<compile_context>
chip_gen: v7x
topology: tpu7x:2x2x1
jax: 0.10.0
libtpu: 0.0.40
codegen_flags: <defaults>
</compile_context>

<pallas_src>
import functools

import jax
import jax.numpy as jnp
from jax.experimental import pallas as pl
from jax.experimental.pallas import tpu as pltpu

_BN_EPS = 1e-5
_VMEM_LIMIT_BYTES = 48 * 1024 * 1024  # under v7x's 64 MiB physical VMEM


def _round_up(x, m):
    return ((x + m - 1) // m) * m


def _cparams(dim_sem):
    return pltpu.CompilerParams(dimension_semantics=dim_sem,
                                vmem_limit_bytes=_VMEM_LIMIT_BYTES)


# ----------------------------------------------------------------------------
# Kernel 1: fused 1x1 conv (matmul) + folded-BN bias + ReLU
# ----------------------------------------------------------------------------
def _matmul_bias_relu_kernel(x_ref, w_ref, b_ref, o_ref):
    acc = jnp.dot(x_ref[...], w_ref[...], preferred_element_type=jnp.float32)
    o_ref[...] = jnp.maximum(acc + b_ref[...], 0.0).astype(o_ref.dtype)


def conv1x1_bn_relu(x2d, w_scaled, bias, *, tm=512, out_dtype=jnp.bfloat16):
    """relu(x2d @ w_scaled + bias).  x2d (M,K) bf16, w (K,N) bf16, bias (1,N) f32."""
    M, K = x2d.shape
    N = w_scaled.shape[1]
    tm_eff = min(tm, _round_up(M, 8))
    m_pad = _round_up(M, tm_eff)
    if m_pad != M:
        x2d = jnp.pad(x2d, ((0, m_pad - M), (0, 0)))
    out = pl.pallas_call(
        _matmul_bias_relu_kernel,
        out_shape=jax.ShapeDtypeStruct((m_pad, N), out_dtype),
        grid=(m_pad // tm_eff,),
        in_specs=[
            pl.BlockSpec((tm_eff, K), lambda i: (i, 0)),
            pl.BlockSpec((K, N), lambda i: (0, 0)),
            pl.BlockSpec((1, N), lambda i: (0, 0)),
        ],
        out_specs=pl.BlockSpec((tm_eff, N), lambda i: (i, 0)),
        compiler_params=_cparams(("parallel",)),
    )(x2d, w_scaled, bias)
    return out[:M]


# ----------------------------------------------------------------------------
# Kernel 2: dilated 3x3 conv + folded-BN bias + ReLU (no im2col in HBM)
# ----------------------------------------------------------------------------
def _dilated3x3_bn_relu_kernel(x_ref, w_ref, b_ref, o_ref, *, d, H, W):
    # x_ref: (1, H+2d, W+2d, Cin) zero-padded image for one batch element.
    # w_ref: (9, Cin, Cout) BN-scaled tap weights, (ky, kx) row-major.
    # 9 statically-shifted dots accumulated in f32 on the MXU.
    acc = None
    for ky in range(3):
        for kx in range(3):
            patch = x_ref[0, pl.ds(ky * d, H), pl.ds(kx * d, W), :]
            patch = patch.reshape(H * W, patch.shape[-1])
            part = jnp.dot(patch, w_ref[ky * 3 + kx],
                           preferred_element_type=jnp.float32)
            acc = part if acc is None else acc + part
    o_ref[0] = jnp.maximum(acc + b_ref[...], 0.0).astype(o_ref.dtype)


def dilated_conv3x3_bn_relu(x_nhwc, w_taps, bias, *, dilation,
                            out_dtype=jnp.bfloat16):
    """Per-batch grid; whole (padded) image resident in VMEM.

    For very large Cin*H*W one would strip-tile H with halo DMA; not needed at
    these block sizes.
    """
    B, H, W, Cin = x_nhwc.shape
    d = int(dilation)
    Cout = w_taps.shape[-1]
    x_pad = jnp.pad(x_nhwc, ((0, 0), (d, d), (d, d), (0, 0)))
    Hp, Wp = H + 2 * d, W + 2 * d
    kernel = functools.partial(_dilated3x3_bn_relu_kernel, d=d, H=H, W=W)
    return pl.pallas_call(
        kernel,
        out_shape=jax.ShapeDtypeStruct((B, H * W, Cout), out_dtype),
        grid=(B,),
        in_specs=[
            pl.BlockSpec((1, Hp, Wp, Cin), lambda b: (b, 0, 0, 0)),
            pl.BlockSpec((9, Cin, Cout), lambda b: (0, 0, 0)),
            pl.BlockSpec((1, Cout), lambda b: (0, 0)),
        ],
        out_specs=pl.BlockSpec((1, H * W, Cout), lambda b: (b, 0, 0)),
        compiler_params=_cparams(("parallel",)),
    )(x_pad, w_taps, bias)


# ----------------------------------------------------------------------------
# Kernel 3: fused concat + projection 1x1 conv + BN + ReLU
#           (+ pooling branch folded in as a per-batch bias)
# ----------------------------------------------------------------------------
def _make_project_kernel(n_br):
    def kernel(*refs):
        br_refs = refs[:n_br]
        w_refs = refs[n_br:2 * n_br]
        bias_ref = refs[2 * n_br]     # (1, 1, N): pool contribution + BN bias
        o_ref = refs[2 * n_br + 1]
        acc = jnp.dot(br_refs[0][0], w_refs[0][...],
                      preferred_element_type=jnp.float32)
        for i in range(1, n_br):
            acc = acc + jnp.dot(br_refs[i][0], w_refs[i][...],
                                preferred_element_type=jnp.float32)
        o_ref[0] = jnp.maximum(acc + bias_ref[0], 0.0).astype(o_ref.dtype)
    return kernel


def project_branches_bn_relu(branches, w_slices, bias_per_batch, *, tm=512):
    """out[b,m,:] = relu(sum_i branches[i][b,m,:] @ w_slices[i] + bias_per_batch[b]).

    branches: list of (B, HW, Cb) bf16; w_slices: list of (Cb, N) bf16;
    bias_per_batch: (B, 1, N) f32.
    """
    n_br = len(branches)
    B, HW, Cb = branches[0].shape
    N = w_slices[0].shape[1]
    tm_eff = min(tm, _round_up(HW, 8))
    hw_pad = _round_up(HW, tm_eff)
    if hw_pad != HW:
        branches = [jnp.pad(br, ((0, 0), (0, hw_pad - HW), (0, 0)))
                    for br in branches]
    br_specs = [pl.BlockSpec((1, tm_eff, Cb), lambda b, m: (b, m, 0))
                for _ in range(n_br)]
    w_specs = [pl.BlockSpec((Cb, N), lambda b, m: (0, 0)) for _ in range(n_br)]
    bias_spec = pl.BlockSpec((1, 1, N), lambda b, m: (b, 0, 0))
    out = pl.pallas_call(
        _make_project_kernel(n_br),
        out_shape=jax.ShapeDtypeStruct((B, hw_pad, N), jnp.float32),
        grid=(B, hw_pad // tm_eff),
        in_specs=br_specs + w_specs + [bias_spec],
        out_specs=pl.BlockSpec((1, tm_eff, N), lambda b, m: (b, m, 0)),
        compiler_params=_cparams(("parallel", "parallel")),
    )(*branches, *w_slices, bias_per_batch)
    return out[:, :HW, :]


# ----------------------------------------------------------------------------
# Kernel 4: tiled global average pool (AdaptiveAvgPool2d(1))
# ----------------------------------------------------------------------------
def _avgpool_accum_kernel(x_ref, o_ref, *, inv_count):
    @pl.when(pl.program_id(0) == 0)
    def _():
        o_ref[...] = jnp.zeros_like(o_ref)

    o_ref[...] += jnp.sum(x_ref[...].astype(jnp.float32), axis=1)

    @pl.when(pl.program_id(0) == pl.num_programs(0) - 1)
    def _():
        o_ref[...] = o_ref[...] * inv_count


def global_avg_pool(x_nhwc, *, ts=512):
    """Mean over spatial dims -> (B, C) f32, tiled over spatial chunks."""
    B, H, W, C = x_nhwc.shape
    HW = H * W
    ts_eff = min(ts, _round_up(HW, 8))
    hw_pad = _round_up(HW, ts_eff)
    x3 = x_nhwc.reshape(B, HW, C)
    if hw_pad != HW:
        x3 = jnp.pad(x3, ((0, 0), (0, hw_pad - HW), (0, 0)))  # zeros: sum unchanged
    kernel = functools.partial(_avgpool_accum_kernel, inv_count=1.0 / float(HW))
    return pl.pallas_call(
        kernel,
        out_shape=jax.ShapeDtypeStruct((B, C), jnp.float32),
        grid=(hw_pad // ts_eff,),
        in_specs=[pl.BlockSpec((B, ts_eff, C), lambda s: (0, s, 0))],
        out_specs=pl.BlockSpec((B, C), lambda s: (0, 0)),
        compiler_params=_cparams(("arbitrary",)),
    )(x3)


# ----------------------------------------------------------------------------
# Parameter setup & BN/weight folding
# ----------------------------------------------------------------------------
def _fold_bn(gamma, beta, running_mean, running_var):
    scale = gamma / jnp.sqrt(running_var + _BN_EPS)
    bias = beta - running_mean * scale
    return scale, bias


def _conv1x1_matrix(w_oihw, scale, dtype=jnp.bfloat16):
    # (Cout, Cin, 1, 1) -> (Cin, Cout) with BN scale folded into columns.
    w = jnp.transpose(w_oihw[:, :, 0, 0], (1, 0)) * scale[None, :]
    return w.astype(dtype)


def _conv3x3_taps(w_oihw, scale, dtype=jnp.bfloat16):
    # (Cout, Cin, 3, 3) -> (9, Cin, Cout), (ky, kx) row-major, BN scale folded.
    w = jnp.transpose(w_oihw, (2, 3, 1, 0))  # (3, 3, Cin, Cout)
    w = w.reshape(9, w.shape[2], w.shape[3]) * scale[None, None, :]
    return w.astype(dtype)


def init_aspp_params(key, in_channels, dilation_rates, out_channels):
    rates = tuple(dilation_rates)
    n_branches = len(rates) + 2  # 1x1 + dilated branches + pooling branch
    params = {"rates": rates}

    def conv_w(k, shape):
        return 0.1 * jax.random.normal(k, shape, dtype=jnp.float32)

    def bn_params(k):
        k1, k2, k3, k4 = jax.random.split(k, 4)
        gamma = 1.0 + 0.1 * jax.random.normal(k1, (out_channels,), jnp.float32)
        beta = 0.1 * jax.random.normal(k2, (out_channels,), jnp.float32)
        rmean = 0.1 * jax.random.normal(k3, (out_channels,), jnp.float32)
        rvar = 1.0 + 0.1 * jax.random.uniform(k4, (out_channels,), jnp.float32)
        return gamma, beta, rmean, rvar

    keys = jax.random.split(key, 2 * (n_branches + 1))
    ki = iter(keys)

    params["w_1x1"] = conv_w(next(ki), (out_channels, in_channels, 1, 1))
    params["bn_1x1"] = bn_params(next(ki))
    params["w_rate"] = []
    params["bn_rate"] = []
    for _ in rates:
        params["w_rate"].append(conv_w(next(ki), (out_channels, in_channels, 3, 3)))
        params["bn_rate"].append(bn_params(next(ki)))
    params["w_pool"] = conv_w(next(ki), (out_channels, in_channels, 1, 1))
    params["bn_pool"] = bn_params(next(ki))
    params["w_proj"] = conv_w(next(ki), (out_channels, n_branches * out_channels, 1, 1))
    params["bn_proj"] = bn_params(next(ki))
    return params


# ----------------------------------------------------------------------------
# ASPP forward
# ----------------------------------------------------------------------------
def aspp_forward(x_nchw, params):
    x = jnp.transpose(x_nchw, (0, 2, 3, 1))          # NCHW -> NHWC (f32)
    B, H, W, Cin = x.shape
    HW = H * W
    x_bf = x.astype(jnp.bfloat16)                    # bf16 MXU feed, f32 accumulation
    Cout = params["w_1x1"].shape[0]

    spatial_branches = []                            # each (B, HW, Cout) bf16

    # --- branch 0: 1x1 conv + BN + ReLU ----------------------------------
    s0, b0 = _fold_bn(*params["bn_1x1"])
    w0 = _conv1x1_matrix(params["w_1x1"], s0)
    y0 = conv1x1_bn_relu(x_bf.reshape(B * HW, Cin), w0,
                         b0.reshape(1, Cout).astype(jnp.float32))
    spatial_branches.append(y0.reshape(B, HW, Cout))

    # --- dilated 3x3 branches (ASPPConv) ----------------------------------
    for rate, w_r, bn_r in zip(params["rates"], params["w_rate"], params["bn_rate"]):
        sr, br = _fold_bn(*bn_r)
        w_taps = _conv3x3_taps(w_r, sr)
        yr = dilated_conv3x3_bn_relu(
            x_bf, w_taps, br.reshape(1, Cout).astype(jnp.float32), dilation=rate)
        spatial_branches.append(yr)

    # --- pooling branch (ASPPPooling) -------------------------------------
    # global avg pool -> 1x1 conv + BN + ReLU; bilinear upsample of a 1x1 map
    # is a constant broadcast, and the projection is linear, so the whole
    # branch folds into a per-batch bias of the projection (identical math,
    # no (B,H,W,Cout) broadcast through HBM). The tiny (B,Cin)x(Cin,Cout)
    # matmul stays in plain XLA.
    pooled = global_avg_pool(x_bf)                               # (B, Cin) f32
    sp, bp = _fold_bn(*params["bn_pool"])
    wp = jnp.transpose(params["w_pool"][:, :, 0, 0], (1, 0)) * sp[None, :]
    yp = jax.nn.relu(pooled @ wp + bp[None, :])                  # (B, Cout) f32

    # --- projection: concat + 1x1 conv + BN + ReLU (+ Dropout eval) -------
    spr, bpr = _fold_bn(*params["bn_proj"])
    n_sp = len(spatial_branches)
    wproj = jnp.transpose(params["w_proj"][:, :, 0, 0], (1, 0)) * spr[None, :]
    # PyTorch concat order: [1x1, dilated rates..., pooling]
    w_slices = [wproj[i * Cout:(i + 1) * Cout].astype(jnp.bfloat16)
                for i in range(n_sp)]
    w_pool_slice = wproj[n_sp * Cout:(n_sp + 1) * Cout]          # f32
    bias_per_batch = (yp @ w_pool_slice + bpr[None, :]).astype(jnp.float32)
    bias_per_batch = bias_per_batch.reshape(B, 1, Cout)

    out = project_branches_bn_relu(spatial_branches, w_slices, bias_per_batch)
    # TODO(synk): Dropout(0.5) is identity in eval mode; no stochastic masking applied.
    out = out.reshape(B, H, W, Cout)
    return jnp.transpose(out, (0, 3, 1, 2))          # NHWC -> NCHW


if __name__ == "__main__":
    key = jax.random.PRNGKey(0)
    k_x, k_p = jax.random.split(key)

    B, Cin, H, W = 2, 4, 16, 16
    dilation_rates = (1, 2, 3)
    Cout = 8

    x = jax.random.normal(k_x, (B, Cin, H, W), dtype=jnp.float32)
    params = init_aspp_params(k_p, Cin, dilation_rates, Cout)

    fwd = jax.jit(functools.partial(aspp_forward, params=params))
    y = fwd(x)
    jax.block_until_ready(y)

    assert y.shape == (B, Cout, H, W), y.shape
    assert bool(jnp.all(jnp.isfinite(y)))
    assert bool(jnp.all(y >= 0.0))  # final ReLU
    print("KERNEL_OK")
</pallas_src>

<mosaic_0001>
module attributes {stable_mosaic.version = 11 : i64} {
  func.func @_dilated3x3_bn_relu_kernel(%arg0: i32, %arg1: memref<1x22x22x4xbf16, #tpu.memory_space<vmem>>, %arg2: memref<9x4x8xbf16, #tpu.memory_space<vmem>>, %arg3: memref<1x8xf32, #tpu.memory_space<vmem>>, %arg4: memref<1x256x8xbf16, #tpu.memory_space<vmem>>) attributes {dimension_semantics = [#tpu.dimension_semantics<parallel>], iteration_bounds = array<i64: 2>, scalar_prefetch = 0 : i64, scratch_operands = 0 : i64, tpu.core_type = #tpu.core_type<tc>, window_params = [{transform_indices = @transform_0, window_bounds = array<i64: 1, 22, 22, 4>}, {pipeline_mode = #tpu.pipeline_mode<synchronous>, transform_indices = @transform_1, window_bounds = array<i64: 9, 4, 8>}, {pipeline_mode = #tpu.pipeline_mode<synchronous>, transform_indices = @transform_2, window_bounds = array<i64: 1, 8>}, {transform_indices = @transform_3, window_bounds = array<i64: 1, 256, 8>}]} {
    %c0 = arith.constant 0 : index
    %c0_0 = arith.constant 0 : index
    %c0_1 = arith.constant 0 : index
    %c0_2 = arith.constant 0 : index
    %0 = vector.load %arg1[%c0, %c0_0, %c0_1, %c0_2] : memref<1x22x22x4xbf16, #tpu.memory_space<vmem>>, vector<1x16x16x4xbf16>
    %1 = vector.shape_cast %0 : vector<1x16x16x4xbf16> to vector<16x16x4xbf16>
    %2 = vector.shape_cast %1 : vector<16x16x4xbf16> to vector<256x4xbf16>
    %c0_3 = arith.constant 0 : index
    %c0_4 = arith.constant 0 : index
    %c0_5 = arith.constant 0 : index
    %3 = vector.load %arg2[%c0_3, %c0_4, %c0_5] : memref<9x4x8xbf16, #tpu.memory_space<vmem>>, vector<1x4x8xbf16>
    %4 = vector.shape_cast %3 : vector<1x4x8xbf16> to vector<4x8xbf16>
    %cst = arith.constant dense<0.000000e+00> : vector<256x8xf32>
    %5 = tpu.matmul %2, %4, %cst {dimension_numbers = #tpu.dot_dimension_numbers<[1], [0], [0], [1], [0, 0, 1, 1], [], []>} : vector<256x4xbf16>, vector<4x8xbf16>, vector<256x8xf32> -> vector<256x8xf32>
    %c0_6 = arith.constant 0 : index
    %c0_7 = arith.constant 0 : index
    %c3 = arith.constant 3 : index
    %c0_8 = arith.constant 0 : index
    %6 = vector.load %arg1[%c0_6, %c0_7, %c3, %c0_8] : memref<1x22x22x4xbf16, #tpu.memory_space<vmem>>, vector<1x16x16x4xbf16>
    %7 = vector.shape_cast %6 : vector<1x16x16x4xbf16> to vector<16x16x4xbf16>
    %8 = vector.shape_cast %7 : vector<16x16x4xbf16> to vector<256x4xbf16>
    %c1 = arith.constant 1 : index
    %c0_9 = arith.constant 0 : index
    %c0_10 = arith.constant 0 : index
    %9 = vector.load %arg2[%c1, %c0_9, %c0_10] : memref<9x4x8xbf16, #tpu.memory_space<vmem>>, vector<1x4x8xbf16>
    %10 = vector.shape_cast %9 : vector<1x4x8xbf16> to vector<4x8xbf16>
    %cst_11 = arith.constant dense<0.000000e+00> : vector<256x8xf32>
    %11 = tpu.matmul %8, %10, %cst_11 {dimension_numbers = #tpu.dot_dimension_numbers<[1], [0], [0], [1], [0, 0, 1, 1], [], []>} : vector<256x4xbf16>, vector<4x8xbf16>, vector<256x8xf32> -> vector<256x8xf32>
    %12 = arith.addf %5, %11 : vector<256x8xf32>
    %c0_12 = arith.constant 0 : index
    %c0_13 = arith.constant 0 : index
    %c6 = arith.constant 6 : index
    %c0_14 = arith.constant 0 : index
    %13 = vector.load %arg1[%c0_12, %c0_13, %c6, %c0_14] : memref<1x22x22x4xbf16, #tpu.memory_space<vmem>>, vector<1x16x16x4xbf16>
    %14 = vector.shape_cast %13 : vector<1x16x16x4xbf16> to vector<16x16x4xbf16>
    %15 = vector.shape_cast %14 : vector<16x16x4xbf16> to vector<256x4xbf16>
    %c2 = arith.constant 2 : index
    %c0_15 = arith.constant 0 : index
    %c0_16 = arith.constant 0 : index
    %16 = vector.load %arg2[%c2, %c0_15, %c0_16] : memref<9x4x8xbf16, #tpu.memory_space<vmem>>, vector<1x4x8xbf16>
    %17 = vector.shape_cast %16 : vector<1x4x8xbf16> to vector<4x8xbf16>
    %cst_17 = arith.constant dense<0.000000e+00> : vector<256x8xf32>
    %18 = tpu.matmul %15, %17, %cst_17 {dimension_numbers = #tpu.dot_dimension_numbers<[1], [0], [0], [1], [0, 0, 1, 1], [], []>} : vector<256x4xbf16>, vector<4x8xbf16>, vector<256x8xf32> -> vector<256x8xf32>
    %19 = arith.addf %12, %18 : vector<256x8xf32>
    %c0_18 = arith.constant 0 : index
    %c3_19 = arith.constant 3 : index
    %c0_20 = arith.constant 0 : index
    %c0_21 = arith.constant 0 : index
    %20 = vector.load %arg1[%c0_18, %c3_19, %c0_20, %c0_21] : memref<1x22x22x4xbf16, #tpu.memory_space<vmem>>, vector<1x16x16x4xbf16>
    %21 = vector.shape_cast %20 : vector<1x16x16x4xbf16> to vector<16x16x4xbf16>
    %22 = vector.shape_cast %21 : vector<16x16x4xbf16> to vector<256x4xbf16>
    %c3_22 = arith.constant 3 : index
    %c0_23 = arith.constant 0 : index
    %c0_24 = arith.constant 0 : index
    %23 = vector.load %arg2[%c3_22, %c0_23, %c0_24] : memref<9x4x8xbf16, #tpu.memory_space<vmem>>, vector<1x4x8xbf16>
    %24 = vector.shape_cast %23 : vector<1x4x8xbf16> to vector<4x8xbf16>
    %cst_25 = arith.constant dense<0.000000e+00> : vector<256x8xf32>
    %25 = tpu.matmul %22, %24, %cst_25 {dimension_numbers = #tpu.dot_dimension_numbers<[1], [0], [0], [1], [0, 0, 1, 1], [], []>} : vector<256x4xbf16>, vector<4x8xbf16>, vector<256x8xf32> -> vector<256x8xf32>
    %26 = arith.addf %19, %25 : vector<256x8xf32>
    %c0_26 = arith.constant 0 : index
    %c3_27 = arith.constant 3 : index
    %c3_28 = arith.constant 3 : index
    %c0_29 = arith.constant 0 : index
    %27 = vector.load %arg1[%c0_26, %c3_27, %c3_28, %c0_29] : memref<1x22x22x4xbf16, #tpu.memory_space<vmem>>, vector<1x16x16x4xbf16>
    %28 = vector.shape_cast %27 : vector<1x16x16x4xbf16> to vector<16x16x4xbf16>
    %29 = vector.shape_cast %28 : vector<16x16x4xbf16> to vector<256x4xbf16>
    %c4 = arith.constant 4 : index
    %c0_30 = arith.constant 0 : index
    %c0_31 = arith.constant 0 : index
    %30 = vector.load %arg2[%c4, %c0_30, %c0_31] : memref<9x4x8xbf16, #tpu.memory_space<vmem>>, vector<1x4x8xbf16>
    %31 = vector.shape_cast %30 : vector<1x4x8xbf16> to vector<4x8xbf16>
    %cst_32 = arith.constant dense<0.000000e+00> : vector<256x8xf32>
    %32 = tpu.matmul %29, %31, %cst_32 {dimension_numbers = #tpu.dot_dimension_numbers<[1], [0], [0], [1], [0, 0, 1, 1], [], []>} : vector<256x4xbf16>, vector<4x8xbf16>, vector<256x8xf32> -> vector<256x8xf32>
    %33 = arith.addf %26, %32 : vector<256x8xf32>
    %c0_33 = arith.constant 0 : index
    %c3_34 = arith.constant 3 : index
    %c6_35 = arith.constant 6 : index
    %c0_36 = arith.constant 0 : index
    %34 = vector.load %arg1[%c0_33, %c3_34, %c6_35, %c0_36] : memref<1x22x22x4xbf16, #tpu.memory_space<vmem>>, vector<1x16x16x4xbf16>
    %35 = vector.shape_cast %34 : vector<1x16x16x4xbf16> to vector<16x16x4xbf16>
    %36 = vector.shape_cast %35 : vector<16x16x4xbf16> to vector<256x4xbf16>
    %c5 = arith.constant 5 : index
    %c0_37 = arith.constant 0 : index
    %c0_38 = arith.constant 0 : index
    %37 = vector.load %arg2[%c5, %c0_37, %c0_38] : memref<9x4x8xbf16, #tpu.memory_space<vmem>>, vector<1x4x8xbf16>
    %38 = vector.shape_cast %37 : vector<1x4x8xbf16> to vector<4x8xbf16>
    %cst_39 = arith.constant dense<0.000000e+00> : vector<256x8xf32>
    %39 = tpu.matmul %36, %38, %cst_39 {dimension_numbers = #tpu.dot_dimension_numbers<[1], [0], [0], [1], [0, 0, 1, 1], [], []>} : vector<256x4xbf16>, vector<4x8xbf16>, vector<256x8xf32> -> vector<256x8xf32>
    %40 = arith.addf %33, %39 : vector<256x8xf32>
    %c0_40 = arith.constant 0 : index
    %c6_41 = arith.constant 6 : index
    %c0_42 = arith.constant 0 : index
    %c0_43 = arith.constant 0 : index
    %41 = vector.load %arg1[%c0_40, %c6_41, %c0_42, %c0_43] : memref<1x22x22x4xbf16, #tpu.memory_space<vmem>>, vector<1x16x16x4xbf16>
    %42 = vector.shape_cast %41 : vector<1x16x16x4xbf16> to vector<16x16x4xbf16>
    %43 = vector.shape_cast %42 : vector<16x16x4xbf16> to vector<256x4xbf16>
    %c6_44 = arith.constant 6 : index
    %c0_45 = arith.constant 0 : index
    %c0_46 = arith.constant 0 : index
    %44 = vector.load %arg2[%c6_44, %c0_45, %c0_46] : memref<9x4x8xbf16, #tpu.memory_space<vmem>>, vector<1x4x8xbf16>
    %45 = vector.shape_cast %44 : vector<1x4x8xbf16> to vector<4x8xbf16>
    %cst_47 = arith.constant dense<0.000000e+00> : vector<256x8xf32>
    %46 = tpu.matmul %43, %45, %cst_47 {dimension_numbers = #tpu.dot_dimension_numbers<[1], [0], [0], [1], [0, 0, 1, 1], [], []>} : vector<256x4xbf16>, vector<4x8xbf16>, vector<256x8xf32> -> vector<256x8xf32>
    %47 = arith.addf %40, %46 : vector<256x8xf32>
    %c0_48 = arith.constant 0 : index
    %c6_49 = arith.constant 6 : index
    %c3_50 = arith.constant 3 : index
    %c0_51 = arith.constant 0 : index
    %48 = vector.load %arg1[%c0_48, %c6_49, %c3_50, %c0_51] : memref<1x22x22x4xbf16, #tpu.memory_space<vmem>>, vector<1x16x16x4xbf16>
    %49 = vector.shape_cast %48 : vector<1x16x16x4xbf16> to vector<16x16x4xbf16>
    %50 = vector.shape_cast %49 : vector<16x16x4xbf16> to vector<256x4xbf16>
    %c7 = arith.constant 7 : index
    %c0_52 = arith.constant 0 : index
    %c0_53 = arith.constant 0 : index
    %51 = vector.load %arg2[%c7, %c0_52, %c0_53] : memref<9x4x8xbf16, #tpu.memory_space<vmem>>, vector<1x4x8xbf16>
    %52 = vector.shape_cast %51 : vector<1x4x8xbf16> to vector<4x8xbf16>
    %cst_54 = arith.constant dense<0.000000e+00> : vector<256x8xf32>
    %53 = tpu.matmul %50, %52, %cst_54 {dimension_numbers = #tpu.dot_dimension_numbers<[1], [0], [0], [1], [0, 0, 1, 1], [], []>} : vector<256x4xbf16>, vector<4x8xbf16>, vector<256x8xf32> -> vector<256x8xf32>
    %54 = arith.addf %47, %53 : vector<256x8xf32>
    %c0_55 = arith.constant 0 : index
    %c6_56 = arith.constant 6 : index
    %c6_57 = arith.constant 6 : index
    %c0_58 = arith.constant 0 : index
    %55 = vector.load %arg1[%c0_55, %c6_56, %c6_57, %c0_58] : memref<1x22x22x4xbf16, #tpu.memory_space<vmem>>, vector<1x16x16x4xbf16>
    %56 = vector.shape_cast %55 : vector<1x16x16x4xbf16> to vector<16x16x4xbf16>
    %57 = vector.shape_cast %56 : vector<16x16x4xbf16> to vector<256x4xbf16>
    %c8 = arith.constant 8 : index
    %c0_59 = arith.constant 0 : index
    %c0_60 = arith.constant 0 : index
    %58 = vector.load %arg2[%c8, %c0_59, %c0_60] : memref<9x4x8xbf16, #tpu.memory_space<vmem>>, vector<1x4x8xbf16>
    %59 = vector.shape_cast %58 : vector<1x4x8xbf16> to vector<4x8xbf16>
    %cst_61 = arith.constant dense<0.000000e+00> : vector<256x8xf32>
    %60 = tpu.matmul %57, %59, %cst_61 {dimension_numbers = #tpu.dot_dimension_numbers<[1], [0], [0], [1], [0, 0, 1, 1], [], []>} : vector<256x4xbf16>, vector<4x8xbf16>, vector<256x8xf32> -> vector<256x8xf32>
    %61 = arith.addf %54, %60 : vector<256x8xf32>
    %c0_62 = arith.constant 0 : index
    %c0_63 = arith.constant 0 : index
    %62 = vector.load %arg3[%c0_62, %c0_63] : memref<1x8xf32, #tpu.memory_space<vmem>>, vector<1x8xf32>
    %63 = vector.broadcast %62 : vector<1x8xf32> to vector<256x8xf32>
    %64 = arith.addf %61, %63 : vector<256x8xf32>
    %cst_64 = arith.constant 0.000000e+00 : f32
    %65 = vector.broadcast %cst_64 : f32 to vector<256x8xf32>
    %66 = arith.maximumf %64, %65 : vector<256x8xf32>
    %67 = arith.truncf %66 : vector<256x8xf32> to vector<256x8xbf16>
    %c0_65 = arith.constant 0 : index
    %c0_66 = arith.constant 0 : index
    %c0_67 = arith.constant 0 : index
    %68 = vector.load %arg4[%c0_65, %c0_66, %c0_67] : memref<1x256x8xbf16, #tpu.memory_space<vmem>>, vector<1x256x8xbf16>
    %69 = vector.shape_cast %68 : vector<1x256x8xbf16> to vector<256x8xbf16>
    %70 = vector.shape_cast %67 : vector<256x8xbf16> to vector<1x256x8xbf16>
    tpu.vector_store %arg4[%c0_65, %c0_66, %c0_67], %70 {strides = array<i32>} : memref<1x256x8xbf16, #tpu.memory_space<vmem>>, vector<1x256x8xbf16>,
    return
  }
  func.func @transform_0(%arg0: i32) -> (i32, i32, i32, i32) {
    %c0_i32 = arith.constant 0 : i32
    %c0_i32_0 = arith.constant 0 : i32
    %c0_i32_1 = arith.constant 0 : i32
    %c0_i32_2 = arith.constant 0 : i32
    return %arg0, %c0_i32, %c0_i32_0, %c0_i32_1 : i32, i32, i32, i32
  }
  func.func @transform_1(%arg0: i32) -> (i32, i32, i32) {
    %c0_i32 = arith.constant 0 : i32
    %c0_i32_0 = arith.constant 0 : i32
    %c0_i32_1 = arith.constant 0 : i32
    %c0_i32_2 = arith.constant 0 : i32
    return %c0_i32, %c0_i32_0, %c0_i32_1 : i32, i32, i32
  }
  func.func @transform_2(%arg0: i32) -> (i32, i32) {
    %c0_i32 = arith.constant 0 : i32
    %c0_i32_0 = arith.constant 0 : i32
    %c0_i32_1 = arith.constant 0 : i32
    return %c0_i32, %c0_i32_0 : i32, i32
  }
  func.func @transform_3(%arg0: i32) -> (i32, i32, i32) {
    %c0_i32 = arith.constant 0 : i32
    %c0_i32_0 = arith.constant 0 : i32
    %c0_i32_1 = arith.constant 0 : i32
    return %arg0, %c0_i32, %c0_i32_0 : i32, i32, i32
  }
}

module attributes {stable_mosaic.version = 11 : i64} {
  func.func @_dilated3x3_bn_relu_kernel(%arg0: i32, %arg1: memref<1x20x20x4xbf16, #tpu.memory_space<vmem>>, %arg2: memref<9x4x8xbf16, #tpu.memory_space<vmem>>, %arg3: memref<1x8xf32, #tpu.memory_space<vmem>>, %arg4: memref<1x256x8xbf16, #tpu.memory_space<vmem>>) attributes {dimension_semantics = [#tpu.dimension_semantics<parallel>], iteration_bounds = array<i64: 2>, scalar_prefetch = 0 : i64, scratch_operands = 0 : i64, tpu.core_type = #tpu.core_type<tc>, window_params = [{transform_indices = @transform_0, window_bounds = array<i64: 1, 20, 20, 4>}, {pipeline_mode = #tpu.pipeline_mode<synchronous>, transform_indices = @transform_1, window_bounds = array<i64: 9, 4, 8>}, {pipeline_mode = #tpu.pipeline_mode<synchronous>, transform_indices = @transform_2, window_bounds = array<i64: 1, 8>}, {transform_indices = @transform_3, window_bounds = array<i64: 1, 256, 8>}]} {
    %c0 = arith.constant 0 : index
    %c0_0 = arith.constant 0 : index
    %c0_1 = arith.constant 0 : index
    %c0_2 = arith.constant 0 : index
    %0 = vector.load %arg1[%c0, %c0_0, %c0_1, %c0_2] : memref<1x20x20x4xbf16, #tpu.memory_space<vmem>>, vector<1x16x16x4xbf16>
    %1 = vector.shape_cast %0 : vector<1x16x16x4xbf16> to vector<16x16x4xbf16>
    %2 = vector.shape_cast %1 : vector<16x16x4xbf16> to vector<256x4xbf16>
    %c0_3 = arith.constant 0 : index
    %c0_4 = arith.constant 0 : index
    %c0_5 = arith.constant 0 : index
    %3 = vector.load %arg2[%c0_3, %c0_4, %c0_5] : memref<9x4x8xbf16, #tpu.memory_space<vmem>>, vector<1x4x8xbf16>
    %4 = vector.shape_cast %3 : vector<1x4x8xbf16> to vector<4x8xbf16>
    %cst = arith.constant dense<0.000000e+00> : vector<256x8xf32>
    %5 = tpu.matmul %2, %4, %cst {dimension_numbers = #tpu.dot_dimension_numbers<[1], [0], [0], [1], [0, 0, 1, 1], [], []>} : vector<256x4xbf16>, vector<4x8xbf16>, vector<256x8xf32> -> vector<256x8xf32>
    %c0_6 = arith.constant 0 : index
    %c0_7 = arith.constant 0 : index
    %c2 = arith.constant 2 : index
    %c0_8 = arith.constant 0 : index
    %6 = vector.load %arg1[%c0_6, %c0_7, %c2, %c0_8] : memref<1x20x20x4xbf16, #tpu.memory_space<vmem>>, vector<1x16x16x4xbf16>
    %7 = vector.shape_cast %6 : vector<1x16x16x4xbf16> to vector<16x16x4xbf16>
    %8 = vector.shape_cast %7 : vector<16x16x4xbf16> to vector<256x4xbf16>
    %c1 = arith.constant 1 : index
    %c0_9 = arith.constant 0 : index
    %c0_10 = arith.constant 0 : index
    %9 = vector.load %arg2[%c1, %c0_9, %c0_10] : memref<9x4x8xbf16, #tpu.memory_space<vmem>>, vector<1x4x8xbf16>
    %10 = vector.shape_cast %9 : vector<1x4x8xbf16> to vector<4x8xbf16>
    %cst_11 = arith.constant dense<0.000000e+00> : vector<256x8xf32>
    %11 = tpu.matmul %8, %10, %cst_11 {dimension_numbers = #tpu.dot_dimension_numbers<[1], [0], [0], [1], [0, 0, 1, 1], [], []>} : vector<256x4xbf16>, vector<4x8xbf16>, vector<256x8xf32> -> vector<256x8xf32>
    %12 = arith.addf %5, %11 : vector<256x8xf32>
    %c0_12 = arith.constant 0 : index
    %c0_13 = arith.constant 0 : index
    %c4 = arith.constant 4 : index
    %c0_14 = arith.constant 0 : index
    %13 = vector.load %arg1[%c0_12, %c0_13, %c4, %c0_14] : memref<1x20x20x4xbf16, #tpu.memory_space<vmem>>, vector<1x16x16x4xbf16>
    %14 = vector.shape_cast %13 : vector<1x16x16x4xbf16> to vector<16x16x4xbf16>
    %15 = vector.shape_cast %14 : vector<16x16x4xbf16> to vector<256x4xbf16>
    %c2_15 = arith.constant 2 : index
    %c0_16 = arith.constant 0 : index
    %c0_17 = arith.constant 0 : index
    %16 = vector.load %arg2[%c2_15, %c0_16, %c0_17] : memref<9x4x8xbf16, #tpu.memory_space<vmem>>, vector<1x4x8xbf16>
    %17 = vector.shape_cast %16 : vector<1x4x8xbf16> to vector<4x8xbf16>
    %cst_18 = arith.constant dense<0.000000e+00> : vector<256x8xf32>
    %18 = tpu.matmul %15, %17, %cst_18 {dimension_numbers = #tpu.dot_dimension_numbers<[1], [0], [0], [1], [0, 0, 1, 1], [], []>} : vector<256x4xbf16>, vector<4x8xbf16>, vector<256x8xf32> -> vector<256x8xf32>
    %19 = arith.addf %12, %18 : vector<256x8xf32>
    %c0_19 = arith.constant 0 : index
    %c2_20 = arith.constant 2 : index
    %c0_21 = arith.constant 0 : index
    %c0_22 = arith.constant 0 : index
    %20 = vector.load %arg1[%c0_19, %c2_20, %c0_21, %c0_22] : memref<1x20x20x4xbf16, #tpu.memory_space<vmem>>, vector<1x16x16x4xbf16>
    %21 = vector.shape_cast %20 : vector<1x16x16x4xbf16> to vector<16x16x4xbf16>
    %22 = vector.shape_cast %21 : vector<16x16x4xbf16> to vector<256x4xbf16>
    %c3 = arith.constant 3 : index
    %c0_23 = arith.constant 0 : index
    %c0_24 = arith.constant 0 : index
    %23 = vector.load %arg2[%c3, %c0_23, %c0_24] : memref<9x4x8xbf16, #tpu.memory_space<vmem>>, vector<1x4x8xbf16>
    %24 = vector.shape_cast %23 : vector<1x4x8xbf16> to vector<4x8xbf16>
    %cst_25 = arith.constant dense<0.000000e+00> : vector<256x8xf32>
    %25 = tpu.matmul %22, %24, %cst_25 {dimension_numbers = #tpu.dot_dimension_numbers<[1], [0], [0], [1], [0, 0, 1, 1], [], []>} : vector<256x4xbf16>, vector<4x8xbf16>, vector<256x8xf32> -> vector<256x8xf32>
    %26 = arith.addf %19, %25 : vector<256x8xf32>
    %c0_26 = arith.constant 0 : index
    %c2_27 = arith.constant 2 : index
    %c2_28 = arith.constant 2 : index
    %c0_29 = arith.constant 0 : index
    %27 = vector.load %arg1[%c0_26, %c2_27, %c2_28, %c0_29] : memref<1x20x20x4xbf16, #tpu.memory_space<vmem>>, vector<1x16x16x4xbf16>
    %28 = vector.shape_cast %27 : vector<1x16x16x4xbf16> to vector<16x16x4xbf16>
    %29 = vector.shape_cast %28 : vector<16x16x4xbf16> to vector<256x4xbf16>
    %c4_30 = arith.constant 4 : index
    %c0_31 = arith.constant 0 : index
    %c0_32 = arith.constant 0 : index
    %30 = vector.load %arg2[%c4_30, %c0_31, %c0_32] : memref<9x4x8xbf16, #tpu.memory_space<vmem>>, vector<1x4x8xbf16>
    %31 = vector.shape_cast %30 : vector<1x4x8xbf16> to vector<4x8xbf16>
    %cst_33 = arith.constant dense<0.000000e+00> : vector<256x8xf32>
    %32 = tpu.matmul %29, %31, %cst_33 {dimension_numbers = #tpu.dot_dimension_numbers<[1], [0], [0], [1], [0, 0, 1, 1], [], []>} : vector<256x4xbf16>, vector<4x8xbf16>, vector<256x8xf32> -> vector<256x8xf32>
    %33 = arith.addf %26, %32 : vector<256x8xf32>
    %c0_34 = arith.constant 0 : index
    %c2_35 = arith.constant 2 : index
    %c4_36 = arith.constant 4 : index
    %c0_37 = arith.constant 0 : index
    %34 = vector.load %arg1[%c0_34, %c2_35, %c4_36, %c0_37] : memref<1x20x20x4xbf16, #tpu.memory_space<vmem>>, vector<1x16x16x4xbf16>
    %35 = vector.shape_cast %34 : vector<1x16x16x4xbf16> to vector<16x16x4xbf16>
    %36 = vector.shape_cast %35 : vector<16x16x4xbf16> to vector<256x4xbf16>
    %c5 = arith.constant 5 : index
    %c0_38 = arith.constant 0 : index
    %c0_39 = arith.constant 0 : index
    %37 = vector.load %arg2[%c5, %c0_38, %c0_39] : memref<9x4x8xbf16, #tpu.memory_space<vmem>>, vector<1x4x8xbf16>
    %38 = vector.shape_cast %37 : vector<1x4x8xbf16> to vector<4x8xbf16>
    %cst_40 = arith.constant dense<0.000000e+00> : vector<256x8xf32>
    %39 = tpu.matmul %36, %38, %cst_40 {dimension_numbers = #tpu.dot_dimension_numbers<[1], [0], [0], [1], [0, 0, 1, 1], [], []>} : vector<256x4xbf16>, vector<4x8xbf16>, vector<256x8xf32> -> vector<256x8xf32>
    %40 = arith.addf %33, %39 : vector<256x8xf32>
    %c0_41 = arith.constant 0 : index
    %c4_42 = arith.constant 4 : index
    %c0_43 = arith.constant 0 : index
    %c0_44 = arith.constant 0 : index
    %41 = vector.load %arg1[%c0_41, %c4_42, %c0_43, %c0_44] : memref<1x20x20x4xbf16, #tpu.memory_space<vmem>>, vector<1x16x16x4xbf16>
    %42 = vector.shape_cast %41 : vector<1x16x16x4xbf16> to vector<16x16x4xbf16>
    %43 = vector.shape_cast %42 : vector<16x16x4xbf16> to vector<256x4xbf16>
    %c6 = arith.constant 6 : index
    %c0_45 = arith.constant 0 : index
    %c0_46 = arith.constant 0 : index
    %44 = vector.load %arg2[%c6, %c0_45, %c0_46] : memref<9x4x8xbf16, #tpu.memory_space<vmem>>, vector<1x4x8xbf16>
    %45 = vector.shape_cast %44 : vector<1x4x8xbf16> to vector<4x8xbf16>
    %cst_47 = arith.constant dense<0.000000e+00> : vector<256x8xf32>
    %46 = tpu.matmul %43, %45, %cst_47 {dimension_numbers = #tpu.dot_dimension_numbers<[1], [0], [0], [1], [0, 0, 1, 1], [], []>} : vector<256x4xbf16>, vector<4x8xbf16>, vector<256x8xf32> -> vector<256x8xf32>
    %47 = arith.addf %40, %46 : vector<256x8xf32>
    %c0_48 = arith.constant 0 : index
    %c4_49 = arith.constant 4 : index
    %c2_50 = arith.constant 2 : index
    %c0_51 = arith.constant 0 : index
    %48 = vector.load %arg1[%c0_48, %c4_49, %c2_50, %c0_51] : memref<1x20x20x4xbf16, #tpu.memory_space<vmem>>, vector<1x16x16x4xbf16>
    %49 = vector.shape_cast %48 : vector<1x16x16x4xbf16> to vector<16x16x4xbf16>
    %50 = vector.shape_cast %49 : vector<16x16x4xbf16> to vector<256x4xbf16>
    %c7 = arith.constant 7 : index
    %c0_52 = arith.constant 0 : index
    %c0_53 = arith.constant 0 : index
    %51 = vector.load %arg2[%c7, %c0_52, %c0_53] : memref<9x4x8xbf16, #tpu.memory_space<vmem>>, vector<1x4x8xbf16>
    %52 = vector.shape_cast %51 : vector<1x4x8xbf16> to vector<4x8xbf16>
    %cst_54 = arith.constant dense<0.000000e+00> : vector<256x8xf32>
    %53 = tpu.matmul %50, %52, %cst_54 {dimension_numbers = #tpu.dot_dimension_numbers<[1], [0], [0], [1], [0, 0, 1, 1], [], []>} : vector<256x4xbf16>, vector<4x8xbf16>, vector<256x8xf32> -> vector<256x8xf32>
    %54 = arith.addf %47, %53 : vector<256x8xf32>
    %c0_55 = arith.constant 0 : index
    %c4_56 = arith.constant 4 : index
    %c4_57 = arith.constant 4 : index
    %c0_58 = arith.constant 0 : index
    %55 = vector.load %arg1[%c0_55, %c4_56, %c4_57, %c0_58] : memref<1x20x20x4xbf16, #tpu.memory_space<vmem>>, vector<1x16x16x4xbf16>
    %56 = vector.shape_cast %55 : vector<1x16x16x4xbf16> to vector<16x16x4xbf16>
    %57 = vector.shape_cast %56 : vector<16x16x4xbf16> to vector<256x4xbf16>
    %c8 = arith.constant 8 : index
    %c0_59 = arith.constant 0 : index
    %c0_60 = arith.constant 0 : index
    %58 = vector.load %arg2[%c8, %c0_59, %c0_60] : memref<9x4x8xbf16, #tpu.memory_space<vmem>>, vector<1x4x8xbf16>
    %59 = vector.shape_cast %58 : vector<1x4x8xbf16> to vector<4x8xbf16>
    %cst_61 = arith.constant dense<0.000000e+00> : vector<256x8xf32>
    %60 = tpu.matmul %57, %59, %cst_61 {dimension_numbers = #tpu.dot_dimension_numbers<[1], [0], [0], [1], [0, 0, 1, 1], [], []>} : vector<256x4xbf16>, vector<4x8xbf16>, vector<256x8xf32> -> vector<256x8xf32>
    %61 = arith.addf %54, %60 : vector<256x8xf32>
    %c0_62 = arith.constant 0 : index
    %c0_63 = arith.constant 0 : index
    %62 = vector.load %arg3[%c0_62, %c0_63] : memref<1x8xf32, #tpu.memory_space<vmem>>, vector<1x8xf32>
    %63 = vector.broadcast %62 : vector<1x8xf32> to vector<256x8xf32>
    %64 = arith.addf %61, %63 : vector<256x8xf32>
    %cst_64 = arith.constant 0.000000e+00 : f32
    %65 = vector.broadcast %cst_64 : f32 to vector<256x8xf32>
    %66 = arith.maximumf %64, %65 : vector<256x8xf32>
    %67 = arith.truncf %66 : vector<256x8xf32> to vector<256x8xbf16>
    %c0_65 = arith.constant 0 : index
    %c0_66 = arith.constant 0 : index
    %c0_67 = arith.constant 0 : index
    %68 = vector.load %arg4[%c0_65, %c0_66, %c0_67] : memref<1x256x8xbf16, #tpu.memory_space<vmem>>, vector<1x256x8xbf16>
    %69 = vector.shape_cast %68 : vector<1x256x8xbf16> to vector<256x8xbf16>
    %70 = vector.shape_cast %67 : vector<256x8xbf16> to vector<1x256x8xbf16>
    tpu.vector_store %arg4[%c0_65, %c0_66, %c0_67], %70 {strides = array<i32>} : memref<1x256x8xbf16, #tpu.memory_space<vmem>>, vector<1x256x8xbf16>,
    return
  }
  func.func @transform_0(%arg0: i32) -> (i32, i32, i32, i32) {
    %c0_i32 = arith.constant 0 : i32
    %c0_i32_0 = arith.constant 0 : i32
    %c0_i32_1 = arith.constant 0 : i32
    %c0_i32_2 = arith.constant 0 : i32
    return %arg0, %c0_i32, %c0_i32_0, %c0_i32_1 : i32, i32, i32, i32
  }
  func.func @transform_1(%arg0: i32) -> (i32, i32, i32) {
    %c0_i32 = arith.constant 0 : i32
    %c0_i32_0 = arith.constant 0 : i32
    %c0_i32_1 = arith.constant 0 : i32
    %c0_i32_2 = arith.constant 0 : i32
    return %c0_i32, %c0_i32_0, %c0_i32_1 : i32, i32, i32
  }
  func.func @transform_2(%arg0: i32) -> (i32, i32) {
    %c0_i32 = arith.constant 0 : i32
    %c0_i32_0 = arith.constant 0 : i32
    %c0_i32_1 = arith.constant 0 : i32
    return %c0_i32, %c0_i32_0 : i32, i32
  }
  func.func @transform_3(%arg0: i32) -> (i32, i32, i32) {
    %c0_i32 = arith.constant 0 : i32
    %c0_i32_0 = arith.constant 0 : i32
    %c0_i32_1 = arith.constant 0 : i32
    return %arg0, %c0_i32, %c0_i32_0 : i32, i32, i32
  }
}

module attributes {stable_mosaic.version = 11 : i64} {
  func.func @_dilated3x3_bn_relu_kernel(%arg0: i32, %arg1: memref<1x18x18x4xbf16, #tpu.memory_space<vmem>>, %arg2: memref<9x4x8xbf16, #tpu.memory_space<vmem>>, %arg3: memref<1x8xf32, #tpu.memory_space<vmem>>, %arg4: memref<1x256x8xbf16, #tpu.memory_space<vmem>>) attributes {dimension_semantics = [#tpu.dimension_semantics<parallel>], iteration_bounds = array<i64: 2>, scalar_prefetch = 0 : i64, scratch_operands = 0 : i64, tpu.core_type = #tpu.core_type<tc>, window_params = [{transform_indices = @transform_0, window_bounds = array<i64: 1, 18, 18, 4>}, {pipeline_mode = #tpu.pipeline_mode<synchronous>, transform_indices = @transform_1, window_bounds = array<i64: 9, 4, 8>}, {pipeline_mode = #tpu.pipeline_mode<synchronous>, transform_indices = @transform_2, window_bounds = array<i64: 1, 8>}, {transform_indices = @transform_3, window_bounds = array<i64: 1, 256, 8>}]} {
    %c0 = arith.constant 0 : index
    %c0_0 = arith.constant 0 : index
    %c0_1 = arith.constant 0 : index
    %c0_2 = arith.constant 0 : index
    %0 = vector.load %arg1[%c0, %c0_0, %c0_1, %c0_2] : memref<1x18x18x4xbf16, #tpu.memory_space<vmem>>, vector<1x16x16x4xbf16>
    %1 = vector.shape_cast %0 : vector<1x16x16x4xbf16> to vector<16x16x4xbf16>
    %2 = vector.shape_cast %1 : vector<16x16x4xbf16> to vector<256x4xbf16>
    %c0_3 = arith.constant 0 : index
    %c0_4 = arith.constant 0 : index
    %c0_5 = arith.constant 0 : index
    %3 = vector.load %arg2[%c0_3, %c0_4, %c0_5] : memref<9x4x8xbf16, #tpu.memory_space<vmem>>, vector<1x4x8xbf16>
    %4 = vector.shape_cast %3 : vector<1x4x8xbf16> to vector<4x8xbf16>
    %cst = arith.constant dense<0.000000e+00> : vector<256x8xf32>
    %5 = tpu.matmul %2, %4, %cst {dimension_numbers = #tpu.dot_dimension_numbers<[1], [0], [0], [1], [0, 0, 1, 1], [], []>} : vector<256x4xbf16>, vector<4x8xbf16>, vector<256x8xf32> -> vector<256x8xf32>
    %c0_6 = arith.constant 0 : index
    %c0_7 = arith.constant 0 : index
    %c1 = arith.constant 1 : index
    %c0_8 = arith.constant 0 : index
    %6 = vector.load %arg1[%c0_6, %c0_7, %c1, %c0_8] : memref<1x18x18x4xbf16, #tpu.memory_space<vmem>>, vector<1x16x16x4xbf16>
    %7 = vector.shape_cast %6 : vector<1x16x16x4xbf16> to vector<16x16x4xbf16>
    %8 = vector.shape_cast %7 : vector<16x16x4xbf16> to vector<256x4xbf16>
    %c1_9 = arith.constant 1 : index
    %c0_10 = arith.constant 0 : index
    %c0_11 = arith.constant 0 : index
    %9 = vector.load %arg2[%c1_9, %c0_10, %c0_11] : memref<9x4x8xbf16, #tpu.memory_space<vmem>>, vector<1x4x8xbf16>
    %10 = vector.shape_cast %9 : vector<1x4x8xbf16> to vector<4x8xbf16>
    %cst_12 = arith.constant dense<0.000000e+00> : vector<256x8xf32>
    %11 = tpu.matmul %8, %10, %cst_12 {dimension_numbers = #tpu.dot_dimension_numbers<[1], [0], [0], [1], [0, 0, 1, 1], [], []>} : vector<256x4xbf16>, vector<4x8xbf16>, vector<256x8xf32> -> vector<256x8xf32>
    %12 = arith.addf %5, %11 : vector<256x8xf32>
    %c0_13 = arith.constant 0 : index
    %c0_14 = arith.constant 0 : index
    %c2 = arith.constant 2 : index
    %c0_15 = arith.constant 0 : index
    %13 = vector.load %arg1[%c0_13, %c0_14, %c2, %c0_15] : memref<1x18x18x4xbf16, #tpu.memory_space<vmem>>, vector<1x16x16x4xbf16>
    %14 = vector.shape_cast %13 : vector<1x16x16x4xbf16> to vector<16x16x4xbf16>
    %15 = vector.shape_cast %14 : vector<16x16x4xbf16> to vector<256x4xbf16>
    %c2_16 = arith.constant 2 : index
    %c0_17 = arith.constant 0 : index
    %c0_18 = arith.constant 0 : index
    %16 = vector.load %arg2[%c2_16, %c0_17, %c0_18] : memref<9x4x8xbf16, #tpu.memory_space<vmem>>, vector<1x4x8xbf16>
    %17 = vector.shape_cast %16 : vector<1x4x8xbf16> to vector<4x8xbf16>
    %cst_19 = arith.constant dense<0.000000e+00> : vector<256x8xf32>
    %18 = tpu.matmul %15, %17, %cst_19 {dimension_numbers = #tpu.dot_dimension_numbers<[1], [0], [0], [1], [0, 0, 1, 1], [], []>} : vector<256x4xbf16>, vector<4x8xbf16>, vector<256x8xf32> -> vector<256x8xf32>
    %19 = arith.addf %12, %18 : vector<256x8xf32>
    %c0_20 = arith.constant 0 : index
    %c1_21 = arith.constant 1 : index
    %c0_22 = arith.constant 0 : index
    %c0_23 = arith.constant 0 : index
    %20 = vector.load %arg1[%c0_20, %c1_21, %c0_22, %c0_23] : memref<1x18x18x4xbf16, #tpu.memory_space<vmem>>, vector<1x16x16x4xbf16>
    %21 = vector.shape_cast %20 : vector<1x16x16x4xbf16> to vector<16x16x4xbf16>
    %22 = vector.shape_cast %21 : vector<16x16x4xbf16> to vector<256x4xbf16>
    %c3 = arith.constant 3 : index
    %c0_24 = arith.constant 0 : index
    %c0_25 = arith.constant 0 : index
    %23 = vector.load %arg2[%c3, %c0_24, %c0_25] : memref<9x4x8xbf16, #tpu.memory_space<vmem>>, vector<1x4x8xbf16>
    %24 = vector.shape_cast %23 : vector<1x4x8xbf16> to vector<4x8xbf16>
    %cst_26 = arith.constant dense<0.000000e+00> : vector<256x8xf32>
    %25 = tpu.matmul %22, %24, %cst_26 {dimension_numbers = #tpu.dot_dimension_numbers<[1], [0], [0], [1], [0, 0, 1, 1], [], []>} : vector<256x4xbf16>, vector<4x8xbf16>, vector<256x8xf32> -> vector<256x8xf32>
    %26 = arith.addf %19, %25 : vector<256x8xf32>
    %c0_27 = arith.constant 0 : index
    %c1_28 = arith.constant 1 : index
    %c1_29 = arith.constant 1 : index
    %c0_30 = arith.constant 0 : index
    %27 = vector.load %arg1[%c0_27, %c1_28, %c1_29, %c0_30] : memref<1x18x18x4xbf16, #tpu.memory_space<vmem>>, vector<1x16x16x4xbf16>
    %28 = vector.shape_cast %27 : vector<1x16x16x4xbf16> to vector<16x16x4xbf16>
    %29 = vector.shape_cast %28 : vector<16x16x4xbf16> to vector<256x4xbf16>
    %c4 = arith.constant 4 : index
    %c0_31 = arith.constant 0 : index
    %c0_32 = arith.constant 0 : index
    %30 = vector.load %arg2[%c4, %c0_31, %c0_32] : memref<9x4x8xbf16, #tpu.memory_space<vmem>>, vector<1x4x8xbf16>
    %31 = vector.shape_cast %30 : vector<1x4x8xbf16> to vector<4x8xbf16>
    %cst_33 = arith.constant dense<0.000000e+00> : vector<256x8xf32>
    %32 = tpu.matmul %29, %31, %cst_33 {dimension_numbers = #tpu.dot_dimension_numbers<[1], [0], [0], [1], [0, 0, 1, 1], [], []>} : vector<256x4xbf16>, vector<4x8xbf16>, vector<256x8xf32> -> vector<256x8xf32>
    %33 = arith.addf %26, %32 : vector<256x8xf32>
    %c0_34 = arith.constant 0 : index
    %c1_35 = arith.constant 1 : index
    %c2_36 = arith.constant 2 : index
    %c0_37 = arith.constant 0 : index
    %34 = vector.load %arg1[%c0_34, %c1_35, %c2_36, %c0_37] : memref<1x18x18x4xbf16, #tpu.memory_space<vmem>>, vector<1x16x16x4xbf16>
    %35 = vector.shape_cast %34 : vector<1x16x16x4xbf16> to vector<16x16x4xbf16>
    %36 = vector.shape_cast %35 : vector<16x16x4xbf16> to vector<256x4xbf16>
    %c5 = arith.constant 5 : index
    %c0_38 = arith.constant 0 : index
    %c0_39 = arith.constant 0 : index
    %37 = vector.load %arg2[%c5, %c0_38, %c0_39] : memref<9x4x8xbf16, #tpu.memory_space<vmem>>, vector<1x4x8xbf16>
    %38 = vector.shape_cast %37 : vector<1x4x8xbf16> to vector<4x8xbf16>
    %cst_40 = arith.constant dense<0.000000e+00> : vector<256x8xf32>
    %39 = tpu.matmul %36, %38, %cst_40 {dimension_numbers = #tpu.dot_dimension_numbers<[1], [0], [0], [1], [0, 0, 1, 1], [], []>} : vector<256x4xbf16>, vector<4x8xbf16>, vector<256x8xf32> -> vector<256x8xf32>
    %40 = arith.addf %33, %39 : vector<256x8xf32>
    %c0_41 = arith.constant 0 : index
    %c2_42 = arith.constant 2 : index
    %c0_43 = arith.constant 0 : index
    %c0_44 = arith.constant 0 : index
    %41 = vector.load %arg1[%c0_41, %c2_42, %c0_43, %c0_44] : memref<1x18x18x4xbf16, #tpu.memory_space<vmem>>, vector<1x16x16x4xbf16>
    %42 = vector.shape_cast %41 : vector<1x16x16x4xbf16> to vector<16x16x4xbf16>
    %43 = vector.shape_cast %42 : vector<16x16x4xbf16> to vector<256x4xbf16>
    %c6 = arith.constant 6 : index
    %c0_45 = arith.constant 0 : index
    %c0_46 = arith.constant 0 : index
    %44 = vector.load %arg2[%c6, %c0_45, %c0_46] : memref<9x4x8xbf16, #tpu.memory_space<vmem>>, vector<1x4x8xbf16>
    %45 = vector.shape_cast %44 : vector<1x4x8xbf16> to vector<4x8xbf16>
    %cst_47 = arith.constant dense<0.000000e+00> : vector<256x8xf32>
    %46 = tpu.matmul %43, %45, %cst_47 {dimension_numbers = #tpu.dot_dimension_numbers<[1], [0], [0], [1], [0, 0, 1, 1], [], []>} : vector<256x4xbf16>, vector<4x8xbf16>, vector<256x8xf32> -> vector<256x8xf32>
    %47 = arith.addf %40, %46 : vector<256x8xf32>
    %c0_48 = arith.constant 0 : index
    %c2_49 = arith.constant 2 : index
    %c1_50 = arith.constant 1 : index
    %c0_51 = arith.constant 0 : index
    %48 = vector.load %arg1[%c0_48, %c2_49, %c1_50, %c0_51] : memref<1x18x18x4xbf16, #tpu.memory_space<vmem>>, vector<1x16x16x4xbf16>
    %49 = vector.shape_cast %48 : vector<1x16x16x4xbf16> to vector<16x16x4xbf16>
    %50 = vector.shape_cast %49 : vector<16x16x4xbf16> to vector<256x4xbf16>
    %c7 = arith.constant 7 : index
    %c0_52 = arith.constant 0 : index
    %c0_53 = arith.constant 0 : index
    %51 = vector.load %arg2[%c7, %c0_52, %c0_53] : memref<9x4x8xbf16, #tpu.memory_space<vmem>>, vector<1x4x8xbf16>
    %52 = vector.shape_cast %51 : vector<1x4x8xbf16> to vector<4x8xbf16>
    %cst_54 = arith.constant dense<0.000000e+00> : vector<256x8xf32>
    %53 = tpu.matmul %50, %52, %cst_54 {dimension_numbers = #tpu.dot_dimension_numbers<[1], [0], [0], [1], [0, 0, 1, 1], [], []>} : vector<256x4xbf16>, vector<4x8xbf16>, vector<256x8xf32> -> vector<256x8xf32>
    %54 = arith.addf %47, %53 : vector<256x8xf32>
    %c0_55 = arith.constant 0 : index
    %c2_56 = arith.constant 2 : index
    %c2_57 = arith.constant 2 : index
    %c0_58 = arith.constant 0 : index
    %55 = vector.load %arg1[%c0_55, %c2_56, %c2_57, %c0_58] : memref<1x18x18x4xbf16, #tpu.memory_space<vmem>>, vector<1x16x16x4xbf16>
    %56 = vector.shape_cast %55 : vector<1x16x16x4xbf16> to vector<16x16x4xbf16>
    %57 = vector.shape_cast %56 : vector<16x16x4xbf16> to vector<256x4xbf16>
    %c8 = arith.constant 8 : index
    %c0_59 = arith.constant 0 : index
    %c0_60 = arith.constant 0 : index
    %58 = vector.load %arg2[%c8, %c0_59, %c0_60] : memref<9x4x8xbf16, #tpu.memory_space<vmem>>, vector<1x4x8xbf16>
    %59 = vector.shape_cast %58 : vector<1x4x8xbf16> to vector<4x8xbf16>
    %cst_61 = arith.constant dense<0.000000e+00> : vector<256x8xf32>
    %60 = tpu.matmul %57, %59, %cst_61 {dimension_numbers = #tpu.dot_dimension_numbers<[1], [0], [0], [1], [0, 0, 1, 1], [], []>} : vector<256x4xbf16>, vector<4x8xbf16>, vector<256x8xf32> -> vector<256x8xf32>
    %61 = arith.addf %54, %60 : vector<256x8xf32>
    %c0_62 = arith.constant 0 : index
    %c0_63 = arith.constant 0 : index
    %62 = vector.load %arg3[%c0_62, %c0_63] : memref<1x8xf32, #tpu.memory_space<vmem>>, vector<1x8xf32>
    %63 = vector.broadcast %62 : vector<1x8xf32> to vector<256x8xf32>
    %64 = arith.addf %61, %63 : vector<256x8xf32>
    %cst_64 = arith.constant 0.000000e+00 : f32
    %65 = vector.broadcast %cst_64 : f32 to vector<256x8xf32>
    %66 = arith.maximumf %64, %65 : vector<256x8xf32>
    %67 = arith.truncf %66 : vector<256x8xf32> to vector<256x8xbf16>
    %c0_65 = arith.constant 0 : index
    %c0_66 = arith.constant 0 : index
    %c0_67 = arith.constant 0 : index
    %68 = vector.load %arg4[%c0_65, %c0_66, %c0_67] : memref<1x256x8xbf16, #tpu.memory_space<vmem>>, vector<1x256x8xbf16>
    %69 = vector.shape_cast %68 : vector<1x256x8xbf16> to vector<256x8xbf16>
    %70 = vector.shape_cast %67 : vector<256x8xbf16> to vector<1x256x8xbf16>
    tpu.vector_store %arg4[%c0_65, %c0_66, %c0_67], %70 {strides = array<i32>} : memref<1x256x8xbf16, #tpu.memory_space<vmem>>, vector<1x256x8xbf16>,
    return
  }
  func.func @transform_0(%arg0: i32) -> (i32, i32, i32, i32) {
    %c0_i32 = arith.constant 0 : i32
    %c0_i32_0 = arith.constant 0 : i32
    %c0_i32_1 = arith.constant 0 : i32
    %c0_i32_2 = arith.constant 0 : i32
    return %arg0, %c0_i32, %c0_i32_0, %c0_i32_1 : i32, i32, i32, i32
  }
  func.func @transform_1(%arg0: i32) -> (i32, i32, i32) {
    %c0_i32 = arith.constant 0 : i32
    %c0_i32_0 = arith.constant 0 : i32
    %c0_i32_1 = arith.constant 0 : i32
    %c0_i32_2 = arith.constant 0 : i32
    return %c0_i32, %c0_i32_0, %c0_i32_1 : i32, i32, i32
  }
  func.func @transform_2(%arg0: i32) -> (i32, i32) {
    %c0_i32 = arith.constant 0 : i32
    %c0_i32_0 = arith.constant 0 : i32
    %c0_i32_1 = arith.constant 0 : i32
    return %c0_i32, %c0_i32_0 : i32, i32
  }
  func.func @transform_3(%arg0: i32) -> (i32, i32, i32) {
    %c0_i32 = arith.constant 0 : i32
    %c0_i32_0 = arith.constant 0 : i32
    %c0_i32_1 = arith.constant 0 : i32
    return %arg0, %c0_i32, %c0_i32_0 : i32, i32, i32
  }
}

module attributes {stable_mosaic.version = 11 : i64} {
  func.func @_matmul_bias_relu_kernel(%arg0: i32, %arg1: memref<512x4xbf16, #tpu.memory_space<vmem>>, %arg2: memref<4x8xbf16, #tpu.memory_space<vmem>>, %arg3: memref<1x8xf32, #tpu.memory_space<vmem>>, %arg4: memref<512x8xbf16, #tpu.memory_space<vmem>>) attributes {dimension_semantics = [#tpu.dimension_semantics<parallel>], iteration_bounds = array<i64: 1>, scalar_prefetch = 0 : i64, scratch_operands = 0 : i64, tpu.core_type = #tpu.core_type<tc>, window_params = [{transform_indices = @transform_0, window_bounds = array<i64: 512, 4>}, {pipeline_mode = #tpu.pipeline_mode<synchronous>, transform_indices = @transform_1, window_bounds = array<i64: 4, 8>}, {pipeline_mode = #tpu.pipeline_mode<synchronous>, transform_indices = @transform_2, window_bounds = array<i64: 1, 8>}, {transform_indices = @transform_3, window_bounds = array<i64: 512, 8>}]} {
    %c0 = arith.constant 0 : index
    %c0_0 = arith.constant 0 : index
    %0 = vector.load %arg1[%c0, %c0_0] : memref<512x4xbf16, #tpu.memory_space<vmem>>, vector<512x4xbf16>
    %c0_1 = arith.constant 0 : index
    %c0_2 = arith.constant 0 : index
    %1 = vector.load %arg2[%c0_1, %c0_2] : memref<4x8xbf16, #tpu.memory_space<vmem>>, vector<4x8xbf16>
    %cst = arith.constant dense<0.000000e+00> : vector<512x8xf32>
    %2 = tpu.matmul %0, %1, %cst {dimension_numbers = #tpu.dot_dimension_numbers<[1], [0], [0], [1], [0, 0, 1, 1], [], []>} : vector<512x4xbf16>, vector<4x8xbf16>, vector<512x8xf32> -> vector<512x8xf32>
    %c0_3 = arith.constant 0 : index
    %c0_4 = arith.constant 0 : index
    %3 = vector.load %arg3[%c0_3, %c0_4] : memref<1x8xf32, #tpu.memory_space<vmem>>, vector<1x8xf32>
    %4 = vector.broadcast %3 : vector<1x8xf32> to vector<512x8xf32>
    %5 = arith.addf %2, %4 : vector<512x8xf32>
    %cst_5 = arith.constant 0.000000e+00 : f32
    %6 = vector.broadcast %cst_5 : f32 to vector<512x8xf32>
    %7 = arith.maximumf %5, %6 : vector<512x8xf32>
    %8 = arith.truncf %7 : vector<512x8xf32> to vector<512x8xbf16>
    %c0_6 = arith.constant 0 : index
    %c0_7 = arith.constant 0 : index
    %9 = vector.load %arg4[%c0_6, %c0_7] : memref<512x8xbf16, #tpu.memory_space<vmem>>, vector<512x8xbf16>
    tpu.vector_store %arg4[%c0_6, %c0_7], %8 {strides = array<i32>} : memref<512x8xbf16, #tpu.memory_space<vmem>>, vector<512x8xbf16>,
    return
  }
  func.func @transform_0(%arg0: i32) -> (i32, i32) {
    %c0_i32 = arith.constant 0 : i32
    %c0_i32_0 = arith.constant 0 : i32
    return %arg0, %c0_i32 : i32, i32
  }
  func.func @transform_1(%arg0: i32) -> (i32, i32) {
    %c0_i32 = arith.constant 0 : i32
    %c0_i32_0 = arith.constant 0 : i32
    %c0_i32_1 = arith.constant 0 : i32
    return %c0_i32, %c0_i32_0 : i32, i32
  }
  func.func @transform_2(%arg0: i32) -> (i32, i32) {
    %c0_i32 = arith.constant 0 : i32
    %c0_i32_0 = arith.constant 0 : i32
    %c0_i32_1 = arith.constant 0 : i32
    return %c0_i32, %c0_i32_0 : i32, i32
  }
  func.func @transform_3(%arg0: i32) -> (i32, i32) {
    %c0_i32 = arith.constant 0 : i32
    %c0_i32_0 = arith.constant 0 : i32
    return %arg0, %c0_i32 : i32, i32
  }
}

module attributes {stable_mosaic.version = 11 : i64} {
  func.func @_avgpool_accum_kernel(%arg0: i32, %arg1: memref<2x256x4xbf16, #tpu.memory_space<vmem>>, %arg2: memref<2x4xf32, #tpu.memory_space<vmem>>) attributes {dimension_semantics = [#tpu.dimension_semantics<arbitrary>], iteration_bounds = array<i64: 1>, scalar_prefetch = 0 : i64, scratch_operands = 0 : i64, tpu.core_type = #tpu.core_type<tc>, window_params = [{transform_indices = @transform_0, window_bounds = array<i64: 2, 256, 4>}, {pipeline_mode = #tpu.pipeline_mode<synchronous>, transform_indices = @transform_1, window_bounds = array<i64: 2, 4>}]} {
    %c0_i32 = arith.constant 0 : i32
    %0 = arith.cmpi eq, %arg0, %c0_i32 : i32
    %1 = arith.extui %0 : i1 to i32
    %c0_i32_0 = arith.constant 0 : i32
    %2 = arith.cmpi ne, %1, %c0_i32_0 : i32
    scf.if %2 {
      %cst_9 = arith.constant 0.000000e+00 : f32
      %12 = vector.broadcast %cst_9 : f32 to vector<2x4xf32>
      %c0_10 = arith.constant 0 : index
      %c0_11 = arith.constant 0 : index
      %13 = vector.load %arg2[%c0_10, %c0_11] : memref<2x4xf32, #tpu.memory_space<vmem>>, vector<2x4xf32>
      tpu.vector_store %arg2[%c0_10, %c0_11], %12 {strides = array<i32>} : memref<2x4xf32, #tpu.memory_space<vmem>>, vector<2x4xf32>,
    } else {
    }
    %c0 = arith.constant 0 : index
    %c0_1 = arith.constant 0 : index
    %3 = vector.load %arg2[%c0, %c0_1] : memref<2x4xf32, #tpu.memory_space<vmem>>, vector<2x4xf32>
    %c0_2 = arith.constant 0 : index
    %c0_3 = arith.constant 0 : index
    %c0_4 = arith.constant 0 : index
    %4 = vector.load %arg1[%c0_2, %c0_3, %c0_4] : memref<2x256x4xbf16, #tpu.memory_space<vmem>>, vector<2x256x4xbf16>
    %5 = arith.extf %4 : vector<2x256x4xbf16> to vector<2x256x4xf32>
    %cst = arith.constant dense<0.000000e+00> : vector<2x4xf32>
    %6 = vector.multi_reduction <add>, %5, %cst [1] : vector<2x256x4xf32> to vector<2x4xf32>
    %7 = arith.addf %3, %6 : vector<2x4xf32>
    %c0_5 = arith.constant 0 : index
    %c0_6 = arith.constant 0 : index
    %8 = vector.load %arg2[%c0_5, %c0_6] : memref<2x4xf32, #tpu.memory_space<vmem>>, vector<2x4xf32>
    tpu.vector_store %arg2[%c0_5, %c0_6], %7 {strides = array<i32>} : memref<2x4xf32, #tpu.memory_space<vmem>>, vector<2x4xf32>,
    %c0_i32_7 = arith.constant 0 : i32
    %9 = arith.cmpi eq, %arg0, %c0_i32_7 : i32
    %10 = arith.extui %9 : i1 to i32
    %c0_i32_8 = arith.constant 0 : i32
    %11 = arith.cmpi ne, %10, %c0_i32_8 : i32
    scf.if %11 {
      %c0_9 = arith.constant 0 : index
      %c0_10 = arith.constant 0 : index
      %12 = vector.load %arg2[%c0_9, %c0_10] : memref<2x4xf32, #tpu.memory_space<vmem>>, vector<2x4xf32>
      %cst_11 = arith.constant 3.906250e-03 : f32
      %13 = vector.broadcast %cst_11 : f32 to vector<2x4xf32>
      %14 = arith.mulf %12, %13 : vector<2x4xf32>
      %c0_12 = arith.constant 0 : index
      %c0_13 = arith.constant 0 : index
      %15 = vector.load %arg2[%c0_12, %c0_13] : memref<2x4xf32, #tpu.memory_space<vmem>>, vector<2x4xf32>
      tpu.vector_store %arg2[%c0_12, %c0_13], %14 {strides = array<i32>} : memref<2x4xf32, #tpu.memory_space<vmem>>, vector<2x4xf32>,
    } else {
    }
    return
  }
  func.func @transform_0(%arg0: i32) -> (i32, i32, i32) {
    %c0_i32 = arith.constant 0 : i32
    %c0_i32_0 = arith.constant 0 : i32
    %c0_i32_1 = arith.constant 0 : i32
    return %c0_i32, %arg0, %c0_i32_0 : i32, i32, i32
  }
  func.func @transform_1(%arg0: i32) -> (i32, i32) {
    %c0_i32 = arith.constant 0 : i32
    %c0_i32_0 = arith.constant 0 : i32
    %c0_i32_1 = arith.constant 0 : i32
    return %c0_i32, %c0_i32_0 : i32, i32
  }
}

module attributes {stable_mosaic.version = 11 : i64} {
  func.func @kernel(%arg0: i32, %arg1: i32, %arg2: memref<1x256x8xbf16, #tpu.memory_space<vmem>>, %arg3: memref<1x256x8xbf16, #tpu.memory_space<vmem>>, %arg4: memref<1x256x8xbf16, #tpu.memory_space<vmem>>, %arg5: memref<1x256x8xbf16, #tpu.memory_space<vmem>>, %arg6: memref<8x8xbf16, #tpu.memory_space<vmem>>, %arg7: memref<8x8xbf16, #tpu.memory_space<vmem>>, %arg8: memref<8x8xbf16, #tpu.memory_space<vmem>>, %arg9: memref<8x8xbf16, #tpu.memory_space<vmem>>, %arg10: memref<1x1x8xf32, #tpu.memory_space<vmem>>, %arg11: memref<1x256x8xf32, #tpu.memory_space<vmem>>) attributes {dimension_semantics = [#tpu.dimension_semantics<parallel>, #tpu.dimension_semantics<parallel>], iteration_bounds = array<i64: 2, 1>, scalar_prefetch = 0 : i64, scratch_operands = 0 : i64, tpu.core_type = #tpu.core_type<tc>, window_params = [{transform_indices = @transform_0, window_bounds = array<i64: 1, 256, 8>}, {transform_indices = @transform_1, window_bounds = array<i64: 1, 256, 8>}, {transform_indices = @transform_2, window_bounds = array<i64: 1, 256, 8>}, {transform_indices = @transform_3, window_bounds = array<i64: 1, 256, 8>}, {pipeline_mode = #tpu.pipeline_mode<synchronous>, transform_indices = @transform_4, window_bounds = array<i64: 8, 8>}, {pipeline_mode = #tpu.pipeline_mode<synchronous>, transform_indices = @transform_5, window_bounds = array<i64: 8, 8>}, {pipeline_mode = #tpu.pipeline_mode<synchronous>, transform_indices = @transform_6, window_bounds = array<i64: 8, 8>}, {pipeline_mode = #tpu.pipeline_mode<synchronous>, transform_indices = @transform_7, window_bounds = array<i64: 8, 8>}, {transform_indices = @transform_8, window_bounds = array<i64: 1, 1, 8>}, {transform_indices = @transform_9, window_bounds = array<i64: 1, 256, 8>}]} {
    %c0 = arith.constant 0 : index
    %c0_0 = arith.constant 0 : index
    %c0_1 = arith.constant 0 : index
    %0 = vector.load %arg2[%c0, %c0_0, %c0_1] : memref<1x256x8xbf16, #tpu.memory_space<vmem>>, vector<1x256x8xbf16>
    %1 = vector.shape_cast %0 : vector<1x256x8xbf16> to vector<256x8xbf16>
    %c0_2 = arith.constant 0 : index
    %c0_3 = arith.constant 0 : index
    %2 = vector.load %arg6[%c0_2, %c0_3] : memref<8x8xbf16, #tpu.memory_space<vmem>>, vector<8x8xbf16>
    %cst = arith.constant dense<0.000000e+00> : vector<256x8xf32>
    %3 = tpu.matmul %1, %2, %cst {dimension_numbers = #tpu.dot_dimension_numbers<[1], [0], [0], [1], [0, 0, 1, 1], [], []>} : vector<256x8xbf16>, vector<8x8xbf16>, vector<256x8xf32> -> vector<256x8xf32>
    %c0_4 = arith.constant 0 : index
    %c0_5 = arith.constant 0 : index
    %c0_6 = arith.constant 0 : index
    %4 = vector.load %arg3[%c0_4, %c0_5, %c0_6] : memref<1x256x8xbf16, #tpu.memory_space<vmem>>, vector<1x256x8xbf16>
    %5 = vector.shape_cast %4 : vector<1x256x8xbf16> to vector<256x8xbf16>
    %c0_7 = arith.constant 0 : index
    %c0_8 = arith.constant 0 : index
    %6 = vector.load %arg7[%c0_7, %c0_8] : memref<8x8xbf16, #tpu.memory_space<vmem>>, vector<8x8xbf16>
    %cst_9 = arith.constant dense<0.000000e+00> : vector<256x8xf32>
    %7 = tpu.matmul %5, %6, %cst_9 {dimension_numbers = #tpu.dot_dimension_numbers<[1], [0], [0], [1], [0, 0, 1, 1], [], []>} : vector<256x8xbf16>, vector<8x8xbf16>, vector<256x8xf32> -> vector<256x8xf32>
    %8 = arith.addf %3, %7 : vector<256x8xf32>
    %c0_10 = arith.constant 0 : index
    %c0_11 = arith.constant 0 : index
    %c0_12 = arith.constant 0 : index
    %9 = vector.load %arg4[%c0_10, %c0_11, %c0_12] : memref<1x256x8xbf16, #tpu.memory_space<vmem>>, vector<1x256x8xbf16>
    %10 = vector.shape_cast %9 : vector<1x256x8xbf16> to vector<256x8xbf16>
    %c0_13 = arith.constant 0 : index
    %c0_14 = arith.constant 0 : index
    %11 = vector.load %arg8[%c0_13, %c0_14] : memref<8x8xbf16, #tpu.memory_space<vmem>>, vector<8x8xbf16>
    %cst_15 = arith.constant dense<0.000000e+00> : vector<256x8xf32>
    %12 = tpu.matmul %10, %11, %cst_15 {dimension_numbers = #tpu.dot_dimension_numbers<[1], [0], [0], [1], [0, 0, 1, 1], [], []>} : vector<256x8xbf16>, vector<8x8xbf16>, vector<256x8xf32> -> vector<256x8xf32>
    %13 = arith.addf %8, %12 : vector<256x8xf32>
    %c0_16 = arith.constant 0 : index
    %c0_17 = arith.constant 0 : index
    %c0_18 = arith.constant 0 : index
    %14 = vector.load %arg5[%c0_16, %c0_17, %c0_18] : memref<1x256x8xbf16, #tpu.memory_space<vmem>>, vector<1x256x8xbf16>
    %15 = vector.shape_cast %14 : vector<1x256x8xbf16> to vector<256x8xbf16>
    %c0_19 = arith.constant 0 : index
    %c0_20 = arith.constant 0 : index
    %16 = vector.load %arg9[%c0_19, %c0_20] : memref<8x8xbf16, #tpu.memory_space<vmem>>, vector<8x8xbf16>
    %cst_21 = arith.constant dense<0.000000e+00> : vector<256x8xf32>
    %17 = tpu.matmul %15, %16, %cst_21 {dimension_numbers = #tpu.dot_dimension_numbers<[1], [0], [0], [1], [0, 0, 1, 1], [], []>} : vector<256x8xbf16>, vector<8x8xbf16>, vector<256x8xf32> -> vector<256x8xf32>
    %18 = arith.addf %13, %17 : vector<256x8xf32>
    %c0_22 = arith.constant 0 : index
    %c0_23 = arith.constant 0 : index
    %c0_24 = arith.constant 0 : index
    %19 = vector.load %arg10[%c0_22, %c0_23, %c0_24] : memref<1x1x8xf32, #tpu.memory_space<vmem>>, vector<1x1x8xf32>
    %20 = vector.shape_cast %19 : vector<1x1x8xf32> to vector<1x8xf32>
    %21 = vector.broadcast %20 : vector<1x8xf32> to vector<256x8xf32>
    %22 = arith.addf %18, %21 : vector<256x8xf32>
    %cst_25 = arith.constant 0.000000e+00 : f32
    %23 = vector.broadcast %cst_25 : f32 to vector<256x8xf32>
    %24 = arith.maximumf %22, %23 : vector<256x8xf32>
    %c0_26 = arith.constant 0 : index
    %c0_27 = arith.constant 0 : index
    %c0_28 = arith.constant 0 : index
    %25 = vector.load %arg11[%c0_26, %c0_27, %c0_28] : memref<1x256x8xf32, #tpu.memory_space<vmem>>, vector<1x256x8xf32>
    %26 = vector.shape_cast %25 : vector<1x256x8xf32> to vector<256x8xf32>
    %27 = vector.shape_cast %24 : vector<256x8xf32> to vector<1x256x8xf32>
    tpu.vector_store %arg11[%c0_26, %c0_27, %c0_28], %27 {strides = array<i32>} : memref<1x256x8xf32, #tpu.memory_space<vmem>>, vector<1x256x8xf32>,
    return
  }
  func.func @transform_0(%arg0: i32, %arg1: i32) -> (i32, i32, i32) {
    %c0_i32 = arith.constant 0 : i32
    %c0_i32_0 = arith.constant 0 : i32
    return %arg0, %arg1, %c0_i32 : i32, i32, i32
  }
  func.func @transform_1(%arg0: i32, %arg1: i32) -> (i32, i32, i32) {
    %c0_i32 = arith.constant 0 : i32
    %c0_i32_0 = arith.constant 0 : i32
    return %arg0, %arg1, %c0_i32 : i32, i32, i32
  }
  func.func @transform_2(%arg0: i32, %arg1: i32) -> (i32, i32, i32) {
    %c0_i32 = arith.constant 0 : i32
    %c0_i32_0 = arith.constant 0 : i32
    return %arg0, %arg1, %c0_i32 : i32, i32, i32
  }
  func.func @transform_3(%arg0: i32, %arg1: i32) -> (i32, i32, i32) {
    %c0_i32 = arith.constant 0 : i32
    %c0_i32_0 = arith.constant 0 : i32
    return %arg0, %arg1, %c0_i32 : i32, i32, i32
  }
  func.func @transform_4(%arg0: i32, %arg1: i32) -> (i32, i32) {
    %c0_i32 = arith.constant 0 : i32
    %c0_i32_0 = arith.constant 0 : i32
    %c0_i32_1 = arith.constant 0 : i32
    return %c0_i32, %c0_i32_0 : i32, i32
  }
  func.func @transform_5(%arg0: i32, %arg1: i32) -> (i32, i32) {
    %c0_i32 = arith.constant 0 : i32
    %c0_i32_0 = arith.constant 0 : i32
    %c0_i32_1 = arith.constant 0 : i32
    return %c0_i32, %c0_i32_0 : i32, i32
  }
  func.func @transform_6(%arg0: i32, %arg1: i32) -> (i32, i32) {
    %c0_i32 = arith.constant 0 : i32
    %c0_i32_0 = arith.constant 0 : i32
    %c0_i32_1 = arith.constant 0 : i32
    return %c0_i32, %c0_i32_0 : i32, i32
  }
  func.func @transform_7(%arg0: i32, %arg1: i32) -> (i32, i32) {
    %c0_i32 = arith.constant 0 : i32
    %c0_i32_0 = arith.constant 0 : i32
    %c0_i32_1 = arith.constant 0 : i32
    return %c0_i32, %c0_i32_0 : i32, i32
  }
  func.func @transform_8(%arg0: i32, %arg1: i32) -> (i32, i32, i32) {
    %c0_i32 = arith.constant 0 : i32
    %c0_i32_0 = arith.constant 0 : i32
    %c0_i32_1 = arith.constant 0 : i32
    return %arg0, %c0_i32, %c0_i32_0 : i32, i32, i32
  }
  func.func @transform_9(%arg0: i32, %arg1: i32) -> (i32, i32, i32) {
    %c0_i32 = arith.constant 0 : i32
    %c0_i32_0 = arith.constant 0 : i32
    return %arg0, %arg1, %c0_i32 : i32, i32, i32
  }
}

</mosaic_0001>

<bundles_post_ra>
// kernel: aspp_forward.6
= control target key start
LH: loop header
LB: loop body
LE: loop exit
PB: predicated region body
PF: predicated region fallthrough
CT: control target
= control target key end

     0   :  { %vm344_vm0 = vcmask 1041408   ;;  %vm247_vm1 = vcmask 31744   ;;  %vm957_vm2 = vcmask 60416   ;;  %s1830_s1 = inlined_call_operand.vmem [shape: bf16[4,8], index: 1, kind: input, shape index: {}]   ;;  %s1831_s0 = inlined_call_operand.vmem [shape: bf16[512,4], index: 0, kind: input, shape index: {}]   ;;  %s1832_s2 = inlined_call_operand.vmem [shape: f32[1,8], index: 2, kind: input, shape index: {}]   ;;  %s1833_s3 = inlined_call_operand.vmem [shape: bf16[512,8], index: 3, kind: output, shape index: {}]  }
   0x1   :  { %v79_v0 = vld [vmem:[%s1830_s1] sm:$0x3]  ;;  %v1324_v4 = vld [vmem:[%s1831_s0 + $0x8] sm:$0xff]   ;;  %v1326_v6 = vld [vmem:[%s1831_s0 + $0x10] sm:$0xff]  }
   0x2   :  { %1320 = vmatprep.subr.msk.bf16.mxu0 %vm344_vm0, %v79_v0  ;;  %1321 = vmatprep.subr.msk.bf16.mxu1 %vm344_vm0, %v79_v0  ;;  %v346_v1 = vsel %vm344_vm0, %v79_v0, 0  ;;  %v1322_v2 = vld [vmem:[%s1831_s0] sm:$0xff]   ;;  %v1325_v5 = vld [vmem:[%s1831_s0 + $0x88] sm:$0xff]   ;;  %v1327_v7 = vld [vmem:[%s1831_s0 + $0x90] sm:$0xff]  }
   0x3   :  { %1253 = vmatpush3.bf16.msra.mxu0 %v346_v1  ;;  %1319 = vmatpush3.bf16.msra.mxu1 %v346_v1  ;;  %v1323_v3 = vld [vmem:[%s1831_s0 + $0x80] sm:$0xff]   ;;  %v1328_v8 = vld [vmem:[%s1831_s0 + $0x18] sm:$0xff]   ;;  %v1332_v12 = vld [vmem:[%s1831_s0 + $0x28] sm:$0xff]  }
   0x4   :  { %1254 = vmatprep.mubr.msk.bf16.mxu0 %vm247_vm1, %v1322_v2  ;;  %1286 = vmatprep.mubr.msk.bf16.mxu1 %vm247_vm1, %v1323_v3  ;;  %v1329_v9 = vld [vmem:[%s1831_s0 + $0x98] sm:$0xff]   ;;  %v1330_v10 = vld [vmem:[%s1831_s0 + $0x20] sm:$0xff]   ;;  %v1333_v13 = vld [vmem:[%s1831_s0 + $0xa8] sm:$0xff]  }
   0x5   :  { %v1331_v11 = vld [vmem:[%s1831_s0 + $0xa0] sm:$0xff]   ;;  %v1334_v14 = vld [vmem:[%s1831_s0 + $0x30] sm:$0xff]   ;;  %v1336_v16 = vld [vmem:[%s1831_s0 + $0x38] sm:$0xff]  }
   0x6   :  { %1255 = vmatmul.mubr.msk.bf16.vlgmr.msra.gmra.mrb[0].mxu0 %vm247_vm1, %v1324_v4  ;;  %1287 = vmatmul.mubr.msk.bf16.vlgmr.msra.gmra.mrb[0].mxu1 %vm247_vm1, %v1325_v5  ;;  %v1335_v15 = vld [vmem:[%s1831_s0 + $0xb0] sm:$0xff]   ;;  %v1337_v17 = vld [vmem:[%s1831_s0 + $0xb8] sm:$0xff]   ;;  %v1338_v18 = vld [vmem:[%s1831_s0 + $0x40] sm:$0xff]  }
   0x7   :  { %1258 = vmatprep.mubr.msk.bf16.mxu0 %vm247_vm1, %v1326_v6  ;;  %1290 = vmatprep.mubr.msk.bf16.mxu1 %vm247_vm1, %v1327_v7  ;;  %v1339_v19 = vld [vmem:[%s1831_s0 + $0xc0] sm:$0xff]   ;;  %v1340_v20 = vld [vmem:[%s1831_s0 + $0x48] sm:$0xff]   ;;  %v1342_v22 = vld [vmem:[%s1831_s0 + $0x50] sm:$0xff]  }
   0x8   :  { %v1341_v21 = vld [vmem:[%s1831_s0 + $0xc8] sm:$0xff]   ;;  %v1343_v23 = vld [vmem:[%s1831_s0 + $0xd0] sm:$0xff]   ;;  %v1344_v24 = vld [vmem:[%s1831_s0 + $0x58] sm:$0xff]  }
   0x9   :  { %v1345_v25 = vld [vmem:[%s1831_s0 + $0xd8] sm:$0xff]   ;;  %v1346_v26 = vld [vmem:[%s1831_s0 + $0x60] sm:$0xff]   ;;  %v1348_v28 = vld [vmem:[%s1831_s0 + $0x68] sm:$0xff]  }
   0xa   :  { %v1347_v27 = vld [vmem:[%s1831_s0 + $0xe0] sm:$0xff]   ;;  %v1349_v29 = vld [vmem:[%s1831_s0 + $0xe8] sm:$0xff]   ;;  %v1350_v30 = vld [vmem:[%s1831_s0 + $0x70] sm:$0xff]  }
   0xb   :  { %v1351_v31 = vld [vmem:[%s1831_s0 + $0xf0] sm:$0xff]   ;;  %v1352_v32 = vld [vmem:[%s1831_s0 + $0x78] sm:$0xff]   ;;  %v1508_v34 = vld [vmem:[%s1832_s2] ss:$0 sm:$0xff] }
   0xc   :  { %v1353_v33 = vld [vmem:[%s1831_s0 + $0xf8] sm:$0xff]  }
   0xe   :  { %1259 = vmatmul.mubr.msk.bf16.gmra.mrb[4].mxu0 %vm247_vm1, %v1328_v8  ;;  %1291 = vmatmul.mubr.msk.bf16.gmra.mrb[4].mxu1 %vm247_vm1, %v1329_v9 }
   0xf   :  { %1262 = vmatprep.mubr.msk.bf16.mxu0 %vm247_vm1, %v1330_v10  ;;  %1294 = vmatprep.mubr.msk.bf16.mxu1 %vm247_vm1, %v1331_v11 }
  0x16   :  { %1263 = vmatmul.mubr.msk.bf16.gmra.mrb[8].mxu0 %vm247_vm1, %v1332_v12  ;;  %1295 = vmatmul.mubr.msk.bf16.gmra.mrb[8].mxu1 %vm247_vm1, %v1333_v13 }
  0x17   :  { %1266 = vmatprep.mubr.msk.bf16.mxu0 %vm247_vm1, %v1334_v14  ;;  %1298 = vmatprep.mubr.msk.bf16.mxu1 %vm247_vm1, %v1335_v15 }
  0x1e   :  { %1267 = vmatmul.mubr.msk.bf16.gmra.mrb[12].mxu0 %vm247_vm1, %v1336_v16  ;;  %1299 = vmatmul.mubr.msk.bf16.gmra.mrb[12].mxu1 %vm247_vm1, %v1337_v17 }
  0x1f   :  { %1270 = vmatprep.mubr.msk.bf16.mxu0 %vm247_vm1, %v1338_v18  ;;  %1302 = vmatprep.mubr.msk.bf16.mxu1 %vm247_vm1, %v1339_v19 }
  0x26   :  { %1271 = vmatmul.mubr.msk.bf16.gmra.mrb[16].mxu0 %vm247_vm1, %v1340_v20  ;;  %1303 = vmatmul.mubr.msk.bf16.gmra.mrb[16].mxu1 %vm247_vm1, %v1341_v21 }
  0x27   :  { %1274 = vmatprep.mubr.msk.bf16.mxu0 %vm247_vm1, %v1342_v22  ;;  %1306 = vmatprep.mubr.msk.bf16.mxu1 %vm247_vm1, %v1343_v23 }
  0x2e   :  { %1275 = vmatmul.mubr.msk.bf16.gmra.mrb[20].mxu0 %vm247_vm1, %v1344_v24  ;;  %1307 = vmatmul.mubr.msk.bf16.gmra.mrb[20].mxu1 %vm247_vm1, %v1345_v25 }
  0x2f   :  { %1278 = vmatprep.mubr.msk.bf16.mxu0 %vm247_vm1, %v1346_v26  ;;  %1310 = vmatprep.mubr.msk.bf16.mxu1 %vm247_vm1, %v1347_v27 }
  0x36   :  { %1279 = vmatmul.mubr.msk.bf16.gmra.mrb[24].mxu0 %vm247_vm1, %v1348_v28  ;;  %1311 = vmatmul.mubr.msk.bf16.gmra.mrb[24].mxu1 %vm247_vm1, %v1349_v29 }
  0x37   :  { %1282 = vmatprep.mubr.msk.bf16.mxu0 %vm247_vm1, %v1350_v30  ;;  %1314 = vmatprep.mubr.msk.bf16.mxu1 %vm247_vm1, %v1351_v31 }
  0x3e   :  { %1283 = vmatmul.mubr.msk.bf16.gmra.mrb[28].mxu0 %vm247_vm1, %v1352_v32  ;;  %1315 = vmatmul.mubr.msk.bf16.gmra.mrb[28].mxu1 %vm247_vm1, %v1353_v33 }
  0xd9   :  { %v1256_v35 = vpop.f32.mrb[0].mxu0  ;;  %v1288_v37 = vpop.f32.mrb[0].mxu1 }
  0xda   :  { %v391_v36 = vadd.f32 %v1256_v35, %v1508_v34  ;;  %v382_v38 = vpop.f32.mrb[1].mxu0  ;;  %v519_v39 = vadd.f32 %v1288_v37, %v1508_v34  ;;  %v510_v41 = vpop.f32.mrb[1].mxu1 }
  0xdb   :  { %v383_v40 = vadd.f32 %v1508_v34, %v382_v38  ;;  %v1257_v42 = vpop.f32.mrb[2].mxu0  ;;  %v511_v44 = vadd.f32 %v1508_v34, %v510_v41  ;;  %v1289_v46 = vpop.f32.mrb[2].mxu1 }
  0xdc   :  { %v639_v43 = vmax.f32 %v391_v36, 0.0  ;;  %v394_v45 = vadd.f32 %v1257_v42, %v1508_v34  ;;  %v385_v47 = vpop.f32.mrb[3].mxu0  ;;  %v671_v48 = vmax.f32 %v519_v39, 0.0  ;;  %v522_v50 = vadd.f32 %v1289_v46, %v1508_v34  ;;  %v513_v52 = vpop.f32.mrb[3].mxu1 }
  0xdd   :  { %v637_v49 = vmax.f32 %v383_v40, 0.0  ;;  %v386_v51 = vadd.f32 %v1508_v34, %v385_v47  ;;  %v669_v54 = vmax.f32 %v511_v44, 0.0  ;;  %v514_v56 = vadd.f32 %v1508_v34, %v513_v52 }
  0xde   :  { %v1157_v53 = vpack.c.bf16 %v639_v43, %v639_v43  ;;  %v640_v55 = vmax.f32 %v394_v45, 0.0  ;;  %v1189_v57 = vpack.c.bf16 %v671_v48, %v671_v48  ;;  %v672_v59 = vmax.f32 %v522_v50, 0.0 }
  0xdf   :  { %v1155_v58 = vpack.c.bf16 %v637_v49, %v637_v49  ;;  %v638_v60 = vmax.f32 %v386_v51, 0.0  ;;  %v1187_v61 = vpack.c.bf16 %v669_v54, %v669_v54  ;;  %v670_v63 = vmax.f32 %v514_v56, 0.0 }
  0xe0   :  { %960 = vst.msk [vmem:[%s1833_s3 + $0x8] sm:$0xf] %vm957_vm2, %v1157_v53  ;;  %v1158_v62 = vpack.c.bf16 %v640_v55, %v640_v55  ;;  %992 = vst.msk [vmem:[%s1833_s3 + $0x88] sm:$0xf] %vm957_vm2, %v1189_v57  ;;  %v1190_v0 = vpack.c.bf16 %v672_v59, %v672_v59 }
  0xe1   :  { %958 = vst.msk [vmem:[%s1833_s3] sm:$0xf] %vm957_vm2, %v1155_v58  ;;  %v1156_v1 = vpack.c.bf16 %v638_v60, %v638_v60  ;;  %v1260_v2 = vpop.f32.mrb[4].mxu0  ;;  %990 = vst.msk [vmem:[%s1833_s3 + $0x80] sm:$0xf] %vm957_vm2, %v1187_v61  ;;  %v1188_v3 = vpack.c.bf16 %v670_v63, %v670_v63  ;;  %v1292_v5 = vpop.f32.mrb[4].mxu1 }
  0xe2   :  { %961 = vst.msk [vmem:[%s1833_s3 + $0xc] sm:$0xf] %vm957_vm2, %v1158_v62  ;;  %v407_v4 = vadd.f32 %v1260_v2, %v1508_v34  ;;  %v398_v6 = vpop.f32.mrb[5].mxu0  ;;  %993 = vst.msk [vmem:[%s1833_s3 + $0x8c] sm:$0xf] %vm957_vm2, %v1190_v0  ;;  %v535_v7 = vadd.f32 %v1292_v5, %v1508_v34  ;;  %v526_v9 = vpop.f32.mrb[5].mxu1 }
  0xe3   :  { %959 = vst.msk [vmem:[%s1833_s3 + $0x4] sm:$0xf] %vm957_vm2, %v1156_v1  ;;  %v399_v8 = vadd.f32 %v1508_v34, %v398_v6  ;;  %v1261_v10 = vpop.f32.mrb[6].mxu0  ;;  %991 = vst.msk [vmem:[%s1833_s3 + $0x84] sm:$0xf] %vm957_vm2, %v1188_v3  ;;  %v527_v12 = vadd.f32 %v1508_v34, %v526_v9  ;;  %v1293_v14 = vpop.f32.mrb[6].mxu1 }
  0xe4   :  { %v643_v11 = vmax.f32 %v407_v4, 0.0  ;;  %v410_v13 = vadd.f32 %v1261_v10, %v1508_v34  ;;  %v401_v15 = vpop.f32.mrb[7].mxu0  ;;  %v675_v16 = vmax.f32 %v535_v7, 0.0  ;;  %v538_v18 = vadd.f32 %v1293_v14, %v1508_v34  ;;  %v529_v20 = vpop.f32.mrb[7].mxu1 }
  0xe5   :  { %v641_v17 = vmax.f32 %v399_v8, 0.0  ;;  %v402_v19 = vadd.f32 %v1508_v34, %v401_v15  ;;  %v673_v22 = vmax.f32 %v527_v12, 0.0  ;;  %v530_v24 = vadd.f32 %v1508_v34, %v529_v20 }
  0xe6   :  { %v1161_v21 = vpack.c.bf16 %v643_v11, %v643_v11  ;;  %v644_v23 = vmax.f32 %v410_v13, 0.0  ;;  %v1193_v25 = vpack.c.bf16 %v675_v16, %v675_v16  ;;  %v676_v27 = vmax.f32 %v538_v18, 0.0 }
  0xe7   :  { %v1159_v26 = vpack.c.bf16 %v641_v17, %v641_v17  ;;  %v642_v28 = vmax.f32 %v402_v19, 0.0  ;;  %v1191_v29 = vpack.c.bf16 %v673_v22, %v673_v22  ;;  %v674_v31 = vmax.f32 %v530_v24, 0.0 }
  0xe8   :  { %964 = vst.msk [vmem:[%s1833_s3 + $0x18] sm:$0xf] %vm957_vm2, %v1161_v21  ;;  %v1162_v30 = vpack.c.bf16 %v644_v23, %v644_v23  ;;  %996 = vst.msk [vmem:[%s1833_s3 + $0x98] sm:$0xf] %vm957_vm2, %v1193_v25  ;;  %v1194_v32 = vpack.c.bf16 %v676_v27, %v676_v27 }
  0xe9   :  { %962 = vst.msk [vmem:[%s1833_s3 + $0x10] sm:$0xf] %vm957_vm2, %v1159_v26  ;;  %v1160_v33 = vpack.c.bf16 %v642_v28, %v642_v28  ;;  %v1264_v35 = vpop.f32.mrb[8].mxu0  ;;  %994 = vst.msk [vmem:[%s1833_s3 + $0x90] sm:$0xf] %vm957_vm2, %v1191_v29  ;;  %v1192_v36 = vpack.c.bf16 %v674_v31, %v674_v31  ;;  %v1296_v38 = vpop.f32.mrb[8].mxu1 }
  0xea   :  { %965 = vst.msk [vmem:[%s1833_s3 + $0x1c] sm:$0xf] %vm957_vm2, %v1162_v30  ;;  %v423_v37 = vadd.f32 %v1264_v35, %v1508_v34  ;;  %v414_v39 = vpop.f32.mrb[9].mxu0  ;;  %997 = vst.msk [vmem:[%s1833_s3 + $0x9c] sm:$0xf] %vm957_vm2, %v1194_v32  ;;  %v551_v40 = vadd.f32 %v1296_v38, %v1508_v34  ;;  %v542_v42 = vpop.f32.mrb[9].mxu1 }
  0xeb   :  { %963 = vst.msk [vmem:[%s1833_s3 + $0x14] sm:$0xf] %vm957_vm2, %v1160_v33  ;;  %v415_v41 = vadd.f32 %v1508_v34, %v414_v39  ;;  %v1265_v43 = vpop.f32.mrb[10].mxu0  ;;  %995 = vst.msk [vmem:[%s1833_s3 + $0x94] sm:$0xf] %vm957_vm2, %v1192_v36  ;;  %v543_v45 = vadd.f32 %v1508_v34, %v542_v42  ;;  %v1297_v47 = vpop.f32.mrb[10].mxu1 }
  0xec   :  { %v647_v44 = vmax.f32 %v423_v37, 0.0  ;;  %v426_v46 = vadd.f32 %v1265_v43, %v1508_v34  ;;  %v417_v48 = vpop.f32.mrb[11].mxu0  ;;  %v679_v49 = vmax.f32 %v551_v40, 0.0  ;;  %v554_v51 = vadd.f32 %v1297_v47, %v1508_v34  ;;  %v545_v53 = vpop.f32.mrb[11].mxu1 }
  0xed   :  { %v645_v50 = vmax.f32 %v415_v41, 0.0  ;;  %v418_v52 = vadd.f32 %v1508_v34, %v417_v48  ;;  %v677_v55 = vmax.f32 %v543_v45, 0.0  ;;  %v546_v57 = vadd.f32 %v1508_v34, %v545_v53 }
  0xee   :  { %v1165_v54 = vpack.c.bf16 %v647_v44, %v647_v44  ;;  %v648_v56 = vmax.f32 %v426_v46, 0.0  ;;  %v1197_v58 = vpack.c.bf16 %v679_v49, %v679_v49  ;;  %v680_v60 = vmax.f32 %v554_v51, 0.0 }
  0xef   :  { %v1163_v59 = vpack.c.bf16 %v645_v50, %v645_v50  ;;  %v646_v61 = vmax.f32 %v418_v52, 0.0  ;;  %v1195_v62 = vpack.c.bf16 %v677_v55, %v677_v55  ;;  %v678_v0 = vmax.f32 %v546_v57, 0.0 }
  0xf0   :  { %968 = vst.msk [vmem:[%s1833_s3 + $0x28] sm:$0xf] %vm957_vm2, %v1165_v54  ;;  %v1166_v63 = vpack.c.bf16 %v648_v56, %v648_v56  ;;  %1000 = vst.msk [vmem:[%s1833_s3 + $0xa8] sm:$0xf] %vm957_vm2, %v1197_v58  ;;  %v1198_v1 = vpack.c.bf16 %v680_v60, %v680_v60 }
  0xf1   :  { %966 = vst.msk [vmem:[%s1833_s3 + $0x20] sm:$0xf] %vm957_vm2, %v1163_v59  ;;  %v1164_v2 = vpack.c.bf16 %v646_v61, %v646_v61  ;;  %v1268_v3 = vpop.f32.mrb[12].mxu0  ;;  %998 = vst.msk [vmem:[%s1833_s3 + $0xa0] sm:$0xf] %vm957_vm2, %v1195_v62  ;;  %v1196_v4 = vpack.c.bf16 %v678_v0, %v678_v0  ;;  %v1300_v6 = vpop.f32.mrb[12].mxu1 }
  0xf2   :  { %969 = vst.msk [vmem:[%s1833_s3 + $0x2c] sm:$0xf] %vm957_vm2, %v1166_v63  ;;  %v439_v5 = vadd.f32 %v1268_v3, %v1508_v34  ;;  %v430_v7 = vpop.f32.mrb[13].mxu0  ;;  %1001 = vst.msk [vmem:[%s1833_s3 + $0xac] sm:$0xf] %vm957_vm2, %v1198_v1  ;;  %v567_v8 = vadd.f32 %v1300_v6, %v1508_v34  ;;  %v558_v10 = vpop.f32.mrb[13].mxu1 }
  0xf3   :  { %967 = vst.msk [vmem:[%s1833_s3 + $0x24] sm:$0xf] %vm957_vm2, %v1164_v2  ;;  %v431_v9 = vadd.f32 %v1508_v34, %v430_v7  ;;  %v1269_v11 = vpop.f32.mrb[14].mxu0  ;;  %999 = vst.msk [vmem:[%s1833_s3 + $0xa4] sm:$0xf] %vm957_vm2, %v1196_v4  ;;  %v559_v13 = vadd.f32 %v1508_v34, %v558_v10  ;;  %v1301_v15 = vpop.f32.mrb[14].mxu1 }
  0xf4   :  { %v651_v12 = vmax.f32 %v439_v5, 0.0  ;;  %v442_v14 = vadd.f32 %v1269_v11, %v1508_v34  ;;  %v433_v16 = vpop.f32.mrb[15].mxu0  ;;  %v683_v17 = vmax.f32 %v567_v8, 0.0  ;;  %v570_v19 = vadd.f32 %v1301_v15, %v1508_v34  ;;  %v561_v21 = vpop.f32.mrb[15].mxu1 }
  0xf5   :  { %v649_v18 = vmax.f32 %v431_v9, 0.0  ;;  %v434_v20 = vadd.f32 %v1508_v34, %v433_v16  ;;  %v681_v23 = vmax.f32 %v559_v13, 0.0  ;;  %v562_v25 = vadd.f32 %v1508_v34, %v561_v21 }
  0xf6   :  { %v1169_v22 = vpack.c.bf16 %v651_v12, %v651_v12  ;;  %v652_v24 = vmax.f32 %v442_v14, 0.0  ;;  %v1201_v26 = vpack.c.bf16 %v683_v17, %v683_v17  ;;  %v684_v28 = vmax.f32 %v570_v19, 0.0 }
  0xf7   :  { %v1167_v27 = vpack.c.bf16 %v649_v18, %v649_v18  ;;  %v650_v29 = vmax.f32 %v434_v20, 0.0  ;;  %v1199_v30 = vpack.c.bf16 %v681_v23, %v681_v23  ;;  %v682_v32 = vmax.f32 %v562_v25, 0.0 }
  0xf8   :  { %972 = vst.msk [vmem:[%s1833_s3 + $0x38] sm:$0xf] %vm957_vm2, %v1169_v22  ;;  %v1170_v31 = vpack.c.bf16 %v652_v24, %v652_v24  ;;  %1004 = vst.msk [vmem:[%s1833_s3 + $0xb8] sm:$0xf] %vm957_vm2, %v1201_v26  ;;  %v1202_v33 = vpack.c.bf16 %v684_v28, %v684_v28 }
  0xf9   :  { %970 = vst.msk [vmem:[%s1833_s3 + $0x30] sm:$0xf] %vm957_vm2, %v1167_v27  ;;  %v1168_v35 = vpack.c.bf16 %v650_v29, %v650_v29  ;;  %v1272_v36 = vpop.f32.mrb[16].mxu0  ;;  %1002 = vst.msk [vmem:[%s1833_s3 + $0xb0] sm:$0xf] %vm957_vm2, %v1199_v30  ;;  %v1200_v37 = vpack.c.bf16 %v682_v32, %v682_v32  ;;  %v1304_v39 = vpop.f32.mrb[16].mxu1 }
  0xfa   :  { %973 = vst.msk [vmem:[%s1833_s3 + $0x3c] sm:$0xf] %vm957_vm2, %v1170_v31  ;;  %v455_v38 = vadd.f32 %v1272_v36, %v1508_v34  ;;  %v446_v40 = vpop.f32.mrb[17].mxu0  ;;  %1005 = vst.msk [vmem:[%s1833_s3 + $0xbc] sm:$0xf] %vm957_vm2, %v1202_v33  ;;  %v583_v41 = vadd.f32 %v1304_v39, %v1508_v34  ;;  %v574_v43 = vpop.f32.mrb[17].mxu1 }
  0xfb   :  { %971 = vst.msk [vmem:[%s1833_s3 + $0x34] sm:$0xf] %vm957_vm2, %v1168_v35  ;;  %v447_v42 = vadd.f32 %v1508_v34, %v446_v40  ;;  %v1273_v44 = vpop.f32.mrb[18].mxu0  ;;  %1003 = vst.msk [vmem:[%s1833_s3 + $0xb4] sm:$0xf] %vm957_vm2, %v1200_v37  ;;  %v575_v46 = vadd.f32 %v1508_v34, %v574_v43  ;;  %v1305_v48 = vpop.f32.mrb[18].mxu1 }
  0xfc   :  { %v655_v45 = vmax.f32 %v455_v38, 0.0  ;;  %v458_v47 = vadd.f32 %v1273_v44, %v1508_v34  ;;  %v449_v49 = vpop.f32.mrb[19].mxu0  ;;  %v687_v50 = vmax.f32 %v583_v41, 0.0  ;;  %v586_v52 = vadd.f32 %v1305_v48, %v1508_v34  ;;  %v577_v54 = vpop.f32.mrb[19].mxu1 }
  0xfd   :  { %v653_v51 = vmax.f32 %v447_v42, 0.0  ;;  %v450_v53 = vadd.f32 %v1508_v34, %v449_v49  ;;  %v685_v56 = vmax.f32 %v575_v46, 0.0  ;;  %v578_v58 = vadd.f32 %v1508_v34, %v577_v54 }
  0xfe   :  { %v1173_v55 = vpack.c.bf16 %v655_v45, %v655_v45  ;;  %v656_v57 = vmax.f32 %v458_v47, 0.0  ;;  %v1205_v59 = vpack.c.bf16 %v687_v50, %v687_v50  ;;  %v688_v61 = vmax.f32 %v586_v52, 0.0 }
  0xff   :  { %v1171_v60 = vpack.c.bf16 %v653_v51, %v653_v51  ;;  %v654_v62 = vmax.f32 %v450_v53, 0.0  ;;  %v1203_v63 = vpack.c.bf16 %v685_v56, %v685_v56  ;;  %v686_v1 = vmax.f32 %v578_v58, 0.0 }
 0x100   :  { %976 = vst.msk [vmem:[%s1833_s3 + $0x48] sm:$0xf] %vm957_vm2, %v1173_v55  ;;  %v1174_v0 = vpack.c.bf16 %v656_v57, %v656_v57  ;;  %1008 = vst.msk [vmem:[%s1833_s3 + $0xc8] sm:$0xf] %vm957_vm2, %v1205_v59  ;;  %v1206_v2 = vpack.c.bf16 %v688_v61, %v688_v61 }
 0x101   :  { %974 = vst.msk [vmem:[%s1833_s3 + $0x40] sm:$0xf] %vm957_vm2, %v1171_v60  ;;  %v1172_v3 = vpack.c.bf16 %v654_v62, %v654_v62  ;;  %v1276_v4 = vpop.f32.mrb[20].mxu0  ;;  %1006 = vst.msk [vmem:[%s1833_s3 + $0xc0] sm:$0xf] %vm957_vm2, %v1203_v63  ;;  %v1204_v5 = vpack.c.bf16 %v686_v1, %v686_v1  ;;  %v1308_v7 = vpop.f32.mrb[20].mxu1 }
 0x102   :  { %977 = vst.msk [vmem:[%s1833_s3 + $0x4c] sm:$0xf] %vm957_vm2, %v1174_v0  ;;  %v471_v6 = vadd.f32 %v1276_v4, %v1508_v34  ;;  %v462_v8 = vpop.f32.mrb[21].mxu0  ;;  %1009 = vst.msk [vmem:[%s1833_s3 + $0xcc] sm:$0xf] %vm957_vm2, %v1206_v2  ;;  %v599_v9 = vadd.f32 %v1308_v7, %v1508_v34  ;;  %v590_v11 = vpop.f32.mrb[21].mxu1 }
 0x103   :  { %975 = vst.msk [vmem:[%s1833_s3 + $0x44] sm:$0xf] %vm957_vm2, %v1172_v3  ;;  %v463_v10 = vadd.f32 %v1508_v34, %v462_v8  ;;  %v1277_v12 = vpop.f32.mrb[22].mxu0  ;;  %1007 = vst.msk [vmem:[%s1833_s3 + $0xc4] sm:$0xf] %vm957_vm2, %v1204_v5  ;;  %v591_v14 = vadd.f32 %v1508_v34, %v590_v11  ;;  %v1309_v16 = vpop.f32.mrb[22].mxu1 }
 0x104   :  { %v659_v13 = vmax.f32 %v471_v6, 0.0  ;;  %v474_v15 = vadd.f32 %v1277_v12, %v1508_v34  ;;  %v465_v17 = vpop.f32.mrb[23].mxu0  ;;  %v691_v18 = vmax.f32 %v599_v9, 0.0  ;;  %v602_v20 = vadd.f32 %v1309_v16, %v1508_v34  ;;  %v593_v22 = vpop.f32.mrb[23].mxu1 }
 0x105   :  { %v657_v19 = vmax.f32 %v463_v10, 0.0  ;;  %v466_v21 = vadd.f32 %v1508_v34, %v465_v17  ;;  %v689_v24 = vmax.f32 %v591_v14, 0.0  ;;  %v594_v26 = vadd.f32 %v1508_v34, %v593_v22 }
 0x106   :  { %v1177_v23 = vpack.c.bf16 %v659_v13, %v659_v13  ;;  %v660_v25 = vmax.f32 %v474_v15, 0.0  ;;  %v1209_v27 = vpack.c.bf16 %v691_v18, %v691_v18  ;;  %v692_v29 = vmax.f32 %v602_v20, 0.0 }
 0x107   :  { %v1175_v28 = vpack.c.bf16 %v657_v19, %v657_v19  ;;  %v658_v30 = vmax.f32 %v466_v21, 0.0  ;;  %v1207_v31 = vpack.c.bf16 %v689_v24, %v689_v24  ;;  %v690_v33 = vmax.f32 %v594_v26, 0.0 }
 0x108   :  { %980 = vst.msk [vmem:[%s1833_s3 + $0x58] sm:$0xf] %vm957_vm2, %v1177_v23  ;;  %v1178_v32 = vpack.c.bf16 %v660_v25, %v660_v25  ;;  %1012 = vst.msk [vmem:[%s1833_s3 + $0xd8] sm:$0xf] %vm957_vm2, %v1209_v27  ;;  %v1210_v35 = vpack.c.bf16 %v692_v29, %v692_v29 }
 0x109   :  { %978 = vst.msk [vmem:[%s1833_s3 + $0x50] sm:$0xf] %vm957_vm2, %v1175_v28  ;;  %v1176_v36 = vpack.c.bf16 %v658_v30, %v658_v30  ;;  %v1280_v37 = vpop.f32.mrb[24].mxu0  ;;  %1010 = vst.msk [vmem:[%s1833_s3 + $0xd0] sm:$0xf] %vm957_vm2, %v1207_v31  ;;  %v1208_v38 = vpack.c.bf16 %v690_v33, %v690_v33  ;;  %v1312_v40 = vpop.f32.mrb[24].mxu1 }
 0x10a   :  { %981 = vst.msk [vmem:[%s1833_s3 + $0x5c] sm:$0xf] %vm957_vm2, %v1178_v32  ;;  %v487_v39 = vadd.f32 %v1280_v37, %v1508_v34  ;;  %v478_v41 = vpop.f32.mrb[25].mxu0  ;;  %1013 = vst.msk [vmem:[%s1833_s3 + $0xdc] sm:$0xf] %vm957_vm2, %v1210_v35  ;;  %v615_v42 = vadd.f32 %v1312_v40, %v1508_v34  ;;  %v606_v44 = vpop.f32.mrb[25].mxu1 }
 0x10b   :  { %979 = vst.msk [vmem:[%s1833_s3 + $0x54] sm:$0xf] %vm957_vm2, %v1176_v36  ;;  %v479_v43 = vadd.f32 %v1508_v34, %v478_v41  ;;  %v1281_v45 = vpop.f32.mrb[26].mxu0  ;;  %1011 = vst.msk [vmem:[%s1833_s3 + $0xd4] sm:$0xf] %vm957_vm2, %v1208_v38  ;;  %v607_v47 = vadd.f32 %v1508_v34, %v606_v44  ;;  %v1313_v49 = vpop.f32.mrb[26].mxu1 }
 0x10c   :  { %v663_v46 = vmax.f32 %v487_v39, 0.0  ;;  %v490_v48 = vadd.f32 %v1281_v45, %v1508_v34  ;;  %v481_v50 = vpop.f32.mrb[27].mxu0  ;;  %v695_v51 = vmax.f32 %v615_v42, 0.0  ;;  %v618_v53 = vadd.f32 %v1313_v49, %v1508_v34  ;;  %v609_v55 = vpop.f32.mrb[27].mxu1 }
 0x10d   :  { %v661_v52 = vmax.f32 %v479_v43, 0.0  ;;  %v482_v54 = vadd.f32 %v1508_v34, %v481_v50  ;;  %v693_v57 = vmax.f32 %v607_v47, 0.0  ;;  %v610_v59 = vadd.f32 %v1508_v34, %v609_v55 }
 0x10e   :  { %v1181_v56 = vpack.c.bf16 %v663_v46, %v663_v46  ;;  %v664_v58 = vmax.f32 %v490_v48, 0.0  ;;  %v1213_v60 = vpack.c.bf16 %v695_v51, %v695_v51  ;;  %v696_v62 = vmax.f32 %v618_v53, 0.0 }
 0x10f   :  { %v1179_v61 = vpack.c.bf16 %v661_v52, %v661_v52  ;;  %v662_v63 = vmax.f32 %v482_v54, 0.0  ;;  %v1211_v0 = vpack.c.bf16 %v693_v57, %v693_v57  ;;  %v694_v2 = vmax.f32 %v610_v59, 0.0 }
 0x110   :  { %984 = vst.msk [vmem:[%s1833_s3 + $0x68] sm:$0xf] %vm957_vm2, %v1181_v56  ;;  %v1182_v1 = vpack.c.bf16 %v664_v58, %v664_v58  ;;  %1016 = vst.msk [vmem:[%s1833_s3 + $0xe8] sm:$0xf] %vm957_vm2, %v1213_v60  ;;  %v1214_v3 = vpack.c.bf16 %v696_v62, %v696_v62 }
 0x111   :  { %982 = vst.msk [vmem:[%s1833_s3 + $0x60] sm:$0xf] %vm957_vm2, %v1179_v61  ;;  %v1180_v4 = vpack.c.bf16 %v662_v63, %v662_v63  ;;  %v1284_v5 = vpop.f32.mrb[28].mxu0  ;;  %1014 = vst.msk [vmem:[%s1833_s3 + $0xe0] sm:$0xf] %vm957_vm2, %v1211_v0  ;;  %v1212_v6 = vpack.c.bf16 %v694_v2, %v694_v2  ;;  %v1316_v8 = vpop.f32.mrb[28].mxu1 }
 0x112   :  { %985 = vst.msk [vmem:[%s1833_s3 + $0x6c] sm:$0xf] %vm957_vm2, %v1182_v1  ;;  %v503_v7 = vadd.f32 %v1284_v5, %v1508_v34  ;;  %v494_v9 = vpop.f32.mrb[29].mxu0  ;;  %1017 = vst.msk [vmem:[%s1833_s3 + $0xec] sm:$0xf] %vm957_vm2, %v1214_v3  ;;  %v631_v10 = vadd.f32 %v1316_v8, %v1508_v34  ;;  %v622_v12 = vpop.f32.mrb[29].mxu1 }
 0x113   :  { %983 = vst.msk [vmem:[%s1833_s3 + $0x64] sm:$0xf] %vm957_vm2, %v1180_v4  ;;  %v495_v11 = vadd.f32 %v1508_v34, %v494_v9  ;;  %v1285_v13 = vpop.f32.mrb[30].mxu0  ;;  %1015 = vst.msk [vmem:[%s1833_s3 + $0xe4] sm:$0xf] %vm957_vm2, %v1212_v6  ;;  %v623_v15 = vadd.f32 %v1508_v34, %v622_v12  ;;  %v1317_v17 = vpop.f32.mrb[30].mxu1 }
 0x114   :  { %v667_v14 = vmax.f32 %v503_v7, 0.0  ;;  %v506_v16 = vadd.f32 %v1285_v13, %v1508_v34  ;;  %v497_v18 = vpop.f32.mrb[31].mxu0  ;;  %v699_v19 = vmax.f32 %v631_v10, 0.0  ;;  %v634_v21 = vadd.f32 %v1317_v17, %v1508_v34  ;;  %v625_v23 = vpop.f32.mrb[31].mxu1 }
 0x115   :  { %v665_v20 = vmax.f32 %v495_v11, 0.0  ;;  %v498_v22 = vadd.f32 %v1508_v34, %v497_v18  ;;  %v697_v25 = vmax.f32 %v623_v15, 0.0  ;;  %v626_v27 = vadd.f32 %v1508_v34, %v625_v23 }
 0x116   :  { %v1185_v24 = vpack.c.bf16 %v667_v14, %v667_v14  ;;  %v668_v26 = vmax.f32 %v506_v16, 0.0  ;;  %v1217_v28 = vpack.c.bf16 %v699_v19, %v699_v19  ;;  %v700_v30 = vmax.f32 %v634_v21, 0.0 }
 0x117   :  { %v1183_v29 = vpack.c.bf16 %v665_v20, %v665_v20  ;;  %v666_v31 = vmax.f32 %v498_v22, 0.0  ;;  %v1215_v32 = vpack.c.bf16 %v697_v25, %v697_v25  ;;  %v698_v35 = vmax.f32 %v626_v27, 0.0 }
 0x118   :  { %988 = vst.msk [vmem:[%s1833_s3 + $0x78] sm:$0xf] %vm957_vm2, %v1185_v24  ;;  %v1186_v33 = vpack.c.bf16 %v668_v26, %v668_v26  ;;  %1020 = vst.msk [vmem:[%s1833_s3 + $0xf8] sm:$0xf] %vm957_vm2, %v1217_v28  ;;  %v1218_v34 = vpack.c.bf16 %v700_v30, %v700_v30 }
 0x119   :  { %986 = vst.msk [vmem:[%s1833_s3 + $0x70] sm:$0xf] %vm957_vm2, %v1183_v29  ;;  %v1184_v36 = vpack.c.bf16 %v666_v31, %v666_v31  ;;  %1018 = vst.msk [vmem:[%s1833_s3 + $0xf0] sm:$0xf] %vm957_vm2, %v1215_v32  ;;  %v1216_v37 = vpack.c.bf16 %v698_v35, %v698_v35 }
 0x11a   :  { %989 = vst.msk [vmem:[%s1833_s3 + $0x7c] sm:$0xf] %vm957_vm2, %v1186_v33  ;;  %1021 = vst.msk [vmem:[%s1833_s3 + $0xfc] sm:$0xf] %vm957_vm2, %v1218_v34 }
 0x11b   :  { %987 = vst.msk [vmem:[%s1833_s3 + $0x74] sm:$0xf] %vm957_vm2, %v1184_v36  ;;  %1019 = vst.msk [vmem:[%s1833_s3 + $0xf4] sm:$0xf] %vm957_vm2, %v1216_v37 }

// kernel: aspp_forward.8
= control target key start
LH: loop header
LB: loop body
LE: loop exit
PB: predicated region body
PF: predicated region fallthrough
CT: control target
= control target key end

     0   :  { %s5879_s12 = smov 0   ;;  %s7123_s0 = inlined_call_operand.vmem [shape: bf16[2,20,20,4], index: 0, kind: input, shape index: {}]   ;;  %s7124_s1 = inlined_call_operand.vmem [shape: bf16[9,4,8], index: 1, kind: input, shape index: {}]   ;;  %s7125_s2 = inlined_call_operand.vmem [shape: f32[1,8], index: 2, kind: input, shape index: {}]   ;;  %s7126_s3 = inlined_call_operand.vmem [shape: bf16[2,256,8], index: 3, kind: output, shape index: {}]  }
   0x1 LB: > { %s4362_s13 = sadd.s32 4294967295, %s5857_s12   ;;  %p4366_p0 = scmp.ge.s32.totalorder %s5857_s12, 1  ;;  %s5857_s12 = sphi %s5879_s12, %s13_s12  }
   0x2   : > { %p137_p1 = scmp.lt.s32.totalorder %s5857_s12, 3 }
   0x4   : > { %p138_p2 = pnand %p4366_p0, %p137_p1 }
   0x5   : > { %v4386_v0 = vld [vmem:[%s7124_s1 + $0x2] sm:$0x3] (!%p138_p2)  ;;  %vm499_vm0 = vcmask (!%p138_p2), 1041408   ;;  %v4629_v1 = vld [vmem:[%s7124_s1 + $0x8] sm:$0x3] (!%p138_p2)  ;;  %p161_p3 = scmp.lt.s32.totalorder (!%p138_p2), %s4362_s13, 1 }
   0x6   : > { %141 = sbr.rel (%p138_p2) target bundleno = 535 (0x217), region = 32  ;;  %5771 = vmatprep.subr.msk.bf16.mxu1 (!%p138_p2), %vm499_vm0, %v4386_v0  ;;  %5775 = vmatprep.subr.msk.bf16.mxu0 (!%p138_p2), %vm499_vm0, %v4629_v1  ;;  %v501_v2 = vsel (!%p138_p2), %vm499_vm0, %v4386_v0, 0  ;;  %v5897_v3 = vsel (!%p138_p2), %vm499_vm0, %v4629_v1, 0  ;;  %v204_v4 = vld [vmem:[%s7124_s1] sm:$0x3] (!%p138_p2)  ;;  %vm285_vm1 = vcmask (!%p138_p2), 1042432  }
   0x7   : > { %5208 = vmatpush3.bf16.msra.mxu1 (!%p138_p2), %v501_v2  ;;  %5344 = vmatpush3.bf16.msra.mxu0 (!%p138_p2), %v5897_v3  ;;  %v4710_v5 = vld [vmem:[%s7124_s1 + $0xa] sm:$0x3] (!%p138_p2)  ;;  %vm286_vm2 = vcmask (!%p138_p2), 1046532   ;;  %vm450_vm4 = vcmask (!%p138_p2), 31744   ;;  %v777_v35 = vsel (!%p138_p2), %vm499_vm0, %v204_v4, 0  ;;  %vm1005_vm5 = vcmask (!%p138_p2), 1045508  }
   0x8   : > { %5772 = vmatprep.subr.msk.bf16.mxu1 (!%p138_p2), %vm499_vm0, %v204_v4  ;;  %5777 = vmatprep.subr.msk.bf16.mxu0 (!%p138_p2), %vm499_vm0, %v4710_v5  ;;  %vm5916_vm3 = vmor (!%p138_p2), %vm285_vm1, %vm286_vm2  ;;  %v2549_v40 = vsel (!%p138_p2), %vm499_vm0, %v4710_v5, 0  ;;  %v5969_v49 = vld [vmem:[%s7124_s1 + $0x4] sm:$0x3] (!%p138_p2)  ;;  %vm4274_vm7 = vcmask (!%p138_p2), 60416  }
   0x9   : > { %vm6121_vm6 = vmor (!%p138_p2), %vm499_vm0, %vm1005_vm5 }
   0xd   : > { %s7132_s13 = smov (!%p161_p3, %s4362_s13), 1 }
   0xe   : > { %s5781_s22 = smul.u32 240, %s7132_s13  ;;  %s5021_s15 = sshll.u32 %s7132_s13, 7 }
   0xf   : > { %s7019_s18 = scalar_lea.vmem %s7126_s3, %s5021_s15 }
  0x10   : > { %s5914_s25 = scalar_lea.vmem %s7123_s0, %s5781_s22 }
  0x11   : > { %v5921_v7 = vld [vmem:[%s5914_s25 + $0x4] sm:$0xf]  ;;  %v205_v8 = vld [vmem:[%s5914_s25] sm:$0xe]  ;;  %v206_v9 = vld [vmem:[%s5914_s25 + $0x8] sm:$0x1] }
  0x12   : > { %v4370_v10 = vrot.slane %v205_v8, 9  ;;  %v290_v11 = vrot.slane %v5921_v7, 5  ;;  %v293_v12 = vrot.slane %v206_v9, 5  ;;  %v4565_v13 = vld [vmem:[%s5914_s25 + $0x18] sm:$0xe] }
  0x13   : > { %v5928_v14 = vld [vmem:[%s5914_s25 + $0x1c] sm:$0xf]  ;;  %v4567_v15 = vld [vmem:[%s5914_s25 + $0x20] sm:$0x1]  ;;  %v4613_v16 = vrot.slane %v4565_v13, 9 }
  0x14   : > { %v291_v17 = vsel %vm5916_vm3, %v4370_v10, %v290_v11  ;;  %v292_v18 = vrot.slane %v290_v11, 4  ;;  %v1870_v19 = vrot.slane %v5928_v14, 5  ;;  %v1873_v20 = vrot.slane %v4567_v15, 5  ;;  %v5935_v21 = vld [vmem:[%s5914_s25 + $0x10] sm:$0xf] }
  0x15   : > { %v2340_v22 = vrot.slane %v5928_v14, 6  ;;  %v207_v23 = vld [vmem:[%s5914_s25 + $0xc] sm:$0xe]  ;;  %v208_v24 = vld [vmem:[%s5914_s25 + $0x14] sm:$0x1]  ;;  %v297_v25 = vrot.slane %v5935_v21, 5 }
  0x16   : > { %v294_v26 = vsel %vm5916_vm3, %v292_v18, %v293_v12  ;;  %v1871_v27 = vsel %vm5916_vm3, %v4613_v16, %v1870_v19  ;;  %v1872_v28 = vrot.slane %v1870_v19, 4  ;;  %v4371_v29 = vrot.slane %v207_v23, 9  ;;  %v4568_v30 = vld [vmem:[%s5914_s25 + $0x24] sm:$0xe]  ;;  %v5947_v31 = vld [vmem:[%s5914_s25 + $0x28] sm:$0xf] }
  0x17   : > { %v4387_v32 = vcombine.low %v291_v17, %v294_v26  ;;  %v299_v33 = vrot.slane %v297_v25, 4  ;;  %v300_v34 = vrot.slane %v208_v24, 5  ;;  %v4570_v36 = vld [vmem:[%s5914_s25 + $0x2c] sm:$0x1]  ;;  %v4614_v39 = vrot.slane %v4568_v30, 9 }
  0x18   : > { %v1874_v37 = vsel %vm5916_vm3, %v1872_v28, %v1873_v20  ;;  %v298_v38 = vsel %vm5916_vm3, %v4371_v29, %v297_v25  ;;  %v5957_v41 = vld [vmem:[%s5914_s25 + $0x1c] sm:$0xf]  ;;  %v209_v42 = vld [vmem:[%s5914_s25 + $0x18] sm:$0xe]  ;;  %v1877_v45 = vrot.slane %v5947_v31, 5  ;;  %v1880_v46 = vrot.slane %v4570_v36, 5 }
  0x19   : > { %5209 = vmatprep.mubr.msk.bf16.mxu1 %vm450_vm4, %v4387_v32  ;;  %v4630_v43 = vcombine.low %v1871_v27, %v1874_v37  ;;  %v301_v44 = vsel %vm5916_vm3, %v299_v33, %v300_v34  ;;  %v210_v47 = vld [vmem:[%s5914_s25 + $0x20] sm:$0x1]  ;;  %v4571_v48 = vld [vmem:[%s5914_s25 + $0x30] sm:$0xe]  ;;  %v5973_v50 = vrot.slane %v2340_v22, 4  ;;  %v2347_v52 = vrot.slane %v5947_v31, 6 }
  0x1a   : > { %v4388_v51 = vcombine.low %v298_v38, %v301_v44  ;;  %v4372_v53 = vrot.slane %v209_v42, 9  ;;  %v5977_v54 = vld [vmem:[%s5914_s25 + $0x34] sm:$0xf]  ;;  %v1878_v55 = vsel %vm5916_vm3, %v4614_v39, %v1877_v45  ;;  %v1879_v56 = vrot.slane %v1877_v45, 4  ;;  %v4573_v59 = vld [vmem:[%s5914_s25 + $0x38] sm:$0x1] }
  0x1b   : > { %5345 = vmatprep.mubr.msk.bf16.mxu0 %vm450_vm4, %v4630_v43  ;;  %v304_v57 = vrot.slane %v5957_v41, 5  ;;  %v307_v58 = vrot.slane %v210_v47, 5  ;;  %v5987_v60 = vrot.slane %v2347_v52, 4  ;;  %v4615_v61 = vrot.slane %v4571_v48, 9  ;;  %v5991_v0 = vld [vmem:[%s5914_s25 + $0x28] sm:$0xf] }
  0x1c   : > { %5210 = vmatmul.mubr.msk.bf16.vlgmr.msra.gmra.mrb[0].mxu1 %vm450_vm4, %v4388_v51  ;;  %v1884_v62 = vrot.slane %v5977_v54, 5  ;;  %v1887_v63 = vrot.slane %v4573_v59, 5  ;;  %v1881_v1 = vsel %vm5916_vm3, %v1879_v56, %v1880_v46  ;;  %v211_v5 = vld [vmem:[%s5914_s25 + $0x24] sm:$0xe]  ;;  %v212_v8 = vld [vmem:[%s5914_s25 + $0x2c] sm:$0x1] }
  0x1d   : > { %5242 = vmatpush3.bf16.msra.mxu1 %v777_v35  ;;  %v305_v2 = vsel %vm5916_vm3, %v4372_v53, %v304_v57  ;;  %v306_v4 = vrot.slane %v304_v57, 4  ;;  %v311_v9 = vrot.slane %v5991_v0, 5  ;;  %v6003_v10 = vld [vmem:[%s7124_s1 + $0xc] sm:$0x3]  ;;  %v4631_v11 = vcombine.low %v1878_v55, %v1881_v1  ;;  %v4574_v16 = vld [vmem:[%s5914_s25 + $0x3c] sm:$0xe] }
  0x1e   : > { %v1885_v12 = vsel %vm5916_vm3, %v4615_v61, %v1884_v62  ;;  %v1886_v13 = vrot.slane %v1884_v62, 4  ;;  %v4373_v15 = vrot.slane %v211_v5, 9  ;;  %v6009_v17 = vld [vmem:[%s5914_s25 + $0x40] sm:$0xf]  ;;  %5773 = vmatprep.subr.msk.bf16.mxu1 %vm499_vm0, %v5969_v49  ;;  %v314_v20 = vrot.slane %v212_v8, 5 }
  0x1f   : > { %v308_v18 = vsel %vm5916_vm3, %v306_v4, %v307_v58  ;;  %v313_v19 = vrot.slane %v311_v9, 4  ;;  %v4576_v23 = vld [vmem:[%s5914_s25 + $0x44] sm:$0x1]  ;;  %v4616_v24 = vrot.slane %v4574_v16, 9  ;;  %5346 = vmatmul.mubr.msk.bf16.vlgmr.msra.gmra.mrb[0].mxu0 %vm450_vm4, %v4631_v11  ;;  %v1891_v28 = vrot.slane %v6009_v17, 5 }
  0x20   : > { %v4389_v25 = vcombine.low %v305_v2, %v308_v18  ;;  %v1888_v26 = vsel %vm5916_vm3, %v1886_v13, %v1887_v63  ;;  %v312_v27 = vsel %vm5916_vm3, %v4373_v15, %v311_v9  ;;  %v6023_v29 = vld [vmem:[%s5914_s25 + $0x34] sm:$0xf]  ;;  %v213_v30 = vld [vmem:[%s5914_s25 + $0x30] sm:$0xe]  ;;  %5378 = vmatpush3.bf16.msra.mxu0 %v2549_v40  ;;  %v1894_v34 = vrot.slane %v4576_v23, 5 }
  0x21   : > { %v4632_v32 = vcombine.low %v1885_v12, %v1888_v26  ;;  %v315_v33 = vsel %vm5916_vm3, %v313_v19, %v314_v20  ;;  %v214_v35 = vld [vmem:[%s5914_s25 + $0x38] sm:$0x1]  ;;  %v4374_v36 = vrot.slane %v213_v30, 9  ;;  %v4577_v37 = vld [vmem:[%s5914_s25 + $0x48] sm:$0xe]  ;;  %v1892_v39 = vsel %vm5916_vm3, %v4616_v24, %v1891_v28  ;;  %5778 = vmatprep.subr.msk.bf16.mxu0 %vm499_vm0, %v6003_v10 }
  0x22   : > { %5213 = vmatprep.mubr.msk.bf16.mxu1 %vm450_vm4, %v4389_v25  ;;  %v4390_v38 = vcombine.low %v312_v27, %v315_v33  ;;  %v1893_v42 = vrot.slane %v1891_v28, 4  ;;  %v318_v40 = vrot.slane %v6023_v29, 5  ;;  %v6035_v43 = vld [vmem:[%s5914_s25 + $0x4c] sm:$0xf]  ;;  %v4579_v44 = vld [vmem:[%s5914_s25 + $0x50] sm:$0x1] }
  0x23   : > { %5349 = vmatprep.mubr.msk.bf16.mxu0 %vm450_vm4, %v4632_v32  ;;  %v321_v45 = vrot.slane %v214_v35, 5  ;;  %v4617_v46 = vrot.slane %v4577_v37, 9  ;;  %v1898_v47 = vrot.slane %v6035_v43, 5  ;;  %v1901_v48 = vrot.slane %v4579_v44, 5  ;;  %v6043_v51 = vld [vmem:[%s5914_s25 + $0x40] sm:$0xf] }
  0x24   : > { %5214 = vmatmul.mubr.msk.bf16.gmra.mrb[4].mxu1 %vm450_vm4, %v4390_v38  ;;  %v1895_v53 = vsel %vm5916_vm3, %v1893_v42, %v1894_v34  ;;  %v319_v55 = vsel %vm5916_vm3, %v4374_v36, %v318_v40  ;;  %v320_v56 = vrot.slane %v318_v40, 4  ;;  %v215_v57 = vld [vmem:[%s5914_s25 + $0x3c] sm:$0xe]  ;;  %v216_v58 = vld [vmem:[%s5914_s25 + $0x44] sm:$0x1]  ;;  %v325_v59 = vrot.slane %v6043_v51, 5 }
  0x25   : > { %v4633_v61 = vcombine.low %v1892_v39, %v1895_v53  ;;  %v1899_v62 = vsel %vm5916_vm3, %v4617_v46, %v1898_v47  ;;  %v1900_v63 = vrot.slane %v1898_v47, 4  ;;  %v4375_v1 = vrot.slane %v215_v57, 9  ;;  %v4580_v2 = vld [vmem:[%s5914_s25 + $0x54] sm:$0xe]  ;;  %v6057_v4 = vld [vmem:[%s5914_s25 + $0x58] sm:$0xf] }
  0x26   : > { %v322_v5 = vsel %vm5916_vm3, %v320_v56, %v321_v45  ;;  %v327_v8 = vrot.slane %v325_v59, 4  ;;  %v328_v9 = vrot.slane %v216_v58, 5  ;;  %v4582_v11 = vld [vmem:[%s5914_s25 + $0x5c] sm:$0x1]  ;;  %v4618_v12 = vrot.slane %v4580_v2, 9 }
  0x27   : > { %v4391_v13 = vcombine.low %v319_v55, %v322_v5  ;;  %v1902_v15 = vsel %vm5916_vm3, %v1900_v63, %v1901_v48  ;;  %v326_v16 = vsel %vm5916_vm3, %v4375_v1, %v325_v59  ;;  %v1905_v18 = vrot.slane %v6057_v4, 5  ;;  %v6068_v19 = vld [vmem:[%s5914_s25 + $0x4c] sm:$0xf]  ;;  %v217_v20 = vld [vmem:[%s5914_s25 + $0x48] sm:$0xe]  ;;  %5350 = vmatmul.mubr.msk.bf16.gmra.mrb[4].mxu0 %vm450_vm4, %v4633_v61 }
  0x28   : > { %v4634_v23 = vcombine.low %v1899_v62, %v1902_v15  ;;  %v329_v24 = vsel %vm5916_vm3, %v327_v8, %v328_v9  ;;  %v1908_v25 = vrot.slane %v4582_v11, 5  ;;  %v218_v26 = vld [vmem:[%s5914_s25 + $0x50] sm:$0x1]  ;;  %v4376_v27 = vrot.slane %v217_v20, 9  ;;  %v4583_v28 = vld [vmem:[%s5914_s25 + $0x60] sm:$0xe] }
  0x29   : > { %5217 = vmatprep.mubr.msk.bf16.mxu1 %vm450_vm4, %v4391_v13  ;;  %v4392_v30 = vcombine.low %v326_v16, %v329_v24  ;;  %v1906_v32 = vsel %vm5916_vm3, %v4618_v12, %v1905_v18  ;;  %v1907_v33 = vrot.slane %v1905_v18, 4  ;;  %v332_v34 = vrot.slane %v6068_v19, 5  ;;  %v6081_v35 = vld [vmem:[%s5914_s25 + $0x64] sm:$0xf]  ;;  %v4585_v36 = vld [vmem:[%s5914_s25 + $0x68] sm:$0x1] }
  0x2a   : > { %5353 = vmatprep.mubr.msk.bf16.mxu0 %vm450_vm4, %v4634_v23  ;;  %v335_v37 = vrot.slane %v218_v26, 5  ;;  %v4619_v38 = vrot.slane %v4583_v28, 9  ;;  %v1912_v39 = vrot.slane %v6081_v35, 5  ;;  %v1915_v42 = vrot.slane %v4585_v36, 5  ;;  %v6087_v40 = vld [vmem:[%s5914_s25 + $0x58] sm:$0xf] }
  0x2b   : > { %v1909_v44 = vsel %vm5916_vm3, %v1907_v33, %v1908_v25  ;;  %v333_v45 = vsel %vm5916_vm3, %v4376_v27, %v332_v34  ;;  %v334_v46 = vrot.slane %v332_v34, 4  ;;  %v219_v47 = vld [vmem:[%s5914_s25 + $0x54] sm:$0xe]  ;;  %v220_v48 = vld [vmem:[%s5914_s25 + $0x5c] sm:$0x1]  ;;  %v339_v53 = vrot.slane %v6087_v40, 5 }
  0x2c   : > { %5218 = vmatmul.mubr.msk.bf16.gmra.mrb[8].mxu1 %vm450_vm4, %v4392_v30  ;;  %v4635_v55 = vcombine.low %v1906_v32, %v1909_v44  ;;  %v1913_v56 = vsel %vm5916_vm3, %v4619_v38, %v1912_v39  ;;  %v1914_v57 = vrot.slane %v1912_v39, 4  ;;  %v4377_v58 = vrot.slane %v219_v47, 9  ;;  %v4586_v59 = vld [vmem:[%s5914_s25 + $0x6c] sm:$0xe]  ;;  %v6101_v61 = vld [vmem:[%s5914_s25 + $0x70] sm:$0xf] }
  0x2d   : > { %v336_v62 = vsel %vm5916_vm3, %v334_v46, %v335_v37  ;;  %v341_v63 = vrot.slane %v339_v53, 4  ;;  %v342_v1 = vrot.slane %v220_v48, 5  ;;  %v4588_v2 = vld [vmem:[%s5914_s25 + $0x74] sm:$0x1]  ;;  %v4620_v5 = vrot.slane %v4586_v59, 9 }
  0x2e   : > { %v4393_v8 = vcombine.low %v333_v45, %v336_v62  ;;  %v1916_v9 = vsel %vm5916_vm3, %v1914_v57, %v1915_v42  ;;  %v340_v11 = vsel %vm5916_vm3, %v4377_v58, %v339_v53  ;;  %v1919_v12 = vrot.slane %v6101_v61, 5  ;;  %v6112_v13 = vld [vmem:[%s5914_s25 + $0x64] sm:$0xf]  ;;  %v221_v15 = vld [vmem:[%s5914_s25 + $0x60] sm:$0xe] }
  0x2f   : > { %v4636_v16 = vcombine.low %v1913_v56, %v1916_v9  ;;  %v343_v18 = vsel %vm5916_vm3, %v341_v63, %v342_v1  ;;  %v1922_v20 = vrot.slane %v4588_v2, 5  ;;  %v222_v23 = vld [vmem:[%s5914_s25 + $0x68] sm:$0x1]  ;;  %v4378_v24 = vrot.slane %v221_v15, 9  ;;  %v4662_v25 = vld [vmem:[%s5914_s25 + $0x18] sm:$0xc]  ;;  %5354 = vmatmul.mubr.msk.bf16.gmra.mrb[8].mxu0 %vm450_vm4, %v4635_v55 }
  0x30   : > { %5221 = vmatprep.mubr.msk.bf16.mxu1 %vm450_vm4, %v4393_v8  ;;  %v4394_v27 = vcombine.low %v340_v11, %v343_v18  ;;  %v1920_v28 = vsel %vm5916_vm3, %v4620_v5, %v1919_v12  ;;  %v1921_v30 = vrot.slane %v1919_v12, 4  ;;  %v346_v32 = vrot.slane %v6112_v13, 5  ;;  %v4663_v33 = vld [vmem:[%s5914_s25 + $0x20] sm:$0x3]  ;;  %v6132_v34 = vld [vmem:[%s5914_s25 + $0x70] sm:$0xf] }
  0x31   : > { %5357 = vmatprep.mubr.msk.bf16.mxu0 %vm450_vm4, %v4636_v16  ;;  %v349_v36 = vrot.slane %v222_v23, 5  ;;  %v4694_v37 = vrot.slane %v4662_v25, 10  ;;  %v2343_v38 = vrot.slane %v4663_v33, 6  ;;  %v223_v39 = vld [vmem:[%s5914_s25 + $0x6c] sm:$0xe]  ;;  %v353_v42 = vrot.slane %v6132_v34, 5 }
  0x32   : > { %v1923_v44 = vsel %vm5916_vm3, %v1921_v30, %v1922_v20  ;;  %v347_v45 = vsel %vm5916_vm3, %v4378_v24, %v346_v32  ;;  %v348_v46 = vrot.slane %v346_v32, 4  ;;  %v224_v47 = vld [vmem:[%s5914_s25 + $0x74] sm:$0x1]  ;;  %v4379_v48 = vrot.slane %v223_v39, 9  ;;  %v4664_v53 = vld [vmem:[%s5914_s25 + $0x24] sm:$0xc] }
  0x33   : > { %v4637_v55 = vcombine.low %v1920_v28, %v1923_v44  ;;  %v2341_v56 = vsel %vm6121_vm6, %v4694_v37, %v2340_v22  ;;  %v2344_v57 = vsel %vm6121_vm6, %v5973_v50, %v2343_v38  ;;  %v355_v58 = vrot.slane %v353_v42, 4  ;;  %v4665_v59 = vld [vmem:[%s5914_s25 + $0x2c] sm:$0x3]  ;;  %v6152_v62 = vld [vmem:[%s5914_s25 + $0x7c] sm:$0xf] }
  0x34   : > { %5222 = vmatmul.mubr.msk.bf16.gmra.mrb[12].mxu1 %vm450_vm4, %v4394_v27  ;;  %v350_v63 = vsel %vm5916_vm3, %v348_v46, %v349_v36  ;;  %v4711_v1 = vcombine.low %v2341_v56, %v2344_v57  ;;  %v354_v14 = vsel %vm5916_vm3, %v4379_v48, %v353_v42  ;;  %v356_v22 = vrot.slane %v224_v47, 5  ;;  %v225_v2 = vld [vmem:[%s5914_s25 + $0x78] sm:$0xe]  ;;  %v226_v5 = vld [vmem:[%s5914_s25 + $0x80] sm:$0x1] }
  0x35   : > { %v4395_v8 = vcombine.low %v347_v45, %v350_v63  ;;  %v4695_v50 = vrot.slane %v4664_v53, 10  ;;  %v2350_v9 = vrot.slane %v4665_v59, 6  ;;  %v4380_v11 = vrot.slane %v225_v2, 9  ;;  %v4666_v12 = vld [vmem:[%s5914_s25 + $0x30] sm:$0xc] }
  0x36   : > { %v357_v15 = vsel %vm5916_vm3, %v355_v58, %v356_v22  ;;  %v360_v16 = vrot.slane %v6152_v62, 5  ;;  %v363_v18 = vrot.slane %v226_v5, 5  ;;  %v4667_v20 = vld [vmem:[%s5914_s25 + $0x38] sm:$0x3]  ;;  %v4696_v23 = vrot.slane %v4666_v12, 10 }
  0x37   : > { %5225 = vmatprep.mubr.msk.bf16.mxu1 %vm450_vm4, %v4395_v8  ;;  %v4396_v24 = vcombine.low %v354_v14, %v357_v15  ;;  %v2348_v25 = vsel %vm6121_vm6, %v4695_v50, %v2347_v52  ;;  %v2908_v27 = vsel %vm499_vm0, %v6003_v10, 0  ;;  %v2354_v28 = vrot.slane %v5977_v54, 6  ;;  %v6175_v30 = vld [vmem:[%s5914_s25 + $0x88] sm:$0xf]  ;;  %v227_v32 = vld [vmem:[%s5914_s25 + $0x84] sm:$0xe]  ;;  %5358 = vmatmul.mubr.msk.bf16.gmra.mrb[12].mxu0 %vm450_vm4, %v4637_v55 }
  0x38   : > { %v2351_v33 = vsel %vm6121_vm6, %v5987_v60, %v2350_v9  ;;  %v361_v31 = vsel %vm5916_vm3, %v4380_v11, %v360_v16  ;;  %v362_v52 = vrot.slane %v360_v16, 4  ;;  %v2357_v36 = vrot.slane %v4667_v20, 6  ;;  %v228_v37 = vld [vmem:[%s5914_s25 + $0x8c] sm:$0x1]  ;;  %v4668_v10 = vld [vmem:[%s5914_s25 + $0x3c] sm:$0xc]  ;;  %5379 = vmatprep.mubr.msk.bf16.mxu0 %vm450_vm4, %v4711_v1 }
  0x39   : > { %v2355_v54 = vsel %vm6121_vm6, %v4696_v23, %v2354_v28  ;;  %v2356_v38 = vrot.slane %v2354_v28, 4  ;;  %v4381_v39 = vrot.slane %v227_v32, 9  ;;  %v367_v42 = vrot.slane %v6175_v30, 5  ;;  %v4669_v60 = vld [vmem:[%s5914_s25 + $0x44] sm:$0x3] }
  0x3a   : > { %v364_v44 = vsel %vm5916_vm3, %v362_v52, %v363_v18  ;;  %v370_v45 = vrot.slane %v228_v37, 5  ;;  %v4697_v46 = vrot.slane %v4668_v10, 10  ;;  %v2361_v47 = vrot.slane %v6009_v17, 6  ;;  %v6195_v48 = vld [vmem:[%s5914_s25 + $0x94] sm:$0xf] }
  0x3b   : > { %v4712_v53 = vcombine.low %v2348_v25, %v2351_v33  ;;  %v4397_v55 = vcombine.low %v361_v31, %v364_v44  ;;  %v2358_v56 = vsel %vm6121_vm6, %v2356_v38, %v2357_v36  ;;  %v369_v57 = vrot.slane %v367_v42, 4  ;;  %v229_v58 = vld [vmem:[%s5914_s25 + $0x90] sm:$0xe]  ;;  %v230_v59 = vld [vmem:[%s5914_s25 + $0x98] sm:$0x1] }
  0x3c   : > { %5226 = vmatmul.mubr.msk.bf16.gmra.mrb[16].mxu1 %vm450_vm4, %v4396_v24  ;;  %v4713_v63 = vcombine.low %v2355_v54, %v2358_v56  ;;  %v368_v1 = vsel %vm5916_vm3, %v4381_v39, %v367_v42  ;;  %v2363_v17 = vrot.slane %v2361_v47, 4  ;;  %v2364_v14 = vrot.slane %v4669_v60, 6  ;;  %v4670_v22 = vld [vmem:[%s5914_s25 + $0x48] sm:$0xc]  ;;  %v4671_v2 = vld [vmem:[%s5914_s25 + $0x50] sm:$0x3] }
  0x3d   : > { %5229 = vmatprep.mubr.msk.bf16.mxu1 %vm450_vm4, %v4397_v55  ;;  %v371_v5 = vsel %vm5916_vm3, %v369_v57, %v370_v45  ;;  %v4382_v8 = vrot.slane %v229_v58, 9  ;;  %v374_v50 = vrot.slane %v6195_v48, 5  ;;  %v377_v9 = vrot.slane %v230_v59, 5  ;;  %v6211_v11 = vld [vmem:[%s5914_s25 + $0xa0] sm:$0xf] }
  0x3e   : > { %v2362_v12 = vsel %vm6121_vm6, %v4697_v46, %v2361_v47  ;;  %v4698_v15 = vrot.slane %v4670_v22, 10  ;;  %v2368_v16 = vrot.slane %v6035_v43, 6  ;;  %v231_v18 = vld [vmem:[%s5914_s25 + $0x9c] sm:$0xe]  ;;  %v232_v20 = vld [vmem:[%s5914_s25 + $0xa4] sm:$0x1]  ;;  %v4398_v23 = vcombine.low %v368_v1, %v371_v5 }
  0x3f   : > { %v375_v24 = vsel %vm5916_vm3, %v4382_v8, %v374_v50  ;;  %v376_v25 = vrot.slane %v374_v50, 4  ;;  %v2371_v28 = vrot.slane %v4671_v2, 6  ;;  %v4672_v32 = vld [vmem:[%s5914_s25 + $0x54] sm:$0xc]  ;;  %v6224_v33 = vld [vmem:[%s7124_s1 + $0xe] sm:$0x3]  ;;  %5380 = vmatmul.mubr.msk.bf16.vlgmr.msra.gmra.mrb[0].mxu0 %vm450_vm4, %v4712_v53  ;;  %v2365_v43 = vsel %vm6121_vm6, %v2363_v17, %v2364_v14 }
  0x40   : > { %v2370_v31 = vrot.slane %v2368_v16, 4  ;;  %v4383_v52 = vrot.slane %v231_v18, 9  ;;  %v381_v36 = vrot.slane %v6211_v11, 5  ;;  %v4673_v37 = vld [vmem:[%s5914_s25 + $0x5c] sm:$0x3]  ;;  %5412 = vmatpush3.bf16.msra.mxu0 %v2908_v27  ;;  %5383 = vmatprep.mubr.msk.bf16.mxu0 %vm450_vm4, %v4713_v63  ;;  %v384_v54 = vrot.slane %v232_v20, 5 }
  0x41   : > { %v378_v10 = vsel %vm5916_vm3, %v376_v25, %v377_v9  ;;  %v2375_v38 = vrot.slane %v6057_v4, 6  ;;  %v6236_v39 = vld [vmem:[%s5914_s25 + $0xac] sm:$0xf]  ;;  %v233_v42 = vld [vmem:[%s5914_s25 + $0xa8] sm:$0xe]  ;;  %v2369_v44 = vsel %vm6121_vm6, %v4698_v15, %v2368_v16  ;;  %5779 = vmatprep.subr.msk.bf16.mxu0 %vm499_vm0, %v6224_v33  ;;  %v4714_v47 = vcombine.low %v2362_v12, %v2365_v43 }
  0x42   : > { %v4399_v60 = vcombine.low %v375_v24, %v378_v10  ;;  %v2372_v27 = vsel %vm6121_vm6, %v2370_v31, %v2371_v28  ;;  %v383_v45 = vrot.slane %v381_v36, 4  ;;  %v234_v46 = vld [vmem:[%s5914_s25 + $0xb0] sm:$0x1]  ;;  %v4699_v53 = vrot.slane %v4672_v32, 10  ;;  %v4674_v55 = vld [vmem:[%s5914_s25 + $0x60] sm:$0xc] }
  0x43   : > { %v2377_v4 = vrot.slane %v2375_v38, 4  ;;  %v4675_v56 = vld [vmem:[%s5914_s25 + $0x68] sm:$0x3]  ;;  %v2378_v57 = vrot.slane %v4673_v37, 6  ;;  %v4384_v58 = vrot.slane %v233_v42, 9  ;;  %v388_v59 = vrot.slane %v6236_v39, 5 }
  0x44   : > { %5230 = vmatmul.mubr.msk.bf16.gmra.mrb[20].mxu1 %vm450_vm4, %v4398_v23  ;;  %v391_v63 = vrot.slane %v234_v46, 5  ;;  %v6251_v1 = vld [vmem:[%s5914_s25 + $0xb8] sm:$0xf]  ;;  %v4715_v17 = vcombine.low %v2369_v44, %v2372_v27  ;;  %v382_v14 = vsel %vm5916_vm3, %v4383_v52, %v381_v36  ;;  %v385_v22 = vsel %vm5916_vm3, %v383_v45, %v384_v54  ;;  %v235_v5 = vld [vmem:[%s5914_s25 + $0xb4] sm:$0xe] }
  0x45   : > { %5233 = vmatprep.mubr.msk.bf16.mxu1 %vm450_vm4, %v4399_v60  ;;  %v2382_v2 = vrot.slane %v6081_v35, 6  ;;  %v389_v8 = vsel %vm5916_vm3, %v4384_v58, %v388_v59  ;;  %v390_v50 = vrot.slane %v388_v59, 4  ;;  %v4700_v9 = vrot.slane %v4674_v55, 10  ;;  %v236_v15 = vld [vmem:[%s5914_s25 + $0xbc] sm:$0x1] }
  0x46   : > { %v2385_v12 = vrot.slane %v4675_v56, 6  ;;  %v2376_v16 = vsel %vm6121_vm6, %v4699_v53, %v2375_v38  ;;  %v395_v20 = vrot.slane %v6251_v1, 5  ;;  %v4400_v35 = vcombine.low %v382_v14, %v385_v22  ;;  %v4590_v28 = vld [vmem:[%s5914_s25 + $0x7c] sm:$0xf]  ;;  %v4676_v52 = vld [vmem:[%s5914_s25 + $0x6c] sm:$0xc] }
  0x47   : > { %v2384_v18 = vrot.slane %v2382_v2, 4  ;;  %5384 = vmatmul.mubr.msk.bf16.gmra.mrb[4].mxu0 %vm450_vm4, %v4714_v47  ;;  %v2379_v23 = vsel %vm6121_vm6, %v2377_v4, %v2378_v57  ;;  %v392_v24 = vsel %vm5916_vm3, %v390_v50, %v391_v63  ;;  %v4385_v25 = vrot.slane %v235_v5, 9  ;;  %v4677_v54 = vld [vmem:[%s5914_s25 + $0x74] sm:$0x3]  ;;  %v4678_v38 = vld [vmem:[%s5914_s25 + $0x78] sm:$0xc] }
  0x48   : > { %5387 = vmatprep.mubr.msk.bf16.mxu0 %vm450_vm4, %v4715_v17  ;;  %v4401_v32 = vcombine.low %v389_v8, %v392_v24  ;;  %v397_v43 = vrot.slane %v395_v20, 4  ;;  %v398_v31 = vrot.slane %v236_v15, 5  ;;  %v2389_v36 = vrot.slane %v6101_v61, 6  ;;  %v4679_v42 = vld [vmem:[%s5914_s25 + $0x80] sm:$0x3] }
  0x49   : > { %v2383_v37 = vsel %vm6121_vm6, %v4700_v9, %v2382_v2  ;;  %v2386_v10 = vsel %vm6121_vm6, %v2384_v18, %v2385_v12  ;;  %v2396_v60 = vrot.slane %v4590_v28, 6  ;;  %v4716_v44 = vcombine.low %v2376_v16, %v2379_v23  ;;  %v172_v4 = vld [vmem:[%s5914_s25] sm:$0xf]  ;;  %v4593_v58 = vld [vmem:[%s5914_s25 + $0x88] sm:$0xf] }
  0x4a   : > { %v396_v27 = vsel %vm5916_vm3, %v4385_v25, %v395_v20  ;;  %v4701_v61 = vrot.slane %v4676_v52, 10  ;;  %v4717_v45 = vcombine.low %v2383_v37, %v2386_v10  ;;  %v399_v46 = vsel %vm5916_vm3, %v397_v43, %v398_v31  ;;  %v4596_v59 = vld [vmem:[%s5914_s25 + $0x94] sm:$0xf]  ;;  %v4680_v50 = vld [vmem:[%s5914_s25 + $0x84] sm:$0xc] }
  0x4b   : > { %v2391_v47 = vrot.slane %v2389_v36, 4  ;;  %v2392_v53 = vrot.slane %v4677_v54, 6  ;;  %v4702_v55 = vrot.slane %v4678_v38, 10  ;;  %v2398_v56 = vrot.slane %v2396_v60, 4  ;;  %v4681_v9 = vld [vmem:[%s5914_s25 + $0x8c] sm:$0x3] }
  0x4c   : > { %5234 = vmatmul.mubr.msk.bf16.gmra.mrb[24].mxu1 %vm450_vm4, %v4400_v35  ;;  %v2399_v57 = vrot.slane %v4679_v42, 6  ;;  %v4402_v63 = vcombine.low %v396_v27, %v399_v46  ;;  %v2390_v17 = vsel %vm6121_vm6, %v4701_v61, %v2389_v36  ;;  %v4419_v22 = vcombine.low %v172_v4, %v5921_v7  ;;  %v4682_v15 = vld [vmem:[%s5914_s25 + $0x90] sm:$0xc]  ;;  %v4683_v16 = vld [vmem:[%s5914_s25 + $0x98] sm:$0x3] }
  0x4d   : > { %5237 = vmatprep.mubr.msk.bf16.mxu1 %vm450_vm4, %v4401_v32  ;;  %v2393_v14 = vsel %vm6121_vm6, %v2391_v47, %v2392_v53  ;;  %v2403_v2 = vrot.slane %v4593_v58, 6  ;;  %v2397_v5 = vsel %vm6121_vm6, %v4702_v55, %v2396_v60  ;;  %v2410_v12 = vrot.slane %v4596_v59, 6  ;;  %v174_v7 = vld [vmem:[%s5914_s25 + $0xc] sm:$0xf]  ;;  %v176_v25 = vld [vmem:[%s5914_s25 + $0x18] sm:$0xf] }
  0x4e   : > { %v2400_v8 = vsel %vm6121_vm6, %v2398_v56, %v2399_v57  ;;  %v4718_v18 = vcombine.low %v2390_v17, %v2393_v14  ;;  %v4703_v35 = vrot.slane %v4680_v50, 10  ;;  %v2406_v24 = vrot.slane %v4681_v9, 6  ;;  %v4599_v31 = vld [vmem:[%s5914_s25 + $0xa0] sm:$0xf]  ;;  %v4602_v52 = vld [vmem:[%s5914_s25 + $0xac] sm:$0xf] }
  0x4f   : > { %5388 = vmatmul.mubr.msk.bf16.gmra.mrb[8].mxu0 %vm450_vm4, %v4716_v44  ;;  %v4719_v20 = vcombine.low %v2397_v5, %v2400_v8  ;;  %v2405_v23 = vrot.slane %v2403_v2, 4  ;;  %v4704_v28 = vrot.slane %v4682_v15, 10  ;;  %v2412_v32 = vrot.slane %v2410_v12, 4  ;;  %v4684_v37 = vld [vmem:[%s5914_s25 + $0x9c] sm:$0xc] }
  0x50   : > { %5391 = vmatprep.mubr.msk.bf16.mxu0 %vm450_vm4, %v4717_v45  ;;  %v2413_v43 = vrot.slane %v4683_v16, 6  ;;  %v4420_v36 = vcombine.low %v174_v7, %v5935_v21  ;;  %v4685_v10 = vld [vmem:[%s5914_s25 + $0xa4] sm:$0x3]  ;;  %v2404_v54 = vsel %vm6121_vm6, %v4703_v35, %v2403_v2  ;;  %v4421_v42 = vcombine.low %v176_v25, %v5957_v41  ;;  %v4686_v61 = vld [vmem:[%s5914_s25 + $0xa8] sm:$0xc] }
  0x51   : > { %v2407_v38 = vsel %vm6121_vm6, %v2405_v23, %v2406_v24  ;;  %v2417_v60 = vrot.slane %v4599_v31, 6  ;;  %v1218_v44 = vsel %vm499_vm0, %v5969_v49, 0  ;;  %v2411_v21 = vsel %vm6121_vm6, %v4704_v28, %v2410_v12  ;;  %v178_v46 = vld [vmem:[%s5914_s25 + $0x24] sm:$0xf]  ;;  %v4687_v47 = vld [vmem:[%s5914_s25 + $0xb0] sm:$0x3] }
  0x52   : > { %v2414_v27 = vsel %vm6121_vm6, %v2412_v32, %v2413_v43  ;;  %v2424_v45 = vrot.slane %v4602_v52, 6  ;;  %v4720_v53 = vcombine.low %v2404_v54, %v2407_v38  ;;  %v4705_v41 = vrot.slane %v4684_v37, 10  ;;  %v180_v55 = vld [vmem:[%s5914_s25 + $0x30] sm:$0xf]  ;;  %v4605_v49 = vld [vmem:[%s5914_s25 + $0xb8] sm:$0xf] }
  0x53   : > { %v2420_v4 = vrot.slane %v4685_v10, 6  ;;  %v4721_v56 = vcombine.low %v2411_v21, %v2414_v27  ;;  %v2419_v57 = vrot.slane %v2417_v60, 4  ;;  %v4706_v58 = vrot.slane %v4686_v61, 10  ;;  %v4688_v17 = vld [vmem:[%s5914_s25 + $0xb4] sm:$0xc] }
  0x54   : > { %5238 = vmatmul.mubr.msk.bf16.gmra.mrb[28].mxu1 %vm450_vm4, %v4402_v63  ;;  %v2426_v59 = vrot.slane %v2424_v45, 4  ;;  %v2427_v63 = vrot.slane %v4687_v47, 6  ;;  %v4608_v14 = vld [vmem:[%s5914_s25 + $0xc4] sm:$0xf]  ;;  %v4689_v2 = vld [vmem:[%s5914_s25 + $0xbc] sm:$0x3]  ;;  %v2418_v5 = vsel %vm6121_vm6, %v4705_v41, %v2417_v60  ;;  %v4423_v50 = vcombine.low %v180_v55, %v6023_v29 }
  0x55   : > { %5243 = vmatprep.mubr.msk.bf16.mxu1 %vm450_vm4, %v4419_v22  ;;  %v4422_v22 = vcombine.low %v178_v46, %v5991_v0  ;;  %v2421_v8 = vsel %vm6121_vm6, %v2419_v57, %v2420_v4  ;;  %v2431_v9 = vrot.slane %v4605_v49, 6  ;;  %v2425_v12 = vsel %vm6121_vm6, %v4706_v58, %v2424_v45  ;;  %v4690_v0 = vld [vmem:[%s5914_s25 + $0xc0] sm:$0xc]  ;;  %v182_v7 = vld [vmem:[%s5914_s25 + $0x3c] sm:$0xf] }
  0x56   : > { %v2428_v15 = vsel %vm6121_vm6, %v2426_v59, %v2427_v63  ;;  %v2438_v16 = vrot.slane %v4608_v14, 6  ;;  %v4722_v35 = vcombine.low %v2418_v5, %v2421_v8  ;;  %v4707_v23 = vrot.slane %v4688_v17, 10  ;;  %v184_v24 = vld [vmem:[%s5914_s25 + $0x48] sm:$0xf]  ;;  %v4692_v21 = vld [vmem:[%s5914_s25 + $0xcc] sm:$0xc] }
  0x57   : > { %5392 = vmatmul.mubr.msk.bf16.gmra.mrb[12].mxu0 %vm450_vm4, %v4718_v18  ;;  %v6354_v18 = vld [vmem:[%s7124_s1 + $0x6] sm:$0x3]  ;;  %v4723_v25 = vcombine.low %v2425_v12, %v2428_v15  ;;  %v2433_v28 = vrot.slane %v2431_v9, 4  ;;  %v2434_v32 = vrot.slane %v4689_v2, 6  ;;  %v4708_v43 = vrot.slane %v4690_v0, 10  ;;  %v5799_v59 = vld [vmem:[%s5914_s25 + $0x30] sm:$0xff]  }
  0x58   : > { %5395 = vmatprep.mubr.msk.bf16.mxu0 %vm450_vm4, %v4719_v20  ;;  %v4691_v20 = vld [vmem:[%s5914_s25 + $0xc8] sm:$0x3]  ;;  %v2440_v31 = vrot.slane %v2438_v16, 4  ;;  %v4424_v37 = vcombine.low %v182_v7, %v6043_v51  ;;  %v2432_v10 = vsel %vm6121_vm6, %v4707_v23, %v2431_v9  ;;  %v4425_v38 = vcombine.low %v184_v24, %v6068_v19  ;;  %v4693_v27 = vld [vmem:[%s5914_s25 + $0xd4] sm:$0x3]  ;;  %v5801_v2 = vld [vmem:[%s5914_s25 + $0x3c] sm:$0xff]  }
  0x59   : > { %v2441_v52 = vrot.slane %v4691_v20, 6  ;;  %v2435_v54 = vsel %vm6121_vm6, %v2433_v28, %v2434_v32  ;;  %v2439_v60 = vsel %vm6121_vm6, %v4708_v43, %v2438_v16  ;;  %v186_v45 = vld [vmem:[%s5914_s25 + $0x54] sm:$0xf]  ;;  %v4709_v47 = vrot.slane %v4692_v21, 10  ;;  %v188_v4 = vld [vmem:[%s5914_s25 + $0x60] sm:$0xf] }
  0x5a   : > { %v4724_v61 = vcombine.low %v2432_v10, %v2435_v54  ;;  %v2448_v41 = vrot.slane %v4693_v27, 6  ;;  %v4426_v55 = vcombine.low %v186_v45, %v6087_v40  ;;  %v4427_v57 = vcombine.low %v188_v4, %v6112_v13  ;;  %v190_v63 = vld [vmem:[%s5914_s25 + $0x6c] sm:$0xf]  ;;  %v192_v17 = vld [vmem:[%s5914_s25 + $0x78] sm:$0xf]  ;;  %v5807_v16 = vld [vmem:[%s5914_s25 + $0x60] sm:$0xff]  }
  0x5b   : > { %v4428_v14 = vcombine.low %v190_v63, %v6132_v34  ;;  %v5803_v5 = vld [vmem:[%s5914_s25 + $0x48] sm:$0xff]   ;;  %v194_v8 = vld [vmem:[%s5914_s25 + $0x84] sm:$0xf]  ;;  %v196_v9 = vld [vmem:[%s5914_s25 + $0x90] sm:$0xf] }
  0x5c   : > { %5244 = vmatmul.mubr.msk.bf16.vlgmr.msra.gmra.mrb[0].mxu1 %vm450_vm4, %v4420_v36  ;;  %v4611_v36 = vld [vmem:[%s5914_s25 + $0xd0] sm:$0xf]  ;;  %v4430_v15 = vcombine.low %v194_v8, %v6175_v30  ;;  %v4431_v0 = vcombine.low %v196_v9, %v6195_v48  ;;  %v198_v7 = vld [vmem:[%s5914_s25 + $0x9c] sm:$0xf]  ;;  %v5838_v20 = vld [vmem:[%s5914_s25 + $0x4] sm:$0xf] }
  0x5d   : > { %5276 = vmatpush3.bf16.msra.mxu1 %v1218_v44  ;;  %5247 = vmatprep.mubr.msk.bf16.mxu1 %vm450_vm4, %v4421_v42  ;;  %v2445_v42 = vrot.slane %v4611_v36, 6  ;;  %v2442_v44 = vsel %vm6121_vm6, %v2440_v31, %v2441_v52  ;;  %v6410_v12 = vld [vmem:[%s7124_s1 + $0x10] sm:$0x3]  ;;  %v200_v23 = vld [vmem:[%s5914_s25 + $0xa8] sm:$0xf]  ;;  %v4432_v28 = vcombine.low %v198_v7, %v6211_v11  ;;  %v5811_v54 = vld [vmem:[%s5914_s25 + $0x78] sm:$0xff]  }
  0x5e   : > { %5774 = vmatprep.subr.msk.bf16.mxu1 %vm499_vm0, %v6354_v18  ;;  %v4725_v46 = vcombine.low %v2439_v60, %v2442_v44  ;;  %v940_v24 = vld [vmem:[%s5914_s25] sm:$0xc]  ;;  %v4433_v32 = vcombine.low %v200_v23, %v6236_v39  ;;  %v5839_v36 = vld [vmem:[%s5914_s25 + $0x10] sm:$0xf]  ;;  %v943_v60 = vld [vmem:[%s5914_s25 + $0x14] sm:$0x3] }
  0x5f   : > { %5396 = vmatmul.mubr.msk.bf16.gmra.mrb[16].mxu0 %vm450_vm4, %v4720_v53  ;;  %v2447_v53 = vrot.slane %v2445_v42, 4  ;;  %v2446_v49 = vsel %vm6121_vm6, %v4709_v47, %v2445_v42  ;;  %v4451_v43 = vrot.slane %v940_v24, 10  ;;  %v5809_v10 = vld [vmem:[%s5914_s25 + $0x6c] sm:$0xff]   ;;  %v5840_v27 = vld [vmem:[%s5914_s25 + $0x1c] sm:$0xf]  ;;  %v1037_v9 = vrot.slane %v6023_v29, 6 }
  0x60   : > { %5399 = vmatprep.mubr.msk.bf16.mxu0 %vm450_vm4, %v4721_v56  ;;  %v942_v42 = vld [vmem:[%s5914_s25 + $0xc] sm:$0xc]  ;;  %v944_v45 = vld [vmem:[%s5914_s25 + $0x18] sm:$0xc]  ;;  %v1577_v23 = vsel %vm499_vm0, %v6354_v18, 0  ;;  %v1044_v18 = vrot.slane %v6043_v51, 6 }
  0x61   : > { %v2449_v56 = vsel %vm6121_vm6, %v2447_v53, %v2448_v41  ;;  %v4452_v4 = vrot.slane %v942_v42, 10  ;;  %v1039_v29 = vrot.slane %v1037_v9, 4  ;;  %v5842_v42 = vld [vmem:[%s7124_s1 + $0x8] sm:$0x3]  ;;  %v953_v51 = vld [vmem:[%s5914_s25 + $0x50] sm:$0x3] }
  0x62   : > { %v4726_v58 = vcombine.low %v2446_v49, %v2449_v56  ;;  %v4453_v49 = vrot.slane %v944_v45, 10 }
  0x64   : > { %5248 = vmatmul.mubr.msk.bf16.gmra.mrb[4].mxu1 %vm450_vm4, %v4422_v22  ;;  %v4429_v22 = vcombine.low %v192_v17, %v6152_v62 }
  0x65   : > { %5251 = vmatprep.mubr.msk.bf16.mxu1 %vm450_vm4, %v4423_v50  ;;  %v3410_v50 = vsel %vm499_vm0, %v6224_v33, 0  ;;  %v5805_v33 = vld [vmem:[%s5914_s25 + $0x54] sm:$0xff]  }
  0x67   : > { %5400 = vmatmul.mubr.msk.bf16.gmra.mrb[20].mxu0 %vm450_vm4, %v4722_v35  ;;  %v1009_v35 = vrot.slane %v5838_v20, 6 }
  0x68   : > { %5403 = vmatprep.mubr.msk.bf16.mxu0 %vm450_vm4, %v4723_v25  ;;  %v941_v25 = vld [vmem:[%s5914_s25 + $0x8] sm:$0x3] }
  0x69   : > { %v1011_v31 = vrot.slane %v1009_v35, 4  ;;  %v1012_v52 = vrot.slane %v941_v25, 6  ;;  %v1010_v44 = vsel %vm6121_vm6, %v4451_v43, %v1009_v35  ;;  %v5816_v43 = vld [vmem:[%s5914_s25 + $0xa8] sm:$0xff]  }
  0x6b   : > { %v1013_v21 = vsel %vm6121_vm6, %v1011_v31, %v1012_v52 }
  0x6c   : > { %5252 = vmatmul.mubr.msk.bf16.gmra.mrb[8].mxu1 %vm450_vm4, %v4424_v37  ;;  %v1016_v37 = vrot.slane %v5839_v36, 6  ;;  %v4468_v41 = vcombine.low %v1010_v44, %v1013_v21 }
  0x6d   : > { %5255 = vmatprep.mubr.msk.bf16.mxu1 %vm450_vm4, %v4425_v38  ;;  %v202_v38 = vld [vmem:[%s5914_s25 + $0xb4] sm:$0xf] }
  0x6e   : > { %v1018_v47 = vrot.slane %v1016_v37, 4  ;;  %v4434_v53 = vcombine.low %v202_v38, %v6251_v1  ;;  %v1017_v63 = vsel %vm6121_vm6, %v4452_v4, %v1016_v37  ;;  %v1051_v38 = vrot.slane %v6068_v19, 6 }
  0x6f   : > { %5404 = vmatmul.mubr.msk.bf16.gmra.mrb[24].mxu0 %vm450_vm4, %v4724_v61  ;;  %v1023_v61 = vrot.slane %v5840_v27, 6  ;;  %v1046_v27 = vrot.slane %v1044_v18, 4  ;;  %v1058_v4 = vrot.slane %v6087_v40, 6  ;;  %v1065_v40 = vrot.slane %v6112_v13, 6 }
  0x70   : > { %5407 = vmatprep.mubr.msk.bf16.mxu0 %vm450_vm4, %v4725_v46  ;;  %v945_v46 = vld [vmem:[%s5914_s25 + $0x20] sm:$0x3]  ;;  %v1053_v45 = vrot.slane %v1051_v38, 4 }
  0x71   : > { %v1025_v56 = vrot.slane %v1023_v61, 4  ;;  %v1024_v8 = vsel %vm6121_vm6, %v4453_v49, %v1023_v61  ;;  %v1067_v13 = vrot.slane %v1065_v40, 4 }
  0x74   : > { %5256 = vmatmul.mubr.msk.bf16.gmra.mrb[12].mxu1 %vm450_vm4, %v4426_v55  ;;  %v1019_v55 = vrot.slane %v943_v60, 6 }
  0x75   : > { %5259 = vmatprep.mubr.msk.bf16.mxu1 %vm450_vm4, %v4427_v57  ;;  %v1026_v57 = vrot.slane %v945_v46, 6  ;;  %v1054_v46 = vrot.slane %v953_v51, 6  ;;  %v4811_v51 = vld [vmem:[%s5914_s25 + $0x3c] sm:$0xe] }
  0x76   : > { %v1020_v17 = vsel %vm6121_vm6, %v1018_v47, %v1019_v55  ;;  %v5817_v47 = vld [vmem:[%s5914_s25 + $0xb4] sm:$0xff]  }
  0x77   : > { %5408 = vmatmul.mubr.msk.bf16.gmra.mrb[28].mxu0 %vm450_vm4, %v4726_v58  ;;  %v5813_v58 = vld [vmem:[%s5914_s25 + $0x84] sm:$0xff]  }
  0x78   : > { %5413 = vmatprep.mubr.msk.bf16.mxu0 %vm450_vm4, %v5799_v59  ;;  %v5814_v59 = vld [vmem:[%s5914_s25 + $0x90] sm:$0xff]  }
  0x7c   : > { %5260 = vmatmul.mubr.msk.bf16.gmra.mrb[16].mxu1 %vm450_vm4, %v4428_v14  ;;  %v946_v14 = vld [vmem:[%s5914_s25 + $0x24] sm:$0xc] }
  0x7d   : > { %5263 = vmatprep.mubr.msk.bf16.mxu1 %vm450_vm4, %v4429_v22  ;;  %v947_v22 = vld [vmem:[%s5914_s25 + $0x2c] sm:$0x3]  ;;  %v4454_v7 = vrot.slane %v946_v14, 10 }
  0x7e   : > { %v1033_v35 = vrot.slane %v947_v22, 6 }
  0x7f   : > { %5414 = vmatmul.mubr.msk.bf16.vlgmr.msra.gmra.mrb[0].mxu0 %vm450_vm4, %v5801_v2  ;;  %v5841_v2 = vld [vmem:[%s5914_s25 + $0x28] sm:$0xf] }
  0x80   : > { %5446 = vmatpush3.bf16.msra.mxu0 %v3410_v50  ;;  %5417 = vmatprep.mubr.msk.bf16.mxu0 %vm450_vm4, %v5803_v5  ;;  %v1030_v5 = vrot.slane %v5841_v2, 6  ;;  %v1027_v50 = vsel %vm6121_vm6, %v1025_v56, %v1026_v57  ;;  %v955_v56 = vld [vmem:[%s5914_s25 + $0x5c] sm:$0x3]  ;;  %v1060_v2 = vrot.slane %v1058_v4, 4 }
  0x81   : > { %5780 = vmatprep.subr.msk.bf16.mxu0 %vm499_vm0, %v6410_v12 }
  0x82   : > { %v1032_v20 = vrot.slane %v1030_v5, 4  ;;  %v1031_v31 = vsel %vm6121_vm6, %v4454_v7, %v1030_v5  ;;  %v1061_v5 = vrot.slane %v955_v56, 6  ;;  %v958_v7 = vld [vmem:[%s5914_s25 + $0x6c] sm:$0xc] }
  0x84   : > { %5264 = vmatmul.mubr.msk.bf16.gmra.mrb[20].mxu1 %vm450_vm4, %v4430_v15  ;;  %v948_v15 = vld [vmem:[%s5914_s25 + $0x30] sm:$0xc]  ;;  %v1034_v52 = vsel %vm6121_vm6, %v1032_v20, %v1033_v35  ;;  %v5820_v20 = vld [vmem:[%s5914_s25 + $0xd8] sm:$0xff]  }
  0x85   : > { %5267 = vmatprep.mubr.msk.bf16.mxu1 %vm450_vm4, %v4431_v0  ;;  %v949_v0 = vld [vmem:[%s5914_s25 + $0x38] sm:$0x3]  ;;  %v4455_v24 = vrot.slane %v948_v15, 10  ;;  %v4471_v60 = vcombine.low %v1031_v31, %v1034_v52  ;;  %v1079_v31 = vrot.slane %v6152_v62, 6 }
  0x86   : > { %v1040_v25 = vrot.slane %v949_v0, 6  ;;  %v4808_v0 = vld [vmem:[%s5914_s25 + $0x30] sm:$0xe] }
  0x87   : > { %5418 = vmatmul.mubr.msk.bf16.gmra.mrb[4].mxu0 %vm450_vm4, %v5805_v33  ;;  %v4469_v33 = vcombine.low %v1017_v63, %v1020_v17  ;;  %v1038_v36 = vsel %vm6121_vm6, %v4455_v24, %v1037_v9  ;;  %v6513_v63 = vld [vmem:[%s5914_s25 + $0x34] sm:$0xf]  ;;  %v957_v17 = vld [vmem:[%s5914_s25 + $0x68] sm:$0x3]  ;;  %v1072_v24 = vrot.slane %v6132_v34, 6 }
  0x88   : > { %5421 = vmatprep.mubr.msk.bf16.mxu0 %vm450_vm4, %v5807_v16  ;;  %v4470_v16 = vcombine.low %v1024_v8, %v1027_v50  ;;  %v1041_v37 = vsel %vm6121_vm6, %v1039_v29, %v1040_v25  ;;  %v3201_v9 = vrot.slane %v6513_v63, 5  ;;  %v1068_v15 = vrot.slane %v957_v17, 6  ;;  %v6531_v29 = vld [vmem:[%s5914_s25 + $0x40] sm:$0xf]  ;;  %v6541_v34 = vld [vmem:[%s5914_s25 + $0x4c] sm:$0xf] }
  0x89   : > { %v4472_v21 = vcombine.low %v1038_v36, %v1041_v37  ;;  %v4856_v25 = vrot.slane %v4808_v0, 9  ;;  %v4460_v36 = vrot.slane %v958_v7, 10  ;;  %v3208_v37 = vrot.slane %v6531_v29, 5  ;;  %v965_v7 = vld [vmem:[%s5914_s25 + $0x98] sm:$0x3] }
  0x8b   : > { %v1073_v56 = vsel %vm6121_vm6, %v4460_v36, %v1072_v24  ;;  %v4820_v36 = vld [vmem:[%s5914_s25 + $0x60] sm:$0xe] }
  0x8c   : > { %5268 = vmatmul.mubr.msk.bf16.gmra.mrb[24].mxu1 %vm450_vm4, %v4432_v28  ;;  %v5815_v28 = vld [vmem:[%s5914_s25 + $0x9c] sm:$0xff]  }
  0x8d   : > { %5271 = vmatprep.mubr.msk.bf16.mxu1 %vm450_vm4, %v4433_v32  ;;  %v950_v32 = vld [vmem:[%s5914_s25 + $0x3c] sm:$0xc] }
  0x8e   : > { %v4456_v44 = vrot.slane %v950_v32, 10 }
  0x8f   : > { %5422 = vmatmul.mubr.msk.bf16.gmra.mrb[8].mxu0 %vm450_vm4, %v5809_v10  ;;  %v951_v10 = vld [vmem:[%s5914_s25 + $0x44] sm:$0x3] }
  0x90   : > { %5425 = vmatprep.mubr.msk.bf16.mxu0 %vm450_vm4, %v5811_v54  ;;  %v952_v54 = vld [vmem:[%s5914_s25 + $0x48] sm:$0xc]  ;;  %v1047_v19 = vrot.slane %v951_v10, 6  ;;  %v1045_v55 = vsel %vm6121_vm6, %v4456_v44, %v1044_v18  ;;  %v1069_v18 = vsel %vm6121_vm6, %v1067_v13, %v1068_v15  ;;  %v960_v10 = vld [vmem:[%s5914_s25 + $0x78] sm:$0xc]  ;;  %v1093_v13 = vrot.slane %v6195_v48, 6 }
  0x91   : > { %v4457_v61 = vrot.slane %v952_v54, 10  ;;  %v961_v54 = vld [vmem:[%s5914_s25 + $0x80] sm:$0x3] }
  0x92   : > { %v1048_v49 = vsel %vm6121_vm6, %v1046_v27, %v1047_v19  ;;  %v4814_v27 = vld [vmem:[%s5914_s25 + $0x48] sm:$0xe]  ;;  %v3215_v19 = vrot.slane %v6541_v34, 5 }
  0x93   : > { %v1052_v57 = vsel %vm6121_vm6, %v4457_v61, %v1051_v38  ;;  %v4473_v14 = vcombine.low %v1045_v55, %v1048_v49  ;;  %v5821_v49 = vld [vmem:[%s5914_s25 + $0xe4] sm:$0xff]  }
  0x94   : > { %5272 = vmatmul.mubr.msk.bf16.gmra.mrb[28].mxu1 %vm450_vm4, %v4434_v53  ;;  %v5818_v53 = vld [vmem:[%s5914_s25 + $0xc0] sm:$0xff]  }
  0x95   : > { %5277 = vmatprep.mubr.msk.bf16.mxu1 %vm450_vm4, %v4468_v41  ;;  %v954_v41 = vld [vmem:[%s5914_s25 + $0x54] sm:$0xc] }
  0x96   : > { %v4458_v22 = vrot.slane %v954_v41, 10  ;;  %v4857_v41 = vrot.slane %v4811_v51, 9 }
  0x97   : > { %5426 = vmatmul.mubr.msk.bf16.gmra.mrb[12].mxu0 %vm450_vm4, %v5813_v58  ;;  %v1055_v58 = vsel %vm6121_vm6, %v1053_v45, %v1054_v46  ;;  %v4461_v45 = vrot.slane %v960_v10, 10  ;;  %v1081_v46 = vrot.slane %v1079_v31, 4 }
  0x98   : > { %5429 = vmatprep.mubr.msk.bf16.mxu0 %vm450_vm4, %v5814_v59  ;;  %v956_v59 = vld [vmem:[%s5914_s25 + $0x60] sm:$0xc]  ;;  %v4474_v8 = vcombine.low %v1052_v57, %v1055_v58  ;;  %v1059_v35 = vsel %vm6121_vm6, %v4458_v22, %v1058_v4  ;;  %v3210_v4 = vrot.slane %v3208_v37, 4  ;;  %v4858_v58 = vrot.slane %v4814_v27, 9 }
  0x99   : > { %v4459_v50 = vrot.slane %v956_v59, 10  ;;  %v962_v59 = vld [vmem:[%s5914_s25 + $0x84] sm:$0xc]  ;;  %v3209_v0 = vsel %vm5916_vm3, %v4857_v41, %v3208_v37  ;;  %v4822_v37 = vld [vmem:[%s5914_s25 + $0x68] sm:$0x1]  ;;  %v4860_v27 = vrot.slane %v4820_v36, 9 }
  0x9a   : > { %v971_v36 = vld [vmem:[%s5914_s25 + $0xbc] sm:$0x3] }
  0x9b   : > { %v1066_v52 = vsel %vm6121_vm6, %v4459_v50, %v1065_v40  ;;  %v1086_v40 = vrot.slane %v6175_v30, 6  ;;  %v6577_v30 = vld [vmem:[%s5914_s25 + $0x64] sm:$0xf] }
  0x9c   : > { %5278 = vmatmul.mubr.msk.bf16.vlgmr.msra.gmra.mrb[0].mxu1 %vm450_vm4, %v4469_v33  ;;  %v4810_v33 = vld [vmem:[%s5914_s25 + $0x38] sm:$0x1]  ;;  %v4476_v44 = vcombine.low %v1066_v52, %v1069_v18  ;;  %v1095_v52 = vrot.slane %v1093_v13, 4  ;;  %v1096_v18 = vrot.slane %v965_v7, 6 }
  0x9d   : > { %5310 = vmatpush3.bf16.msra.mxu1 %v1577_v23  ;;  %5281 = vmatprep.mubr.msk.bf16.mxu1 %vm450_vm4, %v4470_v16  ;;  %v5819_v16 = vld [vmem:[%s5914_s25 + $0xcc] sm:$0xff]   ;;  %v1062_v23 = vsel %vm6121_vm6, %v1060_v2, %v1061_v5  ;;  %v3204_v32 = vrot.slane %v4810_v33, 5  ;;  %v6568_v5 = vld [vmem:[%s5914_s25 + $0x58] sm:$0xf]  ;;  %v1088_v48 = vrot.slane %v1086_v40, 4 }
  0x9e   : > { %5776 = vmatprep.subr.msk.bf16.mxu1 %vm499_vm0, %v5842_v42  ;;  %v4475_v38 = vcombine.low %v1059_v35, %v1062_v23  ;;  %v1074_v42 = vrot.slane %v1072_v24, 4  ;;  %v963_v2 = vld [vmem:[%s5914_s25 + $0x8c] sm:$0x3]  ;;  %v4817_v23 = vld [vmem:[%s5914_s25 + $0x54] sm:$0xe]  ;;  %v3222_v24 = vrot.slane %v6568_v5, 5  ;;  %v1097_v41 = vsel %vm6121_vm6, %v1095_v52, %v1096_v18 }
  0x9f   : > { %5430 = vmatmul.mubr.msk.bf16.gmra.mrb[16].mxu0 %vm450_vm4, %v5815_v28  ;;  %v3203_v28 = vrot.slane %v3201_v9, 4  ;;  %v1089_v35 = vrot.slane %v963_v2, 6  ;;  %v4823_v2 = vld [vmem:[%s5914_s25 + $0x6c] sm:$0xe] }
  0xa0   : > { %5433 = vmatprep.mubr.msk.bf16.mxu0 %vm450_vm4, %v5816_v43  ;;  %v959_v43 = vld [vmem:[%s5914_s25 + $0x74] sm:$0x3]  ;;  %v3224_v51 = vrot.slane %v3222_v24, 4 }
  0xa1   : > { %v1075_v62 = vrot.slane %v959_v43, 6  ;;  %v3205_v61 = vsel %vm5916_vm3, %v3203_v28, %v3204_v32  ;;  %v4819_v32 = vld [vmem:[%s5914_s25 + $0x5c] sm:$0x1] }
  0xa3   : > { %v1076_v57 = vsel %vm6121_vm6, %v1074_v42, %v1075_v62  ;;  %v1090_v62 = vsel %vm6121_vm6, %v1088_v48, %v1089_v35 }
  0xa4   : > { %5282 = vmatmul.mubr.msk.bf16.gmra.mrb[4].mxu1 %vm450_vm4, %v4471_v60  ;;  %v4813_v60 = vld [vmem:[%s5914_s25 + $0x44] sm:$0x1]  ;;  %v4477_v15 = vcombine.low %v1073_v56, %v1076_v57  ;;  %v969_v56 = vld [vmem:[%s5914_s25 + $0xb0] sm:$0x3]  ;;  %v6620_v57 = vld [vmem:[%s5914_s25 + $0x7c] sm:$0xf] }
  0xa5   : > { %5285 = vmatprep.mubr.msk.bf16.mxu1 %vm450_vm4, %v4472_v21  ;;  %v3202_v21 = vsel %vm5916_vm3, %v4856_v25, %v3201_v9  ;;  %v3211_v55 = vrot.slane %v4813_v60, 5  ;;  %v964_v9 = vld [vmem:[%s5914_s25 + $0x90] sm:$0xc]  ;;  %v3225_v60 = vrot.slane %v4819_v32, 5  ;;  %v1114_v32 = vrot.slane %v6251_v1, 6 }
  0xa6   : > { %v4873_v17 = vcombine.low %v3202_v21, %v3205_v61  ;;  %v4463_v43 = vrot.slane %v964_v9, 10  ;;  %v967_v21 = vld [vmem:[%s5914_s25 + $0xa4] sm:$0x3]  ;;  %v3232_v61 = vrot.slane %v4822_v37, 5  ;;  %v6650_v37 = vld [vmem:[%s5914_s25 + $0x88] sm:$0xf] }
  0xa7   : > { %5434 = vmatmul.mubr.msk.bf16.gmra.mrb[20].mxu0 %vm450_vm4, %v5817_v47  ;;  %v1082_v47 = vrot.slane %v961_v54, 6  ;;  %v3212_v33 = vsel %vm5916_vm3, %v3210_v4, %v3211_v55  ;;  %v1107_v4 = vrot.slane %v6236_v39, 6 }
  0xa8   : > { %5437 = vmatprep.mubr.msk.bf16.mxu0 %vm450_vm4, %v5818_v53  ;;  %v4816_v53 = vld [vmem:[%s5914_s25 + $0x50] sm:$0x1]  ;;  %v4874_v10 = vcombine.low %v3209_v0, %v3212_v33  ;;  %v3243_v0 = vrot.slane %v6620_v57, 5 }
  0xa9   : > { %v3218_v22 = vrot.slane %v4816_v53, 5  ;;  %v1083_v50 = vsel %vm6121_vm6, %v1081_v46, %v1082_v47  ;;  %v6606_v46 = vld [vmem:[%s5914_s25 + $0x70] sm:$0xf]  ;;  %v3880_v47 = vsel %vm499_vm0, %v6410_v12, 0  ;;  %v1094_v53 = vsel %vm6121_vm6, %v4463_v43, %v1093_v13 }
  0xaa   : > { %v3226_v12 = vsel %vm5916_vm3, %v3224_v51, %v3225_v60  ;;  %v3236_v39 = vrot.slane %v6606_v46, 5  ;;  %v1109_v9 = vrot.slane %v1107_v4, 4  ;;  %v1110_v13 = vrot.slane %v969_v56, 6 }
  0xab   : > { %v3245_v52 = vrot.slane %v3243_v0, 4  ;;  %v1116_v51 = vrot.slane %v1114_v32, 4  ;;  %v1117_v60 = vrot.slane %v971_v36, 6 }
  0xac   : > { %5286 = vmatmul.mubr.msk.bf16.gmra.mrb[8].mxu1 %vm450_vm4, %v4473_v14  ;;  %v3217_v14 = vrot.slane %v3215_v19, 4  ;;  %v3238_v48 = vrot.slane %v3236_v39, 4 }
  0xad   : > { %5289 = vmatprep.mubr.msk.bf16.mxu1 %vm450_vm4, %v4474_v8  ;;  %v1080_v8 = vsel %vm6121_vm6, %v4461_v45, %v1079_v31  ;;  %v3229_v31 = vrot.slane %v6577_v30, 5  ;;  %v1100_v45 = vrot.slane %v6211_v11, 6  ;;  %v968_v11 = vld [vmem:[%s5914_s25 + $0xa8] sm:$0xc] }
  0xae   : > { %v4478_v25 = vcombine.low %v1080_v8, %v1083_v50  ;;  %v3219_v28 = vsel %vm5916_vm3, %v3217_v14, %v3218_v22  ;;  %v4825_v8 = vld [vmem:[%s5914_s25 + $0x74] sm:$0x1]  ;;  %v4465_v50 = vrot.slane %v968_v11, 10  ;;  %v1118_v11 = vsel %vm6121_vm6, %v1116_v51, %v1117_v60  ;;  %v4843_v51 = vld [vmem:[%s5914_s25 + $0xbc] sm:$0x1] }
  0xaf   : > { %5438 = vmatmul.mubr.msk.bf16.gmra.mrb[24].mxu0 %vm450_vm4, %v5819_v16  ;;  %v4462_v16 = vrot.slane %v962_v59, 10  ;;  %v1103_v59 = vrot.slane %v967_v21, 6  ;;  %v1102_v22 = vrot.slane %v1100_v45, 4  ;;  %v3239_v35 = vrot.slane %v4825_v8, 5  ;;  %v5822_v8 = vld [vmem:[%s5914_s25 + $0x18] sm:$0xff]  }
  0xb0   : > { %5441 = vmatprep.mubr.msk.bf16.mxu0 %vm450_vm4, %v5820_v20  ;;  %v3216_v20 = vsel %vm5916_vm3, %v4858_v58, %v3215_v19  ;;  %v3231_v19 = vrot.slane %v3229_v31, 4  ;;  %v1108_v43 = vsel %vm6121_vm6, %v4465_v50, %v1107_v4  ;;  %v3250_v21 = vrot.slane %v6650_v37, 5 }
  0xb1   : > { %v1087_v54 = vsel %vm6121_vm6, %v4462_v16, %v1086_v40  ;;  %v4875_v42 = vcombine.low %v3216_v20, %v3219_v28  ;;  %v4480_v40 = vcombine.low %v1094_v53, %v1097_v41  ;;  %v4828_v16 = vld [vmem:[%s5914_s25 + $0x80] sm:$0x1]  ;;  %v4861_v20 = vrot.slane %v4823_v2, 9  ;;  %v970_v28 = vld [vmem:[%s5914_s25 + $0xb4] sm:$0xc] }
  0xb2   : > { %v4479_v55 = vcombine.low %v1087_v54, %v1090_v62  ;;  %v3233_v14 = vsel %vm5916_vm3, %v3231_v19, %v3232_v61  ;;  %v3246_v18 = vrot.slane %v4828_v16, 5  ;;  %v4831_v61 = vld [vmem:[%s5914_s25 + $0x8c] sm:$0x1]  ;;  %v4834_v53 = vld [vmem:[%s5914_s25 + $0x98] sm:$0x1]  ;;  %v3252_v56 = vrot.slane %v3250_v21, 4 }
  0xb3   : > { %v3237_v54 = vsel %vm5916_vm3, %v4861_v20, %v3236_v39  ;;  %v3260_v39 = vrot.slane %v4834_v53, 5  ;;  %v4838_v16 = vld [vmem:[%s5914_s25 + $0xa8] sm:$0xe] }
  0xb4   : > { %5290 = vmatmul.mubr.msk.bf16.gmra.mrb[12].mxu1 %vm450_vm4, %v4475_v38  ;;  %v4859_v38 = vrot.slane %v4817_v23, 9  ;;  %v3247_v19 = vsel %vm5916_vm3, %v3245_v52, %v3246_v18  ;;  %v5823_v52 = vld [vmem:[%s5914_s25 + $0x24] sm:$0xff]  }
  0xb5   : > { %5293 = vmatprep.mubr.msk.bf16.mxu1 %vm450_vm4, %v4476_v44  ;;  %v966_v44 = vld [vmem:[%s5914_s25 + $0x9c] sm:$0xc] }
  0xb6   : > { %v4464_v58 = vrot.slane %v966_v44, 10  ;;  %v4829_v44 = vld [vmem:[%s5914_s25 + $0x84] sm:$0xe] }
  0xb7   : > { %5442 = vmatmul.mubr.msk.bf16.gmra.mrb[28].mxu0 %vm450_vm4, %v5821_v49  ;;  %v3223_v49 = vsel %vm5916_vm3, %v4859_v38, %v3222_v24  ;;  %v1104_v24 = vsel %vm6121_vm6, %v1102_v22, %v1103_v59  ;;  %v3240_v38 = vsel %vm5916_vm3, %v3238_v48, %v3239_v35 }
  0xb8   : > { %5447 = vmatprep.mubr.msk.bf16.mxu0 %vm450_vm4, %v4873_v17  ;;  %v3230_v17 = vsel %vm5916_vm3, %v4860_v27, %v3229_v31  ;;  %v4876_v33 = vcombine.low %v3223_v49, %v3226_v12  ;;  %v1101_v7 = vsel %vm6121_vm6, %v4464_v58, %v1100_v45  ;;  %v1111_v31 = vsel %vm6121_vm6, %v1109_v9, %v1110_v13 }
  0xb9   : > { %v4877_v23 = vcombine.low %v3230_v17, %v3233_v14  ;;  %v4481_v1 = vcombine.low %v1101_v7, %v1104_v24  ;;  %v4482_v62 = vcombine.low %v1108_v43, %v1111_v31  ;;  %v4878_v41 = vcombine.low %v3237_v54, %v3240_v38  ;;  %v6681_v17 = vld [vmem:[%s5914_s25 + $0xac] sm:$0xf]  ;;  %v4840_v7 = vld [vmem:[%s5914_s25 + $0xb0] sm:$0x1]  ;;  %v6703_v43 = vld [vmem:[%s5914_s25 + $0xb8] sm:$0xf] }
  0xba   : > { %v3253_v12 = vrot.slane %v4831_v61, 5  ;;  %v6706_v31 = vld [vmem:[%s5914_s25 + $0xc4] sm:$0xf]  ;;  %v3278_v54 = vrot.slane %v6703_v43, 5 }
  0xbb   : > { %v3285_v60 = vrot.slane %v6706_v31, 5 }
  0xbc   : > { %5294 = vmatmul.mubr.msk.bf16.gmra.mrb[16].mxu1 %vm450_vm4, %v4477_v15  ;;  %v4826_v15 = vld [vmem:[%s5914_s25 + $0x78] sm:$0xe]  ;;  %v3254_v2 = vsel %vm5916_vm3, %v3252_v56, %v3253_v12  ;;  %v5826_v12 = vld [vmem:[%s5914_s25 + $0x48] sm:$0xff]  }
  0xbd   : > { %5297 = vmatprep.mubr.msk.bf16.mxu1 %vm450_vm4, %v4478_v25  ;;  %v4862_v25 = vrot.slane %v4826_v15, 9  ;;  %v4835_v15 = vld [vmem:[%s5914_s25 + $0x9c] sm:$0xe] }
  0xbe   : > { %v4865_v35 = vrot.slane %v4835_v15, 9 }
  0xbf   : > { %5448 = vmatmul.mubr.msk.bf16.vlgmr.msra.gmra.mrb[0].mxu0 %vm450_vm4, %v4874_v10  ;;  %v6653_v10 = vld [vmem:[%s5914_s25 + $0x94] sm:$0xf]  ;;  %v3244_v27 = vsel %vm5916_vm3, %v4862_v25, %v3243_v0  ;;  %v4837_v0 = vld [vmem:[%s5914_s25 + $0xa4] sm:$0x1]  ;;  %v4866_v25 = vrot.slane %v4838_v16, 9 }
  0xc0   : > { %5480 = vmatpush3.bf16.msra.mxu0 %v3880_v47  ;;  %5451 = vmatprep.mubr.msk.bf16.mxu0 %vm450_vm4, %v4875_v42  ;;  %v4466_v42 = vrot.slane %v970_v28, 10  ;;  %v3257_v45 = vrot.slane %v6653_v10, 5  ;;  %v4832_v47 = vld [vmem:[%s5914_s25 + $0x90] sm:$0xe]  ;;  %v4879_v49 = vcombine.low %v3244_v27, %v3247_v19  ;;  %v3267_v24 = vrot.slane %v4837_v0, 5 }
  0xc1   : > { %v4864_v58 = vrot.slane %v4832_v47, 9  ;;  %v3281_v47 = vrot.slane %v4843_v51, 5 }
  0xc2   : > { %v1115_v4 = vsel %vm6121_vm6, %v4466_v42, %v1114_v32  ;;  %v3259_v59 = vrot.slane %v3257_v45, 4  ;;  %v3274_v32 = vrot.slane %v4840_v7, 5 }
  0xc3   : > { %v4483_v14 = vcombine.low %v1115_v4, %v1118_v11  ;;  %v3258_v9 = vsel %vm5916_vm3, %v4864_v58, %v3257_v45  ;;  %v3280_v45 = vrot.slane %v3278_v54, 4 }
  0xc4   : > { %5298 = vmatmul.mubr.msk.bf16.gmra.mrb[20].mxu1 %vm450_vm4, %v4479_v55  ;;  %v4863_v55 = vrot.slane %v4829_v44, 9  ;;  %v3261_v13 = vsel %vm5916_vm3, %v3259_v59, %v3260_v39  ;;  %v4844_v44 = vld [vmem:[%s5914_s25 + $0xc0] sm:$0xe] }
  0xc5   : > { %5301 = vmatprep.mubr.msk.bf16.mxu1 %vm450_vm4, %v4480_v40  ;;  %v6678_v40 = vld [vmem:[%s5914_s25 + $0xa0] sm:$0xf]  ;;  %v4881_v48 = vcombine.low %v3258_v9, %v3261_v13  ;;  %v4868_v53 = vrot.slane %v4844_v44, 9  ;;  %v3282_v56 = vsel %vm5916_vm3, %v3280_v45, %v3281_v47  ;;  %v5830_v47 = vld [vmem:[%s5914_s25 + $0x78] sm:$0xff]  }
  0xc6   : > { %v3251_v22 = vsel %vm5916_vm3, %v4863_v55, %v3250_v21  ;;  %v3264_v50 = vrot.slane %v6678_v40, 5  ;;  %v4846_v21 = vld [vmem:[%s5914_s25 + $0xc8] sm:$0x1]  ;;  %v6730_v55 = vld [vmem:[%s5914_s25 + $0xd0] sm:$0xf] }
  0xc7   : > { %5452 = vmatmul.mubr.msk.bf16.gmra.mrb[4].mxu0 %vm450_vm4, %v4876_v33  ;;  %v3271_v33 = vrot.slane %v6681_v17, 5  ;;  %v4880_v20 = vcombine.low %v3251_v22, %v3254_v2  ;;  %v3288_v4 = vrot.slane %v4846_v21, 5  ;;  %v3292_v58 = vrot.slane %v6730_v55, 5  ;;  %v4849_v22 = vld [vmem:[%s5914_s25 + $0xd4] sm:$0x1] }
  0xc8   : > { %5455 = vmatprep.mubr.msk.bf16.mxu0 %vm450_vm4, %v4877_v23  ;;  %v3266_v23 = vrot.slane %v3264_v50, 4  ;;  %v3265_v18 = vsel %vm5916_vm3, %v4865_v35, %v3264_v50  ;;  %v3286_v59 = vsel %vm5916_vm3, %v4868_v53, %v3285_v60  ;;  %v4852_v50 = vld [vmem:[%s5914_s25 + $0xe0] sm:$0x1]  ;;  %v5827_v35 = vld [vmem:[%s5914_s25 + $0x54] sm:$0xff]   ;;  %v3678_v53 = vrot.slane %v6531_v29, 6 }
  0xc9   : > { %v3273_v28 = vrot.slane %v3271_v33, 4  ;;  %v3272_v38 = vsel %vm5916_vm3, %v4866_v25, %v3271_v33  ;;  %v3294_v0 = vrot.slane %v3292_v58, 4  ;;  %v3295_v33 = vrot.slane %v4849_v22, 5  ;;  %v5828_v25 = vld [vmem:[%s5914_s25 + $0x60] sm:$0xff]  }
  0xca   : > { %v3268_v36 = vsel %vm5916_vm3, %v3266_v23, %v3267_v24 }
  0xcb   : > { %v3275_v42 = vsel %vm5916_vm3, %v3273_v28, %v3274_v32  ;;  %v4882_v27 = vcombine.low %v3265_v18, %v3268_v36  ;;  %v3296_v24 = vsel %vm5916_vm3, %v3294_v0, %v3295_v33  ;;  %v4853_v18 = vld [vmem:[%s5914_s25 + $0xe4] sm:$0xe]  ;;  %v4855_v36 = vld [vmem:[%s5914_s25 + $0xec] sm:$0x1]  ;;  %v3692_v0 = vrot.slane %v6568_v5, 6 }
  0xcc   : > { %5302 = vmatmul.mubr.msk.bf16.gmra.mrb[24].mxu1 %vm450_vm4, %v4481_v1  ;;  %v5824_v1 = vld [vmem:[%s5914_s25 + $0x30] sm:$0xff]   ;;  %v4883_v19 = vcombine.low %v3272_v38, %v3275_v42  ;;  %v4906_v38 = vld [vmem:[%s5914_s25 + $0x38] sm:$0x3]  ;;  %v4871_v51 = vrot.slane %v4853_v18, 9  ;;  %v3309_v44 = vrot.slane %v4855_v36, 5 }
  0xcd   : > { %5305 = vmatprep.mubr.msk.bf16.mxu1 %vm450_vm4, %v4482_v62  ;;  %v4841_v62 = vld [vmem:[%s5914_s25 + $0xb4] sm:$0xe] }
  0xce   : > { %v4867_v61 = vrot.slane %v4841_v62, 9 }
  0xcf   : > { %5456 = vmatmul.mubr.msk.bf16.gmra.mrb[8].mxu0 %vm450_vm4, %v4878_v41  ;;  %v3287_v41 = vrot.slane %v3285_v60, 4 }
  0xd0   : > { %5459 = vmatprep.mubr.msk.bf16.mxu0 %vm450_vm4, %v4879_v49  ;;  %v6733_v49 = vld [vmem:[%s5914_s25 + $0xdc] sm:$0xf]  ;;  %v3279_v11 = vsel %vm5916_vm3, %v4867_v61, %v3278_v54  ;;  %v4905_v54 = vld [vmem:[%s5914_s25 + $0x30] sm:$0xc] }
  0xd1   : > { %v3289_v39 = vsel %vm5916_vm3, %v3287_v41, %v3288_v4  ;;  %v3299_v2 = vrot.slane %v6733_v49, 5  ;;  %v4884_v9 = vcombine.low %v3279_v11, %v3282_v56  ;;  %v4937_v21 = vrot.slane %v4905_v54, 10  ;;  %v4908_v11 = vld [vmem:[%s5914_s25 + $0x44] sm:$0x3] }
  0xd2   : > { %v4885_v13 = vcombine.low %v3286_v59, %v3289_v39  ;;  %v3685_v56 = vrot.slane %v6541_v34, 6  ;;  %v3681_v22 = vrot.slane %v4908_v11, 6  ;;  %v5831_v34 = vld [vmem:[%s5914_s25 + $0x84] sm:$0xff]   ;;  %v5843_v11 = vld [vmem:[%s5914_s25 + $0x7c] sm:$0xf] }
  0xd3   : > { %v3301_v7 = vrot.slane %v3299_v2, 4 }
  0xd4   : > { %5306 = vmatmul.mubr.msk.bf16.gmra.mrb[28].mxu1 %vm450_vm4, %v4483_v14  ;;  %v4847_v14 = vld [vmem:[%s5914_s25 + $0xcc] sm:$0xe] }
  0xd5   : > { %5311 = vmatprep.mubr.msk.bf16.mxu1 %vm450_vm4, %v5822_v8  ;;  %v4850_v8 = vld [vmem:[%s5914_s25 + $0xd8] sm:$0xe]  ;;  %v4869_v15 = vrot.slane %v4847_v14, 9  ;;  %v3680_v14 = vrot.slane %v3678_v53, 4 }
  0xd6   : > { %v4870_v16 = vrot.slane %v4850_v8, 9  ;;  %v3687_v8 = vrot.slane %v3685_v56, 4 }
  0xd7   : > { %5460 = vmatmul.mubr.msk.bf16.gmra.mrb[12].mxu0 %vm450_vm4, %v4880_v20  ;;  %v3302_v20 = vrot.slane %v4852_v50, 5  ;;  %v3293_v23 = vsel %vm5916_vm3, %v4869_v15, %v3292_v58  ;;  %v4910_v58 = vld [vmem:[%s5914_s25 + $0x50] sm:$0x3] }
  0xd8   : > { %5463 = vmatprep.mubr.msk.bf16.mxu0 %vm450_vm4, %v4881_v48  ;;  %v6756_v48 = vld [vmem:[%s5914_s25 + $0xe8] sm:$0xf]  ;;  %v3300_v32 = vsel %vm5916_vm3, %v4870_v16, %v3299_v2  ;;  %v4886_v42 = vcombine.low %v3293_v23, %v3296_v24  ;;  %v3688_v50 = vrot.slane %v4910_v58, 6  ;;  %v5832_v15 = vld [vmem:[%s5914_s25 + $0x90] sm:$0xff]   ;;  %v4913_v23 = vld [vmem:[%s5914_s25 + $0x60] sm:$0xc] }
  0xd9   : > { %v3306_v28 = vrot.slane %v6756_v48, 5  ;;  %v4914_v24 = vld [vmem:[%s5914_s25 + $0x68] sm:$0x3]  ;;  %v4941_v18 = vrot.slane %v4913_v23, 10 }
  0xda   : > { %v3689_v16 = vsel %vm6121_vm6, %v3687_v8, %v3688_v50  ;;  %v6842_v58 = vld [vmem:[%s5914_s25 + $0x88] sm:$0xf]  ;;  %v5836_v8 = vld [vmem:[%s5914_s25 + $0xc0] sm:$0xff]  }
  0xdb   : > { %v3308_v60 = vrot.slane %v3306_v28, 4  ;;  %v3307_v61 = vsel %vm5916_vm3, %v4871_v51, %v3306_v28  ;;  %v3706_v51 = vrot.slane %v6606_v46, 6 }
  0xdc   : > { %5312 = vmatmul.mubr.msk.bf16.vlgmr.msra.gmra.mrb[0].mxu1 %vm450_vm4, %v5823_v52  ;;  %v3303_v52 = vsel %vm5916_vm3, %v3301_v7, %v3302_v20  ;;  %v4911_v7 = vld [vmem:[%s5914_s25 + $0x54] sm:$0xc]  ;;  %v4912_v20 = vld [vmem:[%s5914_s25 + $0x5c] sm:$0x3] }
  0xdd   : > { %5514 = vmatpush3.bf16.msra.mxu1 %v5897_v3  ;;  %5315 = vmatprep.mubr.msk.bf16.mxu1 %vm450_vm4, %v5824_v1  ;;  %v5825_v3 = vld [vmem:[%s5914_s25 + $0x3c] sm:$0xff]   ;;  %v3671_v1 = vrot.slane %v6513_v63, 6  ;;  %v4887_v62 = vcombine.low %v3300_v32, %v3303_v52  ;;  %v5829_v63 = vld [vmem:[%s5914_s25 + $0x6c] sm:$0xff]   ;;  %v3310_v45 = vsel %vm5916_vm3, %v3308_v60, %v3309_v44  ;;  %v4940_v28 = vrot.slane %v4911_v7, 10 }
  0xde   : > { %v4888_v59 = vcombine.low %v3307_v61, %v3310_v45  ;;  %v3694_v32 = vrot.slane %v3692_v0, 4  ;;  %v3695_v52 = vrot.slane %v4912_v20, 6 }
  0xdf   : > { %5464 = vmatmul.mubr.msk.bf16.gmra.mrb[16].mxu0 %vm450_vm4, %v4882_v27  ;;  %v3673_v27 = vrot.slane %v3671_v1, 4  ;;  %v3672_v41 = vsel %vm6121_vm6, %v4937_v21, %v3671_v1  ;;  %v3702_v1 = vrot.slane %v4914_v24, 6  ;;  %v3693_v54 = vsel %vm6121_vm6, %v4940_v28, %v3692_v0  ;;  %v4916_v21 = vld [vmem:[%s5914_s25 + $0x74] sm:$0x3]  ;;  %v4592_v28 = vld [vmem:[%s5914_s25 + $0x84] sm:$0xe] }
  0xe0   : > { %5467 = vmatprep.mubr.msk.bf16.mxu0 %vm450_vm4, %v4883_v19  ;;  %v3674_v19 = vrot.slane %v4906_v38, 6  ;;  %v3696_v38 = vsel %vm6121_vm6, %v3694_v32, %v3695_v52  ;;  %v4594_v32 = vld [vmem:[%s5914_s25 + $0x8c] sm:$0x1] }
  0xe1   : > { %v4957_v61 = vcombine.low %v3693_v54, %v3696_v38  ;;  %v4923_v38 = vld [vmem:[%s5914_s25 + $0x9c] sm:$0xc] }
  0xe2   : > { %v3675_v4 = vsel %vm6121_vm6, %v3673_v27, %v3674_v19  ;;  %v4917_v27 = vld [vmem:[%s5914_s25 + $0x78] sm:$0xc]  ;;  %v3713_v19 = vrot.slane %v6620_v57, 6  ;;  %v1926_v57 = vrot.slane %v5843_v11, 5  ;;  %v4946_v11 = vrot.slane %v4923_v38, 10 }
  0xe3   : > { %v4954_v29 = vcombine.low %v3672_v41, %v3675_v4  ;;  %v4943_v41 = vrot.slane %v4917_v27, 10  ;;  %v4924_v27 = vld [vmem:[%s5914_s25 + $0xa4] sm:$0x3] }
  0xe4   : > { %5316 = vmatmul.mubr.msk.bf16.gmra.mrb[4].mxu1 %vm450_vm4, %v5825_v3  ;;  %v4907_v3 = vld [vmem:[%s5914_s25 + $0x3c] sm:$0xc]  ;;  %v3715_v4 = vrot.slane %v3713_v19, 4  ;;  %v1928_v0 = vrot.slane %v1926_v57, 4 }
  0xe5   : > { %5319 = vmatprep.mubr.msk.bf16.mxu1 %vm450_vm4, %v5826_v12  ;;  %v4909_v12 = vld [vmem:[%s5914_s25 + $0x48] sm:$0xc]  ;;  %v4938_v39 = vrot.slane %v4907_v3, 10  ;;  %v3714_v50 = vsel %vm6121_vm6, %v4943_v41, %v3713_v19  ;;  %v3734_v19 = vrot.slane %v6678_v40, 6 }
  0xe6   : > { %v4939_v2 = vrot.slane %v4909_v12, 10  ;;  %v4591_v12 = vld [vmem:[%s5914_s25 + $0x80] sm:$0x1] }
  0xe7   : > { %5468 = vmatmul.mubr.msk.bf16.gmra.mrb[20].mxu0 %vm450_vm4, %v4884_v9  ;;  %v3679_v9 = vsel %vm6121_vm6, %v4938_v39, %v3678_v53  ;;  %v3709_v53 = vrot.slane %v4916_v21, 6  ;;  %v4919_v39 = vld [vmem:[%s5914_s25 + $0x84] sm:$0xc]  ;;  %v1936_v21 = vrot.slane %v4594_v32, 5  ;;  %v3755_v32 = vrot.slane %v6706_v31, 6 }
  0xe8   : > { %5471 = vmatprep.mubr.msk.bf16.mxu0 %vm450_vm4, %v4885_v13  ;;  %v3682_v13 = vsel %vm6121_vm6, %v3680_v14, %v3681_v22  ;;  %v3686_v33 = vsel %vm6121_vm6, %v4939_v2, %v3685_v56  ;;  %v4589_v56 = vld [vmem:[%s5914_s25 + $0x78] sm:$0xe]  ;;  %v3720_v14 = vrot.slane %v6650_v37, 6  ;;  %v4944_v7 = vrot.slane %v4919_v39, 10  ;;  %v5846_v39 = vld [vmem:[%s5914_s25 + $0xa0] sm:$0xf] }
  0xe9   : > { %v4956_v5 = vcombine.low %v3686_v33, %v3689_v16  ;;  %v1929_v33 = vrot.slane %v4591_v12, 5  ;;  %v4922_v16 = vld [vmem:[%s5914_s25 + $0x98] sm:$0x3] }
  0xea   : > { %v3721_v54 = vsel %vm6121_vm6, %v4944_v7, %v3720_v14 }
  0xec   : > { %5320 = vmatmul.mubr.msk.bf16.gmra.mrb[8].mxu1 %vm450_vm4, %v5827_v35  ;;  %v3699_v35 = vrot.slane %v6577_v30, 6  ;;  %v5833_v30 = vld [vmem:[%s5914_s25 + $0x9c] sm:$0xff]  }
  0xed   : > { %5323 = vmatprep.mubr.msk.bf16.mxu1 %vm450_vm4, %v5828_v25  ;;  %v4955_v25 = vcombine.low %v3679_v9, %v3682_v13  ;;  %v4921_v9 = vld [vmem:[%s5914_s25 + $0x90] sm:$0xc]  ;;  %v3727_v13 = vrot.slane %v6653_v10, 6 }
  0xee   : > { %v3701_v36 = vrot.slane %v3699_v35, 4  ;;  %v3700_v60 = vsel %vm6121_vm6, %v4941_v18, %v3699_v35  ;;  %v3722_v35 = vrot.slane %v3720_v14, 4  ;;  %v4945_v10 = vrot.slane %v4921_v9, 10  ;;  %v5847_v9 = vld [vmem:[%s5914_s25 + $0xac] sm:$0xf] }
  0xef   : > { %5472 = vmatmul.mubr.msk.bf16.gmra.mrb[24].mxu0 %vm450_vm4, %v4886_v42  ;;  %v5834_v42 = vld [vmem:[%s5914_s25 + $0xa8] sm:$0xff]   ;;  %v1947_v14 = vrot.slane %v5846_v39, 5 }
  0xf0   : > { %5475 = vmatprep.mubr.msk.bf16.mxu0 %vm450_vm4, %v4887_v62  ;;  %v4915_v62 = vld [vmem:[%s5914_s25 + $0x6c] sm:$0xc]  ;;  %v3703_v44 = vsel %vm6121_vm6, %v3701_v36, %v3702_v1  ;;  %v1930_v36 = vsel %vm5916_vm3, %v1928_v0, %v1929_v33  ;;  %v5845_v1 = vld [vmem:[%s5914_s25 + $0x94] sm:$0xf]  ;;  %v4601_v33 = vld [vmem:[%s5914_s25 + $0xa8] sm:$0xe] }
  0xf1   : > { %v4942_v46 = vrot.slane %v4915_v62, 10  ;;  %v4958_v45 = vcombine.low %v3700_v60, %v3703_v44  ;;  %v4597_v62 = vld [vmem:[%s5914_s25 + $0x98] sm:$0x1]  ;;  %v4622_v44 = vrot.slane %v4592_v28, 9  ;;  %v4929_v28 = vld [vmem:[%s5914_s25 + $0xc0] sm:$0xc] }
  0xf2   : > { %v1943_v41 = vrot.slane %v4597_v62, 5 }
  0xf3   : > { %v3707_v22 = vsel %vm6121_vm6, %v4942_v46, %v3706_v51 }
  0xf4   : > { %5324 = vmatmul.mubr.msk.bf16.gmra.mrb[12].mxu1 %vm450_vm4, %v5829_v63  ;;  %v4918_v63 = vld [vmem:[%s5914_s25 + $0x80] sm:$0x3] }
  0xf5   : > { %5327 = vmatprep.mubr.msk.bf16.mxu1 %vm450_vm4, %v5830_v47  ;;  %v3708_v47 = vrot.slane %v3706_v51, 4  ;;  %v3716_v3 = vrot.slane %v4918_v63, 6  ;;  %v5837_v51 = vld [vmem:[%s5914_s25 + $0xcc] sm:$0xff]  }
  0xf7   : > { %5476 = vmatmul.mubr.msk.bf16.gmra.mrb[28].mxu0 %vm450_vm4, %v4888_v59  ;;  %v1933_v59 = vrot.slane %v6842_v58, 5  ;;  %v3710_v2 = vsel %vm6121_vm6, %v3708_v47, %v3709_v53  ;;  %v3717_v37 = vsel %vm6121_vm6, %v3715_v4, %v3716_v3  ;;  %v4926_v4 = vld [vmem:[%s5914_s25 + $0xb0] sm:$0x3]  ;;  %v3741_v3 = vrot.slane %v6681_v17, 6 }
  0xf8   : > { %5481 = vmatprep.mubr.msk.bf16.mxu0 %vm450_vm4, %v4954_v29  ;;  %v5835_v29 = vld [vmem:[%s5914_s25 + $0xb4] sm:$0xff]   ;;  %v4959_v20 = vcombine.low %v3707_v22, %v3710_v2  ;;  %v4960_v24 = vcombine.low %v3714_v50, %v3717_v37  ;;  %v3736_v58 = vrot.slane %v3734_v19, 4  ;;  %v3744_v2 = vrot.slane %v4926_v4, 6 }
  0xf9   : > { %v1935_v52 = vrot.slane %v1933_v59, 4 }
  0xfb   : > { %v1937_v12 = vsel %vm5916_vm3, %v1935_v52, %v1936_v21 }
  0xfc   : > { %5328 = vmatmul.mubr.msk.bf16.gmra.mrb[16].mxu1 %vm450_vm4, %v5831_v34  ;;  %v4920_v34 = vld [vmem:[%s5914_s25 + $0x8c] sm:$0x3] }
  0xfd   : > { %5331 = vmatprep.mubr.msk.bf16.mxu1 %vm450_vm4, %v5832_v15  ;;  %v4621_v15 = vrot.slane %v4589_v56, 9  ;;  %v3723_v23 = vrot.slane %v4920_v34, 6  ;;  %v1934_v56 = vsel %vm5916_vm3, %v4622_v44, %v1933_v59  ;;  %v3743_v34 = vrot.slane %v3741_v3, 4 }
  0xfe   : > { %v4639_v37 = vcombine.low %v1934_v56, %v1937_v12  ;;  %v3757_v44 = vrot.slane %v3755_v32, 4  ;;  %v3762_v12 = vrot.slane %v6730_v55, 6  ;;  %v4934_v55 = vld [vmem:[%s5914_s25 + $0xe0] sm:$0x3] }
  0xff   : > { %5482 = vmatmul.mubr.msk.bf16.vlgmr.msra.gmra.mrb[0].mxu0 %vm450_vm4, %v4955_v25  ;;  %v3729_v25 = vrot.slane %v3727_v13, 4  ;;  %v1927_v18 = vsel %vm5916_vm3, %v4621_v15, %v1926_v57  ;;  %v3724_v60 = vsel %vm6121_vm6, %v3722_v35, %v3723_v23  ;;  %v3737_v57 = vrot.slane %v4924_v27, 6  ;;  %v4927_v23 = vld [vmem:[%s5914_s25 + $0xb4] sm:$0xc] }
 0x100   : > { %5485 = vmatprep.mubr.msk.bf16.mxu0 %vm450_vm4, %v4956_v5  ;;  %v3730_v5 = vrot.slane %v4922_v16, 6  ;;  %v4638_v63 = vcombine.low %v1927_v18, %v1930_v36  ;;  %v4961_v40 = vcombine.low %v3721_v54, %v3724_v60  ;;  %v3735_v15 = vsel %vm6121_vm6, %v4946_v11, %v3734_v19  ;;  %v4603_v16 = vld [vmem:[%s5914_s25 + $0xb0] sm:$0x1]  ;;  %v4604_v27 = vld [vmem:[%s5914_s25 + $0xb4] sm:$0xe] }
 0x101   : > { %v3738_v7 = vsel %vm6121_vm6, %v3736_v58, %v3737_v57  ;;  %v3745_v52 = vsel %vm6121_vm6, %v3743_v34, %v3744_v2  ;;  %v4625_v18 = vrot.slane %v4601_v33, 9  ;;  %v4948_v38 = vrot.slane %v4927_v23, 10  ;;  %v5848_v19 = vld [vmem:[%s5914_s25 + $0xb8] sm:$0xf] }
 0x102   : > { %v3731_v46 = vsel %vm6121_vm6, %v3729_v25, %v3730_v5  ;;  %v4928_v5 = vld [vmem:[%s5914_s25 + $0xbc] sm:$0x3]  ;;  %v4626_v56 = vrot.slane %v4604_v27, 9  ;;  %v3769_v34 = vrot.slane %v6733_v49, 6  ;;  %v5850_v49 = vld [vmem:[%s5914_s25 + $0xd0] sm:$0xf] }
 0x103   : > { %v3751_v62 = vrot.slane %v4928_v5, 6  ;;  %v4612_v5 = vld [vmem:[%s5914_s25 + $0xd4] sm:$0x1] }
 0x104   : > { %5332 = vmatmul.mubr.msk.bf16.gmra.mrb[20].mxu1 %vm450_vm4, %v5833_v30  ;;  %v1940_v30 = vrot.slane %v5845_v1, 5  ;;  %v1957_v1 = vrot.slane %v4603_v16, 5 }
 0x105   : > { %5335 = vmatprep.mubr.msk.bf16.mxu1 %vm450_vm4, %v5834_v42  ;;  %v4595_v42 = vld [vmem:[%s5914_s25 + $0x90] sm:$0xe] }
 0x106   : > { %v4623_v47 = vrot.slane %v4595_v42, 9  ;;  %v1942_v53 = vrot.slane %v1940_v30, 4 }
 0x107   : > { %5486 = vmatmul.mubr.msk.bf16.gmra.mrb[4].mxu0 %vm450_vm4, %v4957_v61  ;;  %v3728_v61 = vsel %vm6121_vm6, %v4945_v10, %v3727_v13  ;;  %v1954_v13 = vrot.slane %v5847_v9, 5  ;;  %v3748_v10 = vrot.slane %v6703_v43, 6  ;;  %v4963_v43 = vcombine.low %v3735_v15, %v3738_v7 }
 0x108   : > { %5489 = vmatprep.mubr.msk.bf16.mxu0 %vm450_vm4, %v4958_v45  ;;  %v4925_v45 = vld [vmem:[%s5914_s25 + $0xa8] sm:$0xc]  ;;  %v4962_v17 = vcombine.low %v3728_v61, %v3731_v46  ;;  %v1941_v50 = vsel %vm5916_vm3, %v4623_v47, %v1940_v30  ;;  %v1944_v59 = vsel %vm5916_vm3, %v1942_v53, %v1943_v41  ;;  %v4930_v30 = vld [vmem:[%s5914_s25 + $0xc8] sm:$0x3]  ;;  %v5849_v47 = vld [vmem:[%s5914_s25 + $0xc4] sm:$0xf] }
 0x109   : > { %v4947_v22 = vrot.slane %v4925_v45, 10  ;;  %v1956_v36 = vrot.slane %v1954_v13, 4  ;;  %v3750_v42 = vrot.slane %v3748_v10, 4  ;;  %v3758_v21 = vrot.slane %v4930_v30, 6  ;;  %v4606_v45 = vld [vmem:[%s5914_s25 + $0xbc] sm:$0x1] }
 0x10a   : > { %v1955_v61 = vsel %vm5916_vm3, %v4625_v18, %v1954_v13  ;;  %v1968_v53 = vrot.slane %v5849_v47, 5  ;;  %v3749_v4 = vsel %vm6121_vm6, %v4948_v38, %v3748_v10  ;;  %v3764_v15 = vrot.slane %v3762_v12, 4 }
 0x10b   : > { %v3742_v25 = vsel %vm6121_vm6, %v4947_v22, %v3741_v3  ;;  %v1958_v46 = vsel %vm5916_vm3, %v1956_v36, %v1957_v1  ;;  %v4607_v3 = vld [vmem:[%s5914_s25 + $0xc0] sm:$0xe]  ;;  %v3752_v11 = vsel %vm6121_vm6, %v3750_v42, %v3751_v62  ;;  %v4932_v22 = vld [vmem:[%s5914_s25 + $0xd4] sm:$0x3]  ;;  %v1978_v30 = vrot.slane %v4612_v5, 5 }
 0x10c   : > { %5336 = vmatmul.mubr.msk.bf16.gmra.mrb[24].mxu1 %vm450_vm4, %v5835_v29  ;;  %v4598_v29 = vld [vmem:[%s5914_s25 + $0x9c] sm:$0xe]  ;;  %v4964_v60 = vcombine.low %v3742_v25, %v3745_v52  ;;  %v4642_v58 = vcombine.low %v1955_v61, %v1958_v46  ;;  %v4627_v2 = vrot.slane %v4607_v3, 9  ;;  %v4965_v9 = vcombine.low %v3749_v4, %v3752_v11  ;;  %v4936_v42 = vld [vmem:[%s5914_s25 + $0xec] sm:$0x3] }
 0x10d   : > { %5339 = vmatprep.mubr.msk.bf16.mxu1 %vm450_vm4, %v5836_v8  ;;  %v4600_v8 = vld [vmem:[%s5914_s25 + $0xa4] sm:$0x1]  ;;  %v4624_v0 = vrot.slane %v4598_v29, 9  ;;  %v3759_v29 = vsel %vm6121_vm6, %v3757_v44, %v3758_v21  ;;  %v3772_v25 = vrot.slane %v4934_v55, 6  ;;  %v3779_v27 = vrot.slane %v4936_v42, 6 }
 0x10e   : > { %v1950_v35 = vrot.slane %v4600_v8, 5  ;;  %v1970_v8 = vrot.slane %v1968_v53, 4  ;;  %v1969_v23 = vsel %vm5916_vm3, %v4627_v2, %v1968_v53 }
 0x10f   : > { %5490 = vmatmul.mubr.msk.bf16.gmra.mrb[8].mxu0 %vm450_vm4, %v4959_v20  ;;  %v1949_v20 = vrot.slane %v1947_v14, 4  ;;  %v1948_v54 = vsel %vm5916_vm3, %v4624_v0, %v1947_v14  ;;  %v1964_v14 = vrot.slane %v4606_v45, 5  ;;  %v3765_v0 = vrot.slane %v4932_v22, 6 }
 0x110   : > { %5493 = vmatprep.mubr.msk.bf16.mxu0 %vm450_vm4, %v4960_v24  ;;  %v4640_v24 = vcombine.low %v1941_v50, %v1944_v59  ;;  %v4933_v59 = vld [vmem:[%s5914_s25 + $0xd8] sm:$0xc] }
 0x111   : > { %v1951_v31 = vsel %vm5916_vm3, %v1949_v20, %v1950_v35  ;;  %v4951_v7 = vrot.slane %v4933_v59, 10  ;;  %v4610_v20 = vld [vmem:[%s5914_s25 + $0xcc] sm:$0xe]  ;;  %v1975_v35 = vrot.slane %v5850_v49, 5  ;;  %v3766_v52 = vsel %vm6121_vm6, %v3764_v15, %v3765_v0 }
 0x112   : > { %v4641_v41 = vcombine.low %v1948_v54, %v1951_v31  ;;  %v4628_v18 = vrot.slane %v4610_v20, 9  ;;  %v3776_v54 = vrot.slane %v6756_v48, 6 }
 0x113   : > { %v1977_v1 = vrot.slane %v1975_v35, 4  ;;  %v3770_v38 = vsel %vm6121_vm6, %v4951_v7, %v3769_v34 }
 0x114   : > { %5340 = vmatmul.mubr.msk.bf16.gmra.mrb[28].mxu1 %vm450_vm4, %v5837_v51  ;;  %v4949_v51 = vrot.slane %v4929_v28, 10  ;;  %v3778_v21 = vrot.slane %v3776_v54, 4 }
 0x115   : > { %5361 = vmatprep.mubr.msk.bf16.mxu1 %vm450_vm4, %v4638_v63  ;;  %v1961_v63 = vrot.slane %v5848_v19, 5  ;;  %v1979_v48 = vsel %vm5916_vm3, %v1977_v1, %v1978_v30 }
 0x116   : > { %v3756_v57 = vsel %vm6121_vm6, %v4949_v51, %v3755_v32  ;;  %v1976_v51 = vsel %vm5916_vm3, %v4628_v18, %v1975_v35  ;;  %v3780_v61 = vsel %vm6121_vm6, %v3778_v21, %v3779_v27 }
 0x117   : > { %5494 = vmatmul.mubr.msk.bf16.gmra.mrb[12].mxu0 %vm450_vm4, %v4961_v40  ;;  %v4609_v40 = vld [vmem:[%s5914_s25 + $0xc8] sm:$0x1]  ;;  %v1963_v39 = vrot.slane %v1961_v63, 4  ;;  %v1962_v13 = vsel %vm5916_vm3, %v4626_v56, %v1961_v63  ;;  %v4966_v33 = vcombine.low %v3756_v57, %v3759_v29  ;;  %v4645_v19 = vcombine.low %v1976_v51, %v1979_v48 }
 0x118   : > { %5497 = vmatprep.mubr.msk.bf16.mxu0 %vm450_vm4, %v4962_v17  ;;  %v4931_v17 = vld [vmem:[%s5914_s25 + $0xcc] sm:$0xc]  ;;  %v1971_v50 = vrot.slane %v4609_v40, 5 }
 0x119   : > { %v1965_v16 = vsel %vm5916_vm3, %v1963_v39, %v1964_v14 }
 0x11a   : > { %v1972_v10 = vsel %vm5916_vm3, %v1970_v8, %v1971_v50  ;;  %v4643_v28 = vcombine.low %v1962_v13, %v1965_v16 }
 0x11b   : > { %v4644_v36 = vcombine.low %v1969_v23, %v1972_v10 }
 0x11c   : > { %5362 = vmatmul.mubr.msk.bf16.vlgmr.msra.gmra.mrb[16].mxu1 %vm450_vm4, %v4639_v37  ;;  %v4950_v37 = vrot.slane %v4931_v17, 10  ;;  %v7010_v17 = vld [vmem:[%s7125_s2] ss:$0 sm:$0xff] }
 0x11d   : > { %5365 = vmatprep.mubr.msk.bf16.mxu1 %vm450_vm4, %v4640_v24  ;;  %v3771_v24 = vrot.slane %v3769_v34, 4 }
 0x11e   : > { %v3763_v32 = vsel %vm6121_vm6, %v4950_v37, %v3762_v12 }
 0x11f   : > { %5498 = vmatmul.mubr.msk.bf16.gmra.mrb[16].mxu0 %vm450_vm4, %v4963_v43  ;;  %v4935_v43 = vld [vmem:[%s5914_s25 + $0xe4] sm:$0xc]  ;;  %v3773_v31 = vsel %vm6121_vm6, %v3771_v24, %v3772_v25  ;;  %v4967_v62 = vcombine.low %v3763_v32, %v3766_v52 }
 0x120   : > { %5501 = vmatprep.mubr.msk.bf16.mxu0 %vm450_vm4, %v4964_v60  ;;  %v4952_v60 = vrot.slane %v4935_v43, 10  ;;  %v4968_v44 = vcombine.low %v3770_v38, %v3773_v31 }
 0x122   : > { %v3777_v63 = vsel %vm6121_vm6, %v4952_v60, %v3776_v54 }
 0x123   : > { %v4969_v46 = vcombine.low %v3777_v63, %v3780_v61 }
 0x124   : > { %5366 = vmatmul.mubr.msk.bf16.gmra.mrb[20].mxu1 %vm450_vm4, %v4641_v41 }
 0x125   : > { %5369 = vmatprep.mubr.msk.bf16.mxu1 %vm450_vm4, %v4642_v58 }
 0x127   : > { %5502 = vmatmul.mubr.msk.bf16.gmra.mrb[20].mxu0 %vm450_vm4, %v4965_v9 }
 0x128   : > { %5505 = vmatprep.mubr.msk.bf16.mxu0 %vm450_vm4, %v4966_v33 }
 0x12c   : > { %5370 = vmatmul.mubr.msk.bf16.gmra.mrb[24].mxu1 %vm450_vm4, %v4643_v28 }
 0x12d   : > { %5373 = vmatprep.mubr.msk.bf16.mxu1 %vm450_vm4, %v4644_v36 }
 0x12f   : > { %5506 = vmatmul.mubr.msk.bf16.gmra.mrb[24].mxu0 %vm450_vm4, %v4967_v62 }
 0x130   : > { %5509 = vmatprep.mubr.msk.bf16.mxu0 %vm450_vm4, %v4968_v44 }
 0x134   : > { %5374 = vmatmul.mubr.msk.bf16.gmra.mrb[28].mxu1 %vm450_vm4, %v4645_v19 }
 0x137   : > { %5510 = vmatmul.mubr.msk.bf16.gmra.mrb[28].mxu0 %vm450_vm4, %v4969_v46 }
 0x1af   : > { %v5313_v6 = vpop.f32.mrb[0].mxu1 }
 0x1b0   : > { %v1613_v45 = vpop.f32.mrb[1].mxu1 }
 0x1b1   : > { %v5314_v47 = vpop.f32.mrb[2].mxu1 }
 0x1b2   : > { %v1616_v53 = vpop.f32.mrb[3].mxu1 }
 0x1b7   : > { %v5317_v41 = vpop.f32.mrb[4].mxu1 }
 0x1b8   : > { %v1629_v4 = vpop.f32.mrb[5].mxu1 }
 0x1b9   : > { %v5318_v3 = vpop.f32.mrb[6].mxu1 }
 0x1ba   : > { %v1632_v40 = vpop.f32.mrb[7].mxu1 }
 0x1bf   : > { %v5321_v11 = vpop.f32.mrb[8].mxu1 }
 0x1c0   : > { %v1645_v57 = vpop.f32.mrb[9].mxu1 }
 0x1c1   : > { %v6995_v56 = vpop.f32.mrb[10].mxu1 }
 0x1c2   : > { %v6997_v26 = vpop.f32.mrb[11].mxu1 }
 0x1c7   : > { %v6999_v12 = vpop.f32.mrb[12].mxu1 }
 0x1c8   : > { %v7001_v58 = vpop.f32.mrb[13].mxu1 }
 0x1c9   : > { %v7003_v29 = vpop.f32.mrb[14].mxu1 }
 0x1ca   : > { %v7005_v39 = vpop.f32.mrb[15].mxu1 }
 0x1d2   : > { %v5483_v14 = vpop.f32.mrb[0].mxu0 }
 0x1d3   : > { %v5515_v22 = vadd.f32 %v5483_v14, %v5313_v6  ;;  %v3916_v2 = vpop.f32.mrb[1].mxu0 }
 0x1d4   : > { %v5516_v8 = vadd.f32 %v3916_v2, %v1613_v45  ;;  %v5484_v50 = vpop.f32.mrb[2].mxu0 }
 0x1d5   : > { %v4084_v59 = vadd.f32 %v5515_v22, %v7010_v17  ;;  %v5517_v34 = vadd.f32 %v5484_v50, %v5314_v47  ;;  %v3919_v9 = vpop.f32.mrb[3].mxu0 }
 0x1d6   : > { %v4082_v55 = vadd.f32 %v5516_v8, %v7010_v17  ;;  %v5518_v13 = vadd.f32 %v3919_v9, %v1616_v53 }
 0x1d7   : > { %v4116_v37 = vmax.f32 %v4084_v59, 0.0  ;;  %v4085_v15 = vadd.f32 %v5517_v34, %v7010_v17 }
 0x1d8   : > { %v4114_v0 = vmax.f32 %v4082_v55, 0.0  ;;  %v4083_v33 = vadd.f32 %v5518_v13, %v7010_v17 }
 0x1d9   : > { %v5024_v16 = vpack.c.bf16 %v4116_v37, %v4116_v37  ;;  %v4117_v7 = vmax.f32 %v4085_v15, 0.0 }
 0x1da   : > { %v5022_v20 = vpack.c.bf16 %v4114_v0, %v4114_v0  ;;  %v4115_v49 = vmax.f32 %v4083_v33, 0.0  ;;  %v5487_v35 = vpop.f32.mrb[4].mxu0 }
 0x1db   : > { %4277 = vst.msk [vmem:[%s7019_s18 + $0x8] sm:$0xf] %vm4274_vm7, %v5024_v16  ;;  %v5025_v23 = vpack.c.bf16 %v4117_v7, %v4117_v7  ;;  %v5519_v10 = vadd.f32 %v5487_v35, %v5317_v41  ;;  %v3932_v24 = vpop.f32.mrb[5].mxu0 }
 0x1dc   : > { %4275 = vst.msk [vmem:[%s7019_s18] sm:$0xf] %vm4274_vm7, %v5022_v20  ;;  %v5023_v25 = vpack.c.bf16 %v4115_v49, %v4115_v49  ;;  %v5520_v5 = vadd.f32 %v3932_v24, %v1629_v4  ;;  %v5488_v28 = vpop.f32.mrb[6].mxu0 }
 0x1dd   : > { %4278 = vst.msk [vmem:[%s7019_s18 + $0xc] sm:$0xf] %vm4274_vm7, %v5025_v23  ;;  %v4088_v32 = vadd.f32 %v5519_v10, %v7010_v17  ;;  %v5521_v52 = vadd.f32 %v5488_v28, %v5318_v3  ;;  %v3935_v18 = vpop.f32.mrb[7].mxu0 }
 0x1de   : > { %4276 = vst.msk [vmem:[%s7019_s18 + $0x4] sm:$0xf] %vm4274_vm7, %v5023_v25  ;;  %v4086_v36 = vadd.f32 %v5520_v5, %v7010_v17  ;;  %v5522_v1 = vadd.f32 %v3935_v18, %v1632_v40 }
 0x1df   : > { %v4120_v30 = vmax.f32 %v4088_v32, 0.0  ;;  %v4089_v43 = vadd.f32 %v5521_v52, %v7010_v17 }
 0x1e0   : > { %v4118_v54 = vmax.f32 %v4086_v36, 0.0  ;;  %v4087_v38 = vadd.f32 %v5522_v1, %v7010_v17 }
 0x1e1   : > { %v5028_v31 = vpack.c.bf16 %v4120_v30, %v4120_v30  ;;  %v4121_v42 = vmax.f32 %v4089_v43, 0.0 }
 0x1e2   : > { %v5026_v62 = vpack.c.bf16 %v4118_v54, %v4118_v54  ;;  %v4119_v51 = vmax.f32 %v4087_v38, 0.0  ;;  %v5491_v60 = vpop.f32.mrb[8].mxu0 }
 0x1e3   : > { %4281 = vst.msk [vmem:[%s7019_s18 + $0x18] sm:$0xf] %vm4274_vm7, %v5028_v31  ;;  %v5029_v44 = vpack.c.bf16 %v4121_v42, %v4121_v42  ;;  %v5523_v48 = vadd.f32 %v5491_v60, %v5321_v11  ;;  %v3948_v21 = vpop.f32.mrb[9].mxu0 }
 0x1e4   : > { %4279 = vst.msk [vmem:[%s7019_s18 + $0x10] sm:$0xf] %vm4274_vm7, %v5026_v62  ;;  %v5027_v27 = vpack.c.bf16 %v4119_v51, %v4119_v51  ;;  %v5524_v19 = vadd.f32 %v3948_v21, %v1645_v57  ;;  %v5492_v63 = vpop.f32.mrb[10].mxu0 }
 0x1e5   : > { %4282 = vst.msk [vmem:[%s7019_s18 + $0x1c] sm:$0xf] %vm4274_vm7, %v5029_v44  ;;  %v4092_v61 = vadd.f32 %v5523_v48, %v7010_v17  ;;  %v5525_v46 = vadd.f32 %v5492_v63, %v6995_v56  ;;  %v3951_v6 = vpop.f32.mrb[11].mxu0 }
 0x1e6   : > { %4280 = vst.msk [vmem:[%s7019_s18 + $0x14] sm:$0xf] %vm4274_vm7, %v5027_v27  ;;  %v4090_v45 = vadd.f32 %v5524_v19, %v7010_v17  ;;  %v5526_v47 = vadd.f32 %v3951_v6, %v6997_v26 }
 0x1e7   : > { %v4124_v53 = vmax.f32 %v4092_v61, 0.0  ;;  %v4093_v41 = vadd.f32 %v5525_v46, %v7010_v17 }
 0x1e8   : > { %v4122_v4 = vmax.f32 %v4090_v45, 0.0  ;;  %v4091_v3 = vadd.f32 %v5526_v47, %v7010_v17 }
 0x1e9   : > { %v5032_v40 = vpack.c.bf16 %v4124_v53, %v4124_v53  ;;  %v4125_v11 = vmax.f32 %v4093_v41, 0.0 }
 0x1ea   : > { %v5030_v57 = vpack.c.bf16 %v4122_v4, %v4122_v4  ;;  %v4123_v56 = vmax.f32 %v4091_v3, 0.0  ;;  %v5495_v14 = vpop.f32.mrb[12].mxu0 }
 0x1eb   : > { %4285 = vst.msk [vmem:[%s7019_s18 + $0x28] sm:$0xf] %vm4274_vm7, %v5032_v40  ;;  %v5033_v22 = vpack.c.bf16 %v4125_v11, %v4125_v11  ;;  %v5527_v2 = vadd.f32 %v5495_v14, %v6999_v12  ;;  %v3964_v8 = vpop.f32.mrb[13].mxu0 }
 0x1ec   : > { %4283 = vst.msk [vmem:[%s7019_s18 + $0x20] sm:$0xf] %vm4274_vm7, %v5030_v57  ;;  %v5031_v26 = vpack.c.bf16 %v4123_v56, %v4123_v56  ;;  %v5528_v50 = vadd.f32 %v3964_v8, %v7001_v58  ;;  %v5496_v59 = vpop.f32.mrb[14].mxu0 }
 0x1ed   : > { %4286 = vst.msk [vmem:[%s7019_s18 + $0x2c] sm:$0xf] %vm4274_vm7, %v5033_v22  ;;  %v4096_v34 = vadd.f32 %v5527_v2, %v7010_v17  ;;  %v5529_v9 = vadd.f32 %v5496_v59, %v7003_v29  ;;  %v3967_v55 = vpop.f32.mrb[15].mxu0 }
 0x1ee   : > { %4284 = vst.msk [vmem:[%s7019_s18 + $0x24] sm:$0xf] %vm4274_vm7, %v5031_v26  ;;  %v4094_v13 = vadd.f32 %v5528_v50, %v7010_v17  ;;  %v5530_v12 = vadd.f32 %v3967_v55, %v7005_v39 }
 0x1ef   : > { %v5363_v37 = vpop.f32.mrb[16].mxu1  ;;  %v4128_v15 = vmax.f32 %v4096_v34, 0.0  ;;  %v4097_v58 = vadd.f32 %v5529_v9, %v7010_v17 }
 0x1f0   : > { %v2179_v0 = vpop.f32.mrb[17].mxu1  ;;  %v4126_v33 = vmax.f32 %v4094_v13, 0.0  ;;  %v4095_v16 = vadd.f32 %v5530_v12, %v7010_v17 }
 0x1f1   : > { %v5364_v7 = vpop.f32.mrb[18].mxu1  ;;  %v5036_v29 = vpack.c.bf16 %v4128_v15, %v4128_v15  ;;  %v4129_v20 = vmax.f32 %v4097_v58, 0.0 }
 0x1f2   : > { %v2182_v49 = vpop.f32.mrb[19].mxu1  ;;  %v5034_v35 = vpack.c.bf16 %v4126_v33, %v4126_v33  ;;  %v4127_v23 = vmax.f32 %v4095_v16, 0.0  ;;  %v5499_v10 = vpop.f32.mrb[16].mxu0 }
 0x1f3   : > { %4289 = vst.msk [vmem:[%s7019_s18 + $0x38] sm:$0xf] %vm4274_vm7, %v5036_v29  ;;  %v5037_v39 = vpack.c.bf16 %v4129_v20, %v4129_v20  ;;  %v5531_v24 = vadd.f32 %v5499_v10, %v5363_v37  ;;  %v3980_v25 = vpop.f32.mrb[17].mxu0 }
 0x1f4   : > { %4287 = vst.msk [vmem:[%s7019_s18 + $0x30] sm:$0xf] %vm4274_vm7, %v5034_v35  ;;  %v5035_v5 = vpack.c.bf16 %v4127_v23, %v4127_v23  ;;  %v5532_v28 = vadd.f32 %v3980_v25, %v2179_v0  ;;  %v5500_v32 = vpop.f32.mrb[18].mxu0 }
 0x1f5   : > { %4290 = vst.msk [vmem:[%s7019_s18 + $0x3c] sm:$0xf] %vm4274_vm7, %v5037_v39  ;;  %v4100_v52 = vadd.f32 %v5531_v24, %v7010_v17  ;;  %v5533_v18 = vadd.f32 %v5500_v32, %v5364_v7  ;;  %v3983_v36 = vpop.f32.mrb[19].mxu0 }
 0x1f6   : > { %4288 = vst.msk [vmem:[%s7019_s18 + $0x34] sm:$0xf] %vm4274_vm7, %v5035_v5  ;;  %v4098_v1 = vadd.f32 %v5532_v28, %v7010_v17  ;;  %v5534_v30 = vadd.f32 %v3983_v36, %v2182_v49 }
 0x1f7   : > { %v5367_v43 = vpop.f32.mrb[20].mxu1  ;;  %v4132_v54 = vmax.f32 %v4100_v52, 0.0  ;;  %v4101_v38 = vadd.f32 %v5533_v18, %v7010_v17 }
 0x1f8   : > { %v2195_v31 = vpop.f32.mrb[21].mxu1  ;;  %v4130_v42 = vmax.f32 %v4098_v1, 0.0  ;;  %v4099_v62 = vadd.f32 %v5534_v30, %v7010_v17 }
 0x1f9   : > { %v5368_v51 = vpop.f32.mrb[22].mxu1  ;;  %v5040_v60 = vpack.c.bf16 %v4132_v54, %v4132_v54  ;;  %v4133_v44 = vmax.f32 %v4101_v38, 0.0 }
 0x1fa   : > { %v2198_v48 = vpop.f32.mrb[23].mxu1  ;;  %v5038_v21 = vpack.c.bf16 %v4130_v42, %v4130_v42  ;;  %v4131_v27 = vmax.f32 %v4099_v62, 0.0  ;;  %v5503_v19 = vpop.f32.mrb[20].mxu0 }
 0x1fb   : > { %4293 = vst.msk [vmem:[%s7019_s18 + $0x48] sm:$0xf] %vm4274_vm7, %v5040_v60  ;;  %v5041_v63 = vpack.c.bf16 %v4133_v44, %v4133_v44  ;;  %v5535_v61 = vadd.f32 %v5503_v19, %v5367_v43  ;;  %v3996_v46 = vpop.f32.mrb[21].mxu0 }
 0x1fc   : > { %4291 = vst.msk [vmem:[%s7019_s18 + $0x40] sm:$0xf] %vm4274_vm7, %v5038_v21  ;;  %v5039_v6 = vpack.c.bf16 %v4131_v27, %v4131_v27  ;;  %v5536_v45 = vadd.f32 %v3996_v46, %v2195_v31  ;;  %v5504_v47 = vpop.f32.mrb[22].mxu0 }
 0x1fd   : > { %4294 = vst.msk [vmem:[%s7019_s18 + $0x4c] sm:$0xf] %vm4274_vm7, %v5041_v63  ;;  %v4104_v53 = vadd.f32 %v5535_v61, %v7010_v17  ;;  %v5537_v41 = vadd.f32 %v5504_v47, %v5368_v51  ;;  %v3999_v4 = vpop.f32.mrb[23].mxu0 }
 0x1fe   : > { %4292 = vst.msk [vmem:[%s7019_s18 + $0x44] sm:$0xf] %vm4274_vm7, %v5039_v6  ;;  %v4102_v3 = vadd.f32 %v5536_v45, %v7010_v17  ;;  %v5538_v40 = vadd.f32 %v3999_v4, %v2198_v48 }
 0x1ff   : > { %v5371_v11 = vpop.f32.mrb[24].mxu1  ;;  %v4136_v57 = vmax.f32 %v4104_v53, 0.0  ;;  %v4105_v56 = vadd.f32 %v5537_v41, %v7010_v17 }
 0x200   : > { %v2211_v14 = vpop.f32.mrb[25].mxu1  ;;  %v4134_v22 = vmax.f32 %v4102_v3, 0.0  ;;  %v4103_v2 = vadd.f32 %v5538_v40, %v7010_v17 }
 0x201   : > { %v5372_v8 = vpop.f32.mrb[26].mxu1  ;;  %v5044_v26 = vpack.c.bf16 %v4136_v57, %v4136_v57  ;;  %v4137_v50 = vmax.f32 %v4105_v56, 0.0 }
 0x202   : > { %v2214_v59 = vpop.f32.mrb[27].mxu1  ;;  %v5042_v34 = vpack.c.bf16 %v4134_v22, %v4134_v22  ;;  %v4135_v9 = vmax.f32 %v4103_v2, 0.0  ;;  %v5507_v55 = vpop.f32.mrb[24].mxu0 }
 0x203   : > { %4297 = vst.msk [vmem:[%s7019_s18 + $0x58] sm:$0xf] %vm4274_vm7, %v5044_v26  ;;  %v5045_v13 = vpack.c.bf16 %v4137_v50, %v4137_v50  ;;  %v5539_v12 = vadd.f32 %v5507_v55, %v5371_v11  ;;  %v4012_v37 = vpop.f32.mrb[25].mxu0 }
 0x204   : > { %4295 = vst.msk [vmem:[%s7019_s18 + $0x50] sm:$0xf] %vm4274_vm7, %v5042_v34  ;;  %v5043_v15 = vpack.c.bf16 %v4135_v9, %v4135_v9  ;;  %v5540_v58 = vadd.f32 %v4012_v37, %v2211_v14  ;;  %v5508_v0 = vpop.f32.mrb[26].mxu0 }
 0x205   : > { %4298 = vst.msk [vmem:[%s7019_s18 + $0x5c] sm:$0xf] %vm4274_vm7, %v5045_v13  ;;  %v4108_v33 = vadd.f32 %v5539_v12, %v7010_v17  ;;  %v5541_v16 = vadd.f32 %v5508_v0, %v5372_v8  ;;  %v4015_v7 = vpop.f32.mrb[27].mxu0 }
 0x206   : > { %4296 = vst.msk [vmem:[%s7019_s18 + $0x54] sm:$0xf] %vm4274_vm7, %v5043_v15  ;;  %v4106_v29 = vadd.f32 %v5540_v58, %v7010_v17  ;;  %v5542_v20 = vadd.f32 %v4015_v7, %v2214_v59 }
 0x207   : > { %v5375_v49 = vpop.f32.mrb[28].mxu1  ;;  %v4140_v35 = vmax.f32 %v4108_v33, 0.0  ;;  %v4109_v23 = vadd.f32 %v5541_v16, %v7010_v17 }
 0x208   : > { %v2227_v10 = vpop.f32.mrb[29].mxu1  ;;  %v4138_v39 = vmax.f32 %v4106_v29, 0.0  ;;  %v4107_v24 = vadd.f32 %v5542_v20, %v7010_v17 }
 0x209   : > { %v5376_v25 = vpop.f32.mrb[30].mxu1  ;;  %v5048_v5 = vpack.c.bf16 %v4140_v35, %v4140_v35  ;;  %v4141_v28 = vmax.f32 %v4109_v23, 0.0 }
 0x20a   : > { %v2230_v32 = vpop.f32.mrb[31].mxu1  ;;  %v5046_v52 = vpack.c.bf16 %v4138_v39, %v4138_v39  ;;  %v4139_v18 = vmax.f32 %v4107_v24, 0.0  ;;  %v5511_v36 = vpop.f32.mrb[28].mxu0 }
 0x20b   : > { %4301 = vst.msk [vmem:[%s7019_s18 + $0x68] sm:$0xf] %vm4274_vm7, %v5048_v5  ;;  %v5049_v1 = vpack.c.bf16 %v4141_v28, %v4141_v28  ;;  %v5543_v30 = vadd.f32 %v5511_v36, %v5375_v49  ;;  %v4028_v43 = vpop.f32.mrb[29].mxu0 }
 0x20c   : > { %4299 = vst.msk [vmem:[%s7019_s18 + $0x60] sm:$0xf] %vm4274_vm7, %v5046_v52  ;;  %v5047_v54 = vpack.c.bf16 %v4139_v18, %v4139_v18  ;;  %v5544_v38 = vadd.f32 %v4028_v43, %v2227_v10  ;;  %v5512_v31 = vpop.f32.mrb[30].mxu0 }
 0x20d   : > { %4302 = vst.msk [vmem:[%s7019_s18 + $0x6c] sm:$0xf] %vm4274_vm7, %v5049_v1  ;;  %v4112_v42 = vadd.f32 %v5543_v30, %v7010_v17  ;;  %v5545_v62 = vadd.f32 %v5512_v31, %v5376_v25  ;;  %v4031_v51 = vpop.f32.mrb[31].mxu0 }
 0x20e   : > { %4300 = vst.msk [vmem:[%s7019_s18 + $0x64] sm:$0xf] %vm4274_vm7, %v5047_v54  ;;  %v4110_v60 = vadd.f32 %v5544_v38, %v7010_v17  ;;  %v5546_v44 = vadd.f32 %v4031_v51, %v2230_v32 }
 0x20f   : > { %v4144_v48 = vmax.f32 %v4112_v42, 0.0  ;;  %v4113_v21 = vadd.f32 %v5545_v62, %v7010_v17 }
 0x210   : > { %v4142_v27 = vmax.f32 %v4110_v60, 0.0  ;;  %v4111_v19 = vadd.f32 %v5546_v44, %v7010_v17 }
 0x211   : > { %v5052_v63 = vpack.c.bf16 %v4144_v48, %v4144_v48  ;;  %v4145_v61 = vmax.f32 %v4113_v21, 0.0 }
 0x212   : > { %v5050_v46 = vpack.c.bf16 %v4142_v27, %v4142_v27  ;;  %v4143_v6 = vmax.f32 %v4111_v19, 0.0 }
 0x213   : > { %4305 = vst.msk [vmem:[%s7019_s18 + $0x78] sm:$0xf] %vm4274_vm7, %v5052_v63  ;;  %v5053_v45 = vpack.c.bf16 %v4145_v61, %v4145_v61 }
 0x214   : > { %4303 = vst.msk [vmem:[%s7019_s18 + $0x70] sm:$0xf] %vm4274_vm7, %v5050_v46  ;;  %v5051_v47 = vpack.c.bf16 %v4143_v6, %v4143_v6 }
 0x215   : > { %4306 = vst.msk [vmem:[%s7019_s18 + $0x7c] sm:$0xf] %vm4274_vm7, %v5053_v45 }
 0x216   : > { %4304 = vst.msk [vmem:[%s7019_s18 + $0x74] sm:$0xf] %vm4274_vm7, %v5051_v47 }
 0x217 PF: > { %s13_s12 = sadd.s32 1, %s5857_s12  }
 0x218   : > { %p10_p4 = scmp.ge.s32.totalorder %s13_s12, 4  }
 0x21a   :  { %12 = sbr.rel (!%p10_p4) target bundleno = 1 (0x1), region = 72 }

// kernel: aspp_forward.10
= control target key start
LH: loop header
LB: loop body
LE: loop exit
PB: predicated region body
PF: predicated region fallthrough
CT: control target
= control target key end

     0   :  { %vm12_vm0 = vcmask 25600   ;;  %v460_v0 = vmov 0.0   ;;  %vm143_vm1 = vcmask 31744   ;;  %vm284_vm2 = vcmask 1041409   ;;  %s649_s1 = inlined_call_operand.vmem [shape: f32[2,4], index: 1, kind: output, shape index: {}]   ;;  %s650_s0 = inlined_call_operand.vmem [shape: bf16[2,256,4], index: 0, kind: input, shape index: {}]  }
   0x1   :  { %13 = vst.msk [vmem:[%s649_s1] sm:$0x3] %vm12_vm0, %v460_v0  ;;  %v301_v1 = vld [vmem:[%s650_s0] sm:$0xff]   ;;  %v428_v2 = vld [vmem:[%s650_s0 + $0x8] sm:$0xff]   ;;  %v429_v6 = vld [vmem:[%s650_s0 + $0x10] sm:$0xff]  }
   0x2   :  { %v302_v3 = vunpack.c.l.bf16 %v301_v1  ;;  %v303_v4 = vunpack.c.h.bf16 %v301_v1  ;;  %v306_v5 = vunpack.c.l.bf16 %v428_v2  ;;  %v307_v7 = vunpack.c.h.bf16 %v428_v2  ;;  %v430_v12 = vld [vmem:[%s650_s0 + $0x18] sm:$0xff]   ;;  %v443_v15 = vld [vmem:[%s650_s0 + $0x80] sm:$0xff]   ;;  %v444_v16 = vld [vmem:[%s650_s0 + $0x88] sm:$0xff]  }
   0x3   :  { %v310_v8 = vunpack.c.l.bf16 %v429_v6  ;;  %v311_v14 = vunpack.c.h.bf16 %v429_v6  ;;  %v314_v19 = vunpack.c.l.bf16 %v430_v12  ;;  %v431_v21 = vld [vmem:[%s650_s0 + $0x20] sm:$0xff]   ;;  %v366_v22 = vunpack.c.l.bf16 %v443_v15  ;;  %v445_v25 = vld [vmem:[%s650_s0 + $0x90] sm:$0xff]   ;;  %v432_v34 = vld [vmem:[%s650_s0 + $0x28] sm:$0xff]  }
   0x4   :  { %v144_v9 = vsel %vm143_vm1, %v302_v3, 0.0  ;;  %v145_v10 = vsel %vm143_vm1, %v303_v4, 0.0  ;;  %v147_v11 = vsel %vm143_vm1, %v306_v5, 0.0  ;;  %v149_v17 = vsel %vm143_vm1, %v307_v7, 0.0  ;;  %v446_v40 = vld [vmem:[%s650_s0 + $0x98] sm:$0xff]   ;;  %v433_v49 = vld [vmem:[%s650_s0 + $0x30] sm:$0xff]  }
   0x5   :  { %v146_v13 = vadd.f32 %v145_v10, %v144_v9  ;;  %v151_v20 = vsel %vm143_vm1, %v310_v8, 0.0  ;;  %v367_v23 = vunpack.c.h.bf16 %v443_v15  ;;  %v370_v24 = vunpack.c.l.bf16 %v444_v16  ;;  %v447_v54 = vld [vmem:[%s650_s0 + $0xa0] sm:$0xff]   ;;  %v434_v63 = vld [vmem:[%s650_s0 + $0x38] sm:$0xff]   ;;  %v448_v4 = vld [vmem:[%s650_s0 + $0xa8] sm:$0xff]  }
   0x6   :  { %v315_v27 = vunpack.c.h.bf16 %v430_v12  ;;  %v153_v28 = vsel %vm143_vm1, %v311_v14, 0.0  ;;  %v371_v29 = vunpack.c.h.bf16 %v444_v16  ;;  %v318_v31 = vunpack.c.l.bf16 %v431_v21 }
   0x7   :  { %v148_v18 = vadd.f32 %v147_v11, %v146_v13  ;;  %v374_v32 = vunpack.c.l.bf16 %v445_v25  ;;  %v155_v33 = vsel %vm143_vm1, %v314_v19, 0.0  ;;  %v213_v36 = vsel %vm143_vm1, %v366_v22, 0.0  ;;  %v435_v13 = vld [vmem:[%s650_s0 + $0x40] sm:$0xff]  }
   0x8   :  { %v214_v37 = vsel %vm143_vm1, %v367_v23, 0.0  ;;  %v216_v38 = vsel %vm143_vm1, %v370_v24, 0.0  ;;  %v319_v39 = vunpack.c.h.bf16 %v431_v21  ;;  %v157_v41 = vsel %vm143_vm1, %v315_v27, 0.0  ;;  %v436_v27 = vld [vmem:[%s650_s0 + $0x48] sm:$0xff]  }
   0x9   :  { %v150_v26 = vadd.f32 %v149_v17, %v148_v18  ;;  %v215_v42 = vadd.f32 %v214_v37, %v213_v36  ;;  %v375_v43 = vunpack.c.h.bf16 %v445_v25  ;;  %v218_v45 = vsel %vm143_vm1, %v371_v29, 0.0  ;;  %v449_v18 = vld [vmem:[%s650_s0 + $0xb0] sm:$0xff]  }
   0xa   :  { %v322_v46 = vunpack.c.l.bf16 %v432_v34  ;;  %v159_v47 = vsel %vm143_vm1, %v318_v31, 0.0  ;;  %v378_v50 = vunpack.c.l.bf16 %v446_v40  ;;  %v220_v52 = vsel %vm143_vm1, %v374_v32, 0.0  ;;  %v450_v32 = vld [vmem:[%s650_s0 + $0xb8] sm:$0xff]  }
   0xb   :  { %v152_v30 = vadd.f32 %v151_v20, %v150_v26  ;;  %v217_v48 = vadd.f32 %v216_v38, %v215_v42  ;;  %v323_v53 = vunpack.c.h.bf16 %v432_v34  ;;  %v161_v55 = vsel %vm143_vm1, %v319_v39, 0.0 }
   0xc   :  { %v379_v57 = vunpack.c.h.bf16 %v446_v40  ;;  %v222_v59 = vsel %vm143_vm1, %v375_v43, 0.0  ;;  %v326_v60 = vunpack.c.l.bf16 %v433_v49  ;;  %v163_v61 = vsel %vm143_vm1, %v322_v46, 0.0  ;;  %v451_v46 = vld [vmem:[%s650_s0 + $0xc0] sm:$0xff]  }
   0xd   :  { %v154_v35 = vadd.f32 %v153_v28, %v152_v30  ;;  %v219_v56 = vadd.f32 %v218_v45, %v217_v48  ;;  %v382_v0 = vunpack.c.l.bf16 %v447_v54  ;;  %v224_v2 = vsel %vm143_vm1, %v378_v50, 0.0 }
   0xe   :  { %v327_v3 = vunpack.c.h.bf16 %v433_v49  ;;  %v165_v5 = vsel %vm143_vm1, %v323_v53, 0.0  ;;  %v383_v7 = vunpack.c.h.bf16 %v447_v54  ;;  %v226_v9 = vsel %vm143_vm1, %v379_v57, 0.0 }
   0xf   :  { %v156_v44 = vadd.f32 %v155_v33, %v154_v35  ;;  %v221_v62 = vadd.f32 %v220_v52, %v219_v56  ;;  %v330_v10 = vunpack.c.l.bf16 %v434_v63  ;;  %v167_v11 = vsel %vm143_vm1, %v326_v60, 0.0  ;;  %v452_v60 = vld [vmem:[%s650_s0 + $0xc8] sm:$0xff]  }
  0x10   :  { %v386_v14 = vunpack.c.l.bf16 %v448_v4  ;;  %v228_v16 = vsel %vm143_vm1, %v382_v0, 0.0  ;;  %v331_v17 = vunpack.c.h.bf16 %v434_v63  ;;  %v169_v19 = vsel %vm143_vm1, %v327_v3, 0.0 }
  0x11   :  { %v158_v51 = vadd.f32 %v157_v41, %v156_v44  ;;  %v223_v6 = vadd.f32 %v222_v59, %v221_v62  ;;  %v387_v21 = vunpack.c.h.bf16 %v448_v4  ;;  %v230_v23 = vsel %vm143_vm1, %v383_v7, 0.0  ;;  %v437_v41 = vld [vmem:[%s650_s0 + $0x50] sm:$0xff]  }
  0x12   :  { %v334_v24 = vunpack.c.l.bf16 %v435_v13  ;;  %v171_v25 = vsel %vm143_vm1, %v330_v10, 0.0  ;;  %v390_v28 = vunpack.c.l.bf16 %v449_v18  ;;  %v232_v30 = vsel %vm143_vm1, %v386_v14, 0.0  ;;  %v453_v10 = vld [vmem:[%s650_s0 + $0xd0] sm:$0xff]  }
  0x13   :  { %v160_v58 = vadd.f32 %v159_v47, %v158_v51  ;;  %v225_v12 = vadd.f32 %v224_v2, %v223_v6  ;;  %v335_v31 = vunpack.c.h.bf16 %v435_v13  ;;  %v173_v33 = vsel %vm143_vm1, %v331_v17, 0.0 }
  0x14   :  { %v391_v35 = vunpack.c.h.bf16 %v449_v18  ;;  %v234_v37 = vsel %vm143_vm1, %v387_v21, 0.0  ;;  %v338_v38 = vunpack.c.l.bf16 %v436_v27  ;;  %v175_v39 = vsel %vm143_vm1, %v334_v24, 0.0  ;;  %v454_v24 = vld [vmem:[%s650_s0 + $0xd8] sm:$0xff]  }
  0x15   :  { %v162_v1 = vadd.f32 %v161_v55, %v160_v58  ;;  %v227_v20 = vadd.f32 %v226_v9, %v225_v12  ;;  %v394_v42 = vunpack.c.l.bf16 %v450_v32  ;;  %v236_v44 = vsel %vm143_vm1, %v390_v28, 0.0  ;;  %v438_v55 = vld [vmem:[%s650_s0 + $0x58] sm:$0xff]  }
  0x16   :  { %v339_v45 = vunpack.c.h.bf16 %v436_v27  ;;  %v177_v47 = vsel %vm143_vm1, %v335_v31, 0.0  ;;  %v395_v49 = vunpack.c.h.bf16 %v450_v32  ;;  %v238_v51 = vsel %vm143_vm1, %v391_v35, 0.0 }
  0x17   :  { %v164_v8 = vadd.f32 %v163_v61, %v162_v1  ;;  %v229_v26 = vadd.f32 %v228_v16, %v227_v20  ;;  %v342_v52 = vunpack.c.l.bf16 %v437_v41  ;;  %v179_v53 = vsel %vm143_vm1, %v338_v38, 0.0  ;;  %v455_v38 = vld [vmem:[%s650_s0 + $0xe0] sm:$0xff]  }
  0x18   :  { %v398_v56 = vunpack.c.l.bf16 %v451_v46  ;;  %v240_v58 = vsel %vm143_vm1, %v394_v42, 0.0  ;;  %v343_v59 = vunpack.c.h.bf16 %v437_v41  ;;  %v181_v61 = vsel %vm143_vm1, %v339_v45, 0.0 }
  0x19   :  { %v166_v15 = vadd.f32 %v165_v5, %v164_v8  ;;  %v231_v34 = vadd.f32 %v230_v23, %v229_v26  ;;  %v399_v63 = vunpack.c.h.bf16 %v451_v46  ;;  %v242_v1 = vsel %vm143_vm1, %v395_v49, 0.0  ;;  %v439_v5 = vld [vmem:[%s650_s0 + $0x60] sm:$0xff]  }
  0x1a   :  { %v346_v2 = vunpack.c.l.bf16 %v438_v55  ;;  %v183_v3 = vsel %vm143_vm1, %v342_v52, 0.0  ;;  %v402_v6 = vunpack.c.l.bf16 %v452_v60  ;;  %v244_v8 = vsel %vm143_vm1, %v398_v56, 0.0  ;;  %v456_v52 = vld [vmem:[%s650_s0 + $0xe8] sm:$0xff]  }
  0x1b   :  { %v168_v22 = vadd.f32 %v167_v11, %v166_v15  ;;  %v233_v40 = vadd.f32 %v232_v30, %v231_v34  ;;  %v347_v9 = vunpack.c.h.bf16 %v438_v55  ;;  %v185_v11 = vsel %vm143_vm1, %v343_v59, 0.0 }
  0x1c   :  { %v403_v13 = vunpack.c.h.bf16 %v452_v60  ;;  %v246_v15 = vsel %vm143_vm1, %v399_v63, 0.0  ;;  %v350_v16 = vunpack.c.l.bf16 %v439_v5  ;;  %v187_v17 = vsel %vm143_vm1, %v346_v2, 0.0 }
  0x1d   :  { %v170_v29 = vadd.f32 %v169_v19, %v168_v22  ;;  %v235_v48 = vadd.f32 %v234_v37, %v233_v40  ;;  %v440_v19 = vld [vmem:[%s650_s0 + $0x68] sm:$0xff]   ;;  %v406_v20 = vunpack.c.l.bf16 %v453_v10  ;;  %v248_v22 = vsel %vm143_vm1, %v402_v6, 0.0 }
  0x1e   :  { %v351_v23 = vunpack.c.h.bf16 %v439_v5  ;;  %v407_v27 = vunpack.c.h.bf16 %v453_v10  ;;  %v354_v30 = vunpack.c.l.bf16 %v440_v19  ;;  %v191_v31 = vsel %vm143_vm1, %v350_v16, 0.0 }
  0x1f   :  { %v172_v36 = vadd.f32 %v171_v25, %v170_v29  ;;  %v237_v54 = vadd.f32 %v236_v44, %v235_v48  ;;  %v189_v25 = vsel %vm143_vm1, %v347_v9, 0.0  ;;  %v250_v29 = vsel %vm143_vm1, %v403_v13, 0.0 }
  0x20   :  { %v410_v34 = vunpack.c.l.bf16 %v454_v24  ;;  %v355_v37 = vunpack.c.h.bf16 %v440_v19  ;;  %v411_v41 = vunpack.c.h.bf16 %v454_v24  ;;  %v195_v45 = vsel %vm143_vm1, %v354_v30, 0.0 }
  0x21   :  { %v174_v43 = vadd.f32 %v173_v33, %v172_v36  ;;  %v239_v62 = vadd.f32 %v238_v51, %v237_v54  ;;  %v441_v33 = vld [vmem:[%s650_s0 + $0x70] sm:$0xff]   ;;  %v252_v36 = vsel %vm143_vm1, %v406_v20, 0.0  ;;  %v414_v48 = vunpack.c.l.bf16 %v455_v38 }
  0x22   :  { %v358_v44 = vunpack.c.l.bf16 %v441_v33  ;;  %v359_v51 = vunpack.c.h.bf16 %v441_v33  ;;  %v415_v55 = vunpack.c.h.bf16 %v455_v38 }
  0x23   :  { %v176_v50 = vadd.f32 %v175_v39, %v174_v43  ;;  %v241_v4 = vadd.f32 %v240_v58, %v239_v62  ;;  %v193_v39 = vsel %vm143_vm1, %v351_v23, 0.0  ;;  %v254_v43 = vsel %vm143_vm1, %v407_v27, 0.0 }
  0x24   :  { %v199_v59 = vsel %vm143_vm1, %v358_v44, 0.0  ;;  %v260_v63 = vsel %vm143_vm1, %v414_v48, 0.0  ;;  %v201_v2 = vsel %vm143_vm1, %v359_v51, 0.0  ;;  %v262_v6 = vsel %vm143_vm1, %v415_v55, 0.0 }
  0x25   :  { %v178_v57 = vadd.f32 %v177_v47, %v176_v50  ;;  %v243_v12 = vadd.f32 %v242_v1, %v241_v4  ;;  %v442_v47 = vld [vmem:[%s650_s0 + $0x78] sm:$0xff]   ;;  %v256_v50 = vsel %vm143_vm1, %v410_v34, 0.0  ;;  %v457_v1 = vld [vmem:[%s650_s0 + $0xf0] sm:$0xff]   ;;  %v419_v4 = vunpack.c.h.bf16 %v456_v52 }
  0x26   :  { %v362_v58 = vunpack.c.l.bf16 %v442_v47  ;;  %v422_v9 = vunpack.c.l.bf16 %v457_v1 }
  0x27   :  { %v180_v0 = vadd.f32 %v179_v53, %v178_v57  ;;  %v245_v18 = vadd.f32 %v244_v8, %v243_v12  ;;  %v197_v53 = vsel %vm143_vm1, %v355_v37, 0.0  ;;  %v258_v57 = vsel %vm143_vm1, %v411_v41, 0.0  ;;  %v458_v12 = vld [vmem:[%s650_s0 + $0xf8] sm:$0xff]  }
  0x28   :  { %v426_v19 = vunpack.c.l.bf16 %v458_v12  ;;  %v427_v23 = vunpack.c.h.bf16 %v458_v12 }
  0x29   :  { %v182_v7 = vadd.f32 %v181_v61, %v180_v0  ;;  %v247_v26 = vadd.f32 %v246_v15, %v245_v18  ;;  %v418_v61 = vunpack.c.l.bf16 %v456_v52  ;;  %v363_v0 = vunpack.c.h.bf16 %v442_v47 }
  0x2a   :  { %v423_v15 = vunpack.c.h.bf16 %v457_v1  ;;  %v274_v30 = vsel %vm143_vm1, %v427_v23, 0.0 }
  0x2b   :  { %v184_v14 = vadd.f32 %v183_v3, %v182_v7  ;;  %v249_v32 = vadd.f32 %v248_v22, %v247_v26  ;;  %v203_v7 = vsel %vm143_vm1, %v362_v58, 0.0  ;;  %v205_v13 = vsel %vm143_vm1, %v363_v0, 0.0 }
  0x2d   :  { %v186_v21 = vadd.f32 %v185_v11, %v184_v14  ;;  %v251_v40 = vadd.f32 %v250_v29, %v249_v32  ;;  %v264_v11 = vsel %vm143_vm1, %v418_v61, 0.0 }
  0x2f   :  { %v188_v28 = vadd.f32 %v187_v17, %v186_v21  ;;  %v253_v46 = vadd.f32 %v252_v36, %v251_v40  ;;  %v266_v17 = vsel %vm143_vm1, %v419_v4, 0.0  ;;  %v268_v21 = vsel %vm143_vm1, %v422_v9, 0.0 }
  0x31   :  { %v190_v35 = vadd.f32 %v189_v25, %v188_v28  ;;  %v255_v54 = vadd.f32 %v254_v43, %v253_v46  ;;  %v270_v25 = vsel %vm143_vm1, %v423_v15, 0.0  ;;  %v272_v28 = vsel %vm143_vm1, %v426_v19, 0.0 }
  0x33   :  { %v192_v42 = vadd.f32 %v191_v31, %v190_v35  ;;  %v257_v60 = vadd.f32 %v256_v50, %v255_v54 }
  0x35   :  { %v194_v49 = vadd.f32 %v193_v39, %v192_v42  ;;  %v259_v3 = vadd.f32 %v258_v57, %v257_v60  ;;  %v14_v42 = vld [vmem:[%s649_s1] sm:$0x3] }
  0x37   :  { %v196_v56 = vadd.f32 %v195_v45, %v194_v49  ;;  %v261_v8 = vadd.f32 %v260_v63, %v259_v3 }
  0x39   :  { %v198_v62 = vadd.f32 %v197_v53, %v196_v56  ;;  %v263_v14 = vadd.f32 %v262_v6, %v261_v8 }
  0x3b   :  { %v200_v5 = vadd.f32 %v199_v59, %v198_v62  ;;  %v265_v18 = vadd.f32 %v264_v11, %v263_v14 }
  0x3d   :  { %v202_v10 = vadd.f32 %v201_v2, %v200_v5  ;;  %v267_v22 = vadd.f32 %v266_v17, %v265_v18 }
  0x3f   :  { %v204_v16 = vadd.f32 %v203_v7, %v202_v10  ;;  %v269_v26 = vadd.f32 %v268_v21, %v267_v22 }
  0x41   :  { %v206_v20 = vadd.f32 %v205_v13, %v204_v16  ;;  %v271_v29 = vadd.f32 %v270_v25, %v269_v26 }
  0x43   :  { %v207_v24 = vrot.slane %v206_v20, 4  ;;  %v273_v32 = vadd.f32 %v272_v28, %v271_v29 }
  0x45   :  { %v208_v27 = vadd.f32 %v207_v24, %v206_v20  ;;  %v275_v33 = vadd.f32 %v274_v30, %v273_v32 }
  0x47   :  { %v209_v31 = vrot.slane %v208_v27, 2  ;;  %v276_v35 = vrot.slane %v275_v33, 4 }
  0x49   :  { %v210_v34 = vadd.f32 %v209_v31, %v208_v27  ;;  %v277_v36 = vadd.f32 %v276_v35, %v275_v33 }
  0x4b   :  { %v211_v37 = vrot.slane %v210_v34, 1  ;;  %v278_v38 = vrot.slane %v277_v36, 2 }
  0x4d   :  { %v279_v39 = vadd.f32 %v278_v38, %v277_v36  ;;  %v212_v40 = vadd.f32 %v211_v37, %v210_v34 }
  0x4f   :  { %v280_v41 = vrot.slane %v279_v39, 1 }
  0x51   :  { %v281_v43 = vadd.f32 %v280_v41, %v279_v39 }
  0x53   :  { %v285_v44 = vsel %vm284_vm2, %v281_v43, %v212_v40 }
  0x54   :  { %v287_v45 = vadd.f32 %v285_v44, %v14_v42 }
  0x56   :  { %289 = vst.msk [vmem:[%s649_s1] sm:$0x3] %vm12_vm0, %v287_v45 }
  0x5d   :  { %v293_v46 = vld [vmem:[%s649_s1] sm:$0x3] }
  0x5e   :  { %v294_v47 = vmul.f32 0.00390625, %v293_v46 }
  0x60   :  { %295 = vst.msk [vmem:[%s649_s1] sm:$0x3] %vm12_vm0, %v294_v47 }

// kernel: aspp_forward.9
= control target key start
LH: loop header
LB: loop body
LE: loop exit
PB: predicated region body
PF: predicated region fallthrough
CT: control target
= control target key end

     0   :  { %s6757_s12 = smov 0   ;;  %s8408_s0 = inlined_call_operand.vmem [shape: bf16[2,22,22,4], index: 0, kind: input, shape index: {}]   ;;  %s8409_s1 = inlined_call_operand.vmem [shape: bf16[9,4,8], index: 1, kind: input, shape index: {}]   ;;  %s8410_s2 = inlined_call_operand.vmem [shape: f32[1,8], index: 2, kind: input, shape index: {}]   ;;  %s8411_s3 = inlined_call_operand.vmem [shape: bf16[2,256,8], index: 3, kind: output, shape index: {}]  }
   0x1 LB: > { %s5274_s13 = sadd.s32 4294967295, %s6735_s12   ;;  %p5278_p0 = scmp.ge.s32.totalorder %s6735_s12, 1  ;;  %s6735_s12 = sphi %s6757_s12, %s13_s12  }
   0x2   : > { %p137_p1 = scmp.lt.s32.totalorder %s6735_s12, 3 }
   0x4   : > { %p138_p2 = pnand %p5278_p0, %p137_p1 }
   0x5   : > { %v5282_v0 = vld [vmem:[%s8409_s1 + $0x2] sm:$0x3] (!%p138_p2)  ;;  %vm787_vm0 = vcmask (!%p138_p2), 1041408   ;;  %v5509_v1 = vld [vmem:[%s8409_s1 + $0x8] sm:$0x3] (!%p138_p2)  ;;  %p161_p3 = scmp.lt.s32.totalorder (!%p138_p2), %s5274_s13, 1 }
   0x6   : > { %141 = sbr.rel (%p138_p2) target bundleno = 605 (0x25d), region = 32  ;;  %6635 = vmatprep.subr.msk.bf16.mxu1 (!%p138_p2), %vm787_vm0, %v5282_v0  ;;  %6639 = vmatprep.subr.msk.bf16.mxu0 (!%p138_p2), %vm787_vm0, %v5509_v1  ;;  %v789_v2 = vsel (!%p138_p2), %vm787_vm0, %v5282_v0, 0  ;;  %v6775_v3 = vsel (!%p138_p2), %vm787_vm0, %v5509_v1, 0  ;;  %v204_v4 = vld [vmem:[%s8409_s1] sm:$0x3] (!%p138_p2)  ;;  %vm738_vm3 = vcmask (!%p138_p2), 31744  }
   0x7   : > { %6072 = vmatpush3.bf16.msra.mxu1 (!%p138_p2), %v789_v2  ;;  %6208 = vmatpush3.bf16.msra.mxu0 (!%p138_p2), %v6775_v3  ;;  %v5590_v5 = vld [vmem:[%s8409_s1 + $0xa] sm:$0x3] (!%p138_p2)  ;;  %vm237_vm1 = vsmask.f32 (!%p138_p2), 2304  ;;  %vm238_vm2 = vsmask.f32 (!%p138_p2), 6416 }
   0x8   : > { %6636 = vmatprep.subr.msk.bf16.mxu1 (!%p138_p2), %vm787_vm0, %v204_v4  ;;  %6641 = vmatprep.subr.msk.bf16.mxu0 (!%p138_p2), %vm787_vm0, %v5590_v5  ;;  %v6795_v6 = vsel (!%p138_p2), %vm787_vm0, %v204_v4, 0  ;;  %v6800_v7 = vld [vmem:[%s8409_s1 + $0xc] sm:$0x3] (!%p138_p2)  ;;  %v6810_v19 = vsel (!%p138_p2), %vm787_vm0, %v5590_v5, 0  ;;  %vm6822_vm4 = vmor (!%p138_p2), %vm237_vm1, %vm238_vm2  ;;  %vm1308_vm5 = vcmask (!%p138_p2), 1040384   ;;  %vm1309_vm6 = vcmask (!%p138_p2), 1044484  }
   0x9   : > { %v6814_v20 = vsel (!%p138_p2), %vm787_vm0, %v6800_v7, 0  ;;  %vm7003_vm7 = vmor (!%p138_p2), %vm1308_vm5, %vm1309_vm6  ;;  %vm5186_vm8 = vcmask (!%p138_p2), 60416  }
   0xd   : > { %s8424_s13 = smov (!%p161_p3, %s5274_s13), 1 }
   0xe   : > { %s6645_s22 = smul.u32 264, %s8424_s13  ;;  %s5885_s15 = sshll.u32 %s8424_s13, 7 }
   0xf   : > { %s8304_s18 = scalar_lea.vmem %s8411_s3, %s5885_s15 }
  0x10   : > { %s6792_s25 = scalar_lea.vmem %s8408_s0, %s6645_s22 }
  0x11   : > { %v173_v8 = vld [vmem:[%s6792_s25 + $0x4] sm:$0xf]  ;;  %v205_v9 = vld [vmem:[%s6792_s25] sm:$0xe]  ;;  %v206_v10 = vld [vmem:[%s6792_s25 + $0x8] sm:$0x3] }
  0x12   : > { %v241_v11 = vshrl.u32 %v205_v9, 16  ;;  %v244_v12 = vshll.u32 %v205_v9, 16  ;;  %v250_v13 = vshrl.u32 %v173_v8, 16  ;;  %v253_v14 = vshll.u32 %v173_v8, 16  ;;  %v5461_v15 = vld [vmem:[%s6792_s25 + $0x24] sm:$0xe] }
  0x13   : > { %v260_v16 = vshrl.u32 %v206_v10, 16  ;;  %v263_v17 = vshll.u32 %v206_v10, 16  ;;  %v6807_v18 = vld [vmem:[%s6792_s25 + $0x28] sm:$0xf]  ;;  %v5463_v25 = vld [vmem:[%s6792_s25 + $0x2c] sm:$0x3] }
  0x14   : > { %v243_v21 = vrot.slane %v241_v11, 5  ;;  %v246_v22 = vrot.slane %v244_v12, 6  ;;  %v252_v23 = vrot.slane %v250_v13, 5  ;;  %v255_v24 = vrot.slane %v253_v14, 6  ;;  %v207_v34 = vld [vmem:[%s6792_s25 + $0xc] sm:$0xe] }
  0x15   : > { %v262_v26 = vrot.slane %v260_v16, 5  ;;  %v265_v27 = vrot.slane %v263_v17, 6  ;;  %v2125_v28 = vshrl.u32 %v5461_v15, 16  ;;  %v2128_v29 = vshll.u32 %v5461_v15, 16  ;;  %v175_v47 = vld [vmem:[%s6792_s25 + $0x10] sm:$0xf] }
  0x16   : > { %v247_v30 = vor.u32 %v246_v22, %v243_v21  ;;  %v256_v31 = vor.u32 %v255_v24, %v252_v23  ;;  %v2134_v32 = vshrl.u32 %v6807_v18, 16  ;;  %v2137_v33 = vshll.u32 %v6807_v18, 16  ;;  %v208_v52 = vld [vmem:[%s6792_s25 + $0x14] sm:$0x3]  ;;  %v5464_v58 = vld [vmem:[%s6792_s25 + $0x30] sm:$0xe] }
  0x17   : > { %v266_v36 = vor.u32 %v265_v27, %v262_v26  ;;  %v2127_v37 = vrot.slane %v2125_v28, 5  ;;  %v2130_v38 = vrot.slane %v2128_v29, 6  ;;  %v2144_v39 = vshrl.u32 %v5463_v25, 16  ;;  %v6837_v9 = vld [vmem:[%s6792_s25 + $0x34] sm:$0xf] }
  0x18   : > { %v248_v40 = vrot.slane %v247_v30, 4  ;;  %v258_v41 = vrot.slane %v256_v31, 4  ;;  %v2136_v42 = vrot.slane %v2134_v32, 5  ;;  %v2139_v43 = vrot.slane %v2137_v33, 6  ;;  %v5466_v14 = vld [vmem:[%s6792_s25 + $0x38] sm:$0x3] }
  0x19   : > { %v2131_v44 = vor.u32 %v2130_v38, %v2127_v37  ;;  %v2146_v45 = vrot.slane %v2144_v39, 5  ;;  %v2147_v46 = vshll.u32 %v5463_v25, 16  ;;  %v269_v48 = vshrl.u32 %v207_v34, 16  ;;  %v209_v27 = vld [vmem:[%s6792_s25 + $0x18] sm:$0xe] }
  0x1a   : > { %v257_v49 = vsel %vm6822_vm4, %v248_v40, %v256_v31  ;;  %v267_v50 = vsel %vm6822_vm4, %v258_v41, %v266_v36  ;;  %v2140_v51 = vor.u32 %v2139_v43, %v2136_v42  ;;  %v272_v53 = vshll.u32 %v207_v34, 16  ;;  %v177_v37 = vld [vmem:[%s6792_s25 + $0x1c] sm:$0xf]  ;;  %v210_v41 = vld [vmem:[%s6792_s25 + $0x20] sm:$0x3] }
  0x1b   : > { %v5283_v54 = vcombine.low %v257_v49, %v267_v50  ;;  %v2132_v55 = vrot.slane %v2131_v44, 4  ;;  %v2149_v56 = vrot.slane %v2147_v46, 6  ;;  %v271_v57 = vrot.slane %v269_v48, 5 }
  0x1c   : > { %v2142_v59 = vrot.slane %v2140_v51, 4  ;;  %v274_v60 = vrot.slane %v272_v53, 6  ;;  %v278_v61 = vshrl.u32 %v175_v47, 16  ;;  %v281_v62 = vshll.u32 %v175_v47, 16  ;;  %v5467_v47 = vld [vmem:[%s6792_s25 + $0x3c] sm:$0xe] }
  0x1d   : > { %6073 = vmatprep.mubr.msk.bf16.mxu1 %vm738_vm3, %v5283_v54  ;;  %v2141_v63 = vsel %vm6822_vm4, %v2132_v55, %v2140_v51  ;;  %v2150_v0 = vor.u32 %v2149_v56, %v2146_v45  ;;  %v288_v1 = vshrl.u32 %v208_v52, 16  ;;  %v291_v2 = vshll.u32 %v208_v52, 16 }
  0x1e   : > { %v275_v4 = vor.u32 %v274_v60, %v271_v57  ;;  %v280_v5 = vrot.slane %v278_v61, 5  ;;  %v283_v8 = vrot.slane %v281_v62, 6  ;;  %v2153_v10 = vshrl.u32 %v5464_v58, 16 }
  0x1f   : > { %v2151_v11 = vsel %vm6822_vm4, %v2142_v59, %v2150_v0  ;;  %v290_v12 = vrot.slane %v288_v1, 5  ;;  %v293_v13 = vrot.slane %v291_v2, 6  ;;  %v2156_v15 = vshll.u32 %v5464_v58, 16  ;;  %v6863_v59 = vld [vmem:[%s6792_s25 + $0x40] sm:$0xf] }
  0x20   : > { %v5510_v16 = vcombine.low %v2141_v63, %v2151_v11  ;;  %v276_v17 = vrot.slane %v275_v4, 4  ;;  %v284_v21 = vor.u32 %v283_v8, %v280_v5  ;;  %v2155_v22 = vrot.slane %v2153_v10, 5  ;;  %v5469_v0 = vld [vmem:[%s6792_s25 + $0x44] sm:$0x3] }
  0x21   : > { %v294_v23 = vor.u32 %v293_v13, %v290_v12  ;;  %v2158_v24 = vrot.slane %v2156_v15, 6  ;;  %v2162_v25 = vshrl.u32 %v6837_v9, 16  ;;  %v2165_v26 = vshll.u32 %v6837_v9, 16  ;;  %v211_v13 = vld [vmem:[%s6792_s25 + $0x24] sm:$0xe] }
  0x22   : > { %6209 = vmatprep.mubr.msk.bf16.mxu0 %vm738_vm3, %v5510_v16  ;;  %v285_v28 = vsel %vm6822_vm4, %v276_v17, %v284_v21  ;;  %v286_v29 = vrot.slane %v284_v21, 4  ;;  %v2172_v30 = vshrl.u32 %v5466_v14, 16  ;;  %v2175_v31 = vshll.u32 %v5466_v14, 16 }
  0x23   : > { %v2159_v32 = vor.u32 %v2158_v24, %v2155_v22  ;;  %v2164_v33 = vrot.slane %v2162_v25, 5  ;;  %v2167_v34 = vrot.slane %v2165_v26, 6  ;;  %v2955_v36 = vrot.slane %v6837_v9, 7  ;;  %v179_v25 = vld [vmem:[%s6792_s25 + $0x28] sm:$0xf] }
  0x24   : > { %v295_v38 = vsel %vm6822_vm4, %v286_v29, %v294_v23  ;;  %v2174_v39 = vrot.slane %v2172_v30, 5  ;;  %v2177_v40 = vrot.slane %v2175_v31, 6  ;;  %v297_v42 = vshrl.u32 %v209_v27, 16 }
  0x25   : > { %v5284_v43 = vcombine.low %v285_v28, %v295_v38  ;;  %v2160_v44 = vrot.slane %v2159_v32, 4  ;;  %v2168_v45 = vor.u32 %v2167_v34, %v2164_v33  ;;  %v6855_v46 = vrot.slane %v2955_v36, 4  ;;  %v212_v32 = vld [vmem:[%s6792_s25 + $0x2c] sm:$0x3]  ;;  %v5470_v34 = vld [vmem:[%s6792_s25 + $0x48] sm:$0xe] }
  0x26   : > { %v2178_v48 = vor.u32 %v2177_v40, %v2174_v39  ;;  %v299_v49 = vrot.slane %v297_v42, 5  ;;  %v300_v50 = vshll.u32 %v209_v27, 16  ;;  %v306_v51 = vshrl.u32 %v177_v37, 16 }
  0x27   : > { %6074 = vmatmul.mubr.msk.bf16.vlgmr.msra.gmra.mrb[0].mxu1 %vm738_vm3, %v5284_v43  ;;  %v2169_v52 = vsel %vm6822_vm4, %v2160_v44, %v2168_v45  ;;  %v2170_v53 = vrot.slane %v2168_v45, 4  ;;  %v309_v54 = vshll.u32 %v177_v37, 16  ;;  %v316_v55 = vshrl.u32 %v210_v41, 16 }
  0x28   : > { %6106 = vmatpush3.bf16.msra.mxu1 %v6795_v6  ;;  %v302_v56 = vrot.slane %v300_v50, 6  ;;  %v308_v57 = vrot.slane %v306_v51, 5  ;;  %v319_v58 = vshll.u32 %v210_v41, 16  ;;  %v2181_v60 = vshrl.u32 %v5467_v47, 16 }
  0x29   : > { %v2179_v61 = vsel %vm6822_vm4, %v2170_v53, %v2178_v48  ;;  %v311_v62 = vrot.slane %v309_v54, 6  ;;  %v318_v63 = vrot.slane %v316_v55, 5  ;;  %v2184_v1 = vshll.u32 %v5467_v47, 16  ;;  %v6886_v48 = vld [vmem:[%s6792_s25 + $0x4c] sm:$0xf] }
  0x2a   : > { %v5511_v2 = vcombine.low %v2169_v52, %v2179_v61  ;;  %v303_v4 = vor.u32 %v302_v56, %v299_v49  ;;  %v321_v5 = vrot.slane %v319_v58, 6  ;;  %v2183_v8 = vrot.slane %v2181_v60, 5  ;;  %v5472_v53 = vld [vmem:[%s6792_s25 + $0x50] sm:$0x3] }
  0x2b   : > { %v312_v6 = vor.u32 %v311_v62, %v308_v57  ;;  %v2186_v10 = vrot.slane %v2184_v1, 6  ;;  %v2190_v11 = vshrl.u32 %v6863_v59, 16  ;;  %v2193_v12 = vshll.u32 %v6863_v59, 16 }
  0x2c   : > { %6210 = vmatmul.mubr.msk.bf16.vlgmr.msra.gmra.mrb[0].mxu0 %vm738_vm3, %v5511_v2  ;;  %v304_v14 = vrot.slane %v303_v4, 4  ;;  %v322_v15 = vor.u32 %v321_v5, %v318_v63  ;;  %v2200_v16 = vshrl.u32 %v5469_v0, 16  ;;  %v2203_v17 = vshll.u32 %v5469_v0, 16  ;;  %v213_v0 = vld [vmem:[%s6792_s25 + $0x30] sm:$0xe] }
  0x2d   : > { %6242 = vmatpush3.bf16.msra.mxu0 %v6810_v19  ;;  %v314_v21 = vrot.slane %v312_v6, 4  ;;  %v2187_v22 = vor.u32 %v2186_v10, %v2183_v8  ;;  %v2192_v23 = vrot.slane %v2190_v11, 5  ;;  %v2195_v24 = vrot.slane %v2193_v12, 6  ;;  %v181_v8 = vld [vmem:[%s6792_s25 + $0x34] sm:$0xf] }
  0x2e   : > { %v313_v26 = vsel %vm6822_vm4, %v304_v14, %v312_v6  ;;  %v2202_v27 = vrot.slane %v2200_v16, 5  ;;  %v2205_v28 = vrot.slane %v2203_v17, 6  ;;  %v325_v29 = vshrl.u32 %v211_v13, 16  ;;  %6642 = vmatprep.subr.msk.bf16.mxu0 %vm787_vm0, %v6800_v7  ;;  %v214_v16 = vld [vmem:[%s6792_s25 + $0x38] sm:$0x3] }
  0x2f   : > { %v323_v30 = vsel %vm6822_vm4, %v314_v21, %v322_v15  ;;  %v2188_v31 = vrot.slane %v2187_v22, 4  ;;  %v2196_v19 = vor.u32 %v2195_v24, %v2192_v23  ;;  %v328_v33 = vshll.u32 %v211_v13, 16 }
  0x30   : > { %v5285_v37 = vcombine.low %v313_v26, %v323_v30  ;;  %v2206_v38 = vor.u32 %v2205_v28, %v2202_v27  ;;  %v327_v39 = vrot.slane %v325_v29, 5  ;;  %v334_v40 = vshrl.u32 %v179_v25, 16 }
  0x31   : > { %v2197_v41 = vsel %vm6822_vm4, %v2188_v31, %v2196_v19  ;;  %v2198_v42 = vrot.slane %v2196_v19, 4  ;;  %v330_v43 = vrot.slane %v328_v33, 6  ;;  %v337_v7 = vshll.u32 %v179_v25, 16  ;;  %v5473_v25 = vld [vmem:[%s6792_s25 + $0x54] sm:$0xe] }
  0x32   : > { %6077 = vmatprep.mubr.msk.bf16.mxu1 %vm738_vm3, %v5285_v37  ;;  %v336_v44 = vrot.slane %v334_v40, 5  ;;  %v344_v45 = vshrl.u32 %v212_v32, 16  ;;  %v347_v47 = vshll.u32 %v212_v32, 16  ;;  %v2209_v49 = vshrl.u32 %v5470_v34, 16  ;;  %v6903_v33 = vld [vmem:[%s6792_s25 + $0x58] sm:$0xf] }
  0x33   : > { %v2207_v50 = vsel %vm6822_vm4, %v2198_v42, %v2206_v38  ;;  %v331_v51 = vor.u32 %v330_v43, %v327_v39  ;;  %v339_v52 = vrot.slane %v337_v7, 6  ;;  %v2212_v54 = vshll.u32 %v5470_v34, 16  ;;  %v5475_v43 = vld [vmem:[%s6792_s25 + $0x5c] sm:$0x3] }
  0x34   : > { %v5512_v55 = vcombine.low %v2197_v41, %v2207_v50  ;;  %v346_v56 = vrot.slane %v344_v45, 5  ;;  %v349_v57 = vrot.slane %v347_v47, 6  ;;  %v2211_v58 = vrot.slane %v2209_v49, 5 }
  0x35   : > { %v332_v60 = vrot.slane %v331_v51, 4  ;;  %v340_v61 = vor.u32 %v339_v52, %v336_v44  ;;  %v2214_v62 = vrot.slane %v2212_v54, 6  ;;  %v2218_v63 = vshrl.u32 %v6886_v48, 16  ;;  %v215_v54 = vld [vmem:[%s6792_s25 + $0x3c] sm:$0xe] }
  0x36   : > { %6213 = vmatprep.mubr.msk.bf16.mxu0 %vm738_vm3, %v5512_v55  ;;  %v350_v1 = vor.u32 %v349_v57, %v346_v56  ;;  %v2221_v2 = vshll.u32 %v6886_v48, 16  ;;  %v2228_v4 = vshrl.u32 %v5472_v53, 16  ;;  %v2231_v5 = vshll.u32 %v5472_v53, 16 }
  0x37   : > { %v341_v6 = vsel %vm6822_vm4, %v332_v60, %v340_v61  ;;  %v342_v10 = vrot.slane %v340_v61, 4  ;;  %v2215_v11 = vor.u32 %v2214_v62, %v2211_v58  ;;  %v2220_v12 = vrot.slane %v2218_v63, 5  ;;  %v183_v60 = vld [vmem:[%s6792_s25 + $0x40] sm:$0xf] }
  0x38   : > { %v2223_v13 = vrot.slane %v2221_v2, 6  ;;  %v2230_v14 = vrot.slane %v2228_v4, 5  ;;  %v2233_v15 = vrot.slane %v2231_v5, 6  ;;  %v353_v17 = vshrl.u32 %v213_v0, 16  ;;  %v216_v4 = vld [vmem:[%s6792_s25 + $0x44] sm:$0x3] }
  0x39   : > { %v351_v21 = vsel %vm6822_vm4, %v342_v10, %v350_v1  ;;  %v2216_v22 = vrot.slane %v2215_v11, 4  ;;  %v356_v23 = vshll.u32 %v213_v0, 16  ;;  %v362_v24 = vshrl.u32 %v181_v8, 16 }
  0x3a   : > { %v5286_v26 = vcombine.low %v341_v6, %v351_v21  ;;  %v2224_v27 = vor.u32 %v2223_v13, %v2220_v12  ;;  %v2234_v28 = vor.u32 %v2233_v15, %v2230_v14  ;;  %v355_v29 = vrot.slane %v353_v17, 5  ;;  %v5476_v17 = vld [vmem:[%s6792_s25 + $0x60] sm:$0xe] }
  0x3b   : > { %v358_v30 = vrot.slane %v356_v23, 6  ;;  %v364_v31 = vrot.slane %v362_v24, 5  ;;  %v365_v19 = vshll.u32 %v181_v8, 16  ;;  %v372_v32 = vshrl.u32 %v214_v16, 16 }
  0x3c   : > { %6078 = vmatmul.mubr.msk.bf16.gmra.mrb[4].mxu1 %vm738_vm3, %v5286_v26  ;;  %v2225_v34 = vsel %vm6822_vm4, %v2216_v22, %v2224_v27  ;;  %v2226_v37 = vrot.slane %v2224_v27, 4  ;;  %v375_v38 = vshll.u32 %v214_v16, 16  ;;  %v2237_v39 = vshrl.u32 %v5473_v25, 16 }
  0x3d   : > { %v359_v40 = vor.u32 %v358_v30, %v355_v29  ;;  %v367_v41 = vrot.slane %v365_v19, 6  ;;  %v374_v42 = vrot.slane %v372_v32, 5  ;;  %v2240_v7 = vshll.u32 %v5473_v25, 16  ;;  %v6923_v25 = vld [vmem:[%s6792_s25 + $0x64] sm:$0xf] }
  0x3e   : > { %v2235_v44 = vsel %vm6822_vm4, %v2226_v37, %v2234_v28  ;;  %v377_v45 = vrot.slane %v375_v38, 6  ;;  %v2239_v47 = vrot.slane %v2237_v39, 5  ;;  %v2246_v49 = vshrl.u32 %v6903_v33, 16  ;;  %v5478_v19 = vld [vmem:[%s6792_s25 + $0x68] sm:$0x3] }
  0x3f   : > { %v5513_v50 = vcombine.low %v2225_v34, %v2235_v44  ;;  %v360_v51 = vrot.slane %v359_v40, 4  ;;  %v368_v52 = vor.u32 %v367_v41, %v364_v31  ;;  %v2242_v53 = vrot.slane %v2240_v7, 6  ;;  %v217_v44 = vld [vmem:[%s6792_s25 + $0x48] sm:$0xe] }
  0x40   : > { %v378_v55 = vor.u32 %v377_v45, %v374_v42  ;;  %v2248_v56 = vrot.slane %v2246_v49, 5  ;;  %v2249_v57 = vshll.u32 %v6903_v33, 16  ;;  %v2256_v58 = vshrl.u32 %v5475_v43, 16 }
  0x41   : > { %6214 = vmatmul.mubr.msk.bf16.gmra.mrb[4].mxu0 %vm738_vm3, %v5513_v50  ;;  %v369_v61 = vsel %vm6822_vm4, %v360_v51, %v368_v52  ;;  %v370_v62 = vrot.slane %v368_v52, 4  ;;  %v2243_v63 = vor.u32 %v2242_v53, %v2239_v47  ;;  %v2259_v0 = vshll.u32 %v5475_v43, 16  ;;  %v185_v51 = vld [vmem:[%s6792_s25 + $0x4c] sm:$0xf] }
  0x42   : > { %v2251_v1 = vrot.slane %v2249_v57, 6  ;;  %v2258_v2 = vrot.slane %v2256_v58, 5  ;;  %v381_v5 = vshrl.u32 %v215_v54, 16  ;;  %v384_v8 = vshll.u32 %v215_v54, 16  ;;  %v218_v58 = vld [vmem:[%s6792_s25 + $0x50] sm:$0x3] }
  0x43   : > { %v379_v6 = vsel %vm6822_vm4, %v370_v62, %v378_v55  ;;  %v2244_v10 = vrot.slane %v2243_v63, 4  ;;  %v2261_v11 = vrot.slane %v2259_v0, 6  ;;  %v390_v12 = vshrl.u32 %v183_v60, 16 }
  0x44   : > { %v5287_v13 = vcombine.low %v369_v61, %v379_v6  ;;  %v2252_v14 = vor.u32 %v2251_v1, %v2248_v56  ;;  %v383_v15 = vrot.slane %v381_v5, 5  ;;  %v386_v16 = vrot.slane %v384_v8, 6  ;;  %v5479_v6 = vld [vmem:[%s6792_s25 + $0x6c] sm:$0xe] }
  0x45   : > { %v2262_v21 = vor.u32 %v2261_v11, %v2258_v2  ;;  %v392_v22 = vrot.slane %v390_v12, 5  ;;  %v393_v23 = vshll.u32 %v183_v60, 16  ;;  %v400_v24 = vshrl.u32 %v216_v4, 16 }
  0x46   : > { %6081 = vmatprep.mubr.msk.bf16.mxu1 %vm738_vm3, %v5287_v13  ;;  %v2253_v26 = vsel %vm6822_vm4, %v2244_v10, %v2252_v14  ;;  %v2254_v27 = vrot.slane %v2252_v14, 4  ;;  %v387_v28 = vor.u32 %v386_v16, %v383_v15  ;;  %v403_v29 = vshll.u32 %v216_v4, 16  ;;  %v6943_v14 = vld [vmem:[%s6792_s25 + $0x70] sm:$0xf] }
  0x47   : > { %v395_v30 = vrot.slane %v393_v23, 6  ;;  %v402_v31 = vrot.slane %v400_v24, 5  ;;  %v2265_v32 = vshrl.u32 %v5476_v17, 16  ;;  %v2268_v34 = vshll.u32 %v5476_v17, 16  ;;  %v5481_v24 = vld [vmem:[%s6792_s25 + $0x74] sm:$0x3] }
  0x48   : > { %v2263_v37 = vsel %vm6822_vm4, %v2254_v27, %v2262_v21  ;;  %v388_v38 = vrot.slane %v387_v28, 4  ;;  %v405_v39 = vrot.slane %v403_v29, 6  ;;  %v2274_v40 = vshrl.u32 %v6923_v25, 16 }
  0x49   : > { %v5514_v41 = vcombine.low %v2253_v26, %v2263_v37  ;;  %v396_v42 = vor.u32 %v395_v30, %v392_v22  ;;  %v2267_v43 = vrot.slane %v2265_v32, 5  ;;  %v2270_v7 = vrot.slane %v2268_v34, 6 }
  0x4a   : > { %v406_v45 = vor.u32 %v405_v39, %v402_v31  ;;  %v2276_v47 = vrot.slane %v2274_v40, 5  ;;  %v2277_v49 = vshll.u32 %v6923_v25, 16  ;;  %v2284_v50 = vshrl.u32 %v5478_v19, 16  ;;  %v6956_v39 = vld [vmem:[%s8409_s1 + $0x4] sm:$0x3] }
  0x4b   : > { %6217 = vmatprep.mubr.msk.bf16.mxu0 %vm738_vm3, %v5514_v41  ;;  %v397_v52 = vsel %vm6822_vm4, %v388_v38, %v396_v42  ;;  %v398_v53 = vrot.slane %v396_v42, 4  ;;  %v2271_v54 = vor.u32 %v2270_v7, %v2267_v43  ;;  %v2287_v55 = vshll.u32 %v5478_v19, 16  ;;  %v219_v38 = vld [vmem:[%s6792_s25 + $0x54] sm:$0xe]  ;;  %v6960_v7 = vld [vmem:[%s6792_s25 + $0x58] sm:$0xf]  ;;  %6637 = vmatprep.subr.msk.bf16.mxu1 %vm787_vm0, %v6956_v39 }
  0x4c   : > { %v2279_v56 = vrot.slane %v2277_v49, 6  ;;  %v2286_v57 = vrot.slane %v2284_v50, 5  ;;  %v409_v60 = vshrl.u32 %v217_v44, 16  ;;  %v412_v61 = vshll.u32 %v217_v44, 16 }
  0x4d   : > { %v407_v62 = vsel %vm6822_vm4, %v398_v53, %v406_v45  ;;  %v2272_v63 = vrot.slane %v2271_v54, 4  ;;  %v2289_v0 = vrot.slane %v2287_v55, 6  ;;  %v418_v1 = vshrl.u32 %v185_v51, 16 }
  0x4e   : > { %v5288_v2 = vcombine.low %v397_v52, %v407_v62  ;;  %v2280_v4 = vor.u32 %v2279_v56, %v2276_v47  ;;  %v411_v5 = vrot.slane %v409_v60, 5  ;;  %v414_v8 = vrot.slane %v412_v61, 6  ;;  %v220_v52 = vld [vmem:[%s6792_s25 + $0x5c] sm:$0x3] }
  0x4f   : > { %v2290_v10 = vor.u32 %v2289_v0, %v2286_v57  ;;  %v420_v11 = vrot.slane %v418_v1, 5  ;;  %v421_v12 = vshll.u32 %v185_v51, 16  ;;  %v428_v13 = vshrl.u32 %v218_v58, 16  ;;  %v5482_v0 = vld [vmem:[%s6792_s25 + $0x78] sm:$0xe] }
  0x50   : > { %6082 = vmatmul.mubr.msk.bf16.gmra.mrb[8].mxu1 %vm738_vm3, %v5288_v2  ;;  %v2281_v15 = vsel %vm6822_vm4, %v2272_v63, %v2280_v4  ;;  %v2282_v16 = vrot.slane %v2280_v4, 4  ;;  %v415_v17 = vor.u32 %v414_v8, %v411_v5  ;;  %v431_v21 = vshll.u32 %v218_v58, 16  ;;  %v6974_v8 = vld [vmem:[%s6792_s25 + $0x7c] sm:$0xf] }
  0x51   : > { %v423_v22 = vrot.slane %v421_v12, 6  ;;  %v430_v23 = vrot.slane %v428_v13, 5  ;;  %v2293_v26 = vshrl.u32 %v5479_v6, 16  ;;  %v2296_v27 = vshll.u32 %v5479_v6, 16 }
  0x52   : > { %v2291_v28 = vsel %vm6822_vm4, %v2282_v16, %v2290_v10  ;;  %v416_v29 = vrot.slane %v415_v17, 4  ;;  %v433_v30 = vrot.slane %v431_v21, 6  ;;  %v2302_v31 = vshrl.u32 %v6943_v14, 16  ;;  %v5484_v16 = vld [vmem:[%s6792_s25 + $0x80] sm:$0x3] }
  0x53   : > { %v5515_v19 = vcombine.low %v2281_v15, %v2291_v28  ;;  %v424_v32 = vor.u32 %v423_v22, %v420_v11  ;;  %v2295_v34 = vrot.slane %v2293_v26, 5  ;;  %v2298_v37 = vrot.slane %v2296_v27, 6 }
  0x54   : > { %v434_v40 = vor.u32 %v433_v30, %v430_v23  ;;  %v2304_v41 = vrot.slane %v2302_v31, 5  ;;  %v2305_v42 = vshll.u32 %v6943_v14, 16  ;;  %v2312_v43 = vshrl.u32 %v5481_v24, 16  ;;  %v221_v31 = vld [vmem:[%s6792_s25 + $0x60] sm:$0xe] }
  0x55   : > { %6218 = vmatmul.mubr.msk.bf16.gmra.mrb[8].mxu0 %vm738_vm3, %v5515_v19  ;;  %v425_v44 = vsel %vm6822_vm4, %v416_v29, %v424_v32  ;;  %v426_v45 = vrot.slane %v424_v32, 4  ;;  %v2299_v47 = vor.u32 %v2298_v37, %v2295_v34  ;;  %v2315_v49 = vshll.u32 %v5481_v24, 16 }
  0x56   : > { %v2307_v50 = vrot.slane %v2305_v42, 6  ;;  %v2314_v51 = vrot.slane %v2312_v43, 5  ;;  %v437_v53 = vshrl.u32 %v219_v38, 16  ;;  %v440_v54 = vshll.u32 %v219_v38, 16  ;;  %v6986_v38 = vld [vmem:[%s6792_s25 + $0x64] sm:$0xf] }
  0x57   : > { %v435_v55 = vsel %vm6822_vm4, %v426_v45, %v434_v40  ;;  %v2300_v56 = vrot.slane %v2299_v47, 4  ;;  %v2317_v57 = vrot.slane %v2315_v49, 6  ;;  %v446_v58 = vshrl.u32 %v6960_v7, 16  ;;  %v222_v47 = vld [vmem:[%s6792_s25 + $0x68] sm:$0x3] }
  0x58   : > { %v5289_v60 = vcombine.low %v425_v44, %v435_v55  ;;  %v2308_v61 = vor.u32 %v2307_v50, %v2304_v41  ;;  %v439_v62 = vrot.slane %v437_v53, 5  ;;  %v442_v63 = vrot.slane %v440_v54, 6 }
  0x59   : > { %v2318_v1 = vor.u32 %v2317_v57, %v2314_v51  ;;  %v448_v2 = vrot.slane %v446_v58, 5  ;;  %v449_v4 = vshll.u32 %v6960_v7, 16  ;;  %v456_v5 = vshrl.u32 %v220_v52, 16 }
  0x5a   : > { %6085 = vmatprep.mubr.msk.bf16.mxu1 %vm738_vm3, %v5289_v60  ;;  %v2309_v6 = vsel %vm6822_vm4, %v2300_v56, %v2308_v61  ;;  %v2310_v10 = vrot.slane %v2308_v61, 4  ;;  %v443_v11 = vor.u32 %v442_v63, %v439_v62  ;;  %v459_v12 = vshll.u32 %v220_v52, 16  ;;  %v5542_v60 = vld [vmem:[%s6792_s25 + $0x24] sm:$0x8] }
  0x5b   : > { %v451_v13 = vrot.slane %v449_v4, 6  ;;  %v458_v15 = vrot.slane %v456_v5, 5  ;;  %v2321_v17 = vshrl.u32 %v5482_v0, 16  ;;  %v2324_v21 = vshll.u32 %v5482_v0, 16 }
  0x5c   : > { %v2319_v22 = vsel %vm6822_vm4, %v2310_v10, %v2318_v1  ;;  %v444_v23 = vrot.slane %v443_v11, 4  ;;  %v461_v24 = vrot.slane %v459_v12, 6  ;;  %v2330_v26 = vshrl.u32 %v6974_v8, 16  ;;  %v5543_v1 = vld [vmem:[%s6792_s25 + $0x2c] sm:$0x7] }
  0x5d   : > { %v5516_v27 = vcombine.low %v2309_v6, %v2319_v22  ;;  %v452_v28 = vor.u32 %v451_v13, %v448_v2  ;;  %v2323_v29 = vrot.slane %v2321_v17, 5  ;;  %v2326_v30 = vrot.slane %v2324_v21, 6  ;;  %v7008_v11 = vld [vmem:[%s6792_s25 + $0x70] sm:$0xf]  ;;  %v223_v17 = vld [vmem:[%s6792_s25 + $0x6c] sm:$0xe] }
  0x5e   : > { %v462_v19 = vor.u32 %v461_v24, %v458_v15  ;;  %v2332_v32 = vrot.slane %v2330_v26, 5  ;;  %v2333_v34 = vshll.u32 %v6974_v8, 16  ;;  %v2340_v37 = vshrl.u32 %v5484_v16, 16 }
  0x5f   : > { %6221 = vmatprep.mubr.msk.bf16.mxu0 %vm738_vm3, %v5516_v27  ;;  %v453_v40 = vsel %vm6822_vm4, %v444_v23, %v452_v28  ;;  %v454_v41 = vrot.slane %v452_v28, 4  ;;  %v2327_v42 = vor.u32 %v2326_v30, %v2323_v29  ;;  %v2343_v43 = vshll.u32 %v5484_v16, 16 }
  0x60   : > { %v2335_v44 = vrot.slane %v2333_v34, 6  ;;  %v2342_v45 = vrot.slane %v2340_v37, 5  ;;  %v465_v49 = vshrl.u32 %v221_v31, 16  ;;  %v468_v50 = vshll.u32 %v221_v31, 16  ;;  %v224_v31 = vld [vmem:[%s6792_s25 + $0x74] sm:$0x3] }
  0x61   : > { %v463_v51 = vsel %vm6822_vm4, %v454_v41, %v462_v19  ;;  %v2328_v52 = vrot.slane %v2327_v42, 4  ;;  %v2345_v53 = vrot.slane %v2343_v43, 6  ;;  %v474_v54 = vshrl.u32 %v6986_v38, 16  ;;  %v5544_v42 = vld [vmem:[%s6792_s25 + $0x30] sm:$0x8] }
  0x62   : > { %v5290_v55 = vcombine.low %v453_v40, %v463_v51  ;;  %v2336_v56 = vor.u32 %v2335_v44, %v2332_v32  ;;  %v467_v57 = vrot.slane %v465_v49, 5  ;;  %v470_v58 = vrot.slane %v468_v50, 6  ;;  %v5545_v43 = vld [vmem:[%s6792_s25 + $0x38] sm:$0x7] }
  0x63   : > { %v2346_v61 = vor.u32 %v2345_v53, %v2342_v45  ;;  %v476_v62 = vrot.slane %v474_v54, 5  ;;  %v477_v63 = vshll.u32 %v6986_v38, 16  ;;  %v484_v0 = vshrl.u32 %v222_v47, 16  ;;  %v225_v50 = vld [vmem:[%s6792_s25 + $0x78] sm:$0xe] }
  0x64   : > { %6086 = vmatmul.mubr.msk.bf16.gmra.mrb[12].mxu1 %vm738_vm3, %v5290_v55  ;;  %v2337_v2 = vsel %vm6822_vm4, %v2328_v52, %v2336_v56  ;;  %v2338_v4 = vrot.slane %v2336_v56, 4  ;;  %v471_v5 = vor.u32 %v470_v58, %v467_v57  ;;  %v487_v6 = vshll.u32 %v222_v47, 16  ;;  %v7030_v55 = vld [vmem:[%s6792_s25 + $0x7c] sm:$0xf] }
  0x65   : > { %v479_v12 = vrot.slane %v477_v63, 6  ;;  %v486_v13 = vrot.slane %v484_v0, 5  ;;  %v5574_v15 = vrot.slane %v5542_v60, 11  ;;  %v2948_v16 = vrot.slane %v6807_v18, 7 }
  0x66   : > { %v2347_v21 = vsel %vm6822_vm4, %v2338_v4, %v2346_v61  ;;  %v472_v22 = vrot.slane %v471_v5, 4  ;;  %v489_v23 = vrot.slane %v487_v6, 6  ;;  %v2951_v24 = vrot.slane %v5543_v1, 7  ;;  %v226_v61 = vld [vmem:[%s6792_s25 + $0x80] sm:$0x3] }
  0x67   : > { %v5517_v26 = vcombine.low %v2337_v2, %v2347_v21  ;;  %v480_v27 = vor.u32 %v479_v12, %v476_v62  ;;  %v2949_v28 = vsel %vm7003_vm7, %v5574_v15, %v2948_v16  ;;  %v2950_v29 = vrot.slane %v2948_v16, 4  ;;  %v5546_v2 = vld [vmem:[%s6792_s25 + $0x3c] sm:$0x8] }
  0x68   : > { %v490_v30 = vor.u32 %v489_v23, %v486_v13  ;;  %v493_v19 = vshrl.u32 %v223_v17, 16  ;;  %v496_v18 = vshll.u32 %v223_v17, 16  ;;  %v502_v32 = vshrl.u32 %v7008_v11, 16  ;;  %v5547_v13 = vld [vmem:[%s6792_s25 + $0x44] sm:$0x7] }
  0x69   : > { %6222 = vmatmul.mubr.msk.bf16.gmra.mrb[12].mxu0 %vm738_vm3, %v5517_v26  ;;  %v481_v34 = vsel %vm6822_vm4, %v472_v22, %v480_v27  ;;  %v482_v37 = vrot.slane %v480_v27, 4  ;;  %v2952_v40 = vsel %vm7003_vm7, %v2950_v29, %v2951_v24  ;;  %v505_v41 = vshll.u32 %v7008_v11, 16  ;;  %v7047_v22 = vld [vmem:[%s8409_s1 + $0xe] sm:$0x3]  ;;  %v7054_v24 = vld [vmem:[%s6792_s25 + $0x88] sm:$0xf] }
  0x6a   : > { %v5591_v44 = vcombine.low %v2949_v28, %v2952_v40  ;;  %v495_v45 = vrot.slane %v493_v19, 5  ;;  %v498_v47 = vrot.slane %v496_v18, 6  ;;  %v504_v49 = vrot.slane %v502_v32, 5 }
  0x6b   : > { %v491_v51 = vsel %vm6822_vm4, %v482_v37, %v490_v30  ;;  %v507_v52 = vrot.slane %v505_v41, 6  ;;  %v512_v53 = vshrl.u32 %v224_v31, 16  ;;  %v515_v54 = vshll.u32 %v224_v31, 16  ;;  %v227_v30 = vld [vmem:[%s6792_s25 + $0x84] sm:$0xe] }
  0x6c   : > { %v5291_v56 = vcombine.low %v481_v34, %v491_v51  ;;  %6243 = vmatprep.mubr.msk.bf16.mxu0 %vm738_vm3, %v5591_v44  ;;  %v499_v57 = vor.u32 %v498_v47, %v495_v45  ;;  %v5575_v58 = vrot.slane %v5544_v42, 11  ;;  %v2958_v60 = vrot.slane %v5545_v43, 7  ;;  %v228_v42 = vld [vmem:[%s6792_s25 + $0x8c] sm:$0x3]  ;;  %v5548_v47 = vld [vmem:[%s6792_s25 + $0x48] sm:$0x8] }
  0x6d   : > { %v508_v62 = vor.u32 %v507_v52, %v504_v49  ;;  %v514_v63 = vrot.slane %v512_v53, 5  ;;  %v517_v0 = vrot.slane %v515_v54, 6  ;;  %v521_v1 = vshrl.u32 %v225_v50, 16  ;;  %v5549_v52 = vld [vmem:[%s6792_s25 + $0x50] sm:$0x7] }
  0x6e   : > { %6089 = vmatprep.mubr.msk.bf16.mxu1 %vm738_vm3, %v5291_v56  ;;  %v500_v4 = vrot.slane %v499_v57, 4  ;;  %v2956_v5 = vsel %vm7003_vm7, %v5575_v58, %v2955_v36  ;;  %v2959_v6 = vsel %vm7003_vm7, %v6855_v46, %v2958_v60  ;;  %v524_v12 = vshll.u32 %v225_v50, 16  ;;  %v7074_v58 = vld [vmem:[%s6792_s25 + $0x94] sm:$0xf] }
  0x6f   : > { %v510_v15 = vrot.slane %v508_v62, 4  ;;  %v518_v16 = vor.u32 %v517_v0, %v514_v63  ;;  %v5592_v17 = vcombine.low %v2956_v5, %v2959_v6  ;;  %v523_v21 = vrot.slane %v521_v1, 5  ;;  %v229_v5 = vld [vmem:[%s6792_s25 + $0x90] sm:$0xe] }
  0x70   : > { %v509_v9 = vsel %vm6822_vm4, %v500_v4, %v508_v62  ;;  %v526_v36 = vrot.slane %v524_v12, 6  ;;  %v530_v23 = vshrl.u32 %v7030_v55, 16  ;;  %v533_v46 = vshll.u32 %v7030_v55, 16 }
  0x71   : > { %v519_v26 = vsel %vm6822_vm4, %v510_v15, %v518_v16  ;;  %6244 = vmatmul.mubr.msk.bf16.vlgmr.msra.gmra.mrb[0].mxu0 %vm738_vm3, %v5592_v17  ;;  %v540_v27 = vshrl.u32 %v226_v61, 16  ;;  %v543_v28 = vshll.u32 %v226_v61, 16  ;;  %v5576_v29 = vrot.slane %v5546_v2, 11 }
  0x72   : > { %v5292_v31 = vcombine.low %v509_v9, %v519_v26  ;;  %6276 = vmatpush3.bf16.msra.mxu0 %v6814_v20  ;;  %v527_v19 = vor.u32 %v526_v36, %v523_v21  ;;  %v532_v18 = vrot.slane %v530_v23, 5  ;;  %v535_v32 = vrot.slane %v533_v46, 6  ;;  %v230_v36 = vld [vmem:[%s6792_s25 + $0x98] sm:$0x3] }
  0x73   : > { %v542_v34 = vrot.slane %v540_v27, 5  ;;  %v545_v37 = vrot.slane %v543_v28, 6  ;;  %v2962_v40 = vrot.slane %v6863_v59, 7  ;;  %v2965_v41 = vrot.slane %v5547_v13, 7  ;;  %6643 = vmatprep.subr.msk.bf16.mxu0 %vm787_vm0, %v7047_v22  ;;  %v5550_v28 = vld [vmem:[%s6792_s25 + $0x54] sm:$0x8] }
  0x74   : > { %6090 = vmatmul.mubr.msk.bf16.gmra.mrb[16].mxu1 %vm738_vm3, %v5292_v31  ;;  %v528_v43 = vrot.slane %v527_v19, 4  ;;  %v536_v44 = vor.u32 %v535_v32, %v532_v18  ;;  %v549_v45 = vshrl.u32 %v227_v30, 16  ;;  %v552_v20 = vshll.u32 %v227_v30, 16 }
  0x75   : > { %v546_v49 = vor.u32 %v545_v37, %v542_v34  ;;  %v2963_v50 = vsel %vm7003_vm7, %v5576_v29, %v2962_v40  ;;  %v2964_v51 = vrot.slane %v2962_v40, 4  ;;  %v558_v59 = vshrl.u32 %v7054_v24, 16  ;;  %v7095_v40 = vld [vmem:[%s6792_s25 + $0xa0] sm:$0xf] }
  0x76   : > { %v537_v53 = vsel %vm6822_vm4, %v528_v43, %v536_v44  ;;  %v538_v54 = vrot.slane %v536_v44, 4  ;;  %v551_v56 = vrot.slane %v549_v45, 5  ;;  %v554_v57 = vrot.slane %v552_v20, 6  ;;  %v231_v45 = vld [vmem:[%s6792_s25 + $0x9c] sm:$0xe] }
  0x77   : > { %v2966_v60 = vsel %vm7003_vm7, %v2964_v51, %v2965_v41  ;;  %v560_v61 = vrot.slane %v558_v59, 5  ;;  %v561_v62 = vshll.u32 %v7054_v24, 16  ;;  %v568_v63 = vshrl.u32 %v228_v42, 16 }
  0x78   : > { %v547_v0 = vsel %vm6822_vm4, %v538_v54, %v546_v49  ;;  %v5593_v1 = vcombine.low %v2963_v50, %v2966_v60  ;;  %v555_v2 = vor.u32 %v554_v57, %v551_v56  ;;  %v571_v4 = vshll.u32 %v228_v42, 16  ;;  %v232_v54 = vld [vmem:[%s6792_s25 + $0xa4] sm:$0x3] }
  0x79   : > { %v5293_v6 = vcombine.low %v537_v53, %v547_v0  ;;  %v563_v12 = vrot.slane %v561_v62, 6  ;;  %v570_v13 = vrot.slane %v568_v63, 5  ;;  %v5577_v15 = vrot.slane %v5548_v47, 11 }
  0x7a   : > { %6247 = vmatprep.mubr.msk.bf16.mxu0 %vm738_vm3, %v5593_v1  ;;  %v556_v16 = vrot.slane %v555_v2, 4  ;;  %v573_v17 = vrot.slane %v571_v4, 6  ;;  %v2969_v21 = vrot.slane %v6886_v48, 7  ;;  %v2972_v9 = vrot.slane %v5549_v52, 7  ;;  %v5551_v48 = vld [vmem:[%s6792_s25 + $0x5c] sm:$0x7] }
  0x7b   : > { %6093 = vmatprep.mubr.msk.bf16.mxu1 %vm738_vm3, %v5293_v6  ;;  %v564_v23 = vor.u32 %v563_v12, %v560_v61  ;;  %v577_v46 = vshrl.u32 %v229_v5, 16  ;;  %v580_v26 = vshll.u32 %v229_v5, 16  ;;  %v586_v27 = vshrl.u32 %v7074_v58, 16  ;;  %v5552_v12 = vld [vmem:[%s6792_s25 + $0x60] sm:$0x8] }
  0x7c   : > { %v574_v29 = vor.u32 %v573_v17, %v570_v13  ;;  %v2970_v30 = vsel %vm7003_vm7, %v5577_v15, %v2969_v21  ;;  %v2971_v31 = vrot.slane %v2969_v21, 4  ;;  %v589_v19 = vshll.u32 %v7074_v58, 16 }
  0x7d   : > { %v565_v18 = vsel %vm6822_vm4, %v556_v16, %v564_v23  ;;  %v566_v32 = vrot.slane %v564_v23, 4  ;;  %v579_v34 = vrot.slane %v577_v46, 5  ;;  %v582_v37 = vrot.slane %v580_v26, 6  ;;  %v233_v46 = vld [vmem:[%s6792_s25 + $0xa8] sm:$0xe] }
  0x7e   : > { %v2973_v41 = vsel %vm7003_vm7, %v2971_v31, %v2972_v9  ;;  %v588_v42 = vrot.slane %v586_v27, 5  ;;  %v591_v43 = vrot.slane %v589_v19, 6  ;;  %v596_v44 = vshrl.u32 %v230_v36, 16 }
  0x7f   : > { %v575_v20 = vsel %vm6822_vm4, %v566_v32, %v574_v29  ;;  %v5594_v47 = vcombine.low %v2970_v30, %v2973_v41  ;;  %v583_v49 = vor.u32 %v582_v37, %v579_v34  ;;  %v599_v50 = vshll.u32 %v230_v36, 16  ;;  %v7120_v30 = vld [vmem:[%s6792_s25 + $0xac] sm:$0xf]  ;;  %v234_v41 = vld [vmem:[%s6792_s25 + $0xb0] sm:$0x3] }
  0x80   : > { %v5294_v51 = vcombine.low %v565_v18, %v575_v20  ;;  %v592_v59 = vor.u32 %v591_v43, %v588_v42  ;;  %v598_v52 = vrot.slane %v596_v44, 5  ;;  %v5578_v53 = vrot.slane %v5550_v28, 11 }
  0x81   : > { %6248 = vmatmul.mubr.msk.bf16.gmra.mrb[4].mxu0 %vm738_vm3, %v5594_v47  ;;  %v584_v56 = vrot.slane %v583_v49, 4  ;;  %v601_v57 = vrot.slane %v599_v50, 6  ;;  %v2976_v60 = vrot.slane %v6903_v33, 7  ;;  %v2979_v61 = vrot.slane %v5551_v48, 7  ;;  %v5553_v33 = vld [vmem:[%s6792_s25 + $0x68] sm:$0x7] }
  0x82   : > { %6094 = vmatmul.mubr.msk.bf16.gmra.mrb[20].mxu1 %vm738_vm3, %v5294_v51  ;;  %v594_v62 = vrot.slane %v592_v59, 4  ;;  %v605_v63 = vshrl.u32 %v231_v45, 16  ;;  %v608_v0 = vshll.u32 %v231_v45, 16  ;;  %v614_v1 = vshrl.u32 %v7095_v40, 16  ;;  %v5554_v47 = vld [vmem:[%s6792_s25 + $0x6c] sm:$0x8] }
  0x83   : > { %v593_v2 = vsel %vm6822_vm4, %v584_v56, %v592_v59  ;;  %v602_v4 = vor.u32 %v601_v57, %v598_v52  ;;  %v2977_v5 = vsel %vm7003_vm7, %v5578_v53, %v2976_v60  ;;  %v2978_v6 = vrot.slane %v2976_v60, 4  ;;  %v5555_v56 = vld [vmem:[%s6792_s25 + $0x74] sm:$0x7] }
  0x84   : > { %v607_v13 = vrot.slane %v605_v63, 5  ;;  %v610_v15 = vrot.slane %v608_v0, 6  ;;  %v616_v16 = vrot.slane %v614_v1, 5  ;;  %v617_v17 = vshll.u32 %v7095_v40, 16  ;;  %v235_v63 = vld [vmem:[%s6792_s25 + $0xb4] sm:$0xe] }
  0x85   : > { %v603_v21 = vsel %vm6822_vm4, %v594_v62, %v602_v4  ;;  %v2980_v9 = vsel %vm7003_vm7, %v2978_v6, %v2979_v61  ;;  %v624_v36 = vshrl.u32 %v232_v54, 16  ;;  %v627_v23 = vshll.u32 %v232_v54, 16 }
  0x86   : > { %v5295_v26 = vcombine.low %v593_v2, %v603_v21  ;;  %v5595_v27 = vcombine.low %v2977_v5, %v2980_v9  ;;  %v611_v28 = vor.u32 %v610_v15, %v607_v13  ;;  %v619_v29 = vrot.slane %v617_v17, 6  ;;  %v7140_v5 = vld [vmem:[%s6792_s25 + $0xb8] sm:$0xf]  ;;  %v236_v15 = vld [vmem:[%s6792_s25 + $0xbc] sm:$0x3] }
  0x87   : > { %v626_v31 = vrot.slane %v624_v36, 5  ;;  %v629_v19 = vrot.slane %v627_v23, 6  ;;  %v5579_v48 = vrot.slane %v5552_v12, 11  ;;  %v2983_v18 = vrot.slane %v6923_v25, 7  ;;  %v5556_v36 = vld [vmem:[%s6792_s25 + $0x78] sm:$0x8] }
  0x88   : > { %6097 = vmatprep.mubr.msk.bf16.mxu1 %vm738_vm3, %v5295_v26  ;;  %6251 = vmatprep.mubr.msk.bf16.mxu0 %vm738_vm3, %v5595_v27  ;;  %v612_v32 = vrot.slane %v611_v28, 4  ;;  %v620_v34 = vor.u32 %v619_v29, %v616_v16  ;;  %v2986_v37 = vrot.slane %v5553_v33, 7  ;;  %v633_v42 = vshrl.u32 %v233_v46, 16  ;;  %v5557_v28 = vld [vmem:[%s6792_s25 + $0x80] sm:$0x7] }
  0x89   : > { %v630_v43 = vor.u32 %v629_v19, %v626_v31  ;;  %v2984_v44 = vsel %vm7003_vm7, %v5579_v48, %v2983_v18  ;;  %v2985_v45 = vrot.slane %v2983_v18, 4  ;;  %v636_v20 = vshll.u32 %v233_v46, 16  ;;  %v5486_v48 = vld [vmem:[%s6792_s25 + $0x88] sm:$0xf] }
  0x8a   : > { %v621_v25 = vsel %vm6822_vm4, %v612_v32, %v620_v34  ;;  %v622_v49 = vrot.slane %v620_v34, 4  ;;  %v635_v50 = vrot.slane %v633_v42, 5  ;;  %v642_v51 = vshrl.u32 %v7120_v30, 16 }
  0x8b   : > { %v2987_v59 = vsel %vm7003_vm7, %v2985_v45, %v2986_v37  ;;  %v638_v52 = vrot.slane %v636_v20, 6  ;;  %v645_v53 = vshll.u32 %v7120_v30, 16  ;;  %v652_v54 = vshrl.u32 %v234_v41, 16  ;;  %v5558_v45 = vld [vmem:[%s6792_s25 + $0x84] sm:$0x8] }
  0x8c   : > { %v631_v57 = vsel %vm6822_vm4, %v622_v49, %v630_v43  ;;  %v5596_v60 = vcombine.low %v2984_v44, %v2987_v59  ;;  %v644_v61 = vrot.slane %v642_v51, 5  ;;  %v655_v62 = vshll.u32 %v234_v41, 16 }
  0x8d   : > { %v5296_v0 = vcombine.low %v621_v25, %v631_v57  ;;  %v639_v1 = vor.u32 %v638_v52, %v635_v50  ;;  %v647_v2 = vrot.slane %v645_v53, 6  ;;  %v654_v4 = vrot.slane %v652_v54, 5  ;;  %v5559_v50 = vld [vmem:[%s6792_s25 + $0x8c] sm:$0x7] }
  0x8e   : > { %6252 = vmatmul.mubr.msk.bf16.gmra.mrb[8].mxu0 %vm738_vm3, %v5596_v60  ;;  %v657_v6 = vrot.slane %v655_v62, 6  ;;  %v5580_v12 = vrot.slane %v5554_v47, 11  ;;  %v2990_v33 = vrot.slane %v6943_v14, 7  ;;  %v2993_v13 = vrot.slane %v5555_v56, 7 }
  0x8f   : > { %6098 = vmatmul.mubr.msk.bf16.gmra.mrb[24].mxu1 %vm738_vm3, %v5296_v0  ;;  %v640_v16 = vrot.slane %v639_v1, 4  ;;  %v648_v17 = vor.u32 %v647_v2, %v644_v61  ;;  %v661_v21 = vshrl.u32 %v235_v63, 16  ;;  %v664_v9 = vshll.u32 %v235_v63, 16  ;;  %v172_v63 = vld [vmem:[%s6792_s25] sm:$0xf] }
  0x90   : > { %v658_v23 = vor.u32 %v657_v6, %v654_v4  ;;  %v2991_v46 = vsel %vm7003_vm7, %v5580_v12, %v2990_v33  ;;  %v2992_v26 = vrot.slane %v2990_v33, 4  ;;  %v670_v27 = vshrl.u32 %v7140_v5, 16  ;;  %v5560_v6 = vld [vmem:[%s6792_s25 + $0x90] sm:$0x8]  ;;  %v5489_v33 = vld [vmem:[%s6792_s25 + $0x94] sm:$0xf] }
  0x91   : > { %v649_v14 = vsel %vm6822_vm4, %v640_v16, %v648_v17  ;;  %v650_v29 = vrot.slane %v648_v17, 4  ;;  %v663_v31 = vrot.slane %v661_v21, 5  ;;  %v666_v19 = vrot.slane %v664_v9, 6  ;;  %v7179_v17 = vld [vmem:[%s6792_s25 + $0x4] sm:$0xf] }
  0x92   : > { %v2994_v18 = vsel %vm7003_vm7, %v2992_v26, %v2993_v13  ;;  %v672_v32 = vrot.slane %v670_v27, 5  ;;  %v673_v34 = vshll.u32 %v7140_v5, 16  ;;  %v680_v37 = vshrl.u32 %v236_v15, 16  ;;  %v5561_v13 = vld [vmem:[%s6792_s25 + $0x98] sm:$0x7] }
  0x93   : > { %v659_v41 = vsel %vm6822_vm4, %v650_v29, %v658_v23  ;;  %v5597_v42 = vcombine.low %v2991_v46, %v2994_v18  ;;  %v667_v43 = vor.u32 %v666_v19, %v663_v31  ;;  %v683_v44 = vshll.u32 %v236_v15, 16  ;;  %v5562_v23 = vld [vmem:[%s6792_s25 + $0x9c] sm:$0x8]  ;;  %v5563_v46 = vld [vmem:[%s6792_s25 + $0xa4] sm:$0x7] }
  0x94   : > { %v5297_v20 = vcombine.low %v649_v14, %v659_v41  ;;  %v675_v47 = vrot.slane %v673_v34, 6  ;;  %v682_v25 = vrot.slane %v680_v37, 5  ;;  %v5581_v49 = vrot.slane %v5556_v36, 11  ;;  %v5492_v36 = vld [vmem:[%s6792_s25 + $0xa0] sm:$0xf] }
  0x95   : > { %6255 = vmatprep.mubr.msk.bf16.mxu0 %vm738_vm3, %v5597_v42  ;;  %v668_v51 = vrot.slane %v667_v43, 4  ;;  %v685_v59 = vrot.slane %v683_v44, 6  ;;  %v2997_v52 = vrot.slane %v6974_v8, 7  ;;  %v3000_v53 = vrot.slane %v5557_v28, 7  ;;  %v174_v28 = vld [vmem:[%s6792_s25 + $0xc] sm:$0xf] }
  0x96   : > { %6101 = vmatprep.mubr.msk.bf16.mxu1 %vm738_vm3, %v5297_v20  ;;  %v676_v54 = vor.u32 %v675_v47, %v672_v32  ;;  %v5582_v56 = vrot.slane %v5558_v45, 11  ;;  %v3004_v57 = vrot.slane %v5486_v48, 7  ;;  %v3007_v0 = vrot.slane %v5559_v50, 7  ;;  %v176_v19 = vld [vmem:[%s6792_s25 + $0x18] sm:$0xf] }
  0x97   : > { %v686_v60 = vor.u32 %v685_v59, %v682_v25  ;;  %v2998_v61 = vsel %vm7003_vm7, %v5581_v49, %v2997_v52  ;;  %v2999_v62 = vrot.slane %v2997_v52, 4  ;;  %v5315_v21 = vcombine.low %v172_v63, %v7179_v17  ;;  %v5495_v48 = vld [vmem:[%s6792_s25 + $0xac] sm:$0xf]  ;;  %v5564_v37 = vld [vmem:[%s6792_s25 + $0xa8] sm:$0x8] }
  0x98   : > { %v677_v8 = vsel %vm6822_vm4, %v668_v51, %v676_v54  ;;  %v678_v1 = vrot.slane %v676_v54, 4  ;;  %v3005_v2 = vsel %vm7003_vm7, %v5582_v56, %v3004_v57  ;;  %v3006_v4 = vrot.slane %v3004_v57, 4  ;;  %v5565_v43 = vld [vmem:[%s6792_s25 + $0xb0] sm:$0x7]  ;;  %v5498_v44 = vld [vmem:[%s6792_s25 + $0xb8] sm:$0xf] }
  0x99   : > { %v3001_v12 = vsel %vm7003_vm7, %v2999_v62, %v3000_v53  ;;  %v5583_v14 = vrot.slane %v5560_v6, 11  ;;  %v3011_v29 = vrot.slane %v5489_v33, 7  ;;  %v3014_v31 = vrot.slane %v5561_v13, 7  ;;  %v5566_v25 = vld [vmem:[%s6792_s25 + $0xb4] sm:$0x8] }
  0x9a   : > { %v687_v15 = vsel %vm6822_vm4, %v678_v1, %v686_v60  ;;  %v5598_v16 = vcombine.low %v2998_v61, %v3001_v12  ;;  %v3008_v9 = vsel %vm7003_vm7, %v3006_v4, %v3007_v0  ;;  %v5584_v18 = vrot.slane %v5562_v23, 11  ;;  %v5567_v49 = vld [vmem:[%s6792_s25 + $0xbc] sm:$0x7]  ;;  %v7204_v50 = vld [vmem:[%s6792_s25 + $0x10] sm:$0xf] }
  0x9b   : > { %v5298_v26 = vcombine.low %v677_v8, %v687_v15  ;;  %v5599_v27 = vcombine.low %v3005_v2, %v3008_v9  ;;  %v3018_v32 = vrot.slane %v5492_v36, 7  ;;  %v3021_v34 = vrot.slane %v5563_v46, 7  ;;  %v7210_v52 = vld [vmem:[%s6792_s25 + $0x1c] sm:$0xf]  ;;  %v5501_v1 = vld [vmem:[%s6792_s25 + $0xc4] sm:$0xf] }
  0x9c   : > { %6256 = vmatmul.mubr.msk.bf16.gmra.mrb[12].mxu0 %vm738_vm3, %v5598_v16  ;;  %v3012_v41 = vsel %vm7003_vm7, %v5583_v14, %v3011_v29  ;;  %v3013_v42 = vrot.slane %v3011_v29, 4  ;;  %v3025_v47 = vrot.slane %v5495_v48, 7  ;;  %v5316_v51 = vcombine.low %v174_v28, %v7204_v50  ;;  %v5504_v4 = vld [vmem:[%s6792_s25 + $0xd0] sm:$0xf]  ;;  %v7223_v12 = vld [vmem:[%s8409_s1 + $0x6] sm:$0x3] }
  0x9d   : > { %6102 = vmatmul.mubr.msk.bf16.gmra.mrb[28].mxu1 %vm738_vm3, %v5298_v26  ;;  %6259 = vmatprep.mubr.msk.bf16.mxu0 %vm738_vm3, %v5599_v27  ;;  %v3019_v45 = vsel %vm7003_vm7, %v5584_v18, %v3018_v32  ;;  %v3020_v20 = vrot.slane %v3018_v32, 4  ;;  %v5317_v53 = vcombine.low %v176_v19, %v7210_v52  ;;  %v5585_v54 = vrot.slane %v5564_v37, 11  ;;  %v178_v33 = vld [vmem:[%s6792_s25 + $0x24] sm:$0xf]  ;;  %v5568_v9 = vld [vmem:[%s6792_s25 + $0xc0] sm:$0x8] }
  0x9e   : > { %6107 = vmatprep.mubr.msk.bf16.mxu1 %vm738_vm3, %v5315_v21  ;;  %v3015_v59 = vsel %vm7003_vm7, %v3013_v42, %v3014_v31  ;;  %v3027_v60 = vrot.slane %v3025_v47, 4  ;;  %v3028_v61 = vrot.slane %v5565_v43, 7  ;;  %v5586_v63 = vrot.slane %v5566_v25, 11  ;;  %v5569_v36 = vld [vmem:[%s6792_s25 + $0xc8] sm:$0x7] }
  0x9f   : > { %v5600_v56 = vcombine.low %v3012_v41, %v3015_v59  ;;  %v3022_v57 = vsel %vm7003_vm7, %v3020_v20, %v3021_v34  ;;  %v3032_v0 = vrot.slane %v5498_v44, 7  ;;  %v3035_v8 = vrot.slane %v5567_v49, 7  ;;  %v180_v46 = vld [vmem:[%s6792_s25 + $0x30] sm:$0xf]  ;;  %v5570_v26 = vld [vmem:[%s6792_s25 + $0xcc] sm:$0x8] }
  0xa0   : > { %v5601_v62 = vcombine.low %v3019_v45, %v3022_v57  ;;  %v1522_v2 = vsel %vm787_vm0, %v6956_v39, 0  ;;  %v3026_v39 = vsel %vm7003_vm7, %v5585_v54, %v3025_v47  ;;  %v3029_v13 = vsel %vm7003_vm7, %v3027_v60, %v3028_v61  ;;  %v5571_v27 = vld [vmem:[%s6792_s25 + $0xd4] sm:$0x7]  ;;  %v7245_v28 = vld [vmem:[%s6792_s25 + $0x28] sm:$0xf] }
  0xa1   : > { %v3034_v6 = vrot.slane %v3032_v0, 4  ;;  %v3039_v15 = vrot.slane %v5501_v1, 7  ;;  %v3033_v16 = vsel %vm7003_vm7, %v5586_v63, %v3032_v0  ;;  %v3046_v23 = vrot.slane %v5504_v4, 7  ;;  %v7249_v32 = vld [vmem:[%s6792_s25 + $0x34] sm:$0xf] }
  0xa2   : > { %v5318_v14 = vcombine.low %v178_v33, %v7245_v28  ;;  %v5602_v29 = vcombine.low %v3026_v39, %v3029_v13  ;;  %v5587_v19 = vrot.slane %v5568_v9, 11  ;;  %v3042_v18 = vrot.slane %v5569_v36, 7  ;;  %v5507_v43 = vld [vmem:[%s6792_s25 + $0xdc] sm:$0xf]  ;;  %v5573_v59 = vld [vmem:[%s6792_s25 + $0xe0] sm:$0x7] }
  0xa3   : > { %v3036_v21 = vsel %vm7003_vm7, %v3034_v6, %v3035_v8  ;;  %v3041_v48 = vrot.slane %v3039_v15, 4  ;;  %v5319_v34 = vcombine.low %v180_v46, %v7249_v32  ;;  %v5588_v37 = vrot.slane %v5570_v26, 11  ;;  %v182_v44 = vld [vmem:[%s6792_s25 + $0x3c] sm:$0xf]  ;;  %v7270_v54 = vld [vmem:[%s6792_s25 + $0x40] sm:$0xf] }
  0xa4   : > { %6260 = vmatmul.mubr.msk.bf16.gmra.mrb[16].mxu0 %vm738_vm3, %v5600_v56  ;;  %v5603_v31 = vcombine.low %v3033_v16, %v3036_v21  ;;  %v3048_v41 = vrot.slane %v3046_v23, 4  ;;  %v3049_v42 = vrot.slane %v5571_v27, 7  ;;  %v3040_v45 = vsel %vm7003_vm7, %v5587_v19, %v3039_v15  ;;  %v7274_v0 = vld [vmem:[%s6792_s25 + $0x4c] sm:$0xf]  ;;  %v186_v4 = vld [vmem:[%s6792_s25 + $0x54] sm:$0xf] }
  0xa5   : > { %6108 = vmatmul.mubr.msk.bf16.vlgmr.msra.gmra.mrb[0].mxu1 %vm738_vm3, %v5316_v51  ;;  %6263 = vmatprep.mubr.msk.bf16.mxu0 %vm738_vm3, %v5601_v62  ;;  %v3043_v20 = vsel %vm7003_vm7, %v3041_v48, %v3042_v18  ;;  %v3053_v47 = vrot.slane %v5507_v43, 7  ;;  %v3047_v25 = vsel %vm7003_vm7, %v5588_v37, %v3046_v23  ;;  %v5572_v51 = vld [vmem:[%s6792_s25 + $0xd8] sm:$0x8]  ;;  %v5320_v56 = vcombine.low %v182_v44, %v7270_v54  ;;  %v188_v6 = vld [vmem:[%s6792_s25 + $0x60] sm:$0xf]  ;;  %v6663_v13 = vld [vmem:[%s6792_s25 + $0x48] sm:$0xff]  }
  0xa6   : > { %6140 = vmatpush3.bf16.msra.mxu1 %v1522_v2  ;;  %6111 = vmatprep.mubr.msk.bf16.mxu1 %vm738_vm3, %v5317_v53  ;;  %v3050_v49 = vsel %vm7003_vm7, %v3048_v41, %v3049_v42  ;;  %v184_v53 = vld [vmem:[%s6792_s25 + $0x48] sm:$0xf]  ;;  %v5604_v57 = vcombine.low %v3040_v45, %v3043_v20  ;;  %v5589_v61 = vrot.slane %v5572_v51, 11  ;;  %v3056_v63 = vrot.slane %v5573_v59, 7  ;;  %v190_v16 = vld [vmem:[%s6792_s25 + $0x6c] sm:$0xf] }
  0xa7   : > { %6638 = vmatprep.subr.msk.bf16.mxu1 %vm787_vm0, %v7223_v12  ;;  %v5605_v60 = vcombine.low %v3047_v25, %v3050_v49  ;;  %v3055_v62 = vrot.slane %v3053_v47, 4  ;;  %v5321_v8 = vcombine.low %v184_v53, %v7274_v0  ;;  %v5322_v39 = vcombine.low %v186_v4, %v6960_v7  ;;  %v192_v21 = vld [vmem:[%s6792_s25 + $0x78] sm:$0xf]  ;;  %v7293_v9 = vld [vmem:[%s6792_s25 + $0x84] sm:$0xf] }
  0xa8   : > { %v3054_v1 = vsel %vm7003_vm7, %v5589_v61, %v3053_v47  ;;  %v5323_v15 = vcombine.low %v188_v6, %v6986_v38  ;;  %v7296_v36 = vld [vmem:[%s6792_s25 + $0x90] sm:$0xf]  ;;  %v1244_v23 = vld [vmem:[%s6792_s25] sm:$0x8]  ;;  %v1245_v46 = vld [vmem:[%s6792_s25 + $0x8] sm:$0x7]  ;;  %v5325_v37 = vcombine.low %v192_v21, %v7030_v55  ;;  %v5326_v41 = vcombine.low %v7293_v9, %v7054_v24 }
  0xa9   : > { %v3057_v2 = vsel %vm7003_vm7, %v3055_v62, %v3056_v63  ;;  %v1246_v26 = vld [vmem:[%s6792_s25 + $0xc] sm:$0x8]  ;;  %v1313_v7 = vrot.slane %v7179_v17, 7  ;;  %v1247_v38 = vld [vmem:[%s6792_s25 + $0x14] sm:$0x7]  ;;  %v1320_v18 = vrot.slane %v7204_v50, 7  ;;  %v5327_v50 = vcombine.low %v7296_v36, %v7074_v58 }
  0xaa   : > { %v5606_v33 = vcombine.low %v3054_v1, %v3057_v2  ;;  %v1248_v27 = vld [vmem:[%s6792_s25 + $0x18] sm:$0x8]  ;;  %v7313_v19 = vld [vmem:[%s6792_s25 + $0x9c] sm:$0xf]  ;;  %v7316_v48 = vld [vmem:[%s6792_s25 + $0xa8] sm:$0xf] }
  0xab   : > { %v1250_v17 = vld [vmem:[%s6792_s25 + $0x24] sm:$0x8]  ;;  %v7325_v42 = vld [vmem:[%s6792_s25 + $0xb4] sm:$0xf]  ;;  %v1251_v43 = vld [vmem:[%s6792_s25 + $0x2c] sm:$0x7]  ;;  %v5329_v61 = vcombine.low %v7316_v48, %v7120_v30 }
  0xac   : > { %6264 = vmatmul.mubr.msk.bf16.gmra.mrb[20].mxu0 %vm738_vm3, %v5602_v29  ;;  %v6665_v29 = vld [vmem:[%s6792_s25 + $0x54] sm:$0xff]   ;;  %v6667_v44 = vld [vmem:[%s6792_s25 + $0x60] sm:$0xff]   ;;  %v5347_v45 = vrot.slane %v1244_v23, 11  ;;  %v1316_v20 = vrot.slane %v1245_v46, 7  ;;  %v5348_v47 = vrot.slane %v1246_v26, 11  ;;  %v1315_v55 = vrot.slane %v1313_v7, 4 }
  0xad   : > { %6112 = vmatmul.mubr.msk.bf16.gmra.mrb[4].mxu1 %vm738_vm3, %v5318_v14  ;;  %6267 = vmatprep.mubr.msk.bf16.mxu0 %vm738_vm3, %v5603_v31  ;;  %v5324_v14 = vcombine.low %v190_v16, %v7008_v11  ;;  %v4306_v31 = vsel %vm787_vm0, %v7047_v22, 0  ;;  %v1327_v11 = vrot.slane %v7210_v52, 7  ;;  %v1334_v22 = vrot.slane %v7245_v28, 7  ;;  %v1252_v51 = vld [vmem:[%s6792_s25 + $0x30] sm:$0x8]  ;;  %v6673_v24 = vld [vmem:[%s6792_s25 + $0x84] sm:$0xff]  }
  0xae   : > { %6115 = vmatprep.mubr.msk.bf16.mxu1 %vm738_vm3, %v5319_v34  ;;  %v1249_v34 = vld [vmem:[%s6792_s25 + $0x20] sm:$0x7]  ;;  %v1323_v25 = vrot.slane %v1247_v38, 7  ;;  %v5349_v49 = vrot.slane %v1248_v27, 11  ;;  %v1341_v59 = vrot.slane %v7249_v32, 7  ;;  %v1322_v52 = vrot.slane %v1320_v18, 4 }
  0xaf   : > { %v1330_v53 = vrot.slane %v1249_v34, 7  ;;  %v1253_v28 = vld [vmem:[%s6792_s25 + $0x38] sm:$0x7]  ;;  %v1329_v62 = vrot.slane %v1327_v11, 4  ;;  %v1336_v63 = vrot.slane %v1334_v22, 4  ;;  %v5330_v32 = vcombine.low %v7325_v42, %v7140_v5 }
  0xb0   : > { %v7346_v1 = vsel %vm7003_vm7, %v5347_v45, %v1313_v7  ;;  %v7350_v2 = vsel %vm7003_vm7, %v5348_v47, %v1320_v18  ;;  %v1255_v4 = vld [vmem:[%s6792_s25 + $0x44] sm:$0x7]  ;;  %v1348_v6 = vrot.slane %v7270_v54, 7  ;;  %v1344_v16 = vrot.slane %v1253_v28, 7  ;;  %v1256_v21 = vld [vmem:[%s6792_s25 + $0x48] sm:$0x8] }
  0xb1   : > { %v6669_v54 = vld [vmem:[%s6792_s25 + $0x6c] sm:$0xff]   ;;  %v7370_v23 = vsel %vm7003_vm7, %v1322_v52, %v1323_v25  ;;  %v7374_v46 = vsel %vm7003_vm7, %v5349_v49, %v1327_v11  ;;  %v1258_v38 = vld [vmem:[%s6792_s25 + $0x54] sm:$0x8]  ;;  %v7384_v27 = vsel %vm7003_vm7, %v1329_v62, %v1330_v53  ;;  %v6709_v18 = vld [vmem:[%s6792_s25 + $0x58] sm:$0xf] }
  0xb2   : > { %v1257_v7 = vld [vmem:[%s6792_s25 + $0x50] sm:$0x7]  ;;  %v1362_v34 = vrot.slane %v6709_v18, 7  ;;  %v1350_v11 = vrot.slane %v1348_v6, 4  ;;  %v5689_v47 = vld [vmem:[%s6792_s25 + $0x4c] sm:$0xf] }
  0xb3   : > { %v5691_v52 = vld [vmem:[%s6792_s25 + $0x54] sm:$0xe]  ;;  %v1358_v53 = vrot.slane %v1257_v7, 7  ;;  %v1260_v28 = vld [vmem:[%s6792_s25 + $0x60] sm:$0x8]  ;;  %v3769_v7 = vshrl.u32 %v5689_v47, 16 }
  0xb4   : > { %6268 = vmatmul.mubr.msk.bf16.gmra.mrb[24].mxu0 %vm738_vm3, %v5604_v57  ;;  %v1337_v57 = vrot.slane %v1251_v43, 7  ;;  %v1351_v43 = vrot.slane %v1255_v4, 7  ;;  %v5692_v62 = vld [vmem:[%s6792_s25 + $0x58] sm:$0xf]  ;;  %v5693_v36 = vld [vmem:[%s6792_s25 + $0x5c] sm:$0x3] }
  0xb5   : > { %6116 = vmatmul.mubr.msk.bf16.gmra.mrb[8].mxu1 %vm738_vm3, %v5320_v56  ;;  %6271 = vmatprep.mubr.msk.bf16.mxu0 %vm738_vm3, %v5605_v60  ;;  %v5350_v56 = vrot.slane %v1250_v17, 11  ;;  %v5328_v60 = vcombine.low %v7313_v19, %v7095_v40  ;;  %v7397_v17 = vsel %vm787_vm0, %v7223_v12, 0  ;;  %v5353_v12 = vrot.slane %v1256_v21, 11 }
  0xb6   : > { %6119 = vmatprep.mubr.msk.bf16.mxu1 %vm738_vm3, %v5321_v8  ;;  %v1254_v8 = vld [vmem:[%s6792_s25 + $0x3c] sm:$0x8]  ;;  %v7430_v4 = vsel %vm7003_vm7, %v1350_v11, %v1351_v43  ;;  %v6675_v11 = vld [vmem:[%s6792_s25 + $0x90] sm:$0xff]   ;;  %v5355_v43 = vrot.slane %v1260_v28, 11 }
  0xb7   : > { %v7378_v26 = vsel %vm7003_vm7, %v5350_v56, %v1334_v22  ;;  %v5688_v22 = vld [vmem:[%s6792_s25 + $0x48] sm:$0xe]  ;;  %v1364_v56 = vrot.slane %v1362_v34, 4 }
  0xb8   : > { %v3760_v21 = vshrl.u32 %v5688_v22, 16 }
  0xbc   : > { %6272 = vmatmul.mubr.msk.bf16.gmra.mrb[28].mxu0 %vm738_vm3, %v5606_v33  ;;  %v7357_v33 = vld [vmem:[%s8409_s1 + $0x10] sm:$0x3] }
  0xbd   : > { %6120 = vmatmul.mubr.msk.bf16.gmra.mrb[12].mxu1 %vm738_vm3, %v5322_v39  ;;  %6277 = vmatprep.mubr.msk.bf16.mxu0 %vm738_vm3, %v6663_v13  ;;  %v7362_v39 = vsel %vm7003_vm7, %v1315_v55, %v1316_v20  ;;  %v5351_v13 = vrot.slane %v1252_v51, 11  ;;  %v5365_v55 = vcombine.low %v7350_v2, %v7370_v23  ;;  %v5354_v51 = vrot.slane %v1258_v38, 11 }
  0xbe   : > { %6123 = vmatprep.mubr.msk.bf16.mxu1 %vm738_vm3, %v5323_v15  ;;  %v1343_v15 = vrot.slane %v1341_v59, 4  ;;  %v3772_v38 = vshll.u32 %v5689_v47, 16  ;;  %v3762_v47 = vrot.slane %v3760_v21, 5  ;;  %v3807_v21 = vshrl.u32 %v5693_v36, 16 }
  0xbf   : > { %v7405_v45 = vsel %vm7003_vm7, %v5351_v13, %v1341_v59  ;;  %v6710_v13 = vld [vmem:[%s6792_s25 + $0x64] sm:$0xf]  ;;  %v7450_v9 = vsel %vm7003_vm7, %v5354_v51, %v1362_v34  ;;  %v8416_v2 = vcombine.low %v7374_v46, %v7384_v27  ;;  %v6714_v27 = vld [vmem:[%s8409_s1 + $0x8] sm:$0x3] }
  0xc0   : > { %v7409_v20 = vsel %vm7003_vm7, %v1343_v15, %v1344_v16  ;;  %v1369_v15 = vrot.slane %v6710_v13, 7 }
  0xc4   : > { %6278 = vmatmul.mubr.msk.bf16.vlgmr.msra.gmra.mrb[0].mxu0 %vm738_vm3, %v6665_v29  ;;  %v1355_v29 = vrot.slane %v7274_v0, 7  ;;  %v5364_v0 = vcombine.low %v7346_v1, %v7362_v39  ;;  %v7540_v39 = vld [vmem:[%s6792_s25 + $0x70] sm:$0xf] }
  0xc5   : > { %6124 = vmatmul.mubr.msk.bf16.gmra.mrb[16].mxu1 %vm738_vm3, %v5324_v14  ;;  %6310 = vmatpush3.bf16.msra.mxu0 %v4306_v31  ;;  %v7388_v14 = vsel %vm7003_vm7, %v1336_v63, %v1337_v57  ;;  %v1259_v31 = vld [vmem:[%s6792_s25 + $0x5c] sm:$0x7]  ;;  %v1262_v63 = vld [vmem:[%s6792_s25 + $0x6c] sm:$0x8] }
  0xc6   : > { %6127 = vmatprep.mubr.msk.bf16.mxu1 %vm738_vm3, %v5325_v37  ;;  %6281 = vmatprep.mubr.msk.bf16.mxu0 %vm738_vm3, %v6667_v44  ;;  %v5352_v37 = vrot.slane %v1254_v8, 11  ;;  %v6671_v44 = vld [vmem:[%s6792_s25 + $0x78] sm:$0xff]   ;;  %v1357_v59 = vrot.slane %v1355_v29, 4  ;;  %v1365_v57 = vrot.slane %v1259_v31, 7  ;;  %v7440_v16 = vsel %vm7003_vm7, %v5353_v12, %v1355_v29  ;;  %v5694_v12 = vld [vmem:[%s6792_s25 + $0x60] sm:$0xe] }
  0xc7   : > { %6644 = vmatprep.subr.msk.bf16.mxu0 %vm787_vm0, %v7357_v33  ;;  %v3788_v29 = vshrl.u32 %v5691_v52, 16  ;;  %v3791_v31 = vshll.u32 %v5691_v52, 16  ;;  %v3771_v52 = vrot.slane %v3769_v7, 5  ;;  %v3816_v7 = vshrl.u32 %v5694_v12, 16 }
  0xc8   : > { %v7426_v8 = vsel %vm7003_vm7, %v5352_v37, %v1348_v6  ;;  %v1261_v6 = vld [vmem:[%s6792_s25 + $0x68] sm:$0x7]  ;;  %v7455_v18 = vsel %vm7003_vm7, %v1357_v59, %v1358_v53  ;;  %v7459_v58 = vsel %vm7003_vm7, %v1364_v56, %v1365_v57  ;;  %v3800_v37 = vshll.u32 %v5692_v62, 16  ;;  %v7467_v53 = vld [vmem:[%s6792_s25 + $0x64] sm:$0xf] }
  0xc9   : > { %v5370_v56 = vcombine.low %v7440_v16, %v7455_v18  ;;  %v5371_v57 = vcombine.low %v7450_v9, %v7459_v58  ;;  %v3790_v34 = vrot.slane %v3788_v29, 5  ;;  %v3793_v28 = vrot.slane %v3791_v31, 6  ;;  %v6711_v31 = vld [vmem:[%s6792_s25 + $0x70] sm:$0xf] }
  0xca   : > { %v3819_v25 = vshll.u32 %v5694_v12, 16  ;;  %v3828_v29 = vshll.u32 %v7467_v53, 16  ;;  %v3809_v12 = vrot.slane %v3807_v21, 5  ;;  %v3818_v48 = vrot.slane %v3816_v7, 5  ;;  %v6712_v21 = vld [vmem:[%s6792_s25 + $0x7c] sm:$0xf] }
  0xcb   : > { %v5697_v7 = vld [vmem:[%s6792_s25 + $0x6c] sm:$0xe] }
  0xcc   : > { %6282 = vmatmul.mubr.msk.bf16.gmra.mrb[4].mxu0 %vm738_vm3, %v6669_v54  ;;  %v3763_v54 = vshll.u32 %v5688_v22, 16  ;;  %v1371_v22 = vrot.slane %v1369_v15, 4 }
  0xcd   : > { %6128 = vmatmul.mubr.msk.bf16.gmra.mrb[20].mxu1 %vm738_vm3, %v5326_v41  ;;  %6285 = vmatprep.mubr.msk.bf16.mxu0 %vm738_vm3, %v6671_v44  ;;  %v5690_v41 = vld [vmem:[%s6792_s25 + $0x50] sm:$0x3]  ;;  %v1372_v44 = vrot.slane %v1261_v6, 7  ;;  %v3802_v6 = vrot.slane %v3800_v37, 6 }
  0xce   : > { %6131 = vmatprep.mubr.msk.bf16.mxu1 %vm738_vm3, %v5327_v50  ;;  %v3797_v50 = vshrl.u32 %v5692_v62, 16  ;;  %v3765_v51 = vrot.slane %v3763_v54, 6  ;;  %v3779_v59 = vshrl.u32 %v5690_v41, 16  ;;  %v3774_v62 = vrot.slane %v3772_v38, 6 }
  0xcf   : > { %v3782_v13 = vshll.u32 %v5690_v41, 16  ;;  %v3810_v54 = vshll.u32 %v5693_v36, 16  ;;  %v7482_v41 = vsel %vm7003_vm7, %v5355_v43, %v1369_v15  ;;  %v3825_v38 = vshrl.u32 %v7467_v53, 16  ;;  %v5696_v36 = vld [vmem:[%s6792_s25 + $0x68] sm:$0x3] }
  0xd0   : > { %v3799_v49 = vrot.slane %v3797_v50, 5  ;;  %v3766_v40 = vor.u32 %v3765_v51, %v3762_v47  ;;  %v3781_v19 = vrot.slane %v3779_v59, 5  ;;  %v1376_v15 = vrot.slane %v6711_v31, 7  ;;  %v6677_v50 = vld [vmem:[%s6792_s25 + $0x9c] sm:$0xff]   ;;  %v1263_v43 = vld [vmem:[%s6792_s25 + $0x74] sm:$0x7] }
  0xd1   : > { %v7497_v37 = vor.u32 %v3774_v62, %v3771_v52  ;;  %v3812_v30 = vrot.slane %v3810_v54, 6  ;;  %v6678_v47 = vld [vmem:[%s6792_s25 + $0xa8] sm:$0xff]   ;;  %v3830_v51 = vrot.slane %v3828_v29, 6  ;;  %v3835_v59 = vshrl.u32 %v5696_v36, 16 }
  0xd2   : > { %v3838_v31 = vshll.u32 %v5696_v36, 16  ;;  %v3767_v62 = vrot.slane %v3766_v40, 4  ;;  %v1383_v54 = vrot.slane %v6712_v21, 7  ;;  %v1265_v36 = vld [vmem:[%s6792_s25 + $0x80] sm:$0x7]  ;;  %v3853_v21 = vshrl.u32 %v7540_v39, 16 }
  0xd3   : > { %v3813_v40 = vor.u32 %v3812_v30, %v3809_v12  ;;  %v3847_v12 = vshll.u32 %v5697_v7, 16  ;;  %v1386_v1 = vrot.slane %v1265_v36, 7 }
  0xd4   : > { %6286 = vmatmul.mubr.msk.bf16.gmra.mrb[8].mxu0 %vm738_vm3, %v6673_v24  ;;  %v7486_v24 = vsel %vm7003_vm7, %v1371_v22, %v1372_v44  ;;  %v3794_v22 = vor.u32 %v3793_v28, %v3790_v34  ;;  %v7500_v44 = vor.u32 %v3802_v6, %v3799_v49  ;;  %v1378_v34 = vrot.slane %v1376_v15, 4 }
  0xd5   : > { %6132 = vmatmul.mubr.msk.bf16.gmra.mrb[24].mxu1 %vm738_vm3, %v5328_v60  ;;  %6289 = vmatprep.mubr.msk.bf16.mxu0 %vm738_vm3, %v6675_v11  ;;  %v5356_v60 = vrot.slane %v1262_v63, 11  ;;  %v3784_v11 = vrot.slane %v3782_v13, 6  ;;  %v3827_v63 = vrot.slane %v3825_v38, 5  ;;  %v1379_v49 = vrot.slane %v1263_v43, 7  ;;  %v1264_v13 = vld [vmem:[%s6792_s25 + $0x78] sm:$0x8] }
  0xd6   : > { %6135 = vmatprep.mubr.msk.bf16.mxu1 %vm738_vm3, %v5329_v61  ;;  %v3821_v61 = vrot.slane %v3819_v25, 6  ;;  %v3777_v28 = vrot.slane %v7497_v37, 4  ;;  %v3795_v38 = vrot.slane %v3794_v22, 4  ;;  %v3805_v29 = vrot.slane %v7500_v44, 4  ;;  %v6713_v43 = vld [vmem:[%s6792_s25 + $0x88] sm:$0xf] }
  0xd7   : > { %v3785_v6 = vor.u32 %v3784_v11, %v3781_v19  ;;  %v7509_v25 = vsel %vm7003_vm7, %v5356_v60, %v1376_v15  ;;  %v1390_v52 = vrot.slane %v6713_v43, 7  ;;  %v7522_v60 = vor.u32 %v3830_v51, %v3827_v63  ;;  %v1266_v11 = vld [vmem:[%s6792_s25 + $0x84] sm:$0x8]  ;;  %v1267_v22 = vld [vmem:[%s6792_s25 + $0x8c] sm:$0x7] }
  0xd8   : > { %v3822_v19 = vor.u32 %v3821_v61, %v3818_v48  ;;  %v3837_v15 = vrot.slane %v3835_v59, 5  ;;  %v3776_v5 = vsel %vm6822_vm4, %v3767_v62, %v7497_v37  ;;  %v7535_v42 = vsel %vm7003_vm7, %v1378_v34, %v1379_v49  ;;  %v6680_v59 = vld [vmem:[%s6792_s25 + $0xc0] sm:$0xff]  }
  0xd9   : > { %v3786_v30 = vsel %vm6822_vm4, %v3777_v28, %v3785_v6  ;;  %v5357_v48 = vrot.slane %v1264_v13, 11  ;;  %v1385_v61 = vrot.slane %v1383_v54, 4  ;;  %v3804_v37 = vsel %vm6822_vm4, %v3795_v38, %v7500_v44  ;;  %v5699_v13 = vld [vmem:[%s6792_s25 + $0x74] sm:$0x3] }
  0xda   : > { %v1392_v63 = vrot.slane %v1390_v52, 4  ;;  %v1393_v51 = vrot.slane %v1267_v22, 7  ;;  %v3823_v62 = vrot.slane %v3822_v19, 4  ;;  %v3833_v34 = vrot.slane %v7522_v60, 4 }
  0xdb   : > { %v3849_v6 = vrot.slane %v3847_v12, 6  ;;  %v3856_v44 = vshll.u32 %v7540_v39, 16  ;;  %v7557_v38 = vsel %vm787_vm0, %v7357_v33, 0  ;;  %v7568_v36 = vcombine.low %v3776_v5, %v3786_v30  ;;  %v5703_v5 = vld [vmem:[%s6792_s25 + $0x84] sm:$0xe] }
  0xdc   : > { %6290 = vmatmul.mubr.msk.bf16.gmra.mrb[12].mxu0 %vm738_vm3, %v6677_v50  ;;  %v3840_v50 = vrot.slane %v3838_v31, 6  ;;  %v3814_v31 = vsel %vm6822_vm4, %v3805_v29, %v3813_v40  ;;  %v7561_v29 = vsel %vm7003_vm7, %v5357_v48, %v1383_v54  ;;  %v7565_v40 = vsel %vm7003_vm7, %v1385_v61, %v1386_v1  ;;  %v5700_v54 = vld [vmem:[%s6792_s25 + $0x78] sm:$0xe]  ;;  %v7603_v12 = vld [vmem:[%s6792_s25 + $0x88] sm:$0xf]  ;;  %v6681_v1 = vld [vmem:[%s6792_s25 + $0xcc] sm:$0xff]  }
  0xdd   : > { %6136 = vmatmul.mubr.msk.bf16.gmra.mrb[28].mxu1 %vm738_vm3, %v5330_v32  ;;  %6293 = vmatprep.mubr.msk.bf16.mxu0 %vm738_vm3, %v6678_v47  ;;  %v3844_v32 = vshrl.u32 %v5697_v7, 16  ;;  %v5358_v47 = vrot.slane %v1266_v11, 11  ;;  %v5373_v7 = vcombine.low %v7509_v25, %v7535_v42  ;;  %v7570_v43 = vcombine.low %v3804_v37, %v3814_v31  ;;  %v1268_v48 = vld [vmem:[%s6792_s25 + $0x90] sm:$0x8]  ;;  %v5702_v37 = vld [vmem:[%s6792_s25 + $0x80] sm:$0x3] }
  0xde   : > { %6141 = vmatprep.mubr.msk.bf16.mxu1 %vm738_vm3, %v5364_v0  ;;  %v6679_v0 = vld [vmem:[%s6792_s25 + $0xb4] sm:$0xff]   ;;  %v3841_v49 = vor.u32 %v3840_v50, %v3837_v15  ;;  %v7578_v33 = vsel %vm7003_vm7, %v1392_v63, %v1393_v51  ;;  %v7582_v15 = vld [vmem:[%s6792_s25 + $0x7c] sm:$0xf]  ;;  %v3863_v11 = vshrl.u32 %v5699_v13, 16  ;;  %v3866_v22 = vshll.u32 %v5699_v13, 16 }
  0xdf   : > { %v3846_v28 = vrot.slane %v3844_v32, 5  ;;  %v7574_v19 = vsel %vm7003_vm7, %v5358_v47, %v1390_v52  ;;  %v3832_v52 = vsel %vm6822_vm4, %v3823_v62, %v7522_v60  ;;  %v3855_v60 = vrot.slane %v3853_v21, 5  ;;  %v6715_v21 = vld [vmem:[%s6792_s25 + $0x94] sm:$0xf] }
  0xe0   : > { %v3842_v50 = vsel %vm6822_vm4, %v3833_v34, %v3841_v49  ;;  %v3858_v32 = vrot.slane %v3856_v44, 6  ;;  %v3875_v61 = vshll.u32 %v5700_v54, 16  ;;  %v3881_v46 = vshrl.u32 %v7582_v15, 16 }
  0xe1   : > { %v3884_v47 = vshll.u32 %v7582_v15, 16  ;;  %v3900_v63 = vshrl.u32 %v5703_v5, 16  ;;  %v3903_v51 = vshll.u32 %v5703_v5, 16  ;;  %v3865_v31 = vrot.slane %v3863_v11, 5 }
  0xe2   : > { %v3868_v62 = vrot.slane %v3866_v22, 6  ;;  %v3909_v34 = vshrl.u32 %v7603_v12, 16  ;;  %v3912_v49 = vshll.u32 %v7603_v12, 16  ;;  %v1397_v44 = vrot.slane %v6715_v21, 7 }
  0xe3   : > { %v3883_v5 = vrot.slane %v3881_v46, 5  ;;  %v3886_v11 = vrot.slane %v3884_v47, 6  ;;  %v3894_v22 = vshll.u32 %v5702_v37, 16  ;;  %v3902_v30 = vrot.slane %v3900_v63, 5 }
  0xe4   : > { %6294 = vmatmul.mubr.msk.bf16.gmra.mrb[16].mxu0 %vm738_vm3, %v6679_v0  ;;  %v7614_v0 = vcombine.low %v3832_v52, %v3842_v50  ;;  %v1269_v52 = vld [vmem:[%s6792_s25 + $0x98] sm:$0x7]  ;;  %v3905_v23 = vrot.slane %v3903_v51, 6  ;;  %v8418_v46 = vcombine.low %v7405_v45, %v7409_v20  ;;  %v1271_v45 = vld [vmem:[%s6792_s25 + $0xa4] sm:$0x7] }
  0xe5   : > { %6142 = vmatmul.mubr.msk.bf16.vlgmr.msra.gmra.mrb[0].mxu1 %vm738_vm3, %v5365_v55  ;;  %6297 = vmatprep.mubr.msk.bf16.mxu0 %vm738_vm3, %v6680_v59  ;;  %v3850_v55 = vor.u32 %v3849_v6, %v3846_v28  ;;  %v6682_v59 = vld [vmem:[%s6792_s25 + $0xd8] sm:$0xff]   ;;  %v7623_v28 = vor.u32 %v3858_v32, %v3855_v60  ;;  %v5359_v6 = vrot.slane %v1268_v48, 11  ;;  %v3911_v32 = vrot.slane %v3909_v34, 5  ;;  %v6716_v20 = vld [vmem:[%s6792_s25 + $0xa0] sm:$0xf] }
  0xe6   : > { %6174 = vmatpush3.bf16.msra.mxu1 %v7397_v17  ;;  %6145 = vmatprep.mubr.msk.bf16.mxu1 %vm738_vm3, %v8416_v2  ;;  %v3872_v17 = vshrl.u32 %v5700_v54, 16  ;;  %v5705_v54 = vld [vmem:[%s6792_s25 + $0x8c] sm:$0x3]  ;;  %v3877_v2 = vrot.slane %v3875_v61, 6  ;;  %v1270_v60 = vld [vmem:[%s6792_s25 + $0x9c] sm:$0x8]  ;;  %v3887_v21 = vor.u32 %v3886_v11, %v3883_v5 }
  0xe7   : > { %6640 = vmatprep.subr.msk.bf16.mxu1 %vm787_vm0, %v6714_v27  ;;  %v7621_v13 = vrot.slane %v3850_v55, 4  ;;  %v3891_v27 = vshrl.u32 %v5702_v37, 16  ;;  %v8417_v55 = vcombine.low %v7378_v26, %v7388_v14  ;;  %v3914_v48 = vrot.slane %v3912_v49, 6  ;;  %v5706_v34 = vld [vmem:[%s6792_s25 + $0x90] sm:$0xe]  ;;  %v6683_v49 = vld [vmem:[%s6792_s25 + $0xe4] sm:$0xff]  }
  0xe8   : > { %v3874_v50 = vrot.slane %v3872_v17, 5  ;;  %v3919_v17 = vshrl.u32 %v5705_v54, 16  ;;  %v3922_v61 = vshll.u32 %v5705_v54, 16  ;;  %v3861_v26 = vrot.slane %v7623_v28, 4 }
  0xe9   : > { %v3869_v14 = vor.u32 %v3868_v62, %v3865_v31  ;;  %v1400_v37 = vrot.slane %v1269_v52, 7  ;;  %v3860_v47 = vsel %vm6822_vm4, %v7621_v13, %v7623_v28  ;;  %v7646_v63 = vsel %vm7003_vm7, %v5359_v6, %v1397_v44  ;;  %v7653_v52 = vld [vmem:[%s6792_s25 + $0x94] sm:$0xf] }
  0xea   : > { %v3878_v51 = vor.u32 %v3877_v2, %v3874_v50  ;;  %v3893_v31 = vrot.slane %v3891_v27, 5  ;;  %v3896_v62 = vrot.slane %v3894_v22, 6  ;;  %v5360_v54 = vrot.slane %v1270_v60, 11  ;;  %v5708_v22 = vld [vmem:[%s6792_s25 + $0x98] sm:$0x3] }
  0xeb   : > { %v3915_v13 = vor.u32 %v3914_v48, %v3911_v32  ;;  %v3921_v28 = vrot.slane %v3919_v17, 5  ;;  %v3924_v6 = vrot.slane %v3922_v61, 6  ;;  %v3928_v2 = vshrl.u32 %v5706_v34, 16  ;;  %v1272_v17 = vld [vmem:[%s6792_s25 + $0xa8] sm:$0x8] }
  0xec   : > { %6298 = vmatmul.mubr.msk.bf16.gmra.mrb[20].mxu0 %vm738_vm3, %v6681_v1  ;;  %v1399_v1 = vrot.slane %v1397_v44, 4  ;;  %v3870_v44 = vsel %vm6822_vm4, %v3861_v26, %v3869_v14  ;;  %v3931_v5 = vshll.u32 %v5706_v34, 16  ;;  %v1407_v11 = vrot.slane %v1271_v45, 7  ;;  %v6717_v61 = vld [vmem:[%s6792_s25 + $0xac] sm:$0xf] }
  0xed   : > { %6146 = vmatmul.mubr.msk.bf16.gmra.mrb[4].mxu1 %vm738_vm3, %v8417_v55  ;;  %6301 = vmatprep.mubr.msk.bf16.mxu0 %vm738_vm3, %v6682_v59  ;;  %v1404_v59 = vrot.slane %v6716_v20, 7  ;;  %v6684_v55 = vld [vmem:[%s6792_s25 + $0xf0] sm:$0xff]   ;;  %v3879_v60 = vrot.slane %v3878_v51, 4  ;;  %v3889_v32 = vrot.slane %v3887_v21, 4  ;;  %v3897_v48 = vor.u32 %v3896_v62, %v3893_v31 }
  0xee   : > { %6149 = vmatprep.mubr.msk.bf16.mxu1 %vm738_vm3, %v8418_v46  ;;  %v3906_v46 = vor.u32 %v3905_v23, %v3902_v30  ;;  %v7660_v50 = vsel %vm7003_vm7, %v1399_v1, %v1400_v37  ;;  %v3937_v23 = vshrl.u32 %v7653_v52, 16  ;;  %v3940_v30 = vshll.u32 %v7653_v52, 16  ;;  %v1273_v20 = vld [vmem:[%s6792_s25 + $0xb0] sm:$0x7] }
  0xef   : > { %v1406_v27 = vrot.slane %v1404_v59, 4  ;;  %v1411_v26 = vrot.slane %v6717_v61, 7  ;;  %v8419_v14 = vcombine.low %v7426_v8, %v7430_v4  ;;  %v7675_v1 = vsel %vm7003_vm7, %v5360_v54, %v1404_v59 }
  0xf0   : > { %v3907_v37 = vrot.slane %v3906_v46, 4  ;;  %v3917_v45 = vrot.slane %v3915_v13, 4  ;;  %v3925_v51 = vor.u32 %v3924_v6, %v3921_v28  ;;  %v3930_v34 = vrot.slane %v3928_v2, 5 }
  0xf1   : > { %v3933_v8 = vrot.slane %v3931_v5, 6  ;;  %v3947_v4 = vshrl.u32 %v5708_v22, 16  ;;  %v7684_v31 = vsel %vm7003_vm7, %v1406_v27, %v1407_v11  ;;  %v5361_v59 = vrot.slane %v1272_v17, 11  ;;  %v6718_v17 = vld [vmem:[%s6792_s25 + $0xb8] sm:$0xf] }
  0xf2   : > { %v3939_v62 = vrot.slane %v3937_v23, 5  ;;  %v3942_v54 = vrot.slane %v3940_v30, 6  ;;  %v3888_v16 = vsel %vm6822_vm4, %v3879_v60, %v3887_v21  ;;  %v3898_v18 = vsel %vm6822_vm4, %v3889_v32, %v3897_v48  ;;  %v5709_v21 = vld [vmem:[%s6792_s25 + $0x9c] sm:$0xe]  ;;  %v1274_v32 = vld [vmem:[%s6792_s25 + $0xb4] sm:$0x8] }
  0xf3   : > { %v1414_v46 = vrot.slane %v1273_v20, 7  ;;  %v7691_v28 = vcombine.low %v3860_v47, %v3870_v44  ;;  %v5376_v6 = vcombine.low %v7646_v63, %v7660_v50  ;;  %v3916_v2 = vsel %vm6822_vm4, %v3907_v37, %v3915_v13  ;;  %v7703_v47 = vld [vmem:[%s6792_s25 + $0xa0] sm:$0xf]  ;;  %v5712_v44 = vld [vmem:[%s6792_s25 + $0xa8] sm:$0xe] }
  0xf4   : > { %6302 = vmatmul.mubr.msk.bf16.gmra.mrb[24].mxu0 %vm738_vm3, %v6683_v49  ;;  %v3950_v49 = vshll.u32 %v5708_v22, 16  ;;  %v3926_v5 = vsel %vm6822_vm4, %v3917_v45, %v3925_v51  ;;  %v5377_v27 = vcombine.low %v7675_v1, %v7684_v31  ;;  %v3934_v11 = vor.u32 %v3933_v8, %v3930_v34  ;;  %v1275_v48 = vld [vmem:[%s6792_s25 + $0xbc] sm:$0x7]  ;;  %v7725_v20 = vld [vmem:[%s6792_s25 + $0xac] sm:$0xf] }
  0xf5   : > { %6150 = vmatmul.mubr.msk.bf16.gmra.mrb[8].mxu1 %vm738_vm3, %v8419_v14  ;;  %6305 = vmatprep.mubr.msk.bf16.mxu0 %vm738_vm3, %v6684_v55  ;;  %v6685_v55 = vld [vmem:[%s6792_s25 + $0xfc] sm:$0xff]   ;;  %v3949_v22 = vrot.slane %v3947_v4, 5  ;;  %v7706_v30 = vcombine.low %v3888_v16, %v3898_v18  ;;  %v7710_v13 = vsel %vm7003_vm7, %v5361_v59, %v1411_v26  ;;  %v7712_v60 = vor.u32 %v3942_v54, %v3939_v62  ;;  %v5727_v1 = vld [vmem:[%s6792_s25 + $0xe4] sm:$0xe] }
  0xf6   : > { %6153 = vmatprep.mubr.msk.bf16.mxu1 %vm738_vm3, %v5370_v56  ;;  %v1413_v56 = vrot.slane %v1411_v26, 4  ;;  %v3952_v23 = vrot.slane %v3950_v49, 6  ;;  %v1418_v61 = vrot.slane %v6718_v17, 7  ;;  %v7718_v14 = vcombine.low %v3916_v2, %v3926_v5  ;;  %v5711_v26 = vld [vmem:[%s6792_s25 + $0xa4] sm:$0x3] }
  0xf7   : > { %v3956_v45 = vshrl.u32 %v5709_v21, 16  ;;  %v3959_v51 = vshll.u32 %v5709_v21, 16  ;;  %v3965_v34 = vshrl.u32 %v7703_v47, 16  ;;  %v3968_v8 = vshll.u32 %v7703_v47, 16 }
  0xf8   : > { %v7722_v37 = vsel %vm7003_vm7, %v1413_v56, %v1414_v46  ;;  %v3984_v4 = vshrl.u32 %v5712_v44, 16  ;;  %v3987_v49 = vshll.u32 %v5712_v44, 16  ;;  %v8420_v59 = vcombine.low %v7482_v41, %v7486_v24 }
  0xf9   : > { %v7740_v62 = vrot.slane %v3934_v11, 4  ;;  %v3953_v9 = vor.u32 %v3952_v23, %v3949_v22  ;;  %v5362_v58 = vrot.slane %v1274_v32, 11  ;;  %v3945_v54 = vrot.slane %v7712_v60, 4 }
  0xfa   : > { %v3993_v16 = vshrl.u32 %v7725_v20, 16  ;;  %v3996_v18 = vshll.u32 %v7725_v20, 16  ;;  %v3958_v56 = vrot.slane %v3956_v45, 5  ;;  %v3961_v46 = vrot.slane %v3959_v51, 6 }
  0xfb   : > { %v3975_v41 = vshrl.u32 %v5711_v26, 16  ;;  %v3978_v24 = vshll.u32 %v5711_v26, 16  ;;  %v3967_v2 = vrot.slane %v3965_v34, 5  ;;  %v3970_v5 = vrot.slane %v3968_v8, 6  ;;  %v7762_v34 = vld [vmem:[%s6792_s25 + $0xb8] sm:$0xf] }
  0xfc   : > { %6306 = vmatmul.mubr.msk.bf16.gmra.mrb[28].mxu0 %vm738_vm3, %v6685_v55  ;;  %v5714_v55 = vld [vmem:[%s6792_s25 + $0xb0] sm:$0x3]  ;;  %v3986_v21 = vrot.slane %v3984_v4, 5  ;;  %v3989_v11 = vrot.slane %v3987_v49, 6  ;;  %v5378_v22 = vcombine.low %v7710_v13, %v7722_v37  ;;  %v3944_v23 = vsel %vm6822_vm4, %v7740_v62, %v7712_v60  ;;  %v5718_v49 = vld [vmem:[%s6792_s25 + $0xc0] sm:$0xe] }
  0xfd   : > { %6154 = vmatmul.mubr.msk.bf16.gmra.mrb[12].mxu1 %vm738_vm3, %v5371_v57  ;;  %6311 = vmatprep.mubr.msk.bf16.mxu0 %vm738_vm3, %v7568_v36  ;;  %v1421_v57 = vrot.slane %v1275_v48, 7  ;;  %v1420_v36 = vrot.slane %v1418_v61, 4  ;;  %v7754_v44 = vsel %vm7003_vm7, %v5362_v58, %v1418_v61  ;;  %v4003_v32 = vshrl.u32 %v5714_v55, 16  ;;  %v5715_v48 = vld [vmem:[%s6792_s25 + $0xb4] sm:$0xe] }
  0xfe   : > { %6157 = vmatprep.mubr.msk.bf16.mxu1 %vm738_vm3, %v8420_v59  ;;  %v3995_v45 = vrot.slane %v3993_v16, 5  ;;  %v3998_v51 = vrot.slane %v3996_v18, 6  ;;  %v4006_v26 = vshll.u32 %v5714_v55, 16  ;;  %v3954_v60 = vsel %vm6822_vm4, %v3945_v54, %v3953_v9  ;;  %v5717_v55 = vld [vmem:[%s6792_s25 + $0xbc] sm:$0x3] }
  0xff   : > { %v7759_v17 = vsel %vm7003_vm7, %v1420_v36, %v1421_v57  ;;  %v3962_v61 = vor.u32 %v3961_v46, %v3958_v56  ;;  %v3977_v8 = vrot.slane %v3975_v41, 5  ;;  %v3980_v4 = vrot.slane %v3978_v24, 6  ;;  %v7777_v57 = vld [vmem:[%s6792_s25 + $0xc4] sm:$0xf] }
 0x100   : > { %v7774_v59 = vor.u32 %v3970_v5, %v3967_v2  ;;  %v3990_v62 = vor.u32 %v3989_v11, %v3986_v21  ;;  %v4012_v58 = vshrl.u32 %v5715_v48, 16  ;;  %v8421_v9 = vcombine.low %v7561_v29, %v7565_v40  ;;  %v5720_v5 = vld [vmem:[%s6792_s25 + $0xc8] sm:$0x3] }
 0x101   : > { %v5379_v25 = vcombine.low %v7754_v44, %v7759_v17  ;;  %v4005_v42 = vrot.slane %v4003_v32, 5  ;;  %v7789_v54 = vor.u32 %v3998_v51, %v3995_v45  ;;  %v4008_v36 = vrot.slane %v4006_v26, 6  ;;  %v5733_v44 = vld [vmem:[%s6792_s25 + $0xfc] sm:$0xe] }
 0x102   : > { %v4040_v16 = vshrl.u32 %v5718_v49, 16  ;;  %v4043_v29 = vshll.u32 %v5718_v49, 16  ;;  %v7792_v40 = vrot.slane %v3962_v61, 4  ;;  %v3981_v18 = vor.u32 %v3980_v4, %v3977_v8  ;;  %v5721_v8 = vld [vmem:[%s6792_s25 + $0xcc] sm:$0xe] }
 0x103   : > { %v4052_v56 = vshll.u32 %v7777_v57, 16  ;;  %v3973_v46 = vrot.slane %v7774_v59, 4  ;;  %v7797_v41 = vrot.slane %v3990_v62, 4  ;;  %v4014_v24 = vrot.slane %v4012_v58, 5 }
 0x104   : > { %6312 = vmatmul.mubr.msk.bf16.vlgmr.msra.gmra.mrb[0].mxu0 %vm738_vm3, %v7570_v43  ;;  %v4015_v43 = vshll.u32 %v5715_v48, 16  ;;  %v4031_v32 = vshrl.u32 %v5717_v55, 16  ;;  %v4034_v48 = vshll.u32 %v5717_v55, 16  ;;  %v4001_v45 = vrot.slane %v7789_v54, 4 }
 0x105   : > { %6158 = vmatmul.mubr.msk.bf16.gmra.mrb[16].mxu1 %vm738_vm3, %v5373_v7  ;;  %6344 = vmatpush3.bf16.msra.mxu0 %v7557_v38  ;;  %v4021_v7 = vshrl.u32 %v7762_v34, 16  ;;  %v4024_v38 = vshll.u32 %v7762_v34, 16  ;;  %v4009_v51 = vor.u32 %v4008_v36, %v4005_v42  ;;  %v4042_v26 = vrot.slane %v4040_v16, 5 }
 0x106   : > { %6161 = vmatprep.mubr.msk.bf16.mxu1 %vm738_vm3, %v8421_v9  ;;  %6315 = vmatprep.mubr.msk.bf16.mxu0 %vm738_vm3, %v7614_v0  ;;  %v4049_v0 = vshrl.u32 %v7777_v57, 16  ;;  %v4017_v2 = vrot.slane %v4015_v43, 6  ;;  %v4045_v61 = vrot.slane %v4043_v29, 6  ;;  %v4054_v49 = vrot.slane %v4052_v56, 6  ;;  %v7833_v29 = vld [vmem:[%s6792_s25 + $0xdc] sm:$0xf] }
 0x107   : > { %v4023_v21 = vrot.slane %v4021_v7, 5  ;;  %v4026_v11 = vrot.slane %v4024_v38, 6  ;;  %v4059_v62 = vshrl.u32 %v5720_v5, 16  ;;  %v4062_v58 = vshll.u32 %v5720_v5, 16  ;;  %v7815_v7 = vld [vmem:[%s6792_s25 + $0xd0] sm:$0xf] }
 0x108   : > { %v4051_v4 = vrot.slane %v4049_v0, 5  ;;  %v8422_v43 = vcombine.low %v7574_v19, %v7578_v33  ;;  %v5743_v9 = vcombine.low %v3944_v23, %v3954_v60  ;;  %v3972_v42 = vsel %vm6822_vm4, %v7792_v40, %v7774_v59  ;;  %v5724_v60 = vld [vmem:[%s6792_s25 + $0xd8] sm:$0xe]  ;;  %v5723_v40 = vld [vmem:[%s6792_s25 + $0xd4] sm:$0x3] }
 0x109   : > { %v7821_v19 = vor.u32 %v4026_v11, %v4023_v21  ;;  %v4033_v33 = vrot.slane %v4031_v32, 5  ;;  %v4068_v23 = vshrl.u32 %v5721_v8, 16  ;;  %v3982_v38 = vsel %vm6822_vm4, %v3973_v46, %v3981_v18  ;;  %v5726_v11 = vld [vmem:[%s6792_s25 + $0xe0] sm:$0x3] }
 0x10a   : > { %v4000_v59 = vsel %vm6822_vm4, %v7797_v41, %v7789_v54  ;;  %v4046_v36 = vor.u32 %v4045_v61, %v4042_v26  ;;  %v4071_v55 = vshll.u32 %v5721_v8, 16  ;;  %v4010_v63 = vsel %vm6822_vm4, %v4001_v45, %v4009_v51 }
 0x10b   : > { %v4055_v50 = vor.u32 %v4054_v49, %v4051_v4  ;;  %v4064_v16 = vrot.slane %v4062_v58, 6  ;;  %v4077_v0 = vshrl.u32 %v7815_v7, 16  ;;  %v4080_v18 = vshll.u32 %v7815_v7, 16 }
 0x10c   : > { %6316 = vmatmul.mubr.msk.bf16.gmra.mrb[4].mxu0 %vm738_vm3, %v7691_v28  ;;  %v4018_v28 = vor.u32 %v4017_v2, %v4014_v24  ;;  %v4096_v56 = vshrl.u32 %v5724_v60, 16  ;;  %v4099_v46 = vshll.u32 %v5724_v60, 16  ;;  %v4029_v54 = vrot.slane %v7821_v19, 4 }
 0x10d   : > { %6162 = vmatmul.mubr.msk.bf16.gmra.mrb[20].mxu1 %vm738_vm3, %v8422_v43  ;;  %6319 = vmatprep.mubr.msk.bf16.mxu0 %vm738_vm3, %v7706_v30  ;;  %v4036_v30 = vrot.slane %v4034_v48, 6  ;;  %v4070_v2 = vrot.slane %v4068_v23, 5  ;;  %v4047_v5 = vrot.slane %v4046_v36, 4  ;;  %v4073_v21 = vrot.slane %v4071_v55, 6  ;;  %v7870_v36 = vld [vmem:[%s6792_s25 + $0xf4] sm:$0xf] }
 0x10e   : > { %6165 = vmatprep.mubr.msk.bf16.mxu1 %vm738_vm3, %v5376_v6  ;;  %v4061_v6 = vrot.slane %v4059_v62, 5  ;;  %v4019_v24 = vrot.slane %v4018_v28, 4  ;;  %v4105_v32 = vshrl.u32 %v7833_v29, 16  ;;  %v4108_v48 = vshll.u32 %v7833_v29, 16  ;;  %v6686_v55 = vld [vmem:[%s6792_s25 + $0x24] sm:$0xff]  }
 0x10f   : > { %v4037_v41 = vor.u32 %v4036_v30, %v4033_v33  ;;  %v4057_v45 = vrot.slane %v4055_v50, 4  ;;  %v4087_v26 = vshrl.u32 %v5723_v40, 16  ;;  %v4090_v61 = vshll.u32 %v5723_v40, 16  ;;  %v7858_v30 = vld [vmem:[%s6792_s25 + $0xe8] sm:$0xf] }
 0x110   : > { %v4065_v51 = vor.u32 %v4064_v16, %v4061_v6  ;;  %v4079_v8 = vrot.slane %v4077_v0, 5  ;;  %v4082_v4 = vrot.slane %v4080_v18, 6  ;;  %v4098_v49 = vrot.slane %v4096_v56, 5 }
 0x111   : > { %v4101_v62 = vrot.slane %v4099_v46, 6  ;;  %v5745_v58 = vcombine.low %v4000_v59, %v4010_v63  ;;  %v4115_v43 = vshrl.u32 %v5726_v11, 16  ;;  %v4118_v28 = vshll.u32 %v5726_v11, 16  ;;  %v5730_v59 = vld [vmem:[%s6792_s25 + $0xf0] sm:$0xe] }
 0x112   : > { %v4028_v31 = vsel %vm6822_vm4, %v4019_v24, %v7821_v19  ;;  %v4110_v33 = vrot.slane %v4108_v48, 6  ;;  %v4038_v13 = vsel %vm6822_vm4, %v4029_v54, %v4037_v41  ;;  %v4056_v37 = vsel %vm6822_vm4, %v4047_v5, %v4055_v50  ;;  %v5729_v24 = vld [vmem:[%s6792_s25 + $0xec] sm:$0x3] }
 0x113   : > { %v4066_v23 = vsel %vm6822_vm4, %v4057_v45, %v4065_v51  ;;  %v7866_v60 = vor.u32 %v4082_v4, %v4079_v8  ;;  %v4102_v19 = vor.u32 %v4101_v62, %v4098_v49  ;;  %v4117_v63 = vrot.slane %v4115_v43, 5  ;;  %v7894_v49 = vld [vmem:[%s6792_s25 + $0x100] sm:$0xf] }
 0x114   : > { %6320 = vmatmul.mubr.msk.bf16.gmra.mrb[8].mxu0 %vm738_vm3, %v7718_v14  ;;  %v5744_v14 = vcombine.low %v3972_v42, %v3982_v38  ;;  %v4092_v42 = vrot.slane %v4090_v61, 6  ;;  %v4124_v38 = vshrl.u32 %v5727_v1, 16  ;;  %v4120_v6 = vrot.slane %v4118_v28, 6  ;;  %v6687_v28 = vld [vmem:[%s6792_s25 + $0x30] sm:$0xff]  }
 0x115   : > { %6166 = vmatmul.mubr.msk.bf16.gmra.mrb[24].mxu1 %vm738_vm3, %v5377_v27  ;;  %6323 = vmatprep.mubr.msk.bf16.mxu0 %vm738_vm3, %v5743_v9  ;;  %v4074_v27 = vor.u32 %v4073_v21, %v4070_v2  ;;  %v4107_v9 = vrot.slane %v4105_v32, 5  ;;  %v4127_v16 = vshll.u32 %v5727_v1, 16  ;;  %v4133_v40 = vshrl.u32 %v7858_v30, 16  ;;  %v5732_v32 = vld [vmem:[%s6792_s25 + $0xf8] sm:$0x3] }
 0x116   : > { %6169 = vmatprep.mubr.msk.bf16.mxu1 %vm738_vm3, %v5378_v22  ;;  %v4089_v22 = vrot.slane %v4087_v26, 5  ;;  %v5746_v50 = vcombine.low %v4028_v31, %v4038_v13  ;;  %v4136_v56 = vshll.u32 %v7858_v30, 16  ;;  %v5747_v46 = vcombine.low %v4056_v37, %v4066_v23 }
 0x117   : > { %v7874_v0 = vrot.slane %v4074_v27, 4  ;;  %v7876_v18 = vor.u32 %v4110_v33, %v4107_v9  ;;  %v4152_v54 = vshrl.u32 %v5730_v59, 16  ;;  %v4155_v41 = vshll.u32 %v5730_v59, 16  ;;  %v6688_v33 = vld [vmem:[%s6792_s25 + $0x3c] sm:$0xff]  }
 0x118   : > { %v4161_v2 = vshrl.u32 %v7870_v36, 16  ;;  %v4085_v5 = vrot.slane %v7866_v60, 4  ;;  %v4093_v21 = vor.u32 %v4092_v42, %v4089_v22  ;;  %v4126_v11 = vrot.slane %v4124_v38, 5 }
 0x119   : > { %v4164_v48 = vshll.u32 %v7870_v36, 16  ;;  %v4103_v45 = vrot.slane %v4102_v19, 4  ;;  %v4121_v51 = vor.u32 %v4120_v6, %v4117_v63  ;;  %v4129_v26 = vrot.slane %v4127_v16, 6 }
 0x11a   : > { %v4135_v61 = vrot.slane %v4133_v40, 5  ;;  %v4113_v17 = vrot.slane %v7876_v18, 4  ;;  %v4143_v8 = vshrl.u32 %v5729_v24, 16  ;;  %v4146_v4 = vshll.u32 %v5729_v24, 16 }
 0x11b   : > { %v4154_v62 = vrot.slane %v4152_v54, 5  ;;  %v4171_v43 = vshrl.u32 %v5732_v32, 16  ;;  %v4166_v1 = vrot.slane %v4164_v48, 6  ;;  %v4174_v31 = vshll.u32 %v5732_v32, 16  ;;  %v6689_v32 = vld [vmem:[%s6792_s25 + $0x48] sm:$0xff]  }
 0x11c   : > { %6324 = vmatmul.mubr.msk.bf16.gmra.mrb[12].mxu0 %vm738_vm3, %v5744_v14  ;;  %v4157_v14 = vrot.slane %v4155_v41, 6  ;;  %v4180_v27 = vshrl.u32 %v5733_v44, 16  ;;  %v4183_v9 = vshll.u32 %v5733_v44, 16  ;;  %v4084_v13 = vsel %vm6822_vm4, %v7874_v0, %v7866_v60  ;;  %v6690_v44 = vld [vmem:[%s6792_s25 + $0x54] sm:$0xff]  }
 0x11d   : > { %6170 = vmatmul.mubr.msk.bf16.gmra.mrb[28].mxu1 %vm738_vm3, %v5379_v25  ;;  %6327 = vmatprep.mubr.msk.bf16.mxu0 %vm738_vm3, %v5745_v58  ;;  %v4138_v25 = vrot.slane %v4136_v56, 6  ;;  %v4163_v58 = vrot.slane %v4161_v2, 5  ;;  %v4094_v37 = vsel %vm6822_vm4, %v4085_v5, %v4093_v21  ;;  %v4189_v22 = vshrl.u32 %v7894_v49, 16 }
 0x11e   : > { %6175 = vmatprep.mubr.msk.bf16.mxu1 %vm738_vm3, %v6686_v55  ;;  %v4192_v42 = vshll.u32 %v7894_v49, 16  ;;  %v4112_v23 = vsel %vm6822_vm4, %v4103_v45, %v7876_v18  ;;  %v4122_v19 = vsel %vm6822_vm4, %v4113_v17, %v4121_v51  ;;  %v4130_v38 = vor.u32 %v4129_v26, %v4126_v11  ;;  %v5735_v55 = vld [vmem:[%s6792_s25 + $0x104] sm:$0x3]  ;;  %v5769_v51 = vld [vmem:[%s6792_s25 + $0x48] sm:$0x8] }
 0x11f   : > { %v4145_v59 = vrot.slane %v4143_v8, 5  ;;  %v7913_v60 = vor.u32 %v4138_v25, %v4135_v61  ;;  %v4148_v63 = vrot.slane %v4146_v4, 6  ;;  %v4158_v6 = vor.u32 %v4157_v14, %v4154_v62  ;;  %v6719_v26 = vld [vmem:[%s6792_s25 + $0x4c] sm:$0xf]  ;;  %v5770_v62 = vld [vmem:[%s6792_s25 + $0x50] sm:$0x7] }
 0x120   : > { %v4173_v16 = vrot.slane %v4171_v43, 5  ;;  %v4167_v40 = vor.u32 %v4166_v1, %v4163_v58  ;;  %v4176_v0 = vrot.slane %v4174_v31, 6  ;;  %v4182_v18 = vrot.slane %v4180_v27, 5  ;;  %v6720_v14 = vld [vmem:[%s6792_s25 + $0x94] sm:$0xf] }
 0x121   : > { %v4185_v56 = vrot.slane %v4183_v9, 6  ;;  %v4194_v24 = vrot.slane %v4192_v42, 6  ;;  %v4199_v54 = vshrl.u32 %v5735_v55, 16  ;;  %v4202_v41 = vshll.u32 %v5735_v55, 16  ;;  %v5771_v43 = vld [vmem:[%s6792_s25 + $0x54] sm:$0x8] }
 0x122   : > { %v5748_v2 = vcombine.low %v4084_v13, %v4094_v37  ;;  %v4131_v5 = vrot.slane %v4130_v38, 4  ;;  %v4149_v21 = vor.u32 %v4148_v63, %v4145_v59  ;;  %v4159_v11 = vrot.slane %v4158_v6, 4  ;;  %v5772_v13 = vld [vmem:[%s6792_s25 + $0x5c] sm:$0x7]  ;;  %v5773_v6 = vld [vmem:[%s6792_s25 + $0x60] sm:$0x8] }
 0x123   : > { %v4177_v48 = vor.u32 %v4176_v0, %v4173_v16  ;;  %v4186_v45 = vor.u32 %v4185_v56, %v4182_v18  ;;  %v4583_v61 = vrot.slane %v6719_v26, 7  ;;  %v4169_v17 = vrot.slane %v4167_v40, 4  ;;  %v5774_v56 = vld [vmem:[%s6792_s25 + $0x68] sm:$0x7]  ;;  %v5776_v26 = vld [vmem:[%s6792_s25 + $0x74] sm:$0x7] }
 0x124   : > { %6328 = vmatmul.mubr.msk.bf16.gmra.mrb[16].mxu0 %vm738_vm3, %v5746_v50  ;;  %v4191_v50 = vrot.slane %v4189_v22, 5  ;;  %v4201_v8 = vrot.slane %v4199_v54, 5  ;;  %v4204_v4 = vrot.slane %v4202_v41, 6  ;;  %v2386_v58 = vshrl.u32 %v6720_v14, 16 }
 0x125   : > { %6176 = vmatmul.mubr.msk.bf16.vlgmr.msra.gmra.mrb[0].mxu1 %vm738_vm3, %v6687_v28  ;;  %6331 = vmatprep.mubr.msk.bf16.mxu0 %vm738_vm3, %v5747_v46  ;;  %v4141_v46 = vrot.slane %v7913_v60, 4  ;;  %v6721_v28 = vld [vmem:[%s6792_s25 + $0x58] sm:$0xf]  ;;  %v2389_v31 = vshll.u32 %v6720_v14, 16  ;;  %v4140_v27 = vsel %vm6822_vm4, %v4131_v5, %v7913_v60  ;;  %v4187_v37 = vrot.slane %v4186_v45, 4 }
 0x126   : > { %6378 = vmatpush3.bf16.msra.mxu1 %v6775_v3  ;;  %6179 = vmatprep.mubr.msk.bf16.mxu1 %vm738_vm3, %v6688_v33  ;;  %v5749_v3 = vcombine.low %v4112_v23, %v4122_v19  ;;  %v4195_v25 = vor.u32 %v4194_v24, %v4191_v50  ;;  %v4590_v1 = vrot.slane %v6721_v28, 7  ;;  %v4168_v33 = vsel %vm6822_vm4, %v4159_v11, %v4167_v40  ;;  %v5775_v50 = vld [vmem:[%s6792_s25 + $0x6c] sm:$0x8]  ;;  %v6691_v24 = vld [vmem:[%s6792_s25 + $0x60] sm:$0xff]  }
 0x127   : > { %v4150_v9 = vsel %vm6822_vm4, %v4141_v46, %v4149_v21  ;;  %v5801_v22 = vrot.slane %v5769_v51, 11  ;;  %v4585_v42 = vrot.slane %v4583_v61, 4  ;;  %v4586_v23 = vrot.slane %v5770_v62, 7  ;;  %v6692_v46 = vld [vmem:[%s6792_s25 + $0x6c] sm:$0xff]  }
 0x128   : > { %v4178_v19 = vsel %vm6822_vm4, %v4169_v17, %v4177_v48  ;;  %v4197_v38 = vrot.slane %v4195_v25, 4  ;;  %v4205_v59 = vor.u32 %v4204_v4, %v4201_v8  ;;  %v5802_v55 = vrot.slane %v5771_v43, 11  ;;  %v7978_v8 = vld [vmem:[%s6792_s25 + $0x80] sm:$0x7]  ;;  %v5487_v62 = vld [vmem:[%s6792_s25 + $0x8c] sm:$0x3] }
 0x129   : > { %v4592_v60 = vrot.slane %v4590_v1, 4  ;;  %v4593_v63 = vrot.slane %v5772_v13, 7  ;;  %v4597_v16 = vrot.slane %v7467_v53, 7  ;;  %v2388_v40 = vrot.slane %v2386_v58, 5  ;;  %v5485_v53 = vld [vmem:[%s6792_s25 + $0x84] sm:$0xe] }
 0x12a   : > { %v2391_v0 = vrot.slane %v2389_v31, 6  ;;  %v5750_v18 = vcombine.low %v4140_v27, %v4150_v9  ;;  %v5751_v54 = vcombine.low %v4168_v33, %v4178_v19  ;;  %v4196_v41 = vsel %vm6822_vm4, %v4187_v37, %v4195_v25  ;;  %v5777_v25 = vld [vmem:[%s6792_s25 + $0x78] sm:$0x8]  ;;  %v6722_v58 = vld [vmem:[%s6792_s25 + $0x88] sm:$0xf] }
 0x12b   : > { %v7955_v5 = vsel %vm7003_vm7, %v4585_v42, %v4586_v23  ;;  %v4206_v21 = vsel %vm6822_vm4, %v4197_v38, %v4205_v59  ;;  %v7963_v11 = vsel %vm7003_vm7, %v5802_v55, %v4590_v1  ;;  %v7968_v48 = vsel %vm7003_vm7, %v4592_v60, %v4593_v63  ;;  %v6693_v33 = vld [vmem:[%s6792_s25 + $0x78] sm:$0xff]   ;;  %v5779_v23 = vld [vmem:[%s6792_s25 + $0x84] sm:$0x8]  ;;  %v5780_v59 = vld [vmem:[%s6792_s25 + $0x8c] sm:$0x7] }
 0x12c   : > { %6332 = vmatmul.mubr.msk.bf16.gmra.mrb[20].mxu0 %vm738_vm3, %v5748_v2  ;;  %v7951_v2 = vsel %vm7003_vm7, %v5801_v22, %v4583_v61  ;;  %v4599_v45 = vrot.slane %v4597_v16, 4  ;;  %v4600_v51 = vrot.slane %v5774_v56, 7  ;;  %v5804_v61 = vrot.slane %v5775_v50, 11  ;;  %v6694_v19 = vld [vmem:[%s6792_s25 + $0x84] sm:$0xff]  }
 0x12d   : > { %6180 = vmatmul.mubr.msk.bf16.gmra.mrb[4].mxu1 %vm738_vm3, %v6689_v32  ;;  %6335 = vmatprep.mubr.msk.bf16.mxu0 %vm738_vm3, %v5749_v3  ;;  %v5803_v32 = vrot.slane %v5773_v6, 11  ;;  %v4604_v3 = vrot.slane %v7540_v39, 7  ;;  %v5818_v17 = vcombine.low %v7951_v2, %v7955_v5  ;;  %v2349_v39 = vshrl.u32 %v5485_v53, 16  ;;  %v5781_v6 = vld [vmem:[%s6792_s25 + $0x90] sm:$0x8] }
 0x12e   : > { %6183 = vmatprep.mubr.msk.bf16.mxu1 %vm738_vm3, %v6690_v44  ;;  %v7971_v44 = vor.u32 %v2391_v0, %v2388_v40  ;;  %v5752_v4 = vcombine.low %v4196_v41, %v4206_v21  ;;  %v2352_v14 = vshll.u32 %v5485_v53, 16  ;;  %v2358_v43 = vshrl.u32 %v6722_v58, 16  ;;  %v5783_v41 = vld [vmem:[%s6792_s25 + $0x9c] sm:$0x8]  ;;  %v5784_v2 = vld [vmem:[%s6792_s25 + $0xa4] sm:$0x7] }
 0x12f   : > { %v2361_v28 = vshll.u32 %v6722_v58, 16  ;;  %v5819_v1 = vcombine.low %v7963_v11, %v7968_v48  ;;  %v7989_v31 = vsel %vm7003_vm7, %v5803_v32, %v4597_v16  ;;  %v4606_v27 = vrot.slane %v4604_v3, 4  ;;  %v5782_v16 = vld [vmem:[%s6792_s25 + $0x98] sm:$0x7]  ;;  %v5785_v32 = vld [vmem:[%s6792_s25 + $0xa8] sm:$0x8] }
 0x130   : > { %v4607_v9 = vrot.slane %v5776_v26, 7  ;;  %v7994_v13 = vsel %vm7003_vm7, %v4599_v45, %v4600_v51  ;;  %v7998_v37 = vsel %vm7003_vm7, %v5804_v61, %v4604_v3  ;;  %v5805_v22 = vrot.slane %v5777_v25, 11  ;;  %v5786_v51 = vld [vmem:[%s6792_s25 + $0xb0] sm:$0x7] }
 0x131   : > { %v4611_v42 = vrot.slane %v7582_v15, 7  ;;  %v4614_v38 = vrot.slane %v7978_v8, 7  ;;  %v4618_v55 = vrot.slane %v7603_v12, 7  ;;  %v2351_v60 = vrot.slane %v2349_v39, 5  ;;  %v5488_v15 = vld [vmem:[%s6792_s25 + $0x90] sm:$0xe] }
 0x132   : > { %v2368_v63 = vshrl.u32 %v5487_v62, 16  ;;  %v2354_v40 = vrot.slane %v2352_v14, 6  ;;  %v2360_v0 = vrot.slane %v2358_v43, 5  ;;  %v2371_v56 = vshll.u32 %v5487_v62, 16 }
 0x133   : > { %v5820_v50 = vcombine.low %v7989_v31, %v7994_v13  ;;  %v4625_v12 = vrot.slane %v7653_v52, 7  ;;  %v8020_v5 = vsel %vm7003_vm7, %v5805_v22, %v4611_v42  ;;  %v4613_v53 = vrot.slane %v4611_v42, 4  ;;  %v6695_v22 = vld [vmem:[%s6792_s25 + $0x90] sm:$0xff]  }
 0x134   : > { %6336 = vmatmul.mubr.msk.bf16.gmra.mrb[24].mxu0 %vm738_vm3, %v5750_v18  ;;  %v2363_v18 = vrot.slane %v2361_v28, 6  ;;  %v4632_v21 = vrot.slane %v7703_v47, 7  ;;  %v4620_v3 = vrot.slane %v4618_v55, 4  ;;  %v2370_v45 = vrot.slane %v2368_v63, 5  ;;  %v5490_v47 = vld [vmem:[%s6792_s25 + $0x98] sm:$0x3] }
 0x135   : > { %6184 = vmatmul.mubr.msk.bf16.gmra.mrb[8].mxu1 %vm738_vm3, %v6691_v24  ;;  %6339 = vmatprep.mubr.msk.bf16.mxu0 %vm738_vm3, %v5751_v54  ;;  %v8013_v24 = vsel %vm7003_vm7, %v4606_v27, %v4607_v9  ;;  %v5806_v54 = vrot.slane %v5779_v23, 11  ;;  %v2377_v26 = vshrl.u32 %v5488_v15, 16  ;;  %v2380_v61 = vshll.u32 %v5488_v15, 16  ;;  %v5491_v15 = vld [vmem:[%s6792_s25 + $0x9c] sm:$0xe] }
 0x136   : > { %6187 = vmatprep.mubr.msk.bf16.mxu1 %vm738_vm3, %v6692_v46  ;;  %v4621_v46 = vrot.slane %v5780_v59, 7  ;;  %v2355_v52 = vor.u32 %v2354_v40, %v2351_v60  ;;  %v8028_v25 = vor.u32 %v2363_v18, %v2360_v0  ;;  %v2373_v8 = vrot.slane %v2371_v56, 6  ;;  %v6696_v59 = vld [vmem:[%s6792_s25 + $0x9c] sm:$0xff]  }
 0x137   : > { %v4639_v39 = vrot.slane %v7725_v20, 7  ;;  %v4627_v62 = vrot.slane %v4625_v12, 4  ;;  %v4628_v14 = vrot.slane %v5782_v16, 7  ;;  %v5808_v58 = vrot.slane %v5783_v41, 11  ;;  %v5787_v16 = vld [vmem:[%s6792_s25 + $0xb4] sm:$0x8] }
 0x138   : > { %v4634_v43 = vrot.slane %v4632_v21, 4  ;;  %v4635_v28 = vrot.slane %v5784_v2, 7  ;;  %v5809_v31 = vrot.slane %v5785_v32, 11  ;;  %v2379_v27 = vrot.slane %v2377_v26, 5  ;;  %v5788_v56 = vld [vmem:[%s6792_s25 + $0xbc] sm:$0x7] }
 0x139   : > { %v2382_v9 = vrot.slane %v2380_v61, 6  ;;  %v2399_v13 = vshll.u32 %v5490_v47, 16  ;;  %v2356_v20 = vrot.slane %v2355_v52, 4  ;;  %v2366_v42 = vrot.slane %v8028_v25, 4 }
 0x13a   : > { %v2374_v23 = vor.u32 %v2373_v8, %v2370_v45  ;;  %v4615_v60 = vsel %vm7003_vm7, %v4613_v53, %v4614_v38  ;;  %v8040_v63 = vsel %vm7003_vm7, %v5806_v54, %v4618_v55  ;;  %v4646_v40 = vrot.slane %v7762_v34, 7  ;;  %v6723_v45 = vld [vmem:[%s6792_s25 + $0xa0] sm:$0xf] }
 0x13b   : > { %v8054_v18 = vsel %vm7003_vm7, %v4627_v62, %v4628_v14  ;;  %v8058_v38 = vsel %vm7003_vm7, %v5808_v58, %v4632_v21  ;;  %v8062_v55 = vsel %vm7003_vm7, %v4634_v43, %v4635_v28  ;;  %v8072_v34 = vsel %vm7003_vm7, %v5809_v31, %v4639_v39  ;;  %v5494_v62 = vld [vmem:[%s6792_s25 + $0xa8] sm:$0xe]  ;;  %v6698_v14 = vld [vmem:[%s6792_s25 + $0xb4] sm:$0xff]  }
 0x13c   : > { %6340 = vmatmul.mubr.msk.bf16.gmra.mrb[28].mxu0 %vm738_vm3, %v5752_v4  ;;  %v5807_v4 = vrot.slane %v5781_v6, 11  ;;  %v8044_v6 = vsel %vm7003_vm7, %v4620_v3, %v4621_v46  ;;  %v2383_v54 = vor.u32 %v2382_v9, %v2379_v27  ;;  %v2401_v41 = vrot.slane %v2399_v13, 6 }
 0x13d   : > { %6188 = vmatmul.mubr.msk.bf16.gmra.mrb[12].mxu1 %vm738_vm3, %v6693_v33  ;;  %6345 = vmatprep.mubr.msk.bf16.mxu0 %vm738_vm3, %v5818_v17  ;;  %v4642_v17 = vrot.slane %v5786_v51, 7  ;;  %v2396_v33 = vshrl.u32 %v5490_v47, 16  ;;  %v2365_v2 = vsel %vm6822_vm4, %v2356_v20, %v8028_v25  ;;  %v2375_v11 = vsel %vm6822_vm4, %v2366_v42, %v2374_v23  ;;  %v6697_v47 = vld [vmem:[%s6792_s25 + $0xa8] sm:$0xff]  }
 0x13e   : > { %6191 = vmatprep.mubr.msk.bf16.mxu1 %vm738_vm3, %v6694_v19  ;;  %v4641_v19 = vrot.slane %v4639_v39, 4  ;;  %v8050_v0 = vsel %vm7003_vm7, %v5807_v4, %v4625_v12  ;;  %v4648_v53 = vrot.slane %v4646_v40, 4  ;;  %v4649_v46 = vrot.slane %v5788_v56, 7  ;;  %v5493_v39 = vld [vmem:[%s6792_s25 + $0xa4] sm:$0x3] }
 0x13f   : > { %v2398_v12 = vrot.slane %v2396_v33, 5  ;;  %v2405_v21 = vshrl.u32 %v5491_v15, 16  ;;  %v2394_v32 = vrot.slane %v7971_v44, 4  ;;  %v5821_v3 = vcombine.low %v7998_v37, %v8013_v24 }
 0x140   : > { %v8083_v48 = vsel %vm7003_vm7, %v4641_v19, %v4642_v17  ;;  %v2414_v51 = vshrl.u32 %v6723_v45, 16  ;;  %v2417_v26 = vshll.u32 %v6723_v45, 16  ;;  %v5822_v61 = vcombine.low %v8020_v5, %v4615_v60  ;;  %v5497_v17 = vld [vmem:[%s6792_s25 + $0xb4] sm:$0xe]  ;;  %v5496_v19 = vld [vmem:[%s6792_s25 + $0xb0] sm:$0x3] }
 0x141   : > { %v5823_v52 = vcombine.low %v8040_v63, %v8044_v6  ;;  %v8093_v25 = vrot.slane %v2383_v54, 4  ;;  %v2402_v8 = vor.u32 %v2401_v41, %v2398_v12  ;;  %v5824_v4 = vcombine.low %v8050_v0, %v8054_v18  ;;  %v5789_v54 = vld [vmem:[%s6792_s25 + $0xc0] sm:$0x8]  ;;  %v6725_v12 = vld [vmem:[%s6792_s25 + $0xb8] sm:$0xf] }
 0x142   : > { %v5825_v37 = vcombine.low %v8058_v38, %v8062_v55  ;;  %v8101_v24 = vcombine.low %v2365_v2, %v2375_v11  ;;  %v5826_v5 = vcombine.low %v8072_v34, %v8083_v48  ;;  %v8113_v43 = vsel %vm7003_vm7, %v4648_v53, %v4649_v46  ;;  %v5791_v63 = vld [vmem:[%s6792_s25 + $0xcc] sm:$0x8]  ;;  %v5792_v6 = vld [vmem:[%s6792_s25 + $0xd4] sm:$0x7]  ;;  %v5500_v18 = vld [vmem:[%s6792_s25 + $0xc0] sm:$0xe] }
 0x143   : > { %v2407_v28 = vrot.slane %v2405_v21, 5  ;;  %v2416_v27 = vrot.slane %v2414_v51, 5  ;;  %v2419_v9 = vrot.slane %v2417_v26, 6  ;;  %v2424_v33 = vshrl.u32 %v5493_v39, 16  ;;  %v5499_v21 = vld [vmem:[%s6792_s25 + $0xbc] sm:$0x3] }
 0x144   : > { %6346 = vmatmul.mubr.msk.bf16.vlgmr.msra.gmra.mrb[0].mxu0 %vm738_vm3, %v5819_v1  ;;  %v5810_v1 = vrot.slane %v5787_v16, 11  ;;  %v2427_v13 = vshll.u32 %v5493_v39, 16  ;;  %v2403_v20 = vsel %vm6822_vm4, %v2394_v32, %v2402_v8  ;;  %v2433_v42 = vshrl.u32 %v5494_v62, 16  ;;  %v6699_v26 = vld [vmem:[%s6792_s25 + $0xc0] sm:$0xff]  }
 0x145   : > { %6192 = vmatmul.mubr.msk.bf16.gmra.mrb[16].mxu1 %vm738_vm3, %v6695_v22  ;;  %6349 = vmatprep.mubr.msk.bf16.mxu0 %vm738_vm3, %v5820_v50  ;;  %v2408_v50 = vshll.u32 %v5491_v15, 16  ;;  %v2393_v22 = vsel %vm6822_vm4, %v8093_v25, %v7971_v44  ;;  %v2436_v23 = vshll.u32 %v5494_v62, 16  ;;  %v2464_v56 = vshll.u32 %v5497_v17, 16 }
 0x146   : > { %6195 = vmatprep.mubr.msk.bf16.mxu1 %vm738_vm3, %v6696_v59  ;;  %v8109_v58 = vsel %vm7003_vm7, %v5810_v1, %v4646_v40  ;;  %v6724_v59 = vld [vmem:[%s6792_s25 + $0xac] sm:$0xf]  ;;  %v2461_v40 = vshrl.u32 %v5497_v17, 16  ;;  %v2470_v41 = vshrl.u32 %v6725_v12, 16  ;;  %v2473_v2 = vshll.u32 %v6725_v12, 16 }
 0x147   : > { %v2410_v31 = vrot.slane %v2408_v50, 6  ;;  %v2442_v60 = vshrl.u32 %v6724_v59, 16  ;;  %v2445_v16 = vshll.u32 %v6724_v59, 16  ;;  %v5827_v44 = vcombine.low %v8109_v58, %v8113_v43  ;;  %v5790_v50 = vld [vmem:[%s6792_s25 + $0xc8] sm:$0x7] }
 0x148   : > { %v8132_v11 = vor.u32 %v2419_v9, %v2416_v27  ;;  %v2426_v1 = vrot.slane %v2424_v33, 5  ;;  %v2429_v53 = vrot.slane %v2427_v13, 6  ;;  %v4653_v46 = vrot.slane %v7777_v57, 7 }
 0x149   : > { %v2411_v15 = vor.u32 %v2410_v31, %v2407_v28  ;;  %v2435_v32 = vrot.slane %v2433_v42, 5  ;;  %v2452_v45 = vshrl.u32 %v5496_v19, 16  ;;  %v2455_v51 = vshll.u32 %v5496_v19, 16 }
 0x14a   : > { %v2447_v25 = vrot.slane %v2445_v16, 6  ;;  %v2463_v8 = vrot.slane %v2461_v40, 5  ;;  %v2466_v39 = vrot.slane %v2464_v56, 6  ;;  %v2472_v62 = vrot.slane %v2470_v41, 5  ;;  %v5793_v56 = vld [vmem:[%s6792_s25 + $0xd8] sm:$0x8] }
 0x14b   : > { %v2480_v28 = vshrl.u32 %v5499_v21, 16  ;;  %v2483_v31 = vshll.u32 %v5499_v21, 16  ;;  %v8139_v17 = vrot.slane %v2411_v15, 4  ;;  %v5811_v57 = vrot.slane %v5789_v54, 11 }
 0x14c   : > { %6350 = vmatmul.mubr.msk.bf16.gmra.mrb[4].mxu0 %vm738_vm3, %v5821_v3  ;;  %v2438_v3 = vrot.slane %v2436_v23, 6  ;;  %v4655_v27 = vrot.slane %v4653_v46, 4  ;;  %v4656_v9 = vrot.slane %v5790_v50, 7  ;;  %v8145_v33 = vcombine.low %v2393_v22, %v2403_v20 }
 0x14d   : > { %6196 = vmatmul.mubr.msk.bf16.gmra.mrb[20].mxu1 %vm738_vm3, %v6697_v47  ;;  %6353 = vmatprep.mubr.msk.bf16.mxu0 %vm738_vm3, %v5822_v61  ;;  %v2444_v61 = vrot.slane %v2442_v60, 5  ;;  %v6700_v47 = vld [vmem:[%s6792_s25 + $0xcc] sm:$0xff]   ;;  %v2454_v42 = vrot.slane %v2452_v45, 5  ;;  %v2457_v23 = vrot.slane %v2455_v51, 6  ;;  %v2422_v19 = vrot.slane %v8132_v11, 4 }
 0x14e   : > { %6199 = vmatprep.mubr.msk.bf16.mxu1 %vm738_vm3, %v6698_v14  ;;  %v2475_v14 = vrot.slane %v2473_v2, 6  ;;  %v2439_v13 = vor.u32 %v2438_v3, %v2435_v32  ;;  %v2467_v22 = vor.u32 %v2466_v39, %v2463_v8  ;;  %v2430_v20 = vor.u32 %v2429_v53, %v2426_v1  ;;  %v5794_v1 = vld [vmem:[%s6792_s25 + $0xe0] sm:$0x7]  ;;  %v6701_v53 = vld [vmem:[%s6792_s25 + $0xd8] sm:$0xff]   ;;  %v5503_v8 = vld [vmem:[%s6792_s25 + $0xcc] sm:$0xe] }
 0x14f   : > { %v8153_v59 = vor.u32 %v2447_v25, %v2444_v61  ;;  %v2482_v16 = vrot.slane %v2480_v28, 5  ;;  %v2485_v0 = vrot.slane %v2483_v31, 6  ;;  %v8166_v40 = vsel %vm7003_vm7, %v5811_v57, %v4653_v46  ;;  %v5502_v31 = vld [vmem:[%s6792_s25 + $0xc8] sm:$0x3] }
 0x150   : > { %v2476_v60 = vor.u32 %v2475_v14, %v2472_v62  ;;  %v4667_v15 = vrot.slane %v7833_v29, 7  ;;  %v2440_v54 = vrot.slane %v2439_v13, 4  ;;  %v2458_v12 = vor.u32 %v2457_v23, %v2454_v42  ;;  %v6726_v62 = vld [vmem:[%s6792_s25 + $0xc4] sm:$0xf]  ;;  %v6727_v13 = vld [vmem:[%s6792_s25 + $0xd0] sm:$0xf] }
 0x151   : > { %v5812_v41 = vrot.slane %v5791_v63, 11  ;;  %v4663_v2 = vrot.slane %v5792_v6, 7  ;;  %v2468_v46 = vrot.slane %v2467_v22, 4  ;;  %v2489_v50 = vshrl.u32 %v5500_v18, 16  ;;  %v5505_v6 = vld [vmem:[%s6792_s25 + $0xd4] sm:$0x3] }
 0x152   : > { %v2431_v32 = vsel %vm6822_vm4, %v2422_v19, %v2430_v20  ;;  %v2478_v3 = vrot.slane %v2476_v60, 4  ;;  %v2486_v45 = vor.u32 %v2485_v0, %v2482_v16  ;;  %v2492_v51 = vshll.u32 %v5500_v18, 16  ;;  %v5795_v18 = vld [vmem:[%s6792_s25 + $0xe4] sm:$0x8] }
 0x153   : > { %v4669_v61 = vrot.slane %v4667_v15, 4  ;;  %v4670_v25 = vrot.slane %v5794_v1, 7  ;;  %v2449_v39 = vsel %vm6822_vm4, %v2440_v54, %v8153_v59  ;;  %v2498_v14 = vshrl.u32 %v6726_v62, 16 }
 0x154   : > { %6354 = vmatmul.mubr.msk.bf16.gmra.mrb[8].mxu0 %vm738_vm3, %v5823_v52  ;;  %v4660_v52 = vrot.slane %v7815_v7, 7  ;;  %v8170_v7 = vsel %vm7003_vm7, %v4655_v27, %v4656_v9  ;;  %v2501_v28 = vshll.u32 %v6726_v62, 16  ;;  %v2487_v34 = vsel %vm6822_vm4, %v2478_v3, %v2486_v45  ;;  %v5798_v3 = vld [vmem:[%s6792_s25 + $0xf8] sm:$0x7]  ;;  %v6728_v45 = vld [vmem:[%s6792_s25 + $0xdc] sm:$0xf] }
 0x155   : > { %6200 = vmatmul.mubr.msk.bf16.gmra.mrb[24].mxu1 %vm738_vm3, %v6699_v26  ;;  %6357 = vmatprep.mubr.msk.bf16.mxu0 %vm738_vm3, %v5824_v4  ;;  %v2421_v4 = vsel %vm6822_vm4, %v8139_v17, %v8132_v11  ;;  %v2450_v11 = vrot.slane %v8153_v59, 4  ;;  %v5828_v29 = vcombine.low %v8166_v40, %v8170_v7  ;;  %v5813_v26 = vrot.slane %v5793_v56, 11  ;;  %v5506_v56 = vld [vmem:[%s6792_s25 + $0xd8] sm:$0xe] }
 0x156   : > { %6203 = vmatprep.mubr.msk.bf16.mxu1 %vm738_vm3, %v6700_v47  ;;  %v4662_v21 = vrot.slane %v4660_v52, 4  ;;  %v8191_v47 = vsel %vm7003_vm7, %v5812_v41, %v4660_v52  ;;  %v2491_v17 = vrot.slane %v2489_v50, 5  ;;  %v2494_v48 = vrot.slane %v2492_v51, 6 }
 0x157   : > { %v2459_v38 = vsel %vm6822_vm4, %v2450_v11, %v2458_v12  ;;  %v2520_v57 = vshll.u32 %v5503_v8, 16  ;;  %v8214_v27 = vsel %vm7003_vm7, %v5813_v26, %v4667_v15  ;;  %v8218_v9 = vsel %vm7003_vm7, %v4669_v61, %v4670_v25  ;;  %v5796_v15 = vld [vmem:[%s6792_s25 + $0xec] sm:$0x7] }
 0x158   : > { %v8203_v55 = vsel %vm7003_vm7, %v4662_v21, %v4663_v2  ;;  %v2526_v42 = vshrl.u32 %v6727_v13, 16  ;;  %v2529_v23 = vshll.u32 %v6727_v13, 16  ;;  %v2503_v19 = vrot.slane %v2501_v28, 6 }
 0x159   : > { %v2508_v59 = vshrl.u32 %v5502_v31, 16  ;;  %v2511_v63 = vshll.u32 %v5502_v31, 16  ;;  %v5520_v52 = vcombine.low %v2421_v4, %v2431_v32  ;;  %v5521_v22 = vcombine.low %v2449_v39, %v2459_v38 }
 0x15a   : > { %v5829_v20 = vcombine.low %v8191_v47, %v8203_v55  ;;  %v5830_v16 = vcombine.low %v8214_v27, %v8218_v9  ;;  %v2495_v0 = vor.u32 %v2494_v48, %v2491_v17  ;;  %v2522_v7 = vrot.slane %v2520_v57, 6 }
 0x15b   : > { %v2528_v54 = vrot.slane %v2526_v42, 5  ;;  %v2531_v12 = vrot.slane %v2529_v23, 6  ;;  %v2536_v41 = vshrl.u32 %v5505_v6, 16  ;;  %v2539_v2 = vshll.u32 %v5505_v6, 16 }
 0x15c   : > { %6358 = vmatmul.mubr.msk.bf16.gmra.mrb[12].mxu0 %vm738_vm3, %v5825_v37  ;;  %v2477_v37 = vsel %vm6822_vm4, %v2468_v46, %v2476_v60  ;;  %v2510_v1 = vrot.slane %v2508_v59, 5  ;;  %v4674_v11 = vrot.slane %v7858_v30, 7  ;;  %v5814_v21 = vrot.slane %v5795_v18, 11  ;;  %v5797_v46 = vld [vmem:[%s6792_s25 + $0xf0] sm:$0x8] }
 0x15d   : > { %6204 = vmatmul.mubr.msk.bf16.gmra.mrb[28].mxu1 %vm738_vm3, %v6701_v53  ;;  %6361 = vmatprep.mubr.msk.bf16.mxu0 %vm738_vm3, %v5826_v5  ;;  %v2517_v5 = vshrl.u32 %v5503_v8, 16  ;;  %v5522_v60 = vcombine.low %v2477_v37, %v2487_v34  ;;  %v2513_v53 = vrot.slane %v2511_v63, 6  ;;  %v4681_v50 = vrot.slane %v7870_v36, 7 }
 0x15e   : > { %6225 = vmatprep.mubr.msk.bf16.mxu1 %vm738_vm3, %v8101_v24  ;;  %v2500_v24 = vrot.slane %v2498_v14, 5  ;;  %v2545_v58 = vshrl.u32 %v5506_v56, 16  ;;  %v2548_v43 = vshll.u32 %v5506_v56, 16  ;;  %v4677_v32 = vrot.slane %v5796_v15, 7 }
 0x15f   : > { %v2519_v40 = vrot.slane %v2517_v5, 5  ;;  %v2554_v51 = vshrl.u32 %v6728_v45, 16  ;;  %v2557_v30 = vshll.u32 %v6728_v45, 16  ;;  %v2532_v61 = vor.u32 %v2531_v12, %v2528_v54 }
 0x160   : > { %v2504_v4 = vor.u32 %v2503_v19, %v2500_v24  ;;  %v2541_v25 = vrot.slane %v2539_v2, 6  ;;  %v2514_v39 = vor.u32 %v2513_v53, %v2510_v1  ;;  %v4676_v47 = vrot.slane %v4674_v11, 4 }
 0x161   : > { %v2523_v26 = vor.u32 %v2522_v7, %v2519_v40  ;;  %v5815_v62 = vrot.slane %v5797_v46, 11  ;;  %v4683_v36 = vrot.slane %v4681_v50, 4  ;;  %v4684_v14 = vrot.slane %v5798_v3, 7 }
 0x162   : > { %v2506_v8 = vrot.slane %v2504_v4, 4  ;;  %v2547_v28 = vrot.slane %v2545_v58, 5  ;;  %v2550_v38 = vrot.slane %v2548_v43, 6  ;;  %v2556_v55 = vrot.slane %v2554_v51, 5 }
 0x163   : > { %v2559_v37 = vrot.slane %v2557_v30, 6  ;;  %v2524_v34 = vrot.slane %v2523_v26, 4  ;;  %v2534_v48 = vrot.slane %v2532_v61, 4  ;;  %v4675_v27 = vsel %vm7003_vm7, %v5814_v21, %v4674_v11 }
 0x164   : > { %6362 = vmatmul.mubr.msk.bf16.gmra.mrb[16].mxu0 %vm738_vm3, %v5827_v44  ;;  %v2496_v44 = vrot.slane %v2495_v0, 4  ;;  %v4678_v9 = vsel %vm7003_vm7, %v4676_v47, %v4677_v32  ;;  %v2515_v13 = vsel %vm6822_vm4, %v2506_v8, %v2514_v39  ;;  %v4682_v42 = vsel %vm7003_vm7, %v5815_v62, %v4681_v50 }
 0x165   : > { %6226 = vmatmul.mubr.msk.bf16.vlgmr.msra.gmra.mrb[16].mxu1 %vm738_vm3, %v8145_v33  ;;  %6365 = vmatprep.mubr.msk.bf16.mxu0 %vm738_vm3, %v5828_v29  ;;  %v2538_v33 = vrot.slane %v2536_v41, 5  ;;  %v5508_v29 = vld [vmem:[%s6792_s25 + $0xe0] sm:$0x3]  ;;  %v4685_v23 = vsel %vm7003_vm7, %v4683_v36, %v4684_v14  ;;  %v4688_v24 = vrot.slane %v7894_v49, 7  ;;  %v2551_v19 = vor.u32 %v2550_v38, %v2547_v28 }
 0x166   : > { %6229 = vmatprep.mubr.msk.bf16.mxu1 %vm738_vm3, %v5520_v52  ;;  %v2564_v31 = vshrl.u32 %v5508_v29, 16  ;;  %v2567_v17 = vshll.u32 %v5508_v29, 16  ;;  %v2505_v57 = vsel %vm6822_vm4, %v2496_v44, %v2504_v4  ;;  %v2560_v59 = vor.u32 %v2559_v37, %v2556_v55  ;;  %v5799_v52 = vld [vmem:[%s6792_s25 + $0xfc] sm:$0x8]  ;;  %v8295_v29 = vld [vmem:[%s8410_s2] ss:$0 sm:$0xff] }
 0x167   : > { %v2542_v5 = vor.u32 %v2541_v25, %v2538_v33  ;;  %v5523_v0 = vcombine.low %v2505_v57, %v2515_v13  ;;  %v5831_v18 = vcombine.low %v4675_v27, %v4678_v9  ;;  %v5832_v40 = vcombine.low %v4682_v42, %v4685_v23 }
 0x168   : > { %v2566_v63 = vrot.slane %v2564_v31, 5  ;;  %v2569_v6 = vrot.slane %v2567_v17, 6  ;;  %v5816_v7 = vrot.slane %v5799_v52, 11  ;;  %v4690_v56 = vrot.slane %v4688_v24, 4 }
 0x169   : > { %v2562_v54 = vrot.slane %v2560_v59, 4 }
 0x16a   : > { %v2570_v12 = vor.u32 %v2569_v6, %v2566_v63  ;;  %v4689_v41 = vsel %vm7003_vm7, %v5816_v7, %v4688_v24 }
 0x16c   : > { %6366 = vmatmul.mubr.msk.bf16.gmra.mrb[20].mxu0 %vm738_vm3, %v5829_v20  ;;  %v2533_v20 = vsel %vm6822_vm4, %v2524_v34, %v2532_v61  ;;  %v2571_v1 = vsel %vm6822_vm4, %v2562_v54, %v2570_v12 }
 0x16d   : > { %6230 = vmatmul.mubr.msk.bf16.gmra.mrb[20].mxu1 %vm738_vm3, %v5521_v22  ;;  %6369 = vmatprep.mubr.msk.bf16.mxu0 %vm738_vm3, %v5830_v16  ;;  %v5800_v22 = vld [vmem:[%s6792_s25 + $0x104] sm:$0x7]  ;;  %v2543_v16 = vsel %vm6822_vm4, %v2534_v48, %v2542_v5 }
 0x16e   : > { %6233 = vmatprep.mubr.msk.bf16.mxu1 %vm738_vm3, %v5522_v60  ;;  %v4691_v49 = vrot.slane %v5800_v22, 7  ;;  %v5524_v15 = vcombine.low %v2533_v20, %v2543_v16  ;;  %v2552_v60 = vrot.slane %v2551_v19, 4 }
 0x170   : > { %v4692_v2 = vsel %vm7003_vm7, %v4690_v56, %v4691_v49  ;;  %v2561_v4 = vsel %vm6822_vm4, %v2552_v60, %v2560_v59 }
 0x171   : > { %v5833_v53 = vcombine.low %v4689_v41, %v4692_v2  ;;  %v5525_v11 = vcombine.low %v2561_v4, %v2571_v1 }
 0x174   : > { %6370 = vmatmul.mubr.msk.bf16.gmra.mrb[24].mxu0 %vm738_vm3, %v5831_v18 }
 0x175   : > { %6234 = vmatmul.mubr.msk.bf16.gmra.mrb[24].mxu1 %vm738_vm3, %v5523_v0  ;;  %6373 = vmatprep.mubr.msk.bf16.mxu0 %vm738_vm3, %v5832_v40 }
 0x176   : > { %6237 = vmatprep.mubr.msk.bf16.mxu1 %vm738_vm3, %v5524_v15 }
 0x17c   : > { %6374 = vmatmul.mubr.msk.bf16.gmra.mrb[28].mxu0 %vm738_vm3, %v5833_v53 }
 0x17d   : > { %6238 = vmatmul.mubr.msk.bf16.gmra.mrb[28].mxu1 %vm738_vm3, %v5525_v11 }
 0x1f8   : > { %v6177_v21 = vpop.f32.mrb[0].mxu1 }
 0x1f9   : > { %v1917_v46 = vpop.f32.mrb[1].mxu1 }
 0x1fa   : > { %v6178_v50 = vpop.f32.mrb[2].mxu1 }
 0x1fb   : > { %v1920_v58 = vpop.f32.mrb[3].mxu1 }
 0x200   : > { %v6181_v10 = vpop.f32.mrb[4].mxu1 }
 0x201   : > { %v1933_v43 = vpop.f32.mrb[5].mxu1 }
 0x202   : > { %v6182_v44 = vpop.f32.mrb[6].mxu1 }
 0x203   : > { %v1936_v32 = vpop.f32.mrb[7].mxu1 }
 0x208   : > { %v6185_v3 = vpop.f32.mrb[8].mxu1 }
 0x209   : > { %v1949_v45 = vpop.f32.mrb[9].mxu1 }
 0x20a   : > { %v8280_v51 = vpop.f32.mrb[10].mxu1 }
 0x20b   : > { %v8282_v35 = vpop.f32.mrb[11].mxu1 }
 0x210   : > { %v8284_v30 = vpop.f32.mrb[12].mxu1 }
 0x211   : > { %v8286_v26 = vpop.f32.mrb[13].mxu1 }
 0x212   : > { %v8288_v61 = vpop.f32.mrb[14].mxu1 }
 0x213   : > { %v8290_v33 = vpop.f32.mrb[15].mxu1 }
 0x217   : > { %v6347_v25 = vpop.f32.mrb[0].mxu0 }
 0x218   : > { %v6379_v8 = vadd.f32 %v6347_v25, %v6177_v21  ;;  %v4828_v39 = vpop.f32.mrb[1].mxu0 }
 0x219   : > { %v6380_v47 = vadd.f32 %v4828_v39, %v1917_v46  ;;  %v6348_v62 = vpop.f32.mrb[2].mxu0 }
 0x21a   : > { %v4996_v36 = vadd.f32 %v6379_v8, %v8295_v29  ;;  %v6381_v14 = vadd.f32 %v6348_v62, %v6178_v50  ;;  %v4831_v28 = vpop.f32.mrb[3].mxu0 }
 0x21b   : > { %v4994_v38 = vadd.f32 %v6380_v47, %v8295_v29  ;;  %v6382_v55 = vadd.f32 %v4831_v28, %v1920_v58 }
 0x21c   : > { %v5028_v37 = vmax.f32 %v4996_v36, 0.0  ;;  %v4997_v31 = vadd.f32 %v6381_v14, %v8295_v29 }
 0x21d   : > { %v5026_v17 = vmax.f32 %v4994_v38, 0.0  ;;  %v4995_v34 = vadd.f32 %v6382_v55, %v8295_v29 }
 0x21e   : > { %v5888_v48 = vpack.c.bf16 %v5028_v37, %v5028_v37  ;;  %v5029_v5 = vmax.f32 %v4997_v31, 0.0 }
 0x21f   : > { %v5886_v57 = vpack.c.bf16 %v5026_v17, %v5026_v17  ;;  %v5027_v27 = vmax.f32 %v4995_v34, 0.0  ;;  %v6351_v9 = vpop.f32.mrb[4].mxu0 }
 0x220   : > { %5189 = vst.msk [vmem:[%s8304_s18 + $0x8] sm:$0xf] %vm5186_vm8, %v5888_v48  ;;  %v5889_v13 = vpack.c.bf16 %v5029_v5, %v5029_v5  ;;  %v6383_v42 = vadd.f32 %v6351_v9, %v6181_v10  ;;  %v4844_v23 = vpop.f32.mrb[5].mxu0 }
 0x221   : > { %5187 = vst.msk [vmem:[%s8304_s18] sm:$0xf] %vm5186_vm8, %v5886_v57  ;;  %v5887_v24 = vpack.c.bf16 %v5027_v27, %v5027_v27  ;;  %v6384_v19 = vadd.f32 %v4844_v23, %v1933_v43  ;;  %v6352_v59 = vpop.f32.mrb[6].mxu0 }
 0x222   : > { %5190 = vst.msk [vmem:[%s8304_s18 + $0xc] sm:$0xf] %vm5186_vm8, %v5889_v13  ;;  %v5000_v63 = vadd.f32 %v6383_v42, %v8295_v29  ;;  %v6385_v6 = vadd.f32 %v6352_v59, %v6182_v44  ;;  %v4847_v52 = vpop.f32.mrb[7].mxu0 }
 0x223   : > { %5188 = vst.msk [vmem:[%s8304_s18 + $0x4] sm:$0xf] %vm5186_vm8, %v5887_v24  ;;  %v4998_v22 = vadd.f32 %v6384_v19, %v8295_v29  ;;  %v6386_v20 = vadd.f32 %v4847_v52, %v1936_v32 }
 0x224   : > { %v5032_v16 = vmax.f32 %v5000_v63, 0.0  ;;  %v5001_v0 = vadd.f32 %v6385_v6, %v8295_v29 }
 0x225   : > { %v5030_v18 = vmax.f32 %v4998_v22, 0.0  ;;  %v4999_v40 = vadd.f32 %v6386_v20, %v8295_v29 }
 0x226   : > { %v5892_v7 = vpack.c.bf16 %v5032_v16, %v5032_v16  ;;  %v5033_v56 = vmax.f32 %v5001_v0, 0.0 }
 0x227   : > { %v5890_v49 = vpack.c.bf16 %v5030_v18, %v5030_v18  ;;  %v5031_v15 = vmax.f32 %v4999_v40, 0.0  ;;  %v6355_v60 = vpop.f32.mrb[8].mxu0 }
 0x228   : > { %5193 = vst.msk [vmem:[%s8304_s18 + $0x18] sm:$0xf] %vm5186_vm8, %v5892_v7  ;;  %v5893_v54 = vpack.c.bf16 %v5033_v56, %v5033_v56  ;;  %v6387_v12 = vadd.f32 %v6355_v60, %v6185_v3  ;;  %v4860_v41 = vpop.f32.mrb[9].mxu0 }
 0x229   : > { %5191 = vst.msk [vmem:[%s8304_s18 + $0x10] sm:$0xf] %vm5186_vm8, %v5890_v49  ;;  %v5891_v2 = vpack.c.bf16 %v5031_v15, %v5031_v15  ;;  %v6388_v4 = vadd.f32 %v4860_v41, %v1949_v45  ;;  %v6356_v1 = vpop.f32.mrb[10].mxu0 }
 0x22a   : > { %5194 = vst.msk [vmem:[%s8304_s18 + $0x1c] sm:$0xf] %vm5186_vm8, %v5893_v54  ;;  %v5004_v53 = vadd.f32 %v6387_v12, %v8295_v29  ;;  %v6389_v11 = vadd.f32 %v6356_v1, %v8280_v51  ;;  %v4863_v21 = vpop.f32.mrb[11].mxu0 }
 0x22b   : > { %5192 = vst.msk [vmem:[%s8304_s18 + $0x14] sm:$0xf] %vm5186_vm8, %v5891_v2  ;;  %v5002_v46 = vadd.f32 %v6388_v4, %v8295_v29  ;;  %v6390_v50 = vadd.f32 %v4863_v21, %v8282_v35 }
 0x22c   : > { %v5036_v58 = vmax.f32 %v5004_v53, 0.0  ;;  %v5005_v10 = vadd.f32 %v6389_v11, %v8295_v29 }
 0x22d   : > { %v5034_v43 = vmax.f32 %v5002_v46, 0.0  ;;  %v5003_v44 = vadd.f32 %v6390_v50, %v8295_v29 }
 0x22e   : > { %v5896_v32 = vpack.c.bf16 %v5036_v58, %v5036_v58  ;;  %v5037_v3 = vmax.f32 %v5005_v10, 0.0 }
 0x22f   : > { %v5894_v45 = vpack.c.bf16 %v5034_v43, %v5034_v43  ;;  %v5035_v51 = vmax.f32 %v5003_v44, 0.0  ;;  %v6359_v25 = vpop.f32.mrb[12].mxu0 }
 0x230   : > { %5197 = vst.msk [vmem:[%s8304_s18 + $0x28] sm:$0xf] %vm5186_vm8, %v5896_v32  ;;  %v5897_v8 = vpack.c.bf16 %v5037_v3, %v5037_v3  ;;  %v6391_v39 = vadd.f32 %v6359_v25, %v8284_v30  ;;  %v4876_v47 = vpop.f32.mrb[13].mxu0 }
 0x231   : > { %5195 = vst.msk [vmem:[%s8304_s18 + $0x20] sm:$0xf] %vm5186_vm8, %v5894_v45  ;;  %v5895_v35 = vpack.c.bf16 %v5035_v51, %v5035_v51  ;;  %v6392_v62 = vadd.f32 %v4876_v47, %v8286_v26  ;;  %v6360_v36 = vpop.f32.mrb[14].mxu0 }
 0x232   : > { %5198 = vst.msk [vmem:[%s8304_s18 + $0x2c] sm:$0xf] %vm5186_vm8, %v5897_v8  ;;  %v5008_v14 = vadd.f32 %v6391_v39, %v8295_v29  ;;  %v6393_v28 = vadd.f32 %v6360_v36, %v8288_v61  ;;  %v4879_v38 = vpop.f32.mrb[15].mxu0 }
 0x233   : > { %5196 = vst.msk [vmem:[%s8304_s18 + $0x24] sm:$0xf] %vm5186_vm8, %v5895_v35  ;;  %v5006_v30 = vadd.f32 %v6392_v62, %v8295_v29  ;;  %v6394_v55 = vadd.f32 %v4879_v38, %v8290_v33 }
 0x234   : > { %v5040_v37 = vmax.f32 %v5008_v14, 0.0  ;;  %v5009_v31 = vadd.f32 %v6393_v28, %v8295_v29 }
 0x235   : > { %v5038_v26 = vmax.f32 %v5006_v30, 0.0  ;;  %v5007_v17 = vadd.f32 %v6394_v55, %v8295_v29 }
 0x236   : > { %v5900_v34 = vpack.c.bf16 %v5040_v37, %v5040_v37  ;;  %v5041_v48 = vmax.f32 %v5009_v31, 0.0 }
 0x237   : > { %v5898_v5 = vpack.c.bf16 %v5038_v26, %v5038_v26  ;;  %v5039_v61 = vmax.f32 %v5007_v17, 0.0  ;;  %v6363_v57 = vpop.f32.mrb[16].mxu0 }
 0x238   : > { %5201 = vst.msk [vmem:[%s8304_s18 + $0x38] sm:$0xf] %vm5186_vm8, %v5900_v34  ;;  %v5901_v27 = vpack.c.bf16 %v5041_v48, %v5041_v48  ;;  %v6227_v9 = vpop.f32.mrb[16].mxu1  ;;  %v4892_v13 = vpop.f32.mrb[17].mxu0 }
 0x239   : > { %5199 = vst.msk [vmem:[%s8304_s18 + $0x30] sm:$0xf] %vm5186_vm8, %v5898_v5  ;;  %v5899_v33 = vpack.c.bf16 %v5039_v61, %v5039_v61  ;;  %v6395_v42 = vadd.f32 %v6363_v57, %v6227_v9  ;;  %v2771_v23 = vpop.f32.mrb[17].mxu1  ;;  %v6364_v24 = vpop.f32.mrb[18].mxu0 }
 0x23a   : > { %5202 = vst.msk [vmem:[%s8304_s18 + $0x3c] sm:$0xf] %vm5186_vm8, %v5901_v27  ;;  %v6396_v19 = vadd.f32 %v4892_v13, %v2771_v23  ;;  %v6228_v59 = vpop.f32.mrb[18].mxu1  ;;  %v4895_v63 = vpop.f32.mrb[19].mxu0 }
 0x23b   : > { %5200 = vst.msk [vmem:[%s8304_s18 + $0x34] sm:$0xf] %vm5186_vm8, %v5899_v33  ;;  %v5012_v6 = vadd.f32 %v6395_v42, %v8295_v29  ;;  %v6397_v52 = vadd.f32 %v6364_v24, %v6228_v59  ;;  %v2774_v22 = vpop.f32.mrb[19].mxu1 }
 0x23c   : > { %v5010_v20 = vadd.f32 %v6396_v19, %v8295_v29  ;;  %v6398_v16 = vadd.f32 %v4895_v63, %v2774_v22 }
 0x23d   : > { %v5044_v0 = vmax.f32 %v5012_v6, 0.0  ;;  %v5013_v18 = vadd.f32 %v6397_v52, %v8295_v29 }
 0x23e   : > { %v5042_v40 = vmax.f32 %v5010_v20, 0.0  ;;  %v5011_v7 = vadd.f32 %v6398_v16, %v8295_v29 }
 0x23f   : > { %v5904_v56 = vpack.c.bf16 %v5044_v0, %v5044_v0  ;;  %v5045_v49 = vmax.f32 %v5013_v18, 0.0  ;;  %v6367_v15 = vpop.f32.mrb[20].mxu0 }
 0x240   : > { %v5902_v60 = vpack.c.bf16 %v5042_v40, %v5042_v40  ;;  %v5043_v54 = vmax.f32 %v5011_v7, 0.0  ;;  %v6231_v12 = vpop.f32.mrb[20].mxu1  ;;  %v4908_v41 = vpop.f32.mrb[21].mxu0 }
 0x241   : > { %5205 = vst.msk [vmem:[%s8304_s18 + $0x48] sm:$0xf] %vm5186_vm8, %v5904_v56  ;;  %v5905_v2 = vpack.c.bf16 %v5045_v49, %v5045_v49  ;;  %v6399_v4 = vadd.f32 %v6367_v15, %v6231_v12  ;;  %v2787_v1 = vpop.f32.mrb[21].mxu1  ;;  %v6368_v53 = vpop.f32.mrb[22].mxu0 }
 0x242   : > { %5203 = vst.msk [vmem:[%s8304_s18 + $0x40] sm:$0xf] %vm5186_vm8, %v5902_v60  ;;  %v5903_v11 = vpack.c.bf16 %v5043_v54, %v5043_v54  ;;  %v6400_v21 = vadd.f32 %v4908_v41, %v2787_v1  ;;  %v6232_v46 = vpop.f32.mrb[22].mxu1  ;;  %v4911_v50 = vpop.f32.mrb[23].mxu0 }
 0x243   : > { %5206 = vst.msk [vmem:[%s8304_s18 + $0x4c] sm:$0xf] %vm5186_vm8, %v5905_v2  ;;  %v5016_v58 = vadd.f32 %v6399_v4, %v8295_v29  ;;  %v6401_v10 = vadd.f32 %v6368_v53, %v6232_v46  ;;  %v2790_v43 = vpop.f32.mrb[23].mxu1 }
 0x244   : > { %5204 = vst.msk [vmem:[%s8304_s18 + $0x44] sm:$0xf] %vm5186_vm8, %v5903_v11  ;;  %v5014_v44 = vadd.f32 %v6400_v21, %v8295_v29  ;;  %v6402_v32 = vadd.f32 %v4911_v50, %v2790_v43 }
 0x245   : > { %v5048_v3 = vmax.f32 %v5016_v58, 0.0  ;;  %v5017_v45 = vadd.f32 %v6401_v10, %v8295_v29 }
 0x246   : > { %v5046_v51 = vmax.f32 %v5014_v44, 0.0  ;;  %v5015_v25 = vadd.f32 %v6402_v32, %v8295_v29 }
 0x247   : > { %v5908_v8 = vpack.c.bf16 %v5048_v3, %v5048_v3  ;;  %v5049_v39 = vmax.f32 %v5017_v45, 0.0  ;;  %v6371_v47 = vpop.f32.mrb[24].mxu0 }
 0x248   : > { %v5906_v35 = vpack.c.bf16 %v5046_v51, %v5046_v51  ;;  %v5047_v62 = vmax.f32 %v5015_v25, 0.0  ;;  %v6235_v36 = vpop.f32.mrb[24].mxu1  ;;  %v4924_v14 = vpop.f32.mrb[25].mxu0 }
 0x249   : > { %5209 = vst.msk [vmem:[%s8304_s18 + $0x58] sm:$0xf] %vm5186_vm8, %v5908_v8  ;;  %v5909_v28 = vpack.c.bf16 %v5049_v39, %v5049_v39  ;;  %v6403_v38 = vadd.f32 %v6371_v47, %v6235_v36  ;;  %v2803_v30 = vpop.f32.mrb[25].mxu1  ;;  %v6372_v55 = vpop.f32.mrb[26].mxu0 }
 0x24a   : > { %5207 = vst.msk [vmem:[%s8304_s18 + $0x50] sm:$0xf] %vm5186_vm8, %v5906_v35  ;;  %v5907_v37 = vpack.c.bf16 %v5047_v62, %v5047_v62  ;;  %v6404_v31 = vadd.f32 %v4924_v14, %v2803_v30  ;;  %v6236_v26 = vpop.f32.mrb[26].mxu1  ;;  %v4927_v17 = vpop.f32.mrb[27].mxu0 }
 0x24b   : > { %5210 = vst.msk [vmem:[%s8304_s18 + $0x5c] sm:$0xf] %vm5186_vm8, %v5909_v28  ;;  %v5020_v34 = vadd.f32 %v6403_v38, %v8295_v29  ;;  %v6405_v48 = vadd.f32 %v6372_v55, %v6236_v26  ;;  %v2806_v5 = vpop.f32.mrb[27].mxu1 }
 0x24c   : > { %5208 = vst.msk [vmem:[%s8304_s18 + $0x54] sm:$0xf] %vm5186_vm8, %v5907_v37  ;;  %v5018_v61 = vadd.f32 %v6404_v31, %v8295_v29  ;;  %v6406_v57 = vadd.f32 %v4927_v17, %v2806_v5 }
 0x24d   : > { %v5052_v27 = vmax.f32 %v5020_v34, 0.0  ;;  %v5021_v9 = vadd.f32 %v6405_v48, %v8295_v29 }
 0x24e   : > { %v5050_v13 = vmax.f32 %v5018_v61, 0.0  ;;  %v5019_v33 = vadd.f32 %v6406_v57, %v8295_v29 }
 0x24f   : > { %v5912_v42 = vpack.c.bf16 %v5052_v27, %v5052_v27  ;;  %v5053_v23 = vmax.f32 %v5021_v9, 0.0  ;;  %v6375_v24 = vpop.f32.mrb[28].mxu0 }
 0x250   : > { %v5910_v19 = vpack.c.bf16 %v5050_v13, %v5050_v13  ;;  %v5051_v59 = vmax.f32 %v5019_v33, 0.0  ;;  %v6239_v63 = vpop.f32.mrb[28].mxu1  ;;  %v4940_v6 = vpop.f32.mrb[29].mxu0 }
 0x251   : > { %5213 = vst.msk [vmem:[%s8304_s18 + $0x68] sm:$0xf] %vm5186_vm8, %v5912_v42  ;;  %v5913_v52 = vpack.c.bf16 %v5053_v23, %v5053_v23  ;;  %v6407_v22 = vadd.f32 %v6375_v24, %v6239_v63  ;;  %v2819_v20 = vpop.f32.mrb[29].mxu1  ;;  %v6376_v16 = vpop.f32.mrb[30].mxu0 }
 0x252   : > { %5211 = vst.msk [vmem:[%s8304_s18 + $0x60] sm:$0xf] %vm5186_vm8, %v5910_v19  ;;  %v5911_v0 = vpack.c.bf16 %v5051_v59, %v5051_v59  ;;  %v6408_v18 = vadd.f32 %v4940_v6, %v2819_v20  ;;  %v6240_v40 = vpop.f32.mrb[30].mxu1  ;;  %v4943_v7 = vpop.f32.mrb[31].mxu0 }
 0x253   : > { %5214 = vst.msk [vmem:[%s8304_s18 + $0x6c] sm:$0xf] %vm5186_vm8, %v5913_v52  ;;  %v5024_v56 = vadd.f32 %v6407_v22, %v8295_v29  ;;  %v6409_v49 = vadd.f32 %v6376_v16, %v6240_v40  ;;  %v2822_v15 = vpop.f32.mrb[31].mxu1 }
 0x254   : > { %5212 = vst.msk [vmem:[%s8304_s18 + $0x64] sm:$0xf] %vm5186_vm8, %v5911_v0  ;;  %v5022_v60 = vadd.f32 %v6408_v18, %v8295_v29  ;;  %v6410_v54 = vadd.f32 %v4943_v7, %v2822_v15 }
 0x255   : > { %v5056_v12 = vmax.f32 %v5024_v56, 0.0  ;;  %v5025_v41 = vadd.f32 %v6409_v49, %v8295_v29 }
 0x256   : > { %v5054_v2 = vmax.f32 %v5022_v60, 0.0  ;;  %v5023_v4 = vadd.f32 %v6410_v54, %v8295_v29 }
 0x257   : > { %v5916_v1 = vpack.c.bf16 %v5056_v12, %v5056_v12  ;;  %v5057_v53 = vmax.f32 %v5025_v41, 0.0 }
 0x258   : > { %v5914_v11 = vpack.c.bf16 %v5054_v2, %v5054_v2  ;;  %v5055_v21 = vmax.f32 %v5023_v4, 0.0 }
 0x259   : > { %5217 = vst.msk [vmem:[%s8304_s18 + $0x78] sm:$0xf] %vm5186_vm8, %v5916_v1  ;;  %v5917_v46 = vpack.c.bf16 %v5057_v53, %v5057_v53 }
 0x25a   : > { %5215 = vst.msk [vmem:[%s8304_s18 + $0x70] sm:$0xf] %vm5186_vm8, %v5914_v11  ;;  %v5915_v50 = vpack.c.bf16 %v5055_v21, %v5055_v21 }
 0x25b   : > { %5218 = vst.msk [vmem:[%s8304_s18 + $0x7c] sm:$0xf] %vm5186_vm8, %v5917_v46 }
 0x25c   : > { %5216 = vst.msk [vmem:[%s8304_s18 + $0x74] sm:$0xf] %vm5186_vm8, %v5915_v50 }
 0x25d PF: > { %s13_s12 = sadd.s32 1, %s6735_s12  }
 0x25e   : > { %p10_p4 = scmp.ge.s32.totalorder %s13_s12, 4  }
 0x260   :  { %12 = sbr.rel (!%p10_p4) target bundleno = 1 (0x1), region = 72 }

// kernel: aspp_forward.7
= control target key start
LH: loop header
LB: loop body
LE: loop exit
PB: predicated region body
PF: predicated region fallthrough
CT: control target
= control target key end

     0   :  { %s6499_s12 = smov 0   ;;  %s8338_s0 = inlined_call_operand.vmem [shape: bf16[2,18,18,4], index: 0, kind: input, shape index: {}]   ;;  %s8339_s1 = inlined_call_operand.vmem [shape: bf16[9,4,8], index: 1, kind: input, shape index: {}]   ;;  %s8340_s2 = inlined_call_operand.vmem [shape: f32[1,8], index: 2, kind: input, shape index: {}]   ;;  %s8341_s3 = inlined_call_operand.vmem [shape: bf16[2,256,8], index: 3, kind: output, shape index: {}]  }
   0x1 LB: > { %s5018_s13 = sadd.s32 4294967295, %s6477_s12   ;;  %p5022_p0 = scmp.ge.s32.totalorder %s6477_s12, 1  ;;  %s6477_s12 = sphi %s6499_s12, %s13_s12  }
   0x2   : > { %p137_p1 = scmp.lt.s32.totalorder %s6477_s12, 3 }
   0x4   : > { %p138_p2 = pnand %p5022_p0, %p137_p1 }
   0x6   : > { %141 = sbr.rel (%p138_p2) target bundleno = 589 (0x24d), region = 32 }
   0xd   : > { %v5026_v0 = vld [vmem:[%s8339_s1 + $0x2] sm:$0x3]  ;;  %vm707_vm0 = vcmask 1041408   ;;  %v5253_v1 = vld [vmem:[%s8339_s1 + $0x8] sm:$0x3]  ;;  %p161_p3 = scmp.lt.s32.totalorder %s5018_s13, 1 }
   0xe   : > { %6347 = vmatprep.subr.msk.bf16.mxu1 %vm707_vm0, %v5026_v0  ;;  %6351 = vmatprep.subr.msk.bf16.mxu0 %vm707_vm0, %v5253_v1  ;;  %v709_v2 = vsel %vm707_vm0, %v5026_v0, 0  ;;  %v6517_v3 = vsel %vm707_vm0, %v5253_v1, 0  ;;  %v204_v4 = vld [vmem:[%s8339_s1] sm:$0x3]  ;;  %v5318_v5 = vld [vmem:[%s8339_s1 + $0xa] sm:$0x3] }
   0xf   : > { %8355 = vst [vmem:[#allocation2_spill] sm:$0xff] %v6517_v3  ;;  %5784 = vmatpush3.bf16.msra.mxu1 %v709_v2  ;;  %5920 = vmatpush3.bf16.msra.mxu0 %v6517_v3  ;;  %s8410_s13 = smov (!%p161_p3, %s5018_s13), 1  ;;  %vm221_vm1 = vsmask.f32 3328  ;;  %vm222_vm2 = vsmask.f32 7440 }
  0x10   : > { %6348 = vmatprep.subr.msk.bf16.mxu1 %vm707_vm0, %v204_v4  ;;  %6353 = vmatprep.subr.msk.bf16.mxu0 %vm707_vm0, %v5318_v5  ;;  %s6357_s22 = smul.u32 216, %s8410_s13  ;;  %vm658_vm3 = vcmask 31744   ;;  %v6547_v17 = vsel %vm707_vm0, %v204_v4, 0  ;;  %v6553_v26 = vld [vmem:[%s8339_s1 + $0xc] sm:$0x3]  ;;  %vm6560_vm4 = vmor %vm221_vm1, %vm222_vm2  ;;  %v6566_v37 = vsel %vm707_vm0, %v5318_v5, 0 }
  0x11   : > { %v6570_v41 = vsel %vm707_vm0, %v6553_v26, 0  ;;  %vm1212_vm5 = vcmask 1042432   ;;  %vm1213_vm6 = vcmask 1046532   ;;  %s5597_s17 = sshll.u32 %s8410_s13, 7  ;;  %vm4930_vm8 = vcmask 60416  }
  0x12   : > { %s6534_s25 = scalar_lea.vmem %s8338_s0, %s6357_s22  ;;  %vm6786_vm7 = vmor %vm1212_vm5, %vm1213_vm6  ;;  %s8234_s20 = scalar_lea.vmem %s8341_s3, %s5597_s17 }
  0x13   : > { %v172_v6 = vld [vmem:[%s6534_s25] sm:$0xf]  ;;  %v173_v7 = vld [vmem:[%s6534_s25 + $0x4] sm:$0xf]  ;;  %v205_v8 = vld [vmem:[%s6534_s25 + $0x8] sm:$0x1] }
  0x14   : > { %v225_v9 = vshrl.u32 %v172_v6, 16  ;;  %v228_v10 = vshll.u32 %v172_v6, 16  ;;  %v234_v11 = vshll.u32 %v173_v7, 16  ;;  %v238_v12 = vshrl.u32 %v173_v7, 16  ;;  %v5205_v13 = vld [vmem:[%s6534_s25 + $0xc] sm:$0xf] }
  0x15   : > { %v244_v14 = vshll.u32 %v205_v8, 16  ;;  %v6541_v15 = vld [vmem:[%s6534_s25 + $0x10] sm:$0xf]  ;;  %v6544_v16 = vld [vmem:[%s6534_s25 + $0x14] sm:$0x1]  ;;  %v2029_v23 = vshrl.u32 %v5205_v13, 16 }
  0x16   : > { %v227_v18 = vrot.slane %v225_v9, 4  ;;  %v230_v19 = vrot.slane %v228_v10, 5  ;;  %v236_v20 = vrot.slane %v234_v11, 5  ;;  %v240_v21 = vrot.slane %v238_v12, 4  ;;  %v174_v31 = vld [vmem:[%s6534_s25 + $0xc] sm:$0xf] }
  0x17   : > { %v246_v22 = vrot.slane %v244_v14, 5  ;;  %v2032_v24 = vshll.u32 %v5205_v13, 16  ;;  %v2038_v25 = vshll.u32 %v6541_v15, 16  ;;  %v2042_v29 = vshrl.u32 %v6541_v15, 16  ;;  %v175_v36 = vld [vmem:[%s6534_s25 + $0x10] sm:$0xf] }
  0x18   : > { %v231_v27 = vor.u32 %v230_v19, %v227_v18  ;;  %v241_v28 = vor.u32 %v240_v21, %v236_v20  ;;  %v2048_v30 = vshll.u32 %v6544_v16, 16  ;;  %v2031_v33 = vrot.slane %v2029_v23, 4  ;;  %v206_v44 = vld [vmem:[%s6534_s25 + $0x14] sm:$0x1]  ;;  %v5208_v55 = vld [vmem:[%s6534_s25 + $0x18] sm:$0xf] }
  0x19   : > { %v2034_v34 = vrot.slane %v2032_v24, 5  ;;  %v2040_v35 = vrot.slane %v2038_v25, 5  ;;  %v2044_v40 = vrot.slane %v2042_v29, 4  ;;  %v249_v45 = vshrl.u32 %v174_v31, 16  ;;  %v6579_v60 = vld [vmem:[%s6534_s25 + $0x1c] sm:$0xf] }
  0x1a   : > { %v232_v38 = vrot.slane %v231_v27, 4  ;;  %v242_v39 = vrot.slane %v241_v28, 4  ;;  %v2050_v43 = vrot.slane %v2048_v30, 5  ;;  %v252_v46 = vshll.u32 %v174_v31, 16  ;;  %v6587_v1 = vld [vmem:[%s6534_s25 + $0x20] sm:$0x1] }
  0x1b   : > { %v2035_v42 = vor.u32 %v2034_v34, %v2031_v33  ;;  %v2045_v49 = vor.u32 %v2044_v40, %v2040_v35  ;;  %v258_v50 = vshll.u32 %v175_v36, 16  ;;  %v251_v53 = vrot.slane %v249_v45, 4  ;;  %v176_v18 = vld [vmem:[%s6534_s25 + $0x18] sm:$0xf]  ;;  %v177_v23 = vld [vmem:[%s6534_s25 + $0x1c] sm:$0xf] }
  0x1c   : > { %v237_v47 = vsel %vm6560_vm4, %v232_v38, %v236_v20  ;;  %v247_v48 = vsel %vm6560_vm4, %v242_v39, %v246_v22  ;;  %v254_v54 = vrot.slane %v252_v46, 5  ;;  %v262_v58 = vshrl.u32 %v175_v36, 16  ;;  %v207_v31 = vld [vmem:[%s6534_s25 + $0x20] sm:$0x1]  ;;  %v5211_v40 = vld [vmem:[%s6534_s25 + $0x24] sm:$0xf] }
  0x1d   : > { %v5027_v51 = vcombine.low %v237_v47, %v247_v48  ;;  %v2036_v52 = vrot.slane %v2035_v42, 4  ;;  %v2046_v56 = vrot.slane %v2045_v49, 4  ;;  %v260_v57 = vrot.slane %v258_v50, 5  ;;  %v6610_v46 = vld [vmem:[%s6534_s25 + $0x28] sm:$0xf] }
  0x1e   : > { %v268_v59 = vshll.u32 %v206_v44, 16  ;;  %v2772_v62 = vrot.slane %v6541_v15, 5  ;;  %v2775_v63 = vrot.slane %v6544_v16, 5  ;;  %v255_v0 = vor.u32 %v254_v54, %v251_v53  ;;  %v6619_v54 = vld [vmem:[%s6534_s25 + $0x2c] sm:$0x1] }
  0x1f   : > { %5785 = vmatprep.mubr.msk.bf16.mxu1 %vm658_vm3, %v5027_v51  ;;  %v2041_v61 = vsel %vm6560_vm4, %v2036_v52, %v2040_v35  ;;  %v2051_v2 = vsel %vm6560_vm4, %v2046_v56, %v2050_v43  ;;  %v264_v4 = vrot.slane %v262_v58, 4  ;;  %v2053_v6 = vshrl.u32 %v5208_v55, 16  ;;  %v5107_v51 = vld [vmem:[%s8339_s1 + $0x4] sm:$0x3]  ;;  %v6819_v16 = vld [vmem:[%s6534_s25 + $0x7c] sm:$0xf] }
  0x20   : > { %v270_v5 = vrot.slane %v268_v59, 5  ;;  %v5254_v7 = vcombine.low %v2041_v61, %v2051_v2  ;;  %v256_v8 = vrot.slane %v255_v0, 4  ;;  %v2056_v9 = vshll.u32 %v5208_v55, 16  ;;  %v178_v0 = vld [vmem:[%s6534_s25 + $0x24] sm:$0xf] }
  0x21   : > { %v2062_v10 = vshll.u32 %v6579_v60, 16  ;;  %v265_v11 = vor.u32 %v264_v4, %v260_v57  ;;  %v2055_v12 = vrot.slane %v2053_v6, 4  ;;  %v2066_v13 = vshrl.u32 %v6579_v60, 16 }
  0x22   : > { %v2072_v14 = vshll.u32 %v6587_v1, 16  ;;  %5921 = vmatprep.mubr.msk.bf16.mxu0 %vm658_vm3, %v5254_v7  ;;  %v261_v19 = vsel %vm6560_vm4, %v256_v8, %v260_v57  ;;  %v2058_v20 = vrot.slane %v2056_v9, 5  ;;  %v2779_v22 = vrot.slane %v6579_v60, 5  ;;  %v179_v7 = vld [vmem:[%s6534_s25 + $0x28] sm:$0xf] }
  0x23   : > { %v2064_v21 = vrot.slane %v2062_v10, 5  ;;  %v266_v24 = vrot.slane %v265_v11, 4  ;;  %v2068_v25 = vrot.slane %v2066_v13, 4  ;;  %v2782_v28 = vrot.slane %v6587_v1, 5  ;;  %v208_v13 = vld [vmem:[%s6534_s25 + $0x2c] sm:$0x1] }
  0x24   : > { %v2074_v27 = vrot.slane %v2072_v14, 5  ;;  %v2059_v29 = vor.u32 %v2058_v20, %v2055_v12  ;;  %v6603_v30 = vrot.slane %v2779_v22, 4  ;;  %v273_v33 = vshrl.u32 %v176_v18, 16 }
  0x25   : > { %v276_v34 = vshll.u32 %v176_v18, 16  ;;  %v271_v35 = vsel %vm6560_vm4, %v266_v24, %v270_v5  ;;  %v2069_v36 = vor.u32 %v2068_v25, %v2064_v21  ;;  %v282_v38 = vshll.u32 %v177_v23, 16  ;;  %v5214_v24 = vld [vmem:[%s6534_s25 + $0x30] sm:$0xf] }
  0x26   : > { %v286_v39 = vshrl.u32 %v177_v23, 16  ;;  %v5028_v42 = vcombine.low %v261_v19, %v271_v35  ;;  %v2060_v43 = vrot.slane %v2059_v29, 4  ;;  %v275_v44 = vrot.slane %v273_v33, 4  ;;  %v6639_v33 = vld [vmem:[%s6534_s25 + $0x34] sm:$0xf] }
  0x27   : > { %v278_v45 = vrot.slane %v276_v34, 5  ;;  %v2070_v47 = vrot.slane %v2069_v36, 4  ;;  %v284_v48 = vrot.slane %v282_v38, 5  ;;  %v292_v50 = vshll.u32 %v207_v31, 16 }
  0x28   : > { %v288_v49 = vrot.slane %v286_v39, 4  ;;  %5786 = vmatmul.mubr.msk.bf16.vlgmr.msra.gmra.mrb[0].mxu1 %vm658_vm3, %v5028_v42  ;;  %v2065_v52 = vsel %vm6560_vm4, %v2060_v43, %v2064_v21  ;;  %v2077_v55 = vshrl.u32 %v5211_v40, 16  ;;  %v2080_v56 = vshll.u32 %v5211_v40, 16  ;;  %v6647_v40 = vld [vmem:[%s6534_s25 + $0x38] sm:$0x1] }
  0x29   : > { %v279_v53 = vor.u32 %v278_v45, %v275_v44  ;;  %5818 = vmatpush3.bf16.msra.mxu1 %v6547_v17  ;;  %v2075_v57 = vsel %vm6560_vm4, %v2070_v47, %v2074_v27  ;;  %v294_v59 = vrot.slane %v292_v50, 5  ;;  %v2086_v61 = vshll.u32 %v6610_v46, 16 }
  0x2a   : > { %v289_v58 = vor.u32 %v288_v49, %v284_v48  ;;  %v5255_v2 = vcombine.low %v2065_v52, %v2075_v57  ;;  %v2079_v5 = vrot.slane %v2077_v55, 4  ;;  %v2082_v6 = vrot.slane %v2080_v56, 5  ;;  %6349 = vmatprep.subr.msk.bf16.mxu1 %vm707_vm0, %v5107_v51  ;;  %v180_v52 = vld [vmem:[%s6534_s25 + $0x30] sm:$0xf] }
  0x2b   : > { %v280_v4 = vrot.slane %v279_v53, 4  ;;  %v2088_v9 = vrot.slane %v2086_v61, 5  ;;  %v2090_v17 = vshrl.u32 %v6610_v46, 16  ;;  %v2096_v10 = vshll.u32 %v6619_v54, 16 }
  0x2c   : > { %v290_v8 = vrot.slane %v289_v58, 4  ;;  %5922 = vmatmul.mubr.msk.bf16.vlgmr.msra.gmra.mrb[0].mxu0 %vm658_vm3, %v5255_v2  ;;  %v2083_v12 = vor.u32 %v2082_v6, %v2079_v5  ;;  %v297_v14 = vshrl.u32 %v178_v0, 16  ;;  %v300_v18 = vshll.u32 %v178_v0, 16  ;;  %v181_v58 = vld [vmem:[%s6534_s25 + $0x34] sm:$0xf] }
  0x2d   : > { %v285_v11 = vsel %vm6560_vm4, %v280_v4, %v284_v48  ;;  %5954 = vmatpush3.bf16.msra.mxu0 %v6566_v37  ;;  %v2092_v20 = vrot.slane %v2090_v17, 4  ;;  %v2098_v21 = vrot.slane %v2096_v10, 5  ;;  %v306_v23 = vshll.u32 %v179_v7, 16  ;;  %v209_v4 = vld [vmem:[%s6534_s25 + $0x38] sm:$0x1] }
  0x2e   : > { %v295_v19 = vsel %vm6560_vm4, %v290_v8, %v294_v59  ;;  %v2084_v27 = vrot.slane %v2083_v12, 4  ;;  %v299_v29 = vrot.slane %v297_v14, 4  ;;  %v302_v31 = vrot.slane %v300_v18, 5  ;;  %6354 = vmatprep.subr.msk.bf16.mxu0 %vm707_vm0, %v6553_v26  ;;  %v5217_v12 = vld [vmem:[%s6534_s25 + $0x3c] sm:$0xf] }
  0x2f   : > { %v5029_v25 = vcombine.low %v285_v11, %v295_v19  ;;  %v2093_v34 = vor.u32 %v2092_v20, %v2088_v9  ;;  %v308_v35 = vrot.slane %v306_v23, 5  ;;  %v310_v37 = vshrl.u32 %v179_v7, 16  ;;  %v6664_v20 = vld [vmem:[%s6534_s25 + $0x40] sm:$0xf] }
  0x30   : > { %v316_v36 = vshll.u32 %v208_v13, 16  ;;  %v2089_v38 = vsel %vm6560_vm4, %v2084_v27, %v2088_v9  ;;  %v303_v39 = vor.u32 %v302_v31, %v299_v29  ;;  %v2101_v42 = vshrl.u32 %v5214_v24, 16 }
  0x31   : > { %5789 = vmatprep.mubr.msk.bf16.mxu1 %vm658_vm3, %v5029_v25  ;;  %v2104_v43 = vshll.u32 %v5214_v24, 16  ;;  %v2094_v44 = vrot.slane %v2093_v34, 4  ;;  %v312_v45 = vrot.slane %v310_v37, 4  ;;  %v2110_v26 = vshll.u32 %v6639_v33, 16  ;;  %v6669_v34 = vld [vmem:[%s6534_s25 + $0x44] sm:$0x1] }
  0x32   : > { %v318_v47 = vrot.slane %v316_v36, 5  ;;  %v304_v48 = vrot.slane %v303_v39, 4  ;;  %v2103_v49 = vrot.slane %v2101_v42, 4  ;;  %v2114_v51 = vshrl.u32 %v6639_v33, 16  ;;  %v182_v42 = vld [vmem:[%s6534_s25 + $0x3c] sm:$0xf] }
  0x33   : > { %v2106_v50 = vrot.slane %v2104_v43, 5  ;;  %v2099_v53 = vsel %vm6560_vm4, %v2094_v44, %v2098_v21  ;;  %v313_v55 = vor.u32 %v312_v45, %v308_v35  ;;  %v2112_v56 = vrot.slane %v2110_v26, 5  ;;  %v183_v26 = vld [vmem:[%s6534_s25 + $0x40] sm:$0xf] }
  0x34   : > { %v2120_v57 = vshll.u32 %v6647_v40, 16  ;;  %v5256_v59 = vcombine.low %v2089_v38, %v2099_v53  ;;  %v309_v61 = vsel %vm6560_vm4, %v304_v48, %v308_v35  ;;  %v2116_v2 = vrot.slane %v2114_v51, 4 }
  0x35   : > { %v2107_v0 = vor.u32 %v2106_v50, %v2103_v49  ;;  %v314_v5 = vrot.slane %v313_v55, 4  ;;  %v321_v7 = vshrl.u32 %v180_v52, 16  ;;  %v324_v8 = vshll.u32 %v180_v52, 16 }
  0x36   : > { %v2122_v6 = vrot.slane %v2120_v57, 5  ;;  %5925 = vmatprep.mubr.msk.bf16.mxu0 %vm658_vm3, %v5256_v59  ;;  %v2117_v17 = vor.u32 %v2116_v2, %v2112_v56  ;;  %v330_v10 = vshll.u32 %v181_v58, 16  ;;  %v334_v11 = vshrl.u32 %v181_v58, 16  ;;  %v5220_v2 = vld [vmem:[%s6534_s25 + $0x48] sm:$0xf] }
  0x37   : > { %v2108_v9 = vrot.slane %v2107_v0, 4  ;;  %v319_v13 = vsel %vm6560_vm4, %v314_v5, %v318_v47  ;;  %v323_v14 = vrot.slane %v321_v7, 4  ;;  %v326_v18 = vrot.slane %v324_v8, 5  ;;  %v6687_v8 = vld [vmem:[%s6534_s25 + $0x4c] sm:$0xf] }
  0x38   : > { %v340_v19 = vshll.u32 %v209_v4, 16  ;;  %v5030_v21 = vcombine.low %v309_v61, %v319_v13  ;;  %v2118_v24 = vrot.slane %v2117_v17, 4  ;;  %v332_v25 = vrot.slane %v330_v10, 5  ;;  %v210_v61 = vld [vmem:[%s6534_s25 + $0x44] sm:$0x1] }
  0x39   : > { %v2113_v23 = vsel %vm6560_vm4, %v2108_v9, %v2112_v56  ;;  %v327_v27 = vor.u32 %v326_v18, %v323_v14  ;;  %v336_v29 = vrot.slane %v334_v11, 4  ;;  %v2125_v35 = vshrl.u32 %v5217_v12, 16 }
  0x3a   : > { %v342_v31 = vrot.slane %v340_v19, 5  ;;  %5790 = vmatmul.mubr.msk.bf16.gmra.mrb[4].mxu1 %vm658_vm3, %v5030_v21  ;;  %v2123_v37 = vsel %vm6560_vm4, %v2118_v24, %v2122_v6  ;;  %v2128_v36 = vshll.u32 %v5217_v12, 16  ;;  %v2134_v38 = vshll.u32 %v6664_v20, 16 }
  0x3b   : > { %v2138_v39 = vshrl.u32 %v6664_v20, 16  ;;  %v5257_v43 = vcombine.low %v2113_v23, %v2123_v37  ;;  %v328_v44 = vrot.slane %v327_v27, 4  ;;  %v337_v45 = vor.u32 %v336_v29, %v332_v25  ;;  %v6695_v23 = vld [vmem:[%s6534_s25 + $0x50] sm:$0x1]  ;;  %v6699_v27 = vld [vmem:[%s6534_s25 + $0x48] sm:$0xf] }
  0x3c   : > { %v2127_v47 = vrot.slane %v2125_v35, 4  ;;  %v2130_v48 = vrot.slane %v2128_v36, 5  ;;  %v2136_v49 = vrot.slane %v2134_v38, 5  ;;  %v2144_v51 = vshll.u32 %v6669_v34, 16  ;;  %v6702_v36 = vld [vmem:[%s6534_s25 + $0x4c] sm:$0xf] }
  0x3d   : > { %v2140_v50 = vrot.slane %v2138_v39, 4  ;;  %5926 = vmatmul.mubr.msk.bf16.gmra.mrb[4].mxu0 %vm658_vm3, %v5257_v43  ;;  %v333_v52 = vsel %vm6560_vm4, %v328_v44, %v332_v25  ;;  %v338_v53 = vrot.slane %v337_v45, 4  ;;  %v345_v55 = vshrl.u32 %v182_v42, 16 }
  0x3e   : > { %v348_v56 = vshll.u32 %v182_v42, 16  ;;  %v2131_v57 = vor.u32 %v2130_v48, %v2127_v47  ;;  %v2146_v59 = vrot.slane %v2144_v51, 5  ;;  %v354_v0 = vshll.u32 %v183_v26, 16 }
  0x3f   : > { %v2141_v58 = vor.u32 %v2140_v50, %v2136_v49  ;;  %v343_v4 = vsel %vm6560_vm4, %v338_v53, %v342_v31  ;;  %v347_v5 = vrot.slane %v345_v55, 4  ;;  %v358_v7 = vshrl.u32 %v183_v26, 16  ;;  %v211_v26 = vld [vmem:[%s6534_s25 + $0x50] sm:$0x1]  ;;  %v5223_v53 = vld [vmem:[%s6534_s25 + $0x54] sm:$0xf] }
  0x40   : > { %v350_v6 = vrot.slane %v348_v56, 5  ;;  %v5031_v9 = vcombine.low %v333_v52, %v343_v4  ;;  %v2132_v17 = vrot.slane %v2131_v57, 4  ;;  %v356_v11 = vrot.slane %v354_v0, 5  ;;  %v6718_v4 = vld [vmem:[%s6534_s25 + $0x58] sm:$0xf] }
  0x41   : > { %v2142_v10 = vrot.slane %v2141_v58, 4  ;;  %v360_v13 = vrot.slane %v358_v7, 4  ;;  %v364_v14 = vshll.u32 %v210_v61, 16  ;;  %v2149_v18 = vshrl.u32 %v5220_v2, 16 }
  0x42   : > { %v351_v12 = vor.u32 %v350_v6, %v347_v5  ;;  %5793 = vmatprep.mubr.msk.bf16.mxu1 %vm658_vm3, %v5031_v9  ;;  %v2137_v19 = vsel %vm6560_vm4, %v2132_v17, %v2136_v49  ;;  %v2152_v24 = vshll.u32 %v5220_v2, 16  ;;  %v2158_v25 = vshll.u32 %v6687_v8, 16 }
  0x43   : > { %v2147_v21 = vsel %vm6560_vm4, %v2142_v10, %v2146_v59  ;;  %v361_v35 = vor.u32 %v360_v13, %v356_v11  ;;  %v366_v37 = vrot.slane %v364_v14, 5  ;;  %v2151_v38 = vrot.slane %v2149_v18, 4 }
  0x44   : > { %v5258_v29 = vcombine.low %v2137_v19, %v2147_v21  ;;  %v352_v31 = vrot.slane %v351_v12, 4  ;;  %v2154_v39 = vrot.slane %v2152_v24, 5  ;;  %v2160_v42 = vrot.slane %v2158_v25, 5  ;;  %v6724_v12 = vld [vmem:[%s6534_s25 + $0x5c] sm:$0x1] }
  0x45   : > { %v2162_v43 = vshrl.u32 %v6687_v8, 16  ;;  %v362_v45 = vrot.slane %v361_v35, 4  ;;  %v2168_v47 = vshll.u32 %v6695_v23, 16  ;;  %v369_v48 = vshrl.u32 %v6699_v27, 16  ;;  %v6728_v24 = vld [vmem:[%s6534_s25 + $0x54] sm:$0xf] }
  0x46   : > { %5929 = vmatprep.mubr.msk.bf16.mxu0 %vm658_vm3, %v5258_v29  ;;  %v357_v44 = vsel %vm6560_vm4, %v352_v31, %v356_v11  ;;  %v2155_v49 = vor.u32 %v2154_v39, %v2151_v38  ;;  %v372_v51 = vshll.u32 %v6699_v27, 16  ;;  %v378_v52 = vshll.u32 %v6702_v36, 16 }
  0x47   : > { %v2164_v50 = vrot.slane %v2162_v43, 4  ;;  %v367_v55 = vsel %vm6560_vm4, %v362_v45, %v366_v37  ;;  %v2170_v56 = vrot.slane %v2168_v47, 5  ;;  %v371_v57 = vrot.slane %v369_v48, 4  ;;  %v6734_v37 = vld [vmem:[%s6534_s25 + $0x58] sm:$0xf] }
  0x48   : > { %v382_v58 = vshrl.u32 %v6702_v36, 16  ;;  %v5032_v59 = vcombine.low %v357_v44, %v367_v55  ;;  %v2156_v61 = vrot.slane %v2155_v49, 4  ;;  %v374_v2 = vrot.slane %v372_v51, 5 }
  0x49   : > { %v2165_v0 = vor.u32 %v2164_v50, %v2160_v42  ;;  %v380_v5 = vrot.slane %v378_v52, 5  ;;  %v388_v7 = vshll.u32 %v211_v26, 16  ;;  %v2173_v9 = vshrl.u32 %v5223_v53, 16  ;;  %v212_v26 = vld [vmem:[%s6534_s25 + $0x5c] sm:$0x1] }
  0x4a   : > { %v384_v6 = vrot.slane %v382_v58, 4  ;;  %5794 = vmatmul.mubr.msk.bf16.gmra.mrb[8].mxu1 %vm658_vm3, %v5032_v59  ;;  %v2161_v17 = vsel %vm6560_vm4, %v2156_v61, %v2160_v42  ;;  %v375_v11 = vor.u32 %v374_v2, %v371_v57  ;;  %v2176_v13 = vshll.u32 %v5223_v53, 16  ;;  %v5226_v53 = vld [vmem:[%s6534_s25 + $0x60] sm:$0xf]  ;;  %v6748_v59 = vld [vmem:[%s6534_s25 + $0x64] sm:$0xf] }
  0x4b   : > { %v2166_v10 = vrot.slane %v2165_v0, 4  ;;  %v390_v18 = vrot.slane %v388_v7, 5  ;;  %v2175_v19 = vrot.slane %v2173_v9, 4  ;;  %v2182_v21 = vshll.u32 %v6718_v4, 16  ;;  %v6755_v9 = vld [vmem:[%s6534_s25 + $0x68] sm:$0x1] }
  0x4c   : > { %v385_v14 = vor.u32 %v384_v6, %v380_v5  ;;  %v376_v29 = vrot.slane %v375_v11, 4  ;;  %v2178_v31 = vrot.slane %v2176_v13, 5  ;;  %v2186_v35 = vshrl.u32 %v6718_v4, 16 }
  0x4d   : > { %v2171_v25 = vsel %vm6560_vm4, %v2166_v10, %v2170_v56  ;;  %v2184_v42 = vrot.slane %v2182_v21, 5  ;;  %v2192_v43 = vshll.u32 %v6724_v12, 16  ;;  %v393_v48 = vshrl.u32 %v6728_v24, 16 }
  0x4e   : > { %v5259_v38 = vcombine.low %v2161_v17, %v2171_v25  ;;  %v386_v39 = vrot.slane %v385_v14, 4  ;;  %v381_v44 = vsel %vm6560_vm4, %v376_v29, %v380_v5  ;;  %v2179_v45 = vor.u32 %v2178_v31, %v2175_v19  ;;  %v6759_v19 = vld [vmem:[%s6534_s25 + $0x60] sm:$0xf] }
  0x4f   : > { %v2188_v47 = vrot.slane %v2186_v35, 4  ;;  %v2194_v50 = vrot.slane %v2192_v43, 5  ;;  %v396_v51 = vshll.u32 %v6728_v24, 16  ;;  %v402_v52 = vshll.u32 %v6734_v37, 16  ;;  %v6765_v35 = vld [vmem:[%s6534_s25 + $0x64] sm:$0xf] }
  0x50   : > { %5930 = vmatmul.mubr.msk.bf16.gmra.mrb[8].mxu0 %vm658_vm3, %v5259_v38  ;;  %v391_v49 = vsel %vm6560_vm4, %v386_v39, %v390_v18  ;;  %v2180_v56 = vrot.slane %v2179_v45, 4  ;;  %v395_v58 = vrot.slane %v393_v48, 4  ;;  %v406_v2 = vshrl.u32 %v6734_v37, 16 }
  0x51   : > { %v5033_v55 = vcombine.low %v381_v44, %v391_v49  ;;  %v2189_v57 = vor.u32 %v2188_v47, %v2184_v42  ;;  %v398_v61 = vrot.slane %v396_v51, 5  ;;  %v404_v0 = vrot.slane %v402_v52, 5 }
  0x52   : > { %v412_v5 = vshll.u32 %v212_v26, 16  ;;  %v2185_v6 = vsel %vm6560_vm4, %v2180_v56, %v2184_v42  ;;  %v2197_v17 = vshrl.u32 %v5226_v53, 16  ;;  %v2200_v10 = vshll.u32 %v5226_v53, 16 }
  0x53   : > { %5797 = vmatprep.mubr.msk.bf16.mxu1 %vm658_vm3, %v5033_v55  ;;  %v2190_v7 = vrot.slane %v2189_v57, 4  ;;  %v399_v11 = vor.u32 %v398_v61, %v395_v58  ;;  %v408_v13 = vrot.slane %v406_v2, 4  ;;  %v2206_v18 = vshll.u32 %v6748_v59, 16  ;;  %v5286_v58 = vld [vmem:[%s6534_s25 + $0xc] sm:$0xe] }
  0x54   : > { %v414_v14 = vrot.slane %v412_v5, 5  ;;  %v2199_v25 = vrot.slane %v2197_v17, 4  ;;  %v2202_v29 = vrot.slane %v2200_v10, 5  ;;  %v2210_v31 = vshrl.u32 %v6748_v59, 16 }
  0x55   : > { %v2195_v21 = vsel %vm6560_vm4, %v2190_v7, %v2194_v50  ;;  %v400_v39 = vrot.slane %v399_v11, 4  ;;  %v409_v42 = vor.u32 %v408_v13, %v404_v0  ;;  %v2208_v43 = vrot.slane %v2206_v18, 5  ;;  %v213_v50 = vld [vmem:[%s6534_s25 + $0x68] sm:$0x1] }
  0x56   : > { %v5260_v38 = vcombine.low %v2185_v6, %v2195_v21  ;;  %v2203_v44 = vor.u32 %v2202_v29, %v2199_v25  ;;  %v2212_v45 = vrot.slane %v2210_v31, 4  ;;  %v2216_v47 = vshll.u32 %v6755_v9, 16  ;;  %v6793_v29 = vld [vmem:[%s6534_s25 + $0x70] sm:$0xf] }
  0x57   : > { %v417_v26 = vshrl.u32 %v6759_v19, 16  ;;  %v405_v48 = vsel %vm6560_vm4, %v400_v39, %v404_v0  ;;  %v410_v49 = vrot.slane %v409_v42, 4  ;;  %v420_v51 = vshll.u32 %v6759_v19, 16  ;;  %v6780_v0 = vld [vmem:[%s6534_s25 + $0x6c] sm:$0xf] }
  0x58   : > { %5933 = vmatprep.mubr.msk.bf16.mxu0 %vm658_vm3, %v5260_v38  ;;  %v426_v52 = vshll.u32 %v6765_v35, 16  ;;  %v2204_v53 = vrot.slane %v2203_v44, 4  ;;  %v2213_v55 = vor.u32 %v2212_v45, %v2208_v43  ;;  %v2218_v56 = vrot.slane %v2216_v47, 5 }
  0x59   : > { %v419_v57 = vrot.slane %v417_v26, 4  ;;  %v415_v61 = vsel %vm6560_vm4, %v410_v49, %v414_v14  ;;  %v422_v2 = vrot.slane %v420_v51, 5  ;;  %v430_v6 = vshrl.u32 %v6765_v35, 16  ;;  %v214_v26 = vld [vmem:[%s6534_s25 + $0x74] sm:$0x1] }
  0x5a   : > { %v428_v5 = vrot.slane %v426_v52, 5  ;;  %v5034_v7 = vcombine.low %v405_v48, %v415_v61  ;;  %v2209_v17 = vsel %vm6560_vm4, %v2204_v53, %v2208_v43  ;;  %v2214_v10 = vrot.slane %v2213_v55, 4  ;;  %v5287_v48 = vld [vmem:[%s6534_s25 + $0x18] sm:$0xe] }
  0x5b   : > { %v436_v11 = vshll.u32 %v213_v50, 16  ;;  %v423_v14 = vor.u32 %v422_v2, %v419_v57  ;;  %v432_v18 = vrot.slane %v430_v6, 4  ;;  %v5302_v21 = vrot.slane %v5286_v58, 9  ;;  %v6812_v53 = vld [vmem:[%s6534_s25 + $0x78] sm:$0xf] }
  0x5c   : > { %v2774_v25 = vrot.slane %v2772_v62, 4  ;;  %5798 = vmatmul.mubr.msk.bf16.gmra.mrb[12].mxu1 %vm658_vm3, %v5034_v7  ;;  %v2219_v31 = vsel %vm6560_vm4, %v2214_v10, %v2218_v56  ;;  %v441_v39 = vshrl.u32 %v6780_v0, 16  ;;  %v444_v42 = vshll.u32 %v6780_v0, 16  ;;  %v215_v57 = vld [vmem:[%s6534_s25 + $0x80] sm:$0x1] }
  0x5d   : > { %v438_v38 = vrot.slane %v436_v11, 5  ;;  %v5261_v43 = vcombine.low %v2209_v17, %v2219_v31  ;;  %v424_v44 = vrot.slane %v423_v14, 4  ;;  %v433_v45 = vor.u32 %v432_v18, %v428_v5  ;;  %v5288_v10 = vld [vmem:[%s6534_s25 + $0x24] sm:$0xe] }
  0x5e   : > { %v2773_v47 = vsel %vm6786_vm7, %v5302_v21, %v2772_v62  ;;  %v2776_v49 = vsel %vm6786_vm7, %v2774_v25, %v2775_v63  ;;  %v443_v50 = vrot.slane %v441_v39, 4  ;;  %v446_v51 = vrot.slane %v444_v42, 5  ;;  %v6838_v39 = vld [vmem:[%s6534_s25 + $0x84] sm:$0xf] }
  0x5f   : > { %v450_v52 = vshll.u32 %v6793_v29, 16  ;;  %5934 = vmatmul.mubr.msk.bf16.gmra.mrb[12].mxu0 %vm658_vm3, %v5261_v43  ;;  %v429_v15 = vsel %vm6560_vm4, %v424_v44, %v428_v5  ;;  %v434_v62 = vrot.slane %v433_v45, 4  ;;  %v5319_v55 = vcombine.low %v2773_v47, %v2776_v49  ;;  %v6846_v43 = vld [vmem:[%s6534_s25 + $0x88] sm:$0xf] }
  0x60   : > { %v454_v56 = vshrl.u32 %v6793_v29, 16  ;;  %v447_v63 = vor.u32 %v446_v51, %v443_v50  ;;  %v460_v61 = vshll.u32 %v214_v26, 16  ;;  %v5303_v2 = vrot.slane %v5287_v48, 9 }
  0x61   : > { %v452_v58 = vrot.slane %v450_v52, 5  ;;  %v439_v6 = vsel %vm6560_vm4, %v434_v62, %v438_v38  ;;  %5955 = vmatprep.mubr.msk.bf16.mxu0 %vm658_vm3, %v5319_v55  ;;  %v2783_v5 = vsel %vm6786_vm7, %v6603_v30, %v2782_v28  ;;  %v465_v17 = vshrl.u32 %v6812_v53, 16  ;;  %v216_v52 = vld [vmem:[%s6534_s25 + $0x8c] sm:$0x1] }
  0x62   : > { %v456_v7 = vrot.slane %v454_v56, 4  ;;  %v5035_v11 = vcombine.low %v429_v15, %v439_v6  ;;  %v448_v14 = vrot.slane %v447_v63, 4  ;;  %v462_v18 = vrot.slane %v460_v61, 5 }
  0x63   : > { %v2780_v21 = vsel %vm6786_vm7, %v5303_v2, %v2779_v22  ;;  %v467_v38 = vrot.slane %v465_v17, 4  ;;  %v468_v1 = vshll.u32 %v6812_v53, 16  ;;  %v474_v30 = vshll.u32 %v6819_v16, 16  ;;  %v6851_v22 = vld [vmem:[%s8339_s1 + $0xe] sm:$0x3] }
  0x64   : > { %v457_v25 = vor.u32 %v456_v7, %v452_v58  ;;  %v5320_v31 = vcombine.low %v2780_v21, %v2783_v5  ;;  %5801 = vmatprep.mubr.msk.bf16.mxu1 %vm658_vm3, %v5035_v11  ;;  %v453_v28 = vsel %vm6560_vm4, %v448_v14, %v452_v58  ;;  %v478_v60 = vshrl.u32 %v6819_v16, 16  ;;  %v6870_v5 = vld [vmem:[%s6534_s25 + $0x90] sm:$0xf] }
  0x65   : > { %v484_v42 = vshll.u32 %v215_v57, 16  ;;  %v470_v45 = vrot.slane %v468_v1, 5  ;;  %v5304_v47 = vrot.slane %v5288_v10, 9  ;;  %v2786_v26 = vrot.slane %v6610_v46, 5  ;;  %v5289_v57 = vld [vmem:[%s6534_s25 + $0x30] sm:$0xe] }
  0x66   : > { %v458_v44 = vrot.slane %v457_v25, 4  ;;  %v476_v48 = vrot.slane %v474_v30, 5  ;;  %v480_v49 = vrot.slane %v478_v60, 4  ;;  %v2789_v51 = vrot.slane %v6619_v54, 5  ;;  %v6882_v30 = vld [vmem:[%s6534_s25 + $0x94] sm:$0xf] }
  0x67   : > { %v486_v50 = vrot.slane %v484_v42, 5  ;;  %5956 = vmatmul.mubr.msk.bf16.vlgmr.msra.gmra.mrb[0].mxu0 %vm658_vm3, %v5320_v31  ;;  %v471_v62 = vor.u32 %v470_v45, %v467_v38  ;;  %v2787_v55 = vsel %vm6786_vm7, %v5304_v47, %v2786_v26  ;;  %v2788_v56 = vrot.slane %v2786_v26, 4  ;;  %v217_v60 = vld [vmem:[%s6534_s25 + $0x98] sm:$0x1]  ;;  %v5290_v26 = vld [vmem:[%s6534_s25 + $0x3c] sm:$0xe] }
  0x68   : > { %v463_v15 = vsel %vm6560_vm4, %v458_v44, %v462_v18  ;;  %5988 = vmatpush3.bf16.msra.mxu0 %v6570_v41  ;;  %v481_v46 = vor.u32 %v480_v49, %v476_v48  ;;  %v489_v58 = vshrl.u32 %v6838_v39, 16  ;;  %v492_v54 = vshll.u32 %v6838_v39, 16 }
  0x69   : > { %v5036_v63 = vcombine.low %v453_v28, %v463_v15  ;;  %v472_v61 = vrot.slane %v471_v62, 4  ;;  %v2790_v2 = vsel %vm6786_vm7, %v2788_v56, %v2789_v51  ;;  %v498_v6 = vshll.u32 %v6846_v43, 16  ;;  %6355 = vmatprep.subr.msk.bf16.mxu0 %vm707_vm0, %v6851_v22 }
  0x6a   : > { %v502_v7 = vshrl.u32 %v6846_v43, 16  ;;  %v482_v41 = vrot.slane %v481_v46, 4  ;;  %v5321_v17 = vcombine.low %v2787_v55, %v2790_v2  ;;  %v491_v10 = vrot.slane %v489_v58, 4  ;;  %v6902_v46 = vld [vmem:[%s6534_s25 + $0xa0] sm:$0xf] }
  0x6b   : > { %5802 = vmatmul.mubr.msk.bf16.gmra.mrb[16].mxu1 %vm658_vm3, %v5036_v63  ;;  %v494_v11 = vrot.slane %v492_v54, 5  ;;  %v477_v14 = vsel %vm6560_vm4, %v472_v61, %v476_v48  ;;  %v500_v18 = vrot.slane %v498_v6, 5  ;;  %v508_v25 = vshll.u32 %v216_v52, 16  ;;  %v6891_v52 = vld [vmem:[%s6534_s25 + $0x9c] sm:$0xf] }
  0x6c   : > { %v504_v21 = vrot.slane %v502_v7, 4  ;;  %v487_v31 = vsel %vm6560_vm4, %v482_v41, %v486_v50  ;;  %5959 = vmatprep.mubr.msk.bf16.mxu0 %vm658_vm3, %v5321_v17  ;;  %v5305_v1 = vrot.slane %v5289_v57, 9  ;;  %v2793_v28 = vrot.slane %v6639_v33, 5 }
  0x6d   : > { %v495_v38 = vor.u32 %v494_v11, %v491_v10  ;;  %v5037_v42 = vcombine.low %v477_v14, %v487_v31  ;;  %v510_v45 = vrot.slane %v508_v25, 5  ;;  %v2796_v47 = vrot.slane %v6647_v40, 5  ;;  %v218_v10 = vld [vmem:[%s6534_s25 + $0xa4] sm:$0x1]  ;;  %v5291_v11 = vld [vmem:[%s6534_s25 + $0x48] sm:$0xe] }
  0x6e   : > { %v505_v44 = vor.u32 %v504_v21, %v500_v18  ;;  %v2794_v49 = vsel %vm6786_vm7, %v5305_v1, %v2793_v28  ;;  %v2795_v50 = vrot.slane %v2793_v28, 4  ;;  %v513_v51 = vshrl.u32 %v6870_v5, 16 }
  0x6f   : > { %v496_v48 = vrot.slane %v495_v38, 4  ;;  %5805 = vmatprep.mubr.msk.bf16.mxu1 %vm658_vm3, %v5037_v42  ;;  %v516_v15 = vshll.u32 %v6870_v5, 16  ;;  %v522_v62 = vshll.u32 %v6882_v30, 16  ;;  %v526_v40 = vshrl.u32 %v6882_v30, 16 }
  0x70   : > { %v506_v33 = vrot.slane %v505_v44, 4  ;;  %v2797_v56 = vsel %vm6786_vm7, %v2795_v50, %v2796_v47  ;;  %v515_v57 = vrot.slane %v513_v51, 4  ;;  %v532_v63 = vshll.u32 %v217_v60, 16 }
  0x71   : > { %v501_v55 = vsel %vm6560_vm4, %v496_v48, %v500_v18  ;;  %v5322_v54 = vcombine.low %v2794_v49, %v2797_v56  ;;  %v518_v61 = vrot.slane %v516_v15, 5  ;;  %v524_v2 = vrot.slane %v522_v62, 5  ;;  %v6928_v56 = vld [vmem:[%s6534_s25 + $0xac] sm:$0xf] }
  0x72   : > { %v511_v58 = vsel %vm6560_vm4, %v506_v33, %v510_v45  ;;  %v528_v7 = vrot.slane %v526_v40, 4  ;;  %v534_v41 = vrot.slane %v532_v63, 5  ;;  %v5306_v17 = vrot.slane %v5290_v26, 9  ;;  %v6923_v33 = vld [vmem:[%s6534_s25 + $0xa8] sm:$0xf] }
  0x73   : > { %v5038_v6 = vcombine.low %v501_v55, %v511_v58  ;;  %5960 = vmatmul.mubr.msk.bf16.gmra.mrb[4].mxu0 %vm658_vm3, %v5322_v54  ;;  %v519_v14 = vor.u32 %v518_v61, %v515_v57  ;;  %v2800_v18 = vrot.slane %v6664_v20, 5  ;;  %v2803_v21 = vrot.slane %v6669_v34, 5  ;;  %v219_v61 = vld [vmem:[%s6534_s25 + $0xb0] sm:$0x1] }
  0x74   : > { %v537_v25 = vshrl.u32 %v6891_v52, 16  ;;  %v529_v31 = vor.u32 %v528_v7, %v524_v2  ;;  %v540_v38 = vshll.u32 %v6891_v52, 16  ;;  %v546_v1 = vshll.u32 %v6902_v46, 16 }
  0x75   : > { %5806 = vmatmul.mubr.msk.bf16.gmra.mrb[20].mxu1 %vm658_vm3, %v5038_v6  ;;  %v550_v28 = vshrl.u32 %v6902_v46, 16  ;;  %v520_v60 = vrot.slane %v519_v14, 4  ;;  %v2801_v42 = vsel %vm6786_vm7, %v5306_v17, %v2800_v18  ;;  %v2802_v20 = vrot.slane %v2800_v18, 4  ;;  %v6943_v14 = vld [vmem:[%s6534_s25 + $0xb4] sm:$0xf] }
  0x76   : > { %v539_v44 = vrot.slane %v537_v25, 4  ;;  %v530_v34 = vrot.slane %v529_v31, 4  ;;  %v542_v45 = vrot.slane %v540_v38, 5  ;;  %v548_v47 = vrot.slane %v546_v1, 5 }
  0x77   : > { %v552_v26 = vrot.slane %v550_v28, 4  ;;  %v525_v48 = vsel %vm6560_vm4, %v520_v60, %v524_v2  ;;  %v2804_v49 = vsel %vm6786_vm7, %v2802_v20, %v2803_v21  ;;  %v556_v50 = vshll.u32 %v218_v10, 16  ;;  %v5292_v2 = vld [vmem:[%s6534_s25 + $0x54] sm:$0xe] }
  0x78   : > { %v5307_v51 = vrot.slane %v5291_v11, 9  ;;  %v535_v15 = vsel %vm6560_vm4, %v530_v34, %v534_v41  ;;  %v5323_v62 = vcombine.low %v2801_v42, %v2804_v49  ;;  %v543_v40 = vor.u32 %v542_v45, %v539_v44  ;;  %v6952_v42 = vld [vmem:[%s6534_s25 + $0xb8] sm:$0xf]  ;;  %v220_v49 = vld [vmem:[%s6534_s25 + $0xbc] sm:$0x1] }
  0x79   : > { %v553_v55 = vor.u32 %v552_v26, %v548_v47  ;;  %v5039_v57 = vcombine.low %v525_v48, %v535_v15  ;;  %v558_v63 = vrot.slane %v556_v50, 5  ;;  %v2807_v58 = vrot.slane %v6687_v8, 5 }
  0x7a   : > { %v2810_v54 = vrot.slane %v6695_v23, 5  ;;  %5963 = vmatprep.mubr.msk.bf16.mxu0 %vm658_vm3, %v5323_v62  ;;  %v544_v6 = vrot.slane %v543_v40, 4  ;;  %v561_v41 = vshrl.u32 %v6923_v33, 16  ;;  %v564_v17 = vshll.u32 %v6923_v33, 16 }
  0x7b   : > { %v554_v7 = vrot.slane %v553_v55, 4  ;;  %5809 = vmatprep.mubr.msk.bf16.mxu1 %vm658_vm3, %v5039_v57  ;;  %v2808_v10 = vsel %vm6786_vm7, %v5307_v51, %v2807_v58  ;;  %v2809_v11 = vrot.slane %v2807_v58, 4  ;;  %v570_v8 = vshll.u32 %v6928_v56, 16  ;;  %v5293_v55 = vld [vmem:[%s6534_s25 + $0x60] sm:$0xe] }
  0x7c   : > { %v574_v23 = vshrl.u32 %v6928_v56, 16  ;;  %v549_v18 = vsel %vm6560_vm4, %v544_v6, %v548_v47  ;;  %v563_v25 = vrot.slane %v561_v41, 4  ;;  %v566_v31 = vrot.slane %v564_v17, 5  ;;  %v5294_v6 = vld [vmem:[%s6534_s25 + $0x6c] sm:$0xe] }
  0x7d   : > { %v559_v21 = vsel %vm6560_vm4, %v554_v7, %v558_v63  ;;  %v2811_v1 = vsel %vm6786_vm7, %v2809_v11, %v2810_v54  ;;  %v572_v28 = vrot.slane %v570_v8, 5  ;;  %v580_v34 = vshll.u32 %v219_v61, 16  ;;  %v5230_v11 = vld [vmem:[%s6534_s25 + $0x70] sm:$0xf]  ;;  %v5231_v8 = vld [vmem:[%s6534_s25 + $0x74] sm:$0x1] }
  0x7e   : > { %v5040_v38 = vcombine.low %v549_v18, %v559_v21  ;;  %v576_v60 = vrot.slane %v574_v23, 4  ;;  %v5324_v20 = vcombine.low %v2808_v10, %v2811_v1  ;;  %v567_v44 = vor.u32 %v566_v31, %v563_v25 }
  0x7f   : > { %v5308_v45 = vrot.slane %v5292_v2, 9  ;;  %v2814_v26 = vrot.slane %v6718_v4, 5  ;;  %v2817_v48 = vrot.slane %v6724_v12, 5  ;;  %v585_v50 = vshrl.u32 %v6943_v14, 16 }
  0x80   : > { %5810 = vmatmul.mubr.msk.bf16.gmra.mrb[24].mxu1 %vm658_vm3, %v5040_v38  ;;  %v577_v47 = vor.u32 %v576_v60, %v572_v28  ;;  %5964 = vmatmul.mubr.msk.bf16.gmra.mrb[8].mxu0 %vm658_vm3, %v5324_v20  ;;  %v568_v51 = vrot.slane %v567_v44, 4  ;;  %v582_v15 = vrot.slane %v580_v34, 5  ;;  %v588_v62 = vshll.u32 %v6943_v14, 16 }
  0x81   : > { %v594_v40 = vshll.u32 %v6952_v42, 16  ;;  %v2815_v4 = vsel %vm6786_vm7, %v5308_v45, %v2814_v26  ;;  %v2816_v12 = vrot.slane %v2814_v26, 4  ;;  %v587_v63 = vrot.slane %v585_v50, 4 }
  0x82   : > { %v578_v57 = vrot.slane %v577_v47, 4  ;;  %v573_v58 = vsel %vm6560_vm4, %v568_v51, %v572_v28  ;;  %v590_v54 = vrot.slane %v588_v62, 5  ;;  %v598_v2 = vshrl.u32 %v6952_v42, 16  ;;  %v5295_v47 = vld [vmem:[%s6534_s25 + $0x78] sm:$0xe] }
  0x83   : > { %v596_v61 = vrot.slane %v594_v40, 5  ;;  %v2818_v41 = vsel %vm6786_vm7, %v2816_v12, %v2817_v48  ;;  %v604_v17 = vshll.u32 %v220_v49, 16  ;;  %v5309_v10 = vrot.slane %v5293_v55, 9  ;;  %v6414_v51 = vld [vmem:[%s6534_s25] sm:$0xf] }
  0x84   : > { %v583_v7 = vsel %vm6560_vm4, %v578_v57, %v582_v15  ;;  %v5325_v18 = vcombine.low %v2815_v4, %v2818_v41  ;;  %v591_v21 = vor.u32 %v590_v54, %v587_v63  ;;  %v600_v25 = vrot.slane %v598_v2, 4  ;;  %v6990_v15 = vld [vmem:[%s6534_s25 + $0x4] sm:$0xf]  ;;  %v6994_v40 = vld [vmem:[%s6534_s25 + $0x7c] sm:$0xf] }
  0x85   : > { %v5041_v23 = vcombine.low %v573_v58, %v583_v7  ;;  %v606_v31 = vrot.slane %v604_v17, 5  ;;  %v2821_v38 = vrot.slane %v6748_v59, 5  ;;  %v2824_v1 = vrot.slane %v6755_v9, 5  ;;  %v6997_v55 = vld [vmem:[%s6534_s25 + $0x80] sm:$0x1] }
  0x86   : > { %v5310_v28 = vrot.slane %v5294_v6, 9  ;;  %5967 = vmatprep.mubr.msk.bf16.mxu0 %vm658_vm3, %v5325_v18  ;;  %v592_v60 = vrot.slane %v591_v21, 4  ;;  %v601_v20 = vor.u32 %v600_v25, %v596_v61  ;;  %v2828_v44 = vrot.slane %v5230_v11, 5  ;;  %v5236_v57 = vld [vmem:[%s6534_s25 + $0x88] sm:$0xf] }
  0x87   : > { %5813 = vmatprep.mubr.msk.bf16.mxu1 %vm658_vm3, %v5041_v23  ;;  %v2831_v34 = vrot.slane %v5231_v8, 5  ;;  %v2822_v45 = vsel %vm6786_vm7, %v5309_v10, %v2821_v38  ;;  %v2823_v59 = vrot.slane %v2821_v38, 4  ;;  %v5059_v62 = vcombine.low %v6414_v51, %v6990_v15  ;;  %v5237_v54 = vld [vmem:[%s6534_s25 + $0x8c] sm:$0x1]  ;;  %v5239_v17 = vld [vmem:[%s6534_s25 + $0x94] sm:$0xf] }
  0x88   : > { %v597_v9 = vsel %vm6560_vm4, %v592_v60, %v596_v61  ;;  %v602_v26 = vrot.slane %v601_v20, 4  ;;  %v2829_v48 = vsel %vm6786_vm7, %v5310_v28, %v2828_v44  ;;  %v2830_v49 = vrot.slane %v2828_v44, 4  ;;  %v5296_v61 = vld [vmem:[%s6534_s25 + $0x84] sm:$0xe]  ;;  %v5297_v23 = vld [vmem:[%s6534_s25 + $0x90] sm:$0xe] }
  0x89   : > { %v2825_v50 = vsel %vm6786_vm7, %v2823_v59, %v2824_v1  ;;  %v5311_v58 = vrot.slane %v5295_v47, 9  ;;  %v2835_v7 = vrot.slane %v6994_v40, 5  ;;  %v2838_v41 = vrot.slane %v6997_v55, 5  ;;  %v5240_v25 = vld [vmem:[%s6534_s25 + $0x98] sm:$0x1] }
  0x8a   : > { %v607_v4 = vsel %vm6560_vm4, %v602_v26, %v606_v31  ;;  %v5326_v12 = vcombine.low %v2822_v45, %v2825_v50  ;;  %v2832_v63 = vsel %vm6786_vm7, %v2830_v49, %v2831_v34  ;;  %v5312_v10 = vrot.slane %v5296_v61, 9  ;;  %v5242_v31 = vld [vmem:[%s6534_s25 + $0xa0] sm:$0xf]  ;;  %v5243_v60 = vld [vmem:[%s6534_s25 + $0xa4] sm:$0x1] }
  0x8b   : > { %v5042_v2 = vcombine.low %v597_v9, %v607_v4  ;;  %v5327_v6 = vcombine.low %v2829_v48, %v2832_v63  ;;  %v2842_v11 = vrot.slane %v5236_v57, 5  ;;  %v2845_v8 = vrot.slane %v5237_v54, 5  ;;  %v5298_v20 = vld [vmem:[%s6534_s25 + $0x9c] sm:$0xe]  ;;  %v6416_v44 = vld [vmem:[%s6534_s25 + $0xc] sm:$0xf] }
  0x8c   : > { %5968 = vmatmul.mubr.msk.bf16.gmra.mrb[12].mxu0 %vm658_vm3, %v5326_v12  ;;  %v2836_v18 = vsel %vm6786_vm7, %v5311_v58, %v2835_v7  ;;  %v2837_v21 = vrot.slane %v2835_v7, 4  ;;  %v2849_v28 = vrot.slane %v5239_v17, 5  ;;  %v7024_v34 = vld [vmem:[%s6534_s25 + $0x10] sm:$0xf]  ;;  %v6418_v47 = vld [vmem:[%s6534_s25 + $0x18] sm:$0xf] }
  0x8d   : > { %5814 = vmatmul.mubr.msk.bf16.gmra.mrb[28].mxu1 %vm658_vm3, %v5042_v2  ;;  %5971 = vmatprep.mubr.msk.bf16.mxu0 %vm658_vm3, %v5327_v6  ;;  %v2843_v38 = vsel %vm6786_vm7, %v5312_v10, %v2842_v11  ;;  %v2844_v1 = vrot.slane %v2842_v11, 4  ;;  %v5060_v45 = vcombine.low %v6416_v44, %v7024_v34  ;;  %v7031_v9 = vld [vmem:[%s6534_s25 + $0x1c] sm:$0xf]  ;;  %v5313_v48 = vrot.slane %v5297_v23, 9  ;;  %v5245_v57 = vld [vmem:[%s6534_s25 + $0xac] sm:$0xf] }
  0x8e   : > { %5819 = vmatprep.mubr.msk.bf16.mxu1 %vm658_vm3, %v5059_v62  ;;  %v2839_v59 = vsel %vm6786_vm7, %v2837_v21, %v2838_v41  ;;  %v5061_v26 = vcombine.low %v6418_v47, %v7031_v9  ;;  %v2851_v51 = vrot.slane %v2849_v28, 4  ;;  %v2852_v62 = vrot.slane %v5240_v25, 5  ;;  %v6420_v54 = vld [vmem:[%s8339_s1 + $0x4] sm:$0x3]  ;;  %v5248_v2 = vld [vmem:[%s6534_s25 + $0xb8] sm:$0xf] }
  0x8f   : > { %v5328_v49 = vcombine.low %v2836_v18, %v2839_v59  ;;  %v2846_v50 = vsel %vm6786_vm7, %v2844_v1, %v2845_v8  ;;  %v5314_v12 = vrot.slane %v5298_v20, 9  ;;  %v2856_v63 = vrot.slane %v5242_v31, 5  ;;  %v7046_v7 = vld [vmem:[%s8339_s1 + $0x6] sm:$0x3]  ;;  %v5246_v10 = vld [vmem:[%s6534_s25 + $0xb0] sm:$0x1] }
  0x90   : > { %v5329_v4 = vcombine.low %v2843_v38, %v2846_v50  ;;  %v2859_v58 = vrot.slane %v5243_v60, 5  ;;  %v1426_v61 = vsel %vm707_vm0, %v6420_v54, 0  ;;  %v2850_v41 = vsel %vm6786_vm7, %v5313_v48, %v2849_v28  ;;  %v5299_v11 = vld [vmem:[%s6534_s25 + $0xa8] sm:$0xe]  ;;  %v5249_v25 = vld [vmem:[%s6534_s25 + $0xbc] sm:$0x1] }
  0x91   : > { %v2858_v6 = vrot.slane %v2856_v63, 4  ;;  %v2853_v17 = vsel %vm6786_vm7, %v2851_v51, %v2852_v62  ;;  %v2863_v8 = vrot.slane %v5245_v57, 5  ;;  %v2857_v23 = vsel %vm6786_vm7, %v5314_v12, %v2856_v63  ;;  %v5300_v31 = vld [vmem:[%s6534_s25 + $0xb4] sm:$0xe]  ;;  %v6421_v38 = vld [vmem:[%s6534_s25 + $0x24] sm:$0xf] }
  0x92   : > { %v2870_v21 = vrot.slane %v5248_v2, 5  ;;  %v7067_v1 = vld [vmem:[%s6534_s25 + $0x28] sm:$0xf]  ;;  %v5330_v60 = vcombine.low %v2850_v41, %v2853_v17  ;;  %v5315_v44 = vrot.slane %v5299_v11, 9  ;;  %v2866_v59 = vrot.slane %v5246_v10, 5 }
  0x93   : > { %v2860_v18 = vsel %vm6786_vm7, %v2858_v6, %v2859_v58  ;;  %v5062_v28 = vcombine.low %v6421_v38, %v7067_v1  ;;  %v6423_v47 = vld [vmem:[%s6534_s25 + $0x30] sm:$0xf]  ;;  %v2873_v51 = vrot.slane %v5249_v25, 5  ;;  %v5251_v62 = vld [vmem:[%s6534_s25 + $0xc4] sm:$0xf]  ;;  %v2258_v25 = vshrl.u32 %v6994_v40, 16 }
  0x94   : > { %5972 = vmatmul.mubr.msk.bf16.gmra.mrb[16].mxu0 %vm658_vm3, %v5328_v49  ;;  %v5331_v20 = vcombine.low %v2857_v23, %v2860_v18  ;;  %v5316_v49 = vrot.slane %v5300_v31, 9  ;;  %v2872_v50 = vrot.slane %v2870_v21, 4  ;;  %v2864_v57 = vsel %vm6786_vm7, %v5315_v44, %v2863_v8  ;;  %v5301_v12 = vld [vmem:[%s6534_s25 + $0xc0] sm:$0xe]  ;;  %v6425_v41 = vld [vmem:[%s6534_s25 + $0x3c] sm:$0xf] }
  0x95   : > { %5820 = vmatmul.mubr.msk.bf16.vlgmr.msra.gmra.mrb[0].mxu1 %vm658_vm3, %v5060_v45  ;;  %5975 = vmatprep.mubr.msk.bf16.mxu0 %vm658_vm3, %v5329_v4  ;;  %v2865_v45 = vrot.slane %v2863_v8, 4  ;;  %v2877_v63 = vrot.slane %v5251_v62, 5  ;;  %v5317_v6 = vrot.slane %v5301_v12, 9  ;;  %v7092_v17 = vld [vmem:[%s6534_s25 + $0x40] sm:$0xf]  ;;  %v5065_v18 = vcombine.low %v6699_v27, %v6702_v36  ;;  %v6377_v62 = vld [vmem:[%s6534_s25 + $0x24] sm:$0xff]  }
  0x96   : > { %5852 = vmatpush3.bf16.msra.mxu1 %v1426_v61  ;;  %5823 = vmatprep.mubr.msk.bf16.mxu1 %vm658_vm3, %v5061_v26  ;;  %v7072_v26 = vld [vmem:[%s6534_s25 + $0x34] sm:$0xf]  ;;  %v2871_v58 = vsel %vm6786_vm7, %v5316_v49, %v2870_v21  ;;  %v2874_v54 = vsel %vm6786_vm7, %v2872_v50, %v2873_v51  ;;  %v5252_v61 = vld [vmem:[%s6534_s25 + $0xc8] sm:$0x1]  ;;  %v5064_v10 = vcombine.low %v6425_v41, %v7092_v17  ;;  %v2254_v21 = vshll.u32 %v6994_v40, 16 }
  0x97   : > { %6350 = vmatprep.subr.msk.bf16.mxu1 %vm707_vm0, %v7046_v7  ;;  %v5063_v48 = vcombine.low %v6423_v47, %v7072_v26  ;;  %v2867_v4 = vsel %vm6786_vm7, %v2865_v45, %v2866_v59  ;;  %v5333_v11 = vcombine.low %v2871_v58, %v2874_v54  ;;  %v2879_v8 = vrot.slane %v2877_v63, 4  ;;  %v1164_v45 = vld [vmem:[%s6534_s25] sm:$0xe]  ;;  %v1165_v59 = vld [vmem:[%s6534_s25 + $0xc] sm:$0xe] }
  0x98   : > { %v5332_v2 = vcombine.low %v2864_v57, %v2867_v4  ;;  %v2880_v23 = vrot.slane %v5252_v61, 5  ;;  %v2878_v31 = vsel %vm6786_vm7, %v5317_v6, %v2877_v63  ;;  %v7107_v27 = vrot.slane %v2254_v21, 5  ;;  %v1168_v41 = vld [vmem:[%s6534_s25 + $0x30] sm:$0xe] }
  0x99   : > { %v2260_v36 = vrot.slane %v2258_v25, 4  ;;  %v5067_v44 = vcombine.low %v6759_v19, %v6765_v35  ;;  %v2264_v47 = vshll.u32 %v6997_v55, 16  ;;  %v5091_v19 = vrot.slane %v1164_v45, 9 }
  0x9a   : > { %v2881_v38 = vsel %vm6786_vm7, %v2879_v8, %v2880_v23  ;;  %8360 = vst [vmem:[#allocation3_spill] sm:$0xff] %v7107_v27  ;;  %v5092_v35 = vrot.slane %v1165_v59, 9  ;;  %v1231_v4 = vrot.slane %v7031_v9, 5  ;;  %v1238_v12 = vrot.slane %v7067_v1, 5  ;;  %v1169_v8 = vld [vmem:[%s6534_s25 + $0x3c] sm:$0xe] }
  0x9b   : > { %v5334_v40 = vcombine.low %v2878_v31, %v2881_v38  ;;  %v2261_v49 = vor.u32 %v2260_v36, %v7107_v27  ;;  %v7127_v51 = vrot.slane %v2264_v47, 5  ;;  %v5068_v58 = vcombine.low %v6780_v0, %v6793_v29  ;;  %v1170_v31 = vld [vmem:[%s6534_s25 + $0x48] sm:$0xe]  ;;  %v6431_v59 = vld [vmem:[%s6534_s25 + $0x38] sm:$0x1] }
  0x9c   : > { %5976 = vmatmul.mubr.msk.bf16.gmra.mrb[20].mxu0 %vm658_vm3, %v5330_v60  ;;  %v5066_v60 = vcombine.low %v6728_v24, %v6734_v37  ;;  %v6428_v24 = vld [vmem:[%s6534_s25 + $0x14] sm:$0x1]  ;;  %v4066_v54 = vsel %vm707_vm0, %v6851_v22, 0  ;;  %v5069_v61 = vcombine.low %v6812_v53, %v6819_v16  ;;  %v5070_v6 = vcombine.low %v6838_v39, %v6846_v43  ;;  %v6429_v16 = vld [vmem:[%s6534_s25 + $0x20] sm:$0x1] }
  0x9d   : > { %5824 = vmatmul.mubr.msk.bf16.gmra.mrb[4].mxu1 %vm658_vm3, %v5062_v28  ;;  %5979 = vmatprep.mubr.msk.bf16.mxu0 %vm658_vm3, %v5331_v20  ;;  %v1224_v28 = vrot.slane %v7024_v34, 5  ;;  %v6375_v20 = vld [vmem:[%s6534_s25 + $0x18] sm:$0xff]   ;;  %v6427_v34 = vld [vmem:[%s6534_s25 + $0x8] sm:$0x1]  ;;  %v1227_v37 = vrot.slane %v6428_v24, 5  ;;  %8361 = vst [vmem:[#allocation4_spill] sm:$0xff] %v7127_v51  ;;  %v5071_v9 = vcombine.low %v6870_v5, %v6882_v30 }
  0x9e   : > { %5827 = vmatprep.mubr.msk.bf16.mxu1 %vm658_vm3, %v5063_v48  ;;  %v1217_v48 = vrot.slane %v6990_v15, 5  ;;  %v1220_v50 = vrot.slane %v6427_v34, 5  ;;  %v1166_v15 = vld [vmem:[%s6534_s25 + $0x18] sm:$0xe]  ;;  %v7132_v63 = vrot.slane %v2261_v49, 4  ;;  %v1234_v22 = vrot.slane %v6429_v16, 5 }
  0x9f   : > { %v1226_v55 = vrot.slane %v1224_v28, 4  ;;  %v5093_v1 = vrot.slane %v1166_v15, 9  ;;  %v7154_v29 = vsel %vm6786_vm7, %v5092_v35, %v1224_v28  ;;  %v1240_v25 = vrot.slane %v1238_v12, 4  ;;  %v5416_v24 = vld [vmem:[%s6534_s25 + $0x18] sm:$0xf] }
  0xa0   : > { %v1219_v57 = vrot.slane %v1217_v48, 4  ;;  %8362 = vst [vmem:[#allocation5_spill] sm:$0xff] %v7132_v63  ;;  %v7150_v0 = vsel %vm6786_vm7, %v5091_v19, %v1217_v48  ;;  %v1248_v47 = vrot.slane %v6431_v59, 5  ;;  %v7191_v49 = vsel %vm707_vm0, %v7046_v7, 0  ;;  %v5417_v7 = vld [vmem:[%s6534_s25 + $0x1c] sm:$0xf] }
  0xa1   : > { %v7158_v53 = vsel %vm6786_vm7, %v1226_v55, %v1227_v37  ;;  %v7195_v34 = vsel %vm6786_vm7, %v5093_v1, %v1231_v4  ;;  %v6381_v37 = vld [vmem:[%s6534_s25 + $0x3c] sm:$0xff]   ;;  %v5096_v35 = vrot.slane %v1169_v8, 9  ;;  %v6432_v55 = vld [vmem:[%s6534_s25 + $0x44] sm:$0x1]  ;;  %v3587_v8 = vshll.u32 %v5416_v24, 16 }
  0xa2   : > { %v7169_v23 = vsel %vm6786_vm7, %v1219_v57, %v1220_v50  ;;  %v1171_v50 = vld [vmem:[%s6534_s25 + $0x54] sm:$0xe]  ;;  %v1255_v15 = vrot.slane %v6432_v55, 5  ;;  %v5420_v39 = vld [vmem:[%s6534_s25 + $0x28] sm:$0xf] }
  0xa3   : > { %v6439_v5 = vld [vmem:[%s6534_s25 + $0x70] sm:$0xf] }
  0xa4   : > { %5980 = vmatmul.mubr.msk.bf16.gmra.mrb[24].mxu0 %vm658_vm3, %v5332_v2  ;;  %v1167_v2 = vld [vmem:[%s6534_s25 + $0x24] sm:$0xe]  ;;  %v1280_v30 = vrot.slane %v6439_v5, 5 }
  0xa5   : > { %5828 = vmatmul.mubr.msk.bf16.gmra.mrb[8].mxu1 %vm658_vm3, %v5064_v10  ;;  %5983 = vmatprep.mubr.msk.bf16.mxu0 %vm658_vm3, %v5333_v11  ;;  %v1245_v10 = vrot.slane %v7072_v26, 5  ;;  %v6379_v11 = vld [vmem:[%s6534_s25 + $0x30] sm:$0xff]   ;;  %v5094_v21 = vrot.slane %v1167_v2, 9 }
  0xa6   : > { %5831 = vmatprep.mubr.msk.bf16.mxu1 %vm658_vm3, %v5065_v18  ;;  %v7165_v26 = vld [vmem:[%s8339_s1 + $0x10] sm:$0x3]  ;;  %v1233_v18 = vrot.slane %v1231_v4, 4  ;;  %v1282_v48 = vrot.slane %v1280_v30, 4 }
  0xa7   : > { %v1247_v45 = vrot.slane %v1245_v10, 4  ;;  %v7202_v19 = vsel %vm6786_vm7, %v5094_v21, %v1238_v12  ;;  %v3597_v21 = vshrl.u32 %v5417_v7, 16 }
  0xa8   : > { %v7211_v4 = vsel %vm6786_vm7, %v1233_v18, %v1234_v22  ;;  %v3584_v22 = vshrl.u32 %v5416_v24, 16  ;;  %v3593_v18 = vshll.u32 %v5417_v7, 16  ;;  %v5419_v24 = vld [vmem:[%s6534_s25 + $0x24] sm:$0xf] }
  0xa9   : > { %v7224_v1 = vsel %vm6786_vm7, %v1247_v45, %v1248_v47 }
  0xaa   : > { %v3586_v43 = vrot.slane %v3584_v22, 4  ;;  %v7266_v7 = vrot.slane %v3593_v18, 5  ;;  %v3611_v22 = vshll.u32 %v5419_v24, 16  ;;  %v3621_v18 = vshrl.u32 %v5420_v39, 16 }
  0xac   : > { %5984 = vmatmul.mubr.msk.bf16.gmra.mrb[28].mxu0 %vm658_vm3, %v5334_v40  ;;  %v6430_v40 = vld [vmem:[%s6534_s25 + $0x2c] sm:$0x1]  ;;  %v3613_v27 = vrot.slane %v3611_v22, 5 }
  0xad   : > { %5832 = vmatmul.mubr.msk.bf16.gmra.mrb[12].mxu1 %vm658_vm3, %v5066_v60  ;;  %5989 = vmatprep.mubr.msk.bf16.mxu0 %vm658_vm3, %v6375_v20  ;;  %v1241_v28 = vrot.slane %v6430_v40, 5  ;;  %v1252_v60 = vrot.slane %v7092_v17, 5  ;;  %v6435_v40 = vld [vmem:[%s6534_s25 + $0x50] sm:$0x1]  ;;  %v6440_v17 = vld [vmem:[%s6534_s25 + $0x74] sm:$0x1] }
  0xae   : > { %5835 = vmatprep.mubr.msk.bf16.mxu1 %vm658_vm3, %v5067_v44  ;;  %v5095_v44 = vrot.slane %v1168_v41, 9  ;;  %v5098_v41 = vrot.slane %v1171_v50, 9  ;;  %v1172_v50 = vld [vmem:[%s6534_s25 + $0x60] sm:$0xe]  ;;  %v5421_v20 = vld [vmem:[%s6534_s25 + $0x2c] sm:$0x1] }
  0xaf   : > { %v1254_v12 = vrot.slane %v1252_v60, 4  ;;  %v7237_v45 = vsel %vm6786_vm7, %v5096_v35, %v1252_v60  ;;  %v6436_v35 = vld [vmem:[%s6534_s25 + $0x5c] sm:$0x1] }
  0xb0   : > { %v7220_v2 = vsel %vm6786_vm7, %v5095_v44, %v1245_v10  ;;  %v1269_v55 = vrot.slane %v6436_v35, 5  ;;  %v1173_v35 = vld [vmem:[%s6534_s25 + $0x6c] sm:$0xe] }
  0xb1   : > { %v7241_v59 = vsel %vm6786_vm7, %v1254_v12, %v1255_v15  ;;  %v6437_v15 = vld [vmem:[%s6534_s25 + $0x64] sm:$0xf]  ;;  %v3599_v12 = vrot.slane %v3597_v21, 4  ;;  %v5100_v5 = vrot.slane %v1173_v35, 9 }
  0xb2   : > { %v6387_v21 = vld [vmem:[%s6534_s25 + $0x60] sm:$0xff]  }
  0xb4   : > { %5990 = vmatmul.mubr.msk.bf16.vlgmr.msra.gmra.mrb[0].mxu0 %vm658_vm3, %v6377_v62  ;;  %v6433_v62 = vld [vmem:[%s6534_s25 + $0x4c] sm:$0xf] }
  0xb5   : > { %5836 = vmatmul.mubr.msk.bf16.gmra.mrb[16].mxu1 %vm658_vm3, %v5068_v58  ;;  %6022 = vmatpush3.bf16.msra.mxu0 %v4066_v54  ;;  %v1259_v57 = vrot.slane %v6433_v62, 5  ;;  %v7215_v58 = vsel %vm6786_vm7, %v1240_v25, %v1241_v28  ;;  %v5097_v54 = vrot.slane %v1170_v31, 9  ;;  %v1262_v28 = vrot.slane %v6435_v40, 5 }
  0xb6   : > { %5839 = vmatprep.mubr.msk.bf16.mxu1 %vm658_vm3, %v5069_v61  ;;  %5993 = vmatprep.mubr.msk.bf16.mxu0 %vm658_vm3, %v6379_v11  ;;  %v6383_v61 = vld [vmem:[%s6534_s25 + $0x48] sm:$0xff]   ;;  %v6434_v11 = vld [vmem:[%s6534_s25 + $0x58] sm:$0xf]  ;;  %v1273_v62 = vrot.slane %v6437_v15, 5  ;;  %v5423_v15 = vld [vmem:[%s6534_s25 + $0x34] sm:$0xf] }
  0xb7   : > { %6356 = vmatprep.subr.msk.bf16.mxu0 %vm707_vm0, %v7165_v26  ;;  %v1266_v16 = vrot.slane %v6434_v11, 5  ;;  %v1261_v31 = vrot.slane %v1259_v57, 4  ;;  %v7245_v47 = vsel %vm6786_vm7, %v5097_v54, %v1259_v57  ;;  %v5418_v57 = vld [vmem:[%s6534_s25 + $0x20] sm:$0x1]  ;;  %v5422_v54 = vld [vmem:[%s6534_s25 + $0x30] sm:$0xf] }
  0xb8   : > { %v5099_v11 = vrot.slane %v1172_v50, 9  ;;  %v3635_v50 = vshll.u32 %v5422_v54, 16  ;;  %v3603_v25 = vshll.u32 %v5418_v57, 16  ;;  %v3641_v36 = vshll.u32 %v5423_v15, 16 }
  0xb9   : > { %v7256_v60 = vsel %vm6786_vm7, %v5098_v41, %v1266_v16  ;;  %v7272_v41 = vsel %vm6786_vm7, %v1261_v31, %v1262_v28  ;;  %v1275_v31 = vrot.slane %v1273_v62, 4  ;;  %v3632_v28 = vshrl.u32 %v5422_v54, 16 }
  0xba   : > { %v7314_v35 = vrot.slane %v3641_v36, 5 }
  0xbc   : > { %5994 = vmatmul.mubr.msk.bf16.gmra.mrb[4].mxu0 %vm658_vm3, %v6381_v37  ;;  %v1268_v37 = vrot.slane %v1266_v16, 4  ;;  %v6438_v16 = vld [vmem:[%s6534_s25 + $0x68] sm:$0x1] }
  0xbd   : > { %5840 = vmatmul.mubr.msk.bf16.gmra.mrb[20].mxu1 %vm658_vm3, %v5070_v6  ;;  %5997 = vmatprep.mubr.msk.bf16.mxu0 %vm658_vm3, %v6383_v61  ;;  %v3589_v6 = vrot.slane %v3587_v8, 5  ;;  %v6385_v61 = vld [vmem:[%s6534_s25 + $0x54] sm:$0xff]   ;;  %v1276_v40 = vrot.slane %v6438_v16, 5  ;;  %v3617_v8 = vshll.u32 %v5420_v39, 16  ;;  %v3600_v16 = vor.u32 %v3599_v12, %v7266_v7 }
  0xbe   : > { %5843 = vmatprep.mubr.msk.bf16.mxu1 %vm658_vm3, %v5071_v9  ;;  %v3608_v9 = vshrl.u32 %v5419_v24, 16  ;;  %v7281_v44 = vsel %vm6786_vm7, %v1268_v37, %v1269_v55  ;;  %v1283_v24 = vrot.slane %v6440_v17, 5  ;;  %v3645_v39 = vshrl.u32 %v5423_v15, 16 }
  0xbf   : > { %v3590_v10 = vor.u32 %v3589_v6, %v3586_v43  ;;  %v7287_v37 = vrot.slane %v3617_v8, 5  ;;  %v3623_v55 = vrot.slane %v3621_v18, 4  ;;  %v8363_v43 = vcombine.low %v6891_v52, %v6902_v46  ;;  %v6441_v8 = vld [vmem:[%s6534_s25 + $0x7c] sm:$0xf]  ;;  %v7323_v18 = vld [vmem:[%s6534_s25 + $0x38] sm:$0x1] }
  0xc0   : > { %v3610_v38 = vrot.slane %v3608_v9, 4  ;;  %v7296_v17 = vsel %vm6786_vm7, %v5099_v11, %v1273_v62  ;;  %v7300_v57 = vsel %vm6786_vm7, %v1275_v31, %v1276_v40  ;;  %v3634_v6 = vrot.slane %v3632_v28, 4  ;;  %8365 = vst [vmem:[#allocation6_spill] sm:$0xff] %v7323_v18 }
  0xc1   : > { %v3637_v12 = vrot.slane %v3635_v50, 5  ;;  %v8364_v52 = vcombine.low %v6923_v33, %v6928_v56  ;;  %v3591_v46 = vrot.slane %v3590_v10, 4  ;;  %v3601_v54 = vrot.slane %v3600_v16, 4  ;;  %v6389_v33 = vld [vmem:[%s6534_s25 + $0x6c] sm:$0xff]   ;;  %v1175_v16 = vld [vmem:[%s6534_s25 + $0x84] sm:$0xe] }
  0xc2   : > { %v3627_v62 = vshll.u32 %v5421_v20, 16  ;;  %v7308_v11 = vsel %vm6786_vm7, %v5100_v5, %v1280_v30  ;;  %v7312_v40 = vsel %vm6786_vm7, %v1282_v48, %v1283_v24  ;;  %v3647_v9 = vrot.slane %v3645_v39, 4  ;;  %v6390_v48 = vld [vmem:[%s6534_s25 + $0x78] sm:$0xff]  }
  0xc3   : > { %v3614_v10 = vor.u32 %v3613_v27, %v3610_v38  ;;  %v3624_v20 = vor.u32 %v3623_v55, %v7287_v37  ;;  %v1287_v30 = vrot.slane %v6441_v8, 5  ;;  %v3638_v38 = vor.u32 %v3637_v12, %v3634_v6  ;;  %v5425_v5 = vld [vmem:[%s6534_s25 + $0x3c] sm:$0xf] }
  0xc4   : > { %5998 = vmatmul.mubr.msk.bf16.gmra.mrb[8].mxu0 %vm658_vm3, %v6385_v61  ;;  %v3605_v61 = vrot.slane %v3603_v25, 5  ;;  %v1174_v25 = vld [vmem:[%s6534_s25 + $0x78] sm:$0xe]  ;;  %v7339_v50 = vrot.slane %v3627_v62, 5  ;;  %v3648_v39 = vor.u32 %v3647_v9, %v7314_v35  ;;  %v3651_v55 = vshll.u32 %v7323_v18, 16 }
  0xc5   : > { %5844 = vmatmul.mubr.msk.bf16.gmra.mrb[24].mxu1 %vm658_vm3, %v8363_v43  ;;  %6001 = vmatprep.mubr.msk.bf16.mxu0 %vm658_vm3, %v6387_v21  ;;  %v3596_v21 = vsel %vm6560_vm4, %v3591_v46, %v7266_v7  ;;  %v5101_v24 = vrot.slane %v1174_v25, 9  ;;  %v6442_v43 = vld [vmem:[%s6534_s25 + $0x88] sm:$0xf]  ;;  %v7347_v7 = vld [vmem:[%s6534_s25 + $0x40] sm:$0xf]  ;;  %v3615_v12 = vrot.slane %v3614_v10, 4  ;;  %v8367_v62 = vcombine.low %v6943_v14, %v6952_v42 }
  0xc6   : > { %5847 = vmatprep.mubr.msk.bf16.mxu1 %vm658_vm3, %v8364_v52  ;;  %v3606_v31 = vsel %vm6560_vm4, %v3601_v54, %v3605_v61  ;;  %v1294_v6 = vrot.slane %v6442_v43, 5  ;;  %8366 = vst [vmem:[#allocation7_spill] sm:$0xff] %v7347_v7  ;;  %v3625_v52 = vrot.slane %v3624_v20, 4  ;;  %v1289_v46 = vrot.slane %v1287_v30, 4  ;;  %v6443_v54 = vld [vmem:[%s6534_s25 + $0x80] sm:$0x1] }
  0xc7   : > { %v1290_v61 = vrot.slane %v6443_v54, 5  ;;  %v3639_v9 = vrot.slane %v3638_v38, 4  ;;  %v5102_v25 = vrot.slane %v1175_v16, 9  ;;  %v3656_v8 = vshrl.u32 %v5425_v5, 16  ;;  %v6391_v10 = vld [vmem:[%s6534_s25 + $0x84] sm:$0xff]  }
  0xc8   : > { %v3659_v43 = vshll.u32 %v5425_v5, 16  ;;  %v7361_v20 = vcombine.low %v3596_v21, %v3606_v31  ;;  %v7365_v14 = vsel %vm707_vm0, %v7165_v26, 0  ;;  %v3669_v38 = vshrl.u32 %v7347_v7, 16  ;;  %v6392_v21 = vld [vmem:[%s6534_s25 + $0x90] sm:$0xff]   ;;  %v6448_v18 = vld [vmem:[%s6534_s25 + $0xa0] sm:$0xf] }
  0xc9   : > { %v3649_v16 = vrot.slane %v3648_v39, 4  ;;  %v3653_v5 = vrot.slane %v3651_v55, 5  ;;  %v1296_v54 = vrot.slane %v1294_v6, 4  ;;  %v3620_v31 = vsel %vm6560_vm4, %v3615_v12, %v7287_v37 }
  0xca   : > { %v3630_v26 = vsel %vm6560_vm4, %v3625_v52, %v7339_v50  ;;  %v7380_v39 = vsel %vm6786_vm7, %v5101_v24, %v1287_v30  ;;  %v7384_v55 = vsel %vm6786_vm7, %v1289_v46, %v1290_v61  ;;  %v3644_v37 = vsel %vm6560_vm4, %v3639_v9, %v7314_v35  ;;  %v5431_v30 = vld [vmem:[%s6534_s25 + $0x54] sm:$0xf]  ;;  %v7401_v24 = vld [vmem:[%s6534_s25 + $0x58] sm:$0xf]  ;;  %v7406_v61 = vld [vmem:[%s6534_s25 + $0x90] sm:$0xe] }
  0xcb   : > { %v7397_v12 = vsel %vm6786_vm7, %v5102_v25, %v1294_v6  ;;  %v3658_v50 = vrot.slane %v3656_v8, 4  ;;  %v3661_v52 = vrot.slane %v3659_v43, 5  ;;  %v3671_v46 = vrot.slane %v3669_v38, 4 }
  0xcc   : > { %6002 = vmatmul.mubr.msk.bf16.gmra.mrb[12].mxu0 %vm658_vm3, %v6389_v33  ;;  %v8368_v33 = vcombine.low %v7150_v0, %v7169_v23  ;;  %v6444_v0 = vld [vmem:[%s6534_s25 + $0x8c] sm:$0x1]  ;;  %v3654_v36 = vsel %vm6560_vm4, %v3649_v16, %v3653_v5  ;;  %v3704_v25 = vshrl.u32 %v5431_v30, 16  ;;  %v3707_v8 = vshll.u32 %v5431_v30, 16 }
  0xcd   : > { %5848 = vmatmul.mubr.msk.bf16.gmra.mrb[28].mxu1 %vm658_vm3, %v8367_v62  ;;  %6005 = vmatprep.mubr.msk.bf16.mxu0 %vm658_vm3, %v6390_v48  ;;  %v3665_v48 = vshll.u32 %v7347_v7, 16  ;;  %v1297_v23 = vrot.slane %v6444_v0, 5  ;;  %v5428_v62 = vld [vmem:[%s6534_s25 + $0x48] sm:$0xf]  ;;  %v7390_v0 = vld [vmem:[%s6534_s25 + $0x4c] sm:$0xf]  ;;  %v8370_v38 = vcombine.low %v7154_v29, %v7158_v53  ;;  %v7424_v16 = vcombine.low %v3620_v31, %v3630_v26 }
  0xce   : > { %5853 = vmatprep.mubr.msk.bf16.mxu1 %vm658_vm3, %v8368_v33  ;;  %v7387_v33 = vld [vmem:[%s6534_s25 + $0x44] sm:$0x1]  ;;  %v3680_v27 = vshrl.u32 %v5428_v62, 16  ;;  %v3683_v15 = vshll.u32 %v5428_v62, 16  ;;  %v3689_v6 = vshll.u32 %v7390_v0, 16  ;;  %v3693_v9 = vshrl.u32 %v7390_v0, 16 }
  0xcf   : > { %8369 = vst [vmem:[#allocation8_spill] sm:$0xff] %v7387_v33  ;;  %v7403_v28 = vrot.slane %v3665_v48, 5  ;;  %v7412_v35 = vsel %vm6786_vm7, %v1296_v54, %v1297_v23  ;;  %v3713_v43 = vshll.u32 %v7401_v24, 16  ;;  %v3717_v48 = vshrl.u32 %v7401_v24, 16  ;;  %v5434_v31 = vld [vmem:[%s6534_s25 + $0x60] sm:$0xf] }
  0xd0   : > { %v3675_v5 = vshll.u32 %v7387_v33, 16  ;;  %v5103_v54 = vrot.slane %v7406_v61, 9  ;;  %v8371_v23 = vcombine.low %v7195_v34, %v7211_v4  ;;  %v7435_v29 = vcombine.low %v3644_v37, %v3654_v36  ;;  %v6393_v26 = vld [vmem:[%s6534_s25 + $0x9c] sm:$0xff]   ;;  %v6394_v30 = vld [vmem:[%s6534_s25 + $0xa8] sm:$0xff]  }
  0xd1   : > { %v3662_v53 = vor.u32 %v3661_v52, %v3658_v50  ;;  %v3682_v62 = vrot.slane %v3680_v27, 4  ;;  %v7446_v34 = vrot.slane %v3689_v6, 5  ;;  %v3695_v4 = vrot.slane %v3693_v9, 4  ;;  %v6445_v36 = vld [vmem:[%s8339_s1 + $0x8] sm:$0x3] }
  0xd2   : > { %v3706_v27 = vrot.slane %v3704_v25, 4  ;;  %v3709_v37 = vrot.slane %v3707_v8, 5  ;;  %v7455_v50 = vrot.slane %v3713_v43, 5  ;;  %v3719_v52 = vrot.slane %v3717_v48, 4  ;;  %v6446_v6 = vld [vmem:[%s6534_s25 + $0x94] sm:$0xf] }
  0xd3   : > { %v7461_v9 = vld [vmem:[%s6534_s25 + $0x64] sm:$0xf]  ;;  %v3728_v61 = vshrl.u32 %v5434_v31, 16  ;;  %v7463_v22 = vrot.slane %v3662_v53, 4  ;;  %v1308_v25 = vrot.slane %v6448_v18, 5  ;;  %v3696_v43 = vor.u32 %v3695_v4, %v7446_v34 }
  0xd4   : > { %6006 = vmatmul.mubr.msk.bf16.gmra.mrb[16].mxu0 %vm658_vm3, %v6391_v10  ;;  %8372 = vst [vmem:[#allocation9_spill] sm:$0xff] %v7461_v9  ;;  %v3731_v10 = vshll.u32 %v5434_v31, 16  ;;  %v3710_v31 = vor.u32 %v3709_v37, %v3706_v27  ;;  %v3720_v53 = vor.u32 %v3719_v52, %v7455_v50  ;;  %v8373_v18 = vcombine.low %v7202_v19, %v7215_v58  ;;  %v6395_v37 = vld [vmem:[%s6534_s25 + $0xb4] sm:$0xff]  }
  0xd5   : > { %5854 = vmatmul.mubr.msk.bf16.vlgmr.msra.gmra.mrb[0].mxu1 %vm658_vm3, %v8370_v38  ;;  %6009 = vmatprep.mubr.msk.bf16.mxu0 %vm658_vm3, %v6392_v21  ;;  %v3685_v21 = vrot.slane %v3683_v15, 5  ;;  %v7444_v38 = vld [vmem:[%s6534_s25 + $0x50] sm:$0x1]  ;;  %v7453_v15 = vld [vmem:[%s6534_s25 + $0x5c] sm:$0x1]  ;;  %v8374_v27 = vcombine.low %v7220_v2, %v7224_v1  ;;  %v1310_v52 = vrot.slane %v1308_v25, 4 }
  0xd6   : > { %5886 = vmatpush3.bf16.msra.mxu1 %v7191_v49  ;;  %5857 = vmatprep.mubr.msk.bf16.mxu1 %vm658_vm3, %v8371_v23  ;;  %v3672_v49 = vor.u32 %v3671_v46, %v7403_v28  ;;  %v7457_v46 = vrot.slane %v3675_v5, 5  ;;  %v1301_v23 = vrot.slane %v6446_v6, 5  ;;  %v3699_v48 = vshll.u32 %v7444_v38, 16  ;;  %v1177_v5 = vld [vmem:[%s6534_s25 + $0x9c] sm:$0xe] }
  0xd7   : > { %6352 = vmatprep.subr.msk.bf16.mxu1 %vm707_vm0, %v6445_v36  ;;  %v6447_v36 = vld [vmem:[%s6534_s25 + $0x98] sm:$0x1]  ;;  %v3686_v7 = vor.u32 %v3685_v21, %v3682_v62  ;;  %v3723_v6 = vshll.u32 %v7453_v15, 16  ;;  %v3741_v62 = vshrl.u32 %v7461_v9, 16  ;;  %v3733_v4 = vrot.slane %v3731_v10, 5 }
  0xd8   : > { %v1304_v33 = vrot.slane %v6447_v36, 5  ;;  %v3673_v8 = vrot.slane %v3672_v49, 4  ;;  %v3737_v36 = vshll.u32 %v7461_v9, 16  ;;  %v7482_v21 = vsel %vm6786_vm7, %v5103_v54, %v1301_v23  ;;  %v7493_v2 = vld [vmem:[%s6534_s25 + $0x68] sm:$0x1] }
  0xd9   : > { %v3730_v49 = vrot.slane %v3728_v61, 4  ;;  %v3687_v19 = vrot.slane %v3686_v7, 4  ;;  %v5104_v58 = vrot.slane %v1177_v5, 9  ;;  %v3697_v3 = vrot.slane %v3696_v43, 4  ;;  %8375 = vst [vmem:[#allocation10_spill] sm:$0xff] %v7493_v2  ;;  %v6396_v5 = vld [vmem:[%s6534_s25 + $0xc0] sm:$0xff]  }
  0xda   : > { %v3701_v54 = vrot.slane %v3699_v48, 5  ;;  %v3725_v63 = vrot.slane %v3723_v6, 5  ;;  %v1315_v61 = vrot.slane %v6928_v56, 5  ;;  %v3711_v10 = vrot.slane %v3710_v31, 4  ;;  %v1179_v31 = vld [vmem:[%s6534_s25 + $0xb4] sm:$0xe] }
  0xdb   : > { %v3721_v51 = vrot.slane %v3720_v53, 4  ;;  %v7495_v1 = vrot.slane %v3737_v36, 5  ;;  %v3743_v7 = vrot.slane %v3741_v62, 4  ;;  %v3668_v43 = vsel %vm6560_vm4, %v7463_v22, %v7403_v28  ;;  %v6450_v62 = vld [vmem:[%s6534_s25 + $0xb0] sm:$0x1] }
  0xdc   : > { %6010 = vmatmul.mubr.msk.bf16.gmra.mrb[20].mxu0 %vm658_vm3, %v6393_v26  ;;  %v1303_v26 = vrot.slane %v1301_v23, 4  ;;  %v1178_v23 = vld [vmem:[%s6534_s25 + $0xa8] sm:$0xe]  ;;  %v3678_v48 = vsel %vm6560_vm4, %v3673_v8, %v7457_v46  ;;  %v3734_v6 = vor.u32 %v3733_v4, %v3730_v49  ;;  %v3692_v53 = vsel %vm6560_vm4, %v3687_v19, %v7446_v34  ;;  %v5437_v46 = vld [vmem:[%s6534_s25 + $0x6c] sm:$0xf] }
  0xdd   : > { %5858 = vmatmul.mubr.msk.bf16.gmra.mrb[4].mxu1 %vm658_vm3, %v8373_v18  ;;  %6013 = vmatprep.mubr.msk.bf16.mxu0 %vm658_vm3, %v6394_v30  ;;  %v6449_v18 = vld [vmem:[%s6534_s25 + $0xa4] sm:$0x1]  ;;  %v7515_v36 = vsel %vm6786_vm7, %v5104_v58, %v1308_v25  ;;  %v5105_v28 = vrot.slane %v1178_v23, 9  ;;  %v1317_v8 = vrot.slane %v1315_v61, 4  ;;  %v3747_v49 = vshll.u32 %v7493_v2, 16 }
  0xde   : > { %5861 = vmatprep.mubr.msk.bf16.mxu1 %vm658_vm3, %v8374_v27  ;;  %v1311_v30 = vrot.slane %v6449_v18, 5  ;;  %v7507_v56 = vsel %vm6786_vm7, %v1303_v26, %v1304_v33  ;;  %v3702_v33 = vsel %vm6560_vm4, %v3697_v3, %v3701_v54  ;;  %v1318_v26 = vrot.slane %v6450_v62, 5  ;;  %v5440_v18 = vld [vmem:[%s6534_s25 + $0x78] sm:$0xf]  ;;  %v7570_v54 = vld [vmem:[%s6534_s25 + $0xbc] sm:$0x1] }
  0xdf   : > { %v3716_v34 = vsel %vm6560_vm4, %v3711_v10, %v7455_v50  ;;  %v3726_v25 = vsel %vm6560_vm4, %v3721_v51, %v3725_v63  ;;  %v3744_v4 = vor.u32 %v3743_v7, %v7495_v1  ;;  %v5106_v27 = vrot.slane %v1179_v31, 9  ;;  %v7544_v51 = vld [vmem:[%s6534_s25 + $0x70] sm:$0xf]  ;;  %v7574_v10 = vld [vmem:[%s6534_s25 + $0x7c] sm:$0xf] }
  0xe0   : > { %v7519_v22 = vsel %vm6786_vm7, %v1310_v52, %v1311_v30  ;;  %v8377_v3 = vcombine.low %v7237_v45, %v7241_v59  ;;  %v7540_v19 = vrot.slane %v3734_v6, 4  ;;  %v1322_v50 = vrot.slane %v6952_v42, 5  ;;  %8378 = vst [vmem:[#allocation12_spill] sm:$0xff] %v7544_v51  ;;  %8380 = vst [vmem:[#allocation13_spill] sm:$0xff] %v7574_v10  ;;  %v5443_v7 = vld [vmem:[%s6534_s25 + $0x84] sm:$0xf] }
  0xe1   : > { %8376 = vst [vmem:[#allocation11_spill] sm:$0xff] %v7519_v22  ;;  %v3752_v63 = vshrl.u32 %v5437_v46, 16  ;;  %v8379_v45 = vcombine.low %v7245_v47, %v7272_v41  ;;  %v7552_v58 = vcombine.low %v3692_v53, %v3702_v33  ;;  %v7558_v42 = vsel %vm6786_vm7, %v5105_v28, %v1315_v61  ;;  %v6397_v61 = vld [vmem:[%s6534_s25 + $0xcc] sm:$0xff]   ;;  %v7586_v31 = vld [vmem:[%s6534_s25 + $0x88] sm:$0xf] }
  0xe2   : > { %v7561_v30 = vcombine.low %v3716_v34, %v3726_v25  ;;  %v7565_v47 = vsel %vm6786_vm7, %v1317_v8, %v1318_v26  ;;  %v7567_v41 = vrot.slane %v3747_v49, 5  ;;  %v3761_v6 = vshll.u32 %v7544_v51, 16  ;;  %8381 = vst [vmem:[#allocation14_spill] sm:$0xff] %v7586_v31  ;;  %v5446_v62 = vld [vmem:[%s6534_s25 + $0x90] sm:$0xf] }
  0xe3   : > { %v7592_v28 = vrot.slane %v1322_v50, 4  ;;  %v7594_v33 = vrot.slane %v3752_v63, 4  ;;  %v3765_v8 = vshrl.u32 %v7544_v51, 16  ;;  %v3776_v26 = vshrl.u32 %v5440_v18, 16  ;;  %v7601_v25 = vld [vmem:[%s6534_s25 + $0x94] sm:$0xf] }
  0xe4   : > { %6014 = vmatmul.mubr.msk.bf16.gmra.mrb[24].mxu0 %vm658_vm3, %v6395_v37  ;;  %v7538_v37 = vcombine.low %v3668_v43, %v3678_v48  ;;  %v7582_v43 = vsel %vm6786_vm7, %v5106_v27, %v1322_v50  ;;  %v3755_v48 = vshll.u32 %v5437_v46, 16  ;;  %v3779_v49 = vshll.u32 %v5440_v18, 16  ;;  %8382 = vst [vmem:[#allocation15_spill] sm:$0xff] %v7601_v25  ;;  %v7639_v2 = vld [vmem:[%s6534_s25 + $0x8c] sm:$0x1] }
  0xe5   : > { %5862 = vmatmul.mubr.msk.bf16.gmra.mrb[8].mxu1 %vm658_vm3, %v8377_v3  ;;  %6017 = vmatprep.mubr.msk.bf16.mxu0 %vm658_vm3, %v6396_v5  ;;  %v7578_v5 = vrot.slane %v3744_v4, 4  ;;  %v3785_v46 = vshll.u32 %v7574_v10, 16  ;;  %v3789_v34 = vshrl.u32 %v7574_v10, 16  ;;  %v3800_v4 = vshrl.u32 %v5443_v7, 16 }
  0xe6   : > { %5865 = vmatprep.mubr.msk.bf16.mxu1 %vm658_vm3, %v8379_v45  ;;  %v3803_v27 = vshll.u32 %v5443_v7, 16  ;;  %v3809_v3 = vshll.u32 %v7586_v31, 16  ;;  %v3813_v50 = vshrl.u32 %v7586_v31, 16  ;;  %v7611_v45 = vld [vmem:[%s6534_s25 + $0x74] sm:$0x1]  ;;  %v3757_v18 = vrot.slane %v3755_v48, 5 }
  0xe7   : > { %v3824_v52 = vshrl.u32 %v5446_v62, 16  ;;  %v3827_v53 = vshll.u32 %v5446_v62, 16  ;;  %v8383_v7 = vcombine.low %v7256_v60, %v7281_v44  ;;  %v3767_v59 = vrot.slane %v3765_v8, 4  ;;  %v5449_v48 = vld [vmem:[%s6534_s25 + $0x9c] sm:$0xf] }
  0xe8   : > { %v3833_v63 = vshll.u32 %v7601_v25, 16  ;;  %v3837_v23 = vshrl.u32 %v7601_v25, 16  ;;  %v8384_v62 = vcombine.low %v7296_v17, %v7300_v57  ;;  %v7629_v44 = vld [vmem:[%s6534_s25 + $0x80] sm:$0x1]  ;;  %v3778_v60 = vrot.slane %v3776_v26, 4 }
  0xe9   : > { %8385 = vst [vmem:[#allocation16_spill] sm:$0xff] %v7629_v44  ;;  %v3802_v31 = vrot.slane %v3800_v4, 4  ;;  %v3805_v8 = vrot.slane %v3803_v27, 5  ;;  %v7633_v10 = vrot.slane %v3809_v3, 5  ;;  %v3815_v51 = vrot.slane %v3813_v50, 4 }
  0xea   : > { %v7636_v25 = vld [vmem:[%s6534_s25 + $0xa0] sm:$0xf]  ;;  %v3826_v17 = vrot.slane %v3824_v52, 4  ;;  %v3829_v57 = vrot.slane %v3827_v53, 5  ;;  %v3851_v9 = vshll.u32 %v5449_v48, 16  ;;  %v3758_v26 = vor.u32 %v3757_v18, %v7594_v33 }
  0xeb   : > { %v3795_v27 = vshll.u32 %v7629_v44, 16  ;;  %v7648_v3 = vld [vmem:[%s6534_s25 + $0x98] sm:$0x1]  ;;  %v3857_v50 = vshll.u32 %v7636_v25, 16  ;;  %v3861_v52 = vshrl.u32 %v7636_v25, 16  ;;  %v3806_v22 = vor.u32 %v3805_v8, %v3802_v31 }
  0xec   : > { %6018 = vmatmul.mubr.msk.bf16.gmra.mrb[28].mxu0 %vm658_vm3, %v6397_v61  ;;  %v7619_v61 = vrot.slane %v3761_v6, 5  ;;  %v3791_v6 = vrot.slane %v3789_v34, 4  ;;  %v3839_v34 = vrot.slane %v3837_v23, 4  ;;  %v3819_v33 = vshll.u32 %v7639_v2, 16 }
  0xed   : > { %5866 = vmatmul.mubr.msk.bf16.gmra.mrb[12].mxu1 %vm658_vm3, %v8383_v7  ;;  %6023 = vmatprep.mubr.msk.bf16.mxu0 %vm658_vm3, %v7361_v20  ;;  %v3781_v7 = vrot.slane %v3779_v49, 5  ;;  %v7631_v20 = vrot.slane %v3785_v46, 5  ;;  %v3771_v49 = vshll.u32 %v7611_v45, 16  ;;  %v7643_v46 = vrot.slane %v3833_v63, 5 }
  0xee   : > { %5869 = vmatprep.mubr.msk.bf16.mxu1 %vm658_vm3, %v8384_v62  ;;  %v3848_v62 = vshrl.u32 %v5449_v48, 16  ;;  %v3768_v4 = vor.u32 %v3767_v59, %v7619_v61  ;;  %v3816_v23 = vor.u32 %v3815_v51, %v7633_v10  ;;  %v3830_v59 = vor.u32 %v3829_v57, %v3826_v17  ;;  %v7681_v57 = vld [vmem:[%s6534_s25 + $0xa4] sm:$0x1] }
  0xef   : > { %v3782_v53 = vor.u32 %v3781_v7, %v3778_v60  ;;  %v3792_v48 = vor.u32 %v3791_v6, %v7631_v20  ;;  %v3853_v18 = vrot.slane %v3851_v9, 5  ;;  %v8386_v44 = vcombine.low %v7308_v11, %v7312_v40 }
  0xf0   : > { %v3850_v63 = vrot.slane %v3848_v62, 4  ;;  %v8387_v31 = vrot.slane %v7570_v54, 5  ;;  %v3773_v51 = vrot.slane %v3771_v49, 5  ;;  %v3840_v60 = vor.u32 %v3839_v34, %v7643_v46  ;;  %v7684_v34 = vld [vmem:[%s6534_s25 + $0xac] sm:$0xf] }
  0xf1   : > { %v3843_v9 = vshll.u32 %v7648_v3, 16  ;;  %v8388_v11 = vcombine.low %v7380_v39, %v7384_v55  ;;  %v3759_v40 = vrot.slane %v3758_v26, 4  ;;  %v7677_v54 = vrot.slane %v3857_v50, 5 }
  0xf2   : > { %v3783_v7 = vrot.slane %v3782_v53, 4  ;;  %v3793_v6 = vrot.slane %v3792_v48, 4  ;;  %v3797_v8 = vrot.slane %v3795_v27, 5  ;;  %v3821_v17 = vrot.slane %v3819_v33, 5  ;;  %v7694_v48 = vld [vmem:[%s6534_s25 + $0xb0] sm:$0x1] }
  0xf3   : > { %v3807_v39 = vrot.slane %v3806_v22, 4  ;;  %v3817_v55 = vrot.slane %v3816_v23, 4  ;;  %v3831_v62 = vrot.slane %v3830_v59, 4  ;;  %v3854_v49 = vor.u32 %v3853_v18, %v3850_v63 }
  0xf4   : > { %6024 = vmatmul.mubr.msk.bf16.vlgmr.msra.gmra.mrb[0].mxu0 %vm658_vm3, %v7424_v16  ;;  %v7667_v16 = vsel %vm6786_vm7, %v7592_v28, %v8387_v31  ;;  %v3863_v28 = vrot.slane %v3861_v52, 4  ;;  %v3845_v26 = vrot.slane %v3843_v9, 5  ;;  %v3764_v52 = vsel %vm6560_vm4, %v3759_v40, %v7619_v61 }
  0xf5   : > { %5870 = vmatmul.mubr.msk.bf16.gmra.mrb[16].mxu1 %vm658_vm3, %v8386_v44  ;;  %6056 = vmatpush3.bf16.msra.mxu0 %v7365_v14  ;;  %v3769_v14 = vrot.slane %v3768_v4, 4  ;;  %v5452_v44 = vld [vmem:[%s6534_s25 + $0xa8] sm:$0xf]  ;;  %v3867_v22 = vshll.u32 %v7681_v57, 16  ;;  %v3788_v33 = vsel %vm6560_vm4, %v3783_v7, %v7631_v20  ;;  %v3798_v23 = vsel %vm6560_vm4, %v3793_v6, %v3797_v8 }
  0xf6   : > { %5873 = vmatprep.mubr.msk.bf16.mxu1 %vm658_vm3, %v8388_v11  ;;  %6027 = vmatprep.mubr.msk.bf16.mxu0 %vm658_vm3, %v7435_v29  ;;  %v3841_v29 = vrot.slane %v3840_v60, 4  ;;  %v3872_v4 = vshrl.u32 %v5452_v44, 16  ;;  %v3875_v50 = vshll.u32 %v5452_v44, 16  ;;  %v3864_v53 = vor.u32 %v3863_v28, %v7677_v54  ;;  %v5501_v11 = vld [vmem:[%s6534_s25 + $0x48] sm:$0xe] }
  0xf7   : > { %v3774_v27 = vsel %vm6560_vm4, %v3769_v14, %v3773_v51  ;;  %v3881_v59 = vshll.u32 %v7684_v34, 16  ;;  %v3885_v61 = vshrl.u32 %v7684_v34, 16  ;;  %v3812_v63 = vsel %vm6560_vm4, %v3807_v39, %v7633_v10  ;;  %v7759_v39 = vld [vmem:[%s6534_s25 + $0xb8] sm:$0xf] }
  0xf8   : > { %v3822_v18 = vsel %vm6560_vm4, %v3817_v55, %v3821_v17  ;;  %v3836_v20 = vsel %vm6560_vm4, %v3831_v62, %v7643_v46  ;;  %v3855_v31 = vrot.slane %v3854_v49, 4  ;;  %v8389_v51 = vcombine.low %v7397_v12, %v7412_v35 }
  0xf9   : > { %v3874_v10 = vrot.slane %v3872_v4, 4  ;;  %v3877_v60 = vrot.slane %v3875_v50, 5  ;;  %v3891_v9 = vshll.u32 %v7694_v48, 16  ;;  %v8390_v46 = vcombine.low %v7482_v21, %v7507_v56  ;;  %v5455_v21 = vld [vmem:[%s6534_s25 + $0xb4] sm:$0xf] }
  0xfa   : > { %v5122_v12 = vcombine.low %v7558_v42, %v7565_v47  ;;  %v8391_v35 = vsel %vm6560_vm4, %v7578_v5, %v7567_v41  ;;  %v3865_v14 = vrot.slane %v3864_v53, 4  ;;  %v3869_v28 = vrot.slane %v3867_v22, 5  ;;  %v5503_v4 = vld [vmem:[%s6534_s25 + $0x60] sm:$0xe]  ;;  %v5504_v53 = vld [vmem:[%s6534_s25 + $0x6c] sm:$0xe] }
  0xfb   : > { %v5123_v56 = vcombine.low %v7582_v43, %v7667_v16  ;;  %v7742_v44 = vcombine.low %v3764_v52, %v3774_v27  ;;  %v7744_v42 = vrot.slane %v3881_v59, 5  ;;  %v3887_v47 = vrot.slane %v3885_v61, 4  ;;  %v8400_v16 = vld [vmem:[#allocation4_spill] sm:$0xff] }
  0xfc   : > { %6028 = vmatmul.mubr.msk.bf16.gmra.mrb[4].mxu0 %vm658_vm3, %v7538_v37  ;;  %v3846_v37 = vsel %vm6560_vm4, %v3841_v29, %v3845_v26  ;;  %v7746_v41 = vcombine.low %v3788_v33, %v3798_v23  ;;  %v7748_v5 = vcombine.low %v3812_v63, %v3822_v18  ;;  %v3860_v6 = vsel %vm6560_vm4, %v3855_v31, %v7677_v54  ;;  %v8393_v23 = vld [vmem:[#allocation11_spill] sm:$0xff]  ;;  %v5458_v63 = vld [vmem:[%s6534_s25 + $0xc0] sm:$0xf]  ;;  %v8395_v18 = vld [vmem:[#allocation9_spill] sm:$0xff] }
  0xfd   : > { %5874 = vmatmul.mubr.msk.bf16.gmra.mrb[20].mxu1 %vm658_vm3, %v8389_v51  ;;  %6031 = vmatprep.mubr.msk.bf16.mxu0 %vm658_vm3, %v7552_v58  ;;  %v8392_v58 = vsel %vm6560_vm4, %v7540_v19, %v7495_v1  ;;  %v7750_v7 = vcombine.low %v3836_v20, %v3846_v37  ;;  %v5517_v1 = vrot.slane %v5501_v11, 9  ;;  %v5502_v19 = vld [vmem:[%s6534_s25 + $0x54] sm:$0xe]  ;;  %v3878_v8 = vor.u32 %v3877_v60, %v3874_v10  ;;  %v8396_v31 = vld [vmem:[#allocation10_spill] sm:$0xff] }
  0xfe   : > { %5877 = vmatprep.mubr.msk.bf16.mxu1 %vm658_vm3, %v8390_v46  ;;  %v5471_v40 = vcombine.low %v8392_v58, %v8391_v35  ;;  %v7756_v17 = vrot.slane %v3891_v9, 5  ;;  %v3896_v55 = vshrl.u32 %v5455_v21, 16  ;;  %v3870_v62 = vsel %vm6560_vm4, %v3865_v14, %v3869_v28  ;;  %v8397_v9 = vld [vmem:[#allocation12_spill] sm:$0xff]  ;;  %v7808_v35 = vld [vmem:[%s6534_s25 + $0xbc] sm:$0x1] }
  0xff   : > { %v3899_v49 = vshll.u32 %v5455_v21, 16  ;;  %v4355_v29 = vrot.slane %v7390_v0, 5  ;;  %v4358_v26 = vrot.slane %v7444_v38, 5  ;;  %v3888_v50 = vor.u32 %v3887_v47, %v7744_v42  ;;  %v7811_v58 = vld [vmem:[%s6534_s25 + $0xc4] sm:$0xf] }
 0x100   : > { %v5518_v52 = vrot.slane %v5502_v19, 9  ;;  %v4362_v54 = vrot.slane %v7401_v24, 5  ;;  %v4365_v27 = vrot.slane %v7453_v15, 5  ;;  %v3905_v22 = vshll.u32 %v7759_v39, 16  ;;  %v5505_v19 = vld [vmem:[%s6534_s25 + $0x78] sm:$0xe] }
 0x101   : > { %v3909_v33 = vshrl.u32 %v7759_v39, 16  ;;  %v7776_v0 = vsel %vm6786_vm7, %v5517_v1, %v4355_v29  ;;  %v4357_v38 = vrot.slane %v4355_v29, 4  ;;  %v8394_v59 = vcombine.low %v7515_v36, %v8393_v23  ;;  %v8398_v23 = vld [vmem:[#allocation13_spill] sm:$0xff] }
 0x102   : > { %v7783_v24 = vcombine.low %v3860_v6, %v3870_v62  ;;  %v7787_v15 = vsel %vm6786_vm7, %v5518_v52, %v4362_v54  ;;  %v5519_v61 = vrot.slane %v5503_v4, 9  ;;  %v4369_v20 = vrot.slane %v8395_v18, 5  ;;  %v6398_v6 = vld [vmem:[%s6534_s25 + $0xc] sm:$0xff]  }
 0x103   : > { %v7793_v36 = vsel %vm6786_vm7, %v4357_v38, %v4358_v26  ;;  %v4372_v51 = vrot.slane %v8396_v31, 5  ;;  %v5520_v37 = vrot.slane %v5504_v53, 9  ;;  %v4376_v11 = vrot.slane %v8397_v9, 5 }
 0x104   : > { %6032 = vmatmul.mubr.msk.bf16.gmra.mrb[8].mxu0 %vm658_vm3, %v7561_v30  ;;  %v4364_v30 = vrot.slane %v4362_v54, 4  ;;  %v5534_v10 = vcombine.low %v7776_v0, %v7793_v36  ;;  %v4379_v46 = vrot.slane %v7611_v45, 5  ;;  %v7817_v14 = vsel %vm6786_vm7, %v5519_v61, %v4369_v20 }
 0x105   : > { %5878 = vmatmul.mubr.msk.bf16.gmra.mrb[24].mxu1 %vm658_vm3, %v8394_v59  ;;  %6035 = vmatprep.mubr.msk.bf16.mxu0 %vm658_vm3, %v5471_v40  ;;  %v4371_v28 = vrot.slane %v4369_v20, 4  ;;  %v7819_v21 = vrot.slane %v3896_v55, 4  ;;  %v3920_v47 = vshrl.u32 %v5458_v63, 16  ;;  %v7823_v45 = vsel %vm6786_vm7, %v5520_v37, %v4376_v11  ;;  %v5232_v55 = vld [vmem:[%s6534_s25 + $0x78] sm:$0xf]  ;;  %v8399_v59 = vld [vmem:[#allocation16_spill] sm:$0xff] }
 0x106   : > { %5881 = vmatprep.mubr.msk.bf16.mxu1 %vm658_vm3, %v5122_v12  ;;  %v7801_v60 = vsel %vm6786_vm7, %v4364_v30, %v4365_v27  ;;  %v7805_v12 = vrot.slane %v3878_v8, 4  ;;  %v4378_v1 = vrot.slane %v4376_v11, 4  ;;  %v7827_v8 = vrot.slane %v3888_v50, 4 }
 0x107   : > { %v5535_v40 = vcombine.low %v7787_v15, %v7801_v60  ;;  %v7829_v62 = vrot.slane %v3899_v49, 5  ;;  %v3923_v29 = vshll.u32 %v5458_v63, 16  ;;  %v7833_v26 = vsel %vm6786_vm7, %v4371_v28, %v4372_v51  ;;  %v8402_v28 = vld [vmem:[#allocation14_spill] sm:$0xff] }
 0x108   : > { %v7836_v4 = vrot.slane %v3905_v22, 5  ;;  %v7838_v52 = vrot.slane %v3909_v33, 4  ;;  %v5536_v54 = vcombine.low %v7817_v14, %v7833_v26  ;;  %v7844_v27 = vsel %vm6786_vm7, %v4378_v1, %v4379_v46  ;;  %v5506_v33 = vld [vmem:[%s6534_s25 + $0x84] sm:$0xe]  ;;  %v6399_v1 = vld [vmem:[%s6534_s25 + $0x18] sm:$0xff]  }
 0x109   : > { %v3915_v49 = vshll.u32 %v7808_v35, 16  ;;  %v3929_v50 = vshll.u32 %v7811_v58, 16  ;;  %v5537_v53 = vcombine.low %v7823_v45, %v7844_v27  ;;  %v5521_v22 = vrot.slane %v5505_v19, 9  ;;  %v6461_v60 = vld [vmem:[%s6534_s25 + $0xa0] sm:$0xf] }
 0x10a   : > { %v3922_v38 = vrot.slane %v3920_v47, 4  ;;  %v4386_v30 = vrot.slane %v8399_v59, 5  ;;  %v2245_v61 = vshrl.u32 %v5232_v55, 16  ;;  %v3925_v63 = vrot.slane %v3923_v29, 5  ;;  %v5461_v29 = vld [vmem:[%s6534_s25 + $0xcc] sm:$0xf] }
 0x10b   : > { %v3933_v18 = vshrl.u32 %v7811_v58, 16  ;;  %v2248_v43 = vshll.u32 %v5232_v55, 16  ;;  %v5522_v37 = vrot.slane %v5506_v33, 9  ;;  %v3884_v9 = vsel %vm6560_vm4, %v7805_v12, %v7744_v42  ;;  %v7887_v55 = vld [vmem:[%s6534_s25 + $0xd0] sm:$0xf] }
 0x10c   : > { %6036 = vmatmul.mubr.msk.bf16.gmra.mrb[12].mxu0 %vm658_vm3, %v7742_v44  ;;  %v4383_v44 = vrot.slane %v8398_v23, 5  ;;  %v2247_v51 = vrot.slane %v2245_v61, 4  ;;  %v3902_v11 = vor.u32 %v7829_v62, %v7819_v21  ;;  %v4390_v47 = vrot.slane %v8402_v28, 5  ;;  %v6400_v21 = vld [vmem:[%s6534_s25 + $0x24] sm:$0xff]   ;;  %v6465_v27 = vld [vmem:[%s6534_s25 + $0xac] sm:$0xf] }
 0x10d   : > { %5882 = vmatmul.mubr.msk.bf16.gmra.mrb[28].mxu1 %vm658_vm3, %v5123_v56  ;;  %6039 = vmatprep.mubr.msk.bf16.mxu0 %vm658_vm3, %v7746_v41  ;;  %v8401_v56 = vld [vmem:[#allocation5_spill] sm:$0xff]  ;;  %v2250_v46 = vrot.slane %v2248_v43, 5  ;;  %v3894_v19 = vsel %vm6560_vm4, %v7827_v8, %v7756_v17  ;;  %v4393_v12 = vrot.slane %v7639_v2, 5  ;;  %v7895_v62 = vrot.slane %v3929_v50, 5  ;;  %v5507_v8 = vld [vmem:[%s6534_s25 + $0x90] sm:$0xe] }
 0x10e   : > { %5887 = vmatprep.mubr.msk.bf16.mxu1 %vm658_vm3, %v6398_v6  ;;  %v2267_v41 = vsel %vm6560_vm4, %v8401_v56, %v8400_v16  ;;  %v7869_v20 = vsel %vm6786_vm7, %v5521_v22, %v4383_v44  ;;  %v4385_v31 = vrot.slane %v4383_v44, 4  ;;  %v3912_v6 = vor.u32 %v7838_v52, %v7836_v4  ;;  %v7901_v52 = vld [vmem:[%s6534_s25 + $0xc8] sm:$0x1]  ;;  %v8404_v16 = vld [vmem:[#allocation2_spill] sm:$0xff] }
 0x10f   : > { %v3935_v22 = vrot.slane %v3933_v18, 4  ;;  %v2251_v17 = vor.u32 %v2250_v46, %v2247_v51  ;;  %v3917_v23 = vrot.slane %v3915_v49, 5  ;;  %v3926_v44 = vor.u32 %v3925_v63, %v3922_v38  ;;  %v8405_v51 = vld [vmem:[#allocation3_spill] sm:$0xff] }
 0x110   : > { %v7891_v42 = vsel %vm6786_vm7, %v4385_v31, %v4386_v30  ;;  %v7905_v59 = vsel %vm6786_vm7, %v5522_v37, %v4390_v47  ;;  %v4392_v30 = vrot.slane %v4390_v47, 4  ;;  %v3944_v2 = vshrl.u32 %v5461_v29, 16 }
 0x111   : > { %v5538_v33 = vcombine.low %v7869_v20, %v7891_v42  ;;  %v3947_v50 = vshll.u32 %v5461_v29, 16  ;;  %v3953_v61 = vshll.u32 %v7887_v55, 16  ;;  %v2252_v18 = vrot.slane %v2251_v17, 4  ;;  %v6401_v29 = vld [vmem:[%s6534_s25 + $0x30] sm:$0xff]  }
 0x112   : > { %v3957_v49 = vshrl.u32 %v7887_v55, 16  ;;  %v7916_v38 = vsel %vm6786_vm7, %v4392_v30, %v4393_v12  ;;  %v5523_v63 = vrot.slane %v5507_v8, 9  ;;  %v3936_v56 = vor.u32 %v3935_v22, %v7895_v62 }
 0x113   : > { %v3939_v31 = vshll.u32 %v7901_v52, 16  ;;  %v5539_v37 = vcombine.low %v7905_v59, %v7916_v38  ;;  %v5477_v46 = vcombine.low %v3884_v9, %v3894_v19  ;;  %v3903_v28 = vrot.slane %v3902_v11, 4  ;;  %v5508_v11 = vld [vmem:[%s6534_s25 + $0x9c] sm:$0xe] }
 0x114   : > { %6040 = vmatmul.mubr.msk.bf16.gmra.mrb[16].mxu0 %vm658_vm3, %v7748_v5  ;;  %v8403_v5 = vld [vmem:[#allocation15_spill] sm:$0xff]  ;;  %v3913_v47 = vrot.slane %v3912_v6, 4  ;;  %v3927_v12 = vrot.slane %v3926_v44, 4  ;;  %v4400_v8 = vrot.slane %v7648_v3, 5  ;;  %v3946_v30 = vrot.slane %v3944_v2, 4  ;;  %v6402_v19 = vld [vmem:[%s6534_s25 + $0x3c] sm:$0xff]  }
 0x115   : > { %5888 = vmatmul.mubr.msk.bf16.vlgmr.msra.gmra.mrb[0].mxu1 %vm658_vm3, %v6399_v1  ;;  %6043 = vmatprep.mubr.msk.bf16.mxu0 %vm658_vm3, %v7750_v7  ;;  %v4397_v43 = vrot.slane %v8403_v5, 5  ;;  %v2257_v7 = vsel %vm6560_vm4, %v2252_v18, %v8405_v51  ;;  %v3949_v18 = vrot.slane %v3947_v50, 5  ;;  %v7939_v5 = vrot.slane %v3953_v61, 5 }
 0x116   : > { %6090 = vmatpush3.bf16.msra.mxu1 %v8404_v16  ;;  %5891 = vmatprep.mubr.msk.bf16.mxu1 %vm658_vm3, %v6400_v21  ;;  %v7928_v1 = vcombine.low %v2257_v7, %v2267_v41  ;;  %v7932_v21 = vld [vmem:[%s6534_s25 + $0xd4] sm:$0x1]  ;;  %v3959_v9 = vrot.slane %v3957_v49, 4  ;;  %v3937_v41 = vrot.slane %v3936_v56, 4  ;;  %v3941_v6 = vrot.slane %v3939_v31, 5 }
 0x117   : > { %v7936_v22 = vsel %vm6786_vm7, %v5523_v63, %v4397_v43  ;;  %v4399_v17 = vrot.slane %v4397_v43, 4  ;;  %v3908_v63 = vsel %vm6560_vm4, %v3903_v28, %v7836_v4  ;;  %v3918_v2 = vsel %vm6560_vm4, %v3913_v47, %v3917_v23  ;;  %v6452_v16 = vld [vmem:[%s6534_s25 + $0x1c] sm:$0xf]  ;;  %v5509_v28 = vld [vmem:[%s6534_s25 + $0xa8] sm:$0xe] }
 0x118   : > { %v3963_v50 = vshll.u32 %v7932_v21, 16  ;;  %v5524_v61 = vrot.slane %v5508_v11, 9  ;;  %v4404_v49 = vrot.slane %v7636_v25, 5  ;;  %v3932_v4 = vsel %vm6560_vm4, %v3927_v12, %v7895_v62  ;;  %v5497_v62 = vld [vmem:[%s6534_s25 + $0x18] sm:$0xe]  ;;  %v6403_v47 = vld [vmem:[%s6534_s25 + $0x48] sm:$0xff]  }
 0x119   : > { %v7945_v44 = vsel %vm6786_vm7, %v4399_v17, %v4400_v8  ;;  %v3960_v43 = vor.u32 %v3959_v9, %v7939_v5  ;;  %v4407_v23 = vrot.slane %v7681_v57, 5  ;;  %v3942_v25 = vsel %vm6560_vm4, %v3937_v41, %v3941_v6  ;;  %v6453_v11 = vld [vmem:[%s6534_s25 + $0x20] sm:$0x1] }
 0x11a   : > { %v5540_v3 = vcombine.low %v7936_v22, %v7945_v44  ;;  %v4327_v56 = vrot.slane %v6452_v16, 5  ;;  %v7971_v31 = vsel %vm6786_vm7, %v5524_v61, %v4404_v49  ;;  %v4406_v51 = vrot.slane %v4404_v49, 4  ;;  %v5510_v49 = vld [vmem:[%s6534_s25 + $0xb4] sm:$0xe] }
 0x11b   : > { %v5478_v7 = vcombine.low %v3908_v63, %v3918_v2  ;;  %v3961_v17 = vrot.slane %v3960_v43, 4  ;;  %v5525_v41 = vrot.slane %v5509_v28, 9  ;;  %v4411_v6 = vrot.slane %v7684_v34, 5  ;;  %v5498_v2 = vld [vmem:[%s6534_s25 + $0x24] sm:$0xe] }
 0x11c   : > { %6044 = vmatmul.mubr.msk.bf16.gmra.mrb[20].mxu0 %vm658_vm3, %v7783_v24  ;;  %v3950_v24 = vor.u32 %v3949_v18, %v3946_v30  ;;  %v7976_v57 = vsel %vm6786_vm7, %v4406_v51, %v4407_v23  ;;  %v6404_v30 = vld [vmem:[%s6534_s25 + $0x54] sm:$0xff]   ;;  %v5513_v18 = vrot.slane %v5497_v62, 9  ;;  %v4329_v9 = vrot.slane %v4327_v56, 4  ;;  %v6456_v28 = vld [vmem:[%s6534_s25 + $0x2c] sm:$0x1] }
 0x11d   : > { %5892 = vmatmul.mubr.msk.bf16.gmra.mrb[4].mxu1 %vm658_vm3, %v6401_v29  ;;  %6047 = vmatprep.mubr.msk.bf16.mxu0 %vm658_vm3, %v5477_v46  ;;  %v3965_v46 = vrot.slane %v3963_v50, 5  ;;  %v5479_v29 = vcombine.low %v3932_v4, %v3942_v25  ;;  %v5541_v8 = vcombine.low %v7971_v31, %v7976_v57  ;;  %v4414_v63 = vrot.slane %v7694_v48, 5  ;;  %v6454_v50 = vld [vmem:[%s6534_s25 + $0x28] sm:$0xf]  ;;  %v5499_v25 = vld [vmem:[%s6534_s25 + $0x30] sm:$0xe] }
 0x11e   : > { %5895 = vmatprep.mubr.msk.bf16.mxu1 %vm658_vm3, %v6402_v19  ;;  %v3951_v12 = vrot.slane %v3950_v24, 4  ;;  %v4330_v19 = vrot.slane %v6453_v11, 5  ;;  %v4334_v61 = vrot.slane %v6454_v50, 5  ;;  %v7999_v48 = vsel %vm6786_vm7, %v5525_v41, %v4411_v6  ;;  %v6406_v11 = vld [vmem:[%s6534_s25 + $0x6c] sm:$0xff]   ;;  %v8406_v41 = vld [vmem:[#allocation6_spill] sm:$0xff] }
 0x11f   : > { %v3966_v34 = vsel %vm6560_vm4, %v3961_v17, %v3965_v46  ;;  %v4413_v24 = vrot.slane %v4411_v6, 4  ;;  %v4328_v43 = vsel %vm6786_vm7, %v5513_v18, %v4327_v56  ;;  %v5514_v51 = vrot.slane %v5498_v2, 9  ;;  %v5511_v50 = vld [vmem:[%s6534_s25 + $0xc0] sm:$0xe]  ;;  %v6470_v31 = vld [vmem:[%s6534_s25 + $0xc8] sm:$0x1] }
 0x120   : > { %v3956_v4 = vsel %vm6560_vm4, %v3951_v12, %v7939_v5  ;;  %v4331_v23 = vsel %vm6786_vm7, %v4329_v9, %v4330_v19  ;;  %v6455_v5 = vld [vmem:[%s6534_s25 + $0x34] sm:$0xf]  ;;  %v6405_v12 = vld [vmem:[%s6534_s25 + $0x60] sm:$0xff]   ;;  %v5515_v18 = vrot.slane %v5499_v25, 9  ;;  %v4421_v9 = vrot.slane %v7808_v35, 5 }
 0x121   : > { %v4341_v16 = vrot.slane %v6455_v5, 5  ;;  %v8010_v62 = vsel %vm6786_vm7, %v4413_v24, %v4414_v63  ;;  %v5480_v46 = vcombine.low %v3956_v4, %v3966_v34  ;;  %v5530_v17 = vcombine.low %v4328_v43, %v4331_v23  ;;  %v5500_v24 = vld [vmem:[%s6534_s25 + $0x3c] sm:$0xe] }
 0x122   : > { %v5542_v56 = vcombine.low %v7999_v48, %v8010_v62  ;;  %v4344_v6 = vrot.slane %v8406_v41, 5  ;;  %v4335_v35 = vsel %vm6786_vm7, %v5514_v51, %v4334_v61  ;;  %v5527_v5 = vrot.slane %v5511_v50, 9 }
 0x123   : > { %v4343_v19 = vrot.slane %v4341_v16, 4  ;;  %v4342_v23 = vsel %vm6786_vm7, %v5515_v18, %v4341_v16  ;;  %v4428_v51 = vrot.slane %v7901_v52, 5  ;;  %v2408_v57 = vshll.u32 %v6470_v31, 16 }
 0x124   : > { %6048 = vmatmul.mubr.msk.bf16.gmra.mrb[24].mxu0 %vm658_vm3, %v5478_v7  ;;  %v5526_v7 = vrot.slane %v5510_v49, 9 }
 0x125   : > { %5896 = vmatmul.mubr.msk.bf16.gmra.mrb[8].mxu1 %vm658_vm3, %v6403_v47  ;;  %6051 = vmatprep.mubr.msk.bf16.mxu0 %vm658_vm3, %v5479_v29  ;;  %v4337_v47 = vrot.slane %v6456_v28, 5  ;;  %v4418_v29 = vrot.slane %v7759_v39, 5  ;;  %v8407_v39 = vld [vmem:[#allocation7_spill] sm:$0xff]  ;;  %v4345_v25 = vsel %vm6786_vm7, %v4343_v19, %v4344_v6  ;;  %v5516_v28 = vrot.slane %v5500_v24, 9 }
 0x126   : > { %5899 = vmatprep.mubr.msk.bf16.mxu1 %vm658_vm3, %v6404_v30  ;;  %v4336_v30 = vrot.slane %v4334_v61, 4  ;;  %v4348_v49 = vrot.slane %v8407_v39, 5  ;;  %v4425_v61 = vrot.slane %v7811_v58, 5  ;;  %v6457_v39 = vld [vmem:[%s6534_s25 + $0x70] sm:$0xf]  ;;  %v4432_v24 = vrot.slane %v7887_v55, 5 }
 0x127   : > { %v8022_v63 = vsel %vm6786_vm7, %v5526_v7, %v4418_v29  ;;  %v4420_v2 = vrot.slane %v4418_v29, 4  ;;  %v5229_v7 = vld [vmem:[%s6534_s25 + $0x6c] sm:$0xf]  ;;  %v8408_v29 = vld [vmem:[#allocation8_spill] sm:$0xff] }
 0x128   : > { %v4338_v34 = vsel %vm6786_vm7, %v4336_v30, %v4337_v47  ;;  %v4350_v47 = vrot.slane %v4348_v49, 4  ;;  %v6407_v30 = vld [vmem:[%s6534_s25 + $0x78] sm:$0xff]   ;;  %v8053_v16 = vsel %vm6786_vm7, %v5527_v5, %v4425_v61  ;;  %v4427_v18 = vrot.slane %v4425_v61, 4 }
 0x129   : > { %v8029_v4 = vsel %vm6786_vm7, %v4420_v2, %v4421_v9  ;;  %v5532_v9 = vcombine.low %v4342_v23, %v4345_v25  ;;  %v2221_v19 = vshrl.u32 %v5229_v7, 16  ;;  %v2224_v41 = vshll.u32 %v5229_v7, 16 }
 0x12a   : > { %v5543_v43 = vcombine.low %v8022_v63, %v8029_v4  ;;  %v8058_v58 = vsel %vm6786_vm7, %v4427_v18, %v4428_v51  ;;  %v4349_v6 = vsel %vm6786_vm7, %v5516_v28, %v4348_v49  ;;  %v4435_v49 = vrot.slane %v7932_v21, 5  ;;  %v6409_v51 = vld [vmem:[%s6534_s25 + $0x90] sm:$0xff]   ;;  %v6410_v21 = vld [vmem:[%s6534_s25 + $0x9c] sm:$0xff]  }
 0x12b   : > { %v5544_v50 = vcombine.low %v8053_v16, %v8058_v58  ;;  %v2223_v23 = vrot.slane %v2221_v19, 4  ;;  %v2226_v25 = vrot.slane %v2224_v41, 5  ;;  %v4434_v7 = vrot.slane %v4432_v24, 4 }
 0x12c   : > { %6052 = vmatmul.mubr.msk.bf16.gmra.mrb[28].mxu0 %vm658_vm3, %v5480_v46  ;;  %v5531_v46 = vcombine.low %v4335_v35, %v4338_v34  ;;  %v2230_v35 = vshll.u32 %v6457_v39, 16  ;;  %v2234_v34 = vshrl.u32 %v6457_v39, 16 }
 0x12d   : > { %5900 = vmatmul.mubr.msk.bf16.gmra.mrb[12].mxu1 %vm658_vm3, %v6405_v12  ;;  %6057 = vmatprep.mubr.msk.bf16.mxu0 %vm658_vm3, %v5530_v17  ;;  %v4351_v12 = vrot.slane %v8408_v29, 5  ;;  %v5512_v17 = vld [vmem:[%s6534_s25 + $0xcc] sm:$0xe]  ;;  %v8080_v55 = vsel %vm6786_vm7, %v4434_v7, %v4435_v49 }
 0x12e   : > { %5903 = vmatprep.mubr.msk.bf16.mxu1 %vm658_vm3, %v6406_v11  ;;  %v6408_v11 = vld [vmem:[%s6534_s25 + $0x84] sm:$0xff]   ;;  %v5528_v52 = vrot.slane %v5512_v17, 9  ;;  %v2236_v28 = vrot.slane %v2234_v34, 4  ;;  %v6458_v17 = vld [vmem:[%s6534_s25 + $0x74] sm:$0x1] }
 0x12f   : > { %v4352_v2 = vsel %vm6786_vm7, %v4350_v47, %v4351_v12  ;;  %v5235_v47 = vld [vmem:[%s6534_s25 + $0x84] sm:$0xf]  ;;  %v2227_v12 = vor.u32 %v2226_v25, %v2223_v23  ;;  %v6412_v34 = vld [vmem:[%s6534_s25 + $0xb4] sm:$0xff]  }
 0x130   : > { %v8075_v5 = vsel %vm6786_vm7, %v5528_v52, %v4432_v24  ;;  %v5533_v61 = vcombine.low %v4349_v6, %v4352_v2  ;;  %v2272_v18 = vshll.u32 %v5235_v47, 16  ;;  %v5238_v6 = vld [vmem:[%s6534_s25 + $0x90] sm:$0xf]  ;;  %v6411_v2 = vld [vmem:[%s6534_s25 + $0xa8] sm:$0xff]  }
 0x131   : > { %v5545_v29 = vcombine.low %v8075_v5, %v8080_v55  ;;  %v2228_v52 = vrot.slane %v2227_v12, 4  ;;  %v2293_v23 = vshrl.u32 %v5238_v6, 16  ;;  %v2296_v25 = vshll.u32 %v5238_v6, 16 }
 0x132   : > { %v2326_v12 = vshll.u32 %v6461_v60, 16 }
 0x133   : > { %v2298_v14 = vrot.slane %v2296_v25, 5  ;;  %v6464_v25 = vld [vmem:[%s6534_s25 + $0xa4] sm:$0x1] }
 0x134   : > { %6058 = vmatmul.mubr.msk.bf16.vlgmr.msra.gmra.mrb[0].mxu0 %vm658_vm3, %v5531_v46  ;;  %v2232_v46 = vrot.slane %v2230_v35, 5  ;;  %v5241_v35 = vld [vmem:[%s6534_s25 + $0x9c] sm:$0xf]  ;;  %v8122_v6 = vrot.slane %v2326_v12, 5 }
 0x135   : > { %5904 = vmatmul.mubr.msk.bf16.gmra.mrb[16].mxu1 %vm658_vm3, %v6407_v30  ;;  %6061 = vmatprep.mubr.msk.bf16.mxu0 %vm658_vm3, %v5532_v9  ;;  %v2240_v30 = vshll.u32 %v6458_v17, 16  ;;  %v2269_v9 = vshrl.u32 %v5235_v47, 16  ;;  %v2320_v47 = vshll.u32 %v5241_v35, 16  ;;  %v6462_v17 = vld [vmem:[%s6534_s25 + $0x8c] sm:$0x1] }
 0x136   : > { %5907 = vmatprep.mubr.msk.bf16.mxu1 %vm658_vm3, %v6408_v11  ;;  %v2237_v13 = vor.u32 %v2236_v28, %v2232_v46  ;;  %v6459_v11 = vld [vmem:[%s6534_s25 + $0x88] sm:$0xf]  ;;  %v2233_v7 = vsel %vm6560_vm4, %v2228_v52, %v2232_v46 }
 0x137   : > { %v2278_v19 = vshll.u32 %v6459_v11, 16  ;;  %v2282_v41 = vshrl.u32 %v6459_v11, 16  ;;  %v2242_v0 = vrot.slane %v2240_v30, 5  ;;  %v2271_v36 = vrot.slane %v2269_v9, 4 }
 0x138   : > { %v2238_v39 = vrot.slane %v2237_v13, 4  ;;  %v2288_v30 = vshll.u32 %v6462_v17, 16  ;;  %v2295_v9 = vrot.slane %v2293_v23, 4  ;;  %v2322_v11 = vrot.slane %v2320_v47, 5 }
 0x139   : > { %v8099_v24 = vrot.slane %v2278_v19, 5  ;;  %v2284_v49 = vrot.slane %v2282_v41, 4  ;;  %v6413_v19 = vld [vmem:[%s6534_s25 + $0xc0] sm:$0xff]  }
 0x13a   : > { %v2243_v46 = vsel %vm6560_vm4, %v2238_v39, %v2242_v0  ;;  %v5244_v39 = vld [vmem:[%s6534_s25 + $0xa8] sm:$0xf] }
 0x13b   : > { %v2285_v13 = vor.u32 %v2284_v49, %v8099_v24  ;;  %v5262_v41 = vcombine.low %v2233_v7, %v2243_v46  ;;  %v2336_v7 = vshll.u32 %v6464_v25, 16  ;;  %v2344_v45 = vshll.u32 %v5244_v39, 16 }
 0x13c   : > { %6062 = vmatmul.mubr.msk.bf16.gmra.mrb[4].mxu0 %vm658_vm3, %v5533_v61  ;;  %v6460_v61 = vld [vmem:[%s6534_s25 + $0x94] sm:$0xf] }
 0x13d   : > { %5908 = vmatmul.mubr.msk.bf16.gmra.mrb[20].mxu1 %vm658_vm3, %v6409_v51  ;;  %6065 = vmatprep.mubr.msk.bf16.mxu0 %vm658_vm3, %v5534_v10  ;;  %v2274_v10 = vrot.slane %v2272_v18, 5  ;;  %v2302_v51 = vshll.u32 %v6460_v61, 16  ;;  %v2306_v28 = vshrl.u32 %v6460_v61, 16  ;;  %v2286_v0 = vrot.slane %v2285_v13, 4 }
 0x13e   : > { %5911 = vmatprep.mubr.msk.bf16.mxu1 %vm658_vm3, %v6410_v21  ;;  %v2317_v21 = vshrl.u32 %v5241_v35, 16  ;;  %v6463_v35 = vld [vmem:[%s6534_s25 + $0x98] sm:$0x1]  ;;  %v2341_v61 = vshrl.u32 %v5244_v39, 16  ;;  %v5250_v39 = vld [vmem:[%s6534_s25 + $0xc0] sm:$0xf] }
 0x13f   : > { %v2275_v15 = vor.u32 %v2274_v10, %v2271_v36  ;;  %v8119_v26 = vrot.slane %v2302_v51, 5  ;;  %v2290_v36 = vrot.slane %v2288_v30, 5  ;;  %v2299_v10 = vor.u32 %v2298_v14, %v2295_v9  ;;  %v5247_v51 = vld [vmem:[%s6534_s25 + $0xb4] sm:$0xf] }
 0x140   : > { %v2319_v18 = vrot.slane %v2317_v21, 4  ;;  %v2354_v21 = vshrl.u32 %v6465_v27, 16  ;;  %v2365_v20 = vshrl.u32 %v5247_v51, 16  ;;  %v2368_v42 = vshll.u32 %v5247_v51, 16 }
 0x141   : > { %v2276_v52 = vrot.slane %v2275_v15, 4  ;;  %v2291_v46 = vsel %vm6560_vm4, %v2286_v0, %v2290_v36  ;;  %v2300_v15 = vrot.slane %v2299_v10, 4  ;;  %v2338_v30 = vrot.slane %v2336_v7, 5 }
 0x142   : > { %v2323_v23 = vor.u32 %v2322_v11, %v2319_v18  ;;  %v2343_v9 = vrot.slane %v2341_v61, 4  ;;  %v2356_v11 = vrot.slane %v2354_v21, 4  ;;  %v6469_v61 = vld [vmem:[%s6534_s25 + $0xbc] sm:$0x1] }
 0x143   : > { %v2281_v47 = vsel %vm6560_vm4, %v2276_v52, %v8099_v24  ;;  %v2305_v0 = vsel %vm6560_vm4, %v2300_v15, %v8119_v26  ;;  %v2384_v22 = vshll.u32 %v6469_v61, 16 }
 0x144   : > { %6066 = vmatmul.mubr.msk.bf16.gmra.mrb[8].mxu0 %vm658_vm3, %v5535_v40  ;;  %v2330_v40 = vshrl.u32 %v6461_v60, 16  ;;  %v2324_v17 = vrot.slane %v2323_v23, 4  ;;  %v5264_v24 = vcombine.low %v2281_v47, %v2291_v46 }
 0x145   : > { %5912 = vmatmul.mubr.msk.bf16.gmra.mrb[24].mxu1 %vm658_vm3, %v6411_v2  ;;  %6069 = vmatprep.mubr.msk.bf16.mxu0 %vm658_vm3, %v5536_v54  ;;  %v2308_v54 = vrot.slane %v2306_v28, 4 }
 0x146   : > { %5915 = vmatprep.mubr.msk.bf16.mxu1 %vm658_vm3, %v6412_v34  ;;  %v2332_v2 = vrot.slane %v2330_v40, 4  ;;  %v2312_v34 = vshll.u32 %v6463_v35, 16  ;;  %v2329_v10 = vsel %vm6560_vm4, %v2324_v17, %v8122_v6  ;;  %v2410_v17 = vrot.slane %v2408_v57, 5 }
 0x147   : > { %v2309_v49 = vor.u32 %v2308_v54, %v8119_v26  ;;  %v2346_v54 = vrot.slane %v2344_v45, 5  ;;  %v6467_v26 = vld [vmem:[%s6534_s25 + $0xb0] sm:$0x1] }
 0x148   : > { %v2333_v28 = vor.u32 %v2332_v2, %v8122_v6  ;;  %v2314_v60 = vrot.slane %v2312_v34, 5  ;;  %v2360_v35 = vshll.u32 %v6467_v26, 16  ;;  %v2389_v34 = vshrl.u32 %v5250_v39, 16 }
 0x149   : > { %v2310_v13 = vrot.slane %v2309_v49, 4  ;;  %v2347_v38 = vor.u32 %v2346_v54, %v2343_v9  ;;  %v2392_v6 = vshll.u32 %v5250_v39, 16  ;;  %v6468_v49 = vld [vmem:[%s6534_s25 + $0xc4] sm:$0xf] }
 0x14a   : > { %v2334_v14 = vrot.slane %v2333_v28, 4  ;;  %v2398_v23 = vshll.u32 %v6468_v49, 16  ;;  %v2402_v25 = vshrl.u32 %v6468_v49, 16  ;;  %v2362_v45 = vrot.slane %v2360_v35, 5 }
 0x14b   : > { %v2315_v36 = vsel %vm6560_vm4, %v2310_v13, %v2314_v60  ;;  %v2348_v51 = vrot.slane %v2347_v38, 4  ;;  %v2386_v60 = vrot.slane %v2384_v22, 5 }
 0x14c   : > { %6070 = vmatmul.mubr.msk.bf16.gmra.mrb[12].mxu0 %vm658_vm3, %v5537_v53  ;;  %v2350_v53 = vshll.u32 %v6465_v27, 16  ;;  %v2339_v59 = vsel %vm6560_vm4, %v2334_v14, %v2338_v30  ;;  %v5265_v44 = vcombine.low %v2305_v0, %v2315_v36  ;;  %v2391_v27 = vrot.slane %v2389_v34, 4 }
 0x14d   : > { %5916 = vmatmul.mubr.msk.bf16.gmra.mrb[28].mxu1 %vm658_vm3, %v6413_v19  ;;  %6073 = vmatprep.mubr.msk.bf16.mxu0 %vm658_vm3, %v5538_v33  ;;  %v6466_v33 = vld [vmem:[%s6534_s25 + $0xb8] sm:$0xf]  ;;  %v2367_v19 = vrot.slane %v2365_v20, 4  ;;  %v2400_v21 = vrot.slane %v2398_v23, 5  ;;  %v2404_v47 = vrot.slane %v2402_v25, 4 }
 0x14e   : > { %5937 = vmatprep.mubr.msk.bf16.mxu1 %vm658_vm3, %v5262_v41  ;;  %v2374_v12 = vshll.u32 %v6466_v33, 16  ;;  %v2378_v40 = vshrl.u32 %v6466_v33, 16  ;;  %v2352_v18 = vrot.slane %v2350_v53, 5  ;;  %v2370_v41 = vrot.slane %v2368_v42, 5 }
 0x14f   : > { %v2394_v53 = vrot.slane %v2392_v6, 5 }
 0x150   : > { %v2376_v52 = vrot.slane %v2374_v12, 5  ;;  %v2380_v2 = vrot.slane %v2378_v40, 4  ;;  %v2353_v20 = vsel %vm6560_vm4, %v2348_v51, %v2352_v18  ;;  %v2405_v12 = vor.u32 %v2404_v47, %v2400_v21 }
 0x151   : > { %v2395_v33 = vor.u32 %v2394_v53, %v2391_v27 }
 0x152   : > { %v2381_v7 = vor.u32 %v2380_v2, %v2376_v52  ;;  %v2406_v13 = vrot.slane %v2405_v12, 4  ;;  %v8225_v2 = vld [vmem:[%s8340_s2] ss:$0 sm:$0xff] }
 0x153   : > { %v2396_v40 = vrot.slane %v2395_v33, 4 }
 0x154   : > { %6074 = vmatmul.mubr.msk.bf16.gmra.mrb[16].mxu0 %vm658_vm3, %v5539_v37  ;;  %v2357_v37 = vor.u32 %v2356_v11, %v2352_v18  ;;  %v2382_v15 = vrot.slane %v2381_v7, 4  ;;  %v2411_v9 = vsel %vm6560_vm4, %v2406_v13, %v2410_v17 }
 0x155   : > { %5938 = vmatmul.mubr.msk.bf16.vlgmr.msra.gmra.mrb[16].mxu1 %vm658_vm3, %v7928_v1  ;;  %6077 = vmatprep.mubr.msk.bf16.mxu0 %vm658_vm3, %v5540_v3  ;;  %v2371_v1 = vor.u32 %v2370_v41, %v2367_v19  ;;  %v5266_v3 = vcombine.low %v2329_v10, %v2339_v59  ;;  %v2401_v30 = vsel %vm6560_vm4, %v2396_v40, %v2400_v21 }
 0x156   : > { %5941 = vmatprep.mubr.msk.bf16.mxu1 %vm658_vm3, %v5264_v24  ;;  %v2358_v28 = vrot.slane %v2357_v37, 4  ;;  %v2387_v48 = vsel %vm6560_vm4, %v2382_v15, %v2386_v60  ;;  %v5269_v14 = vcombine.low %v2401_v30, %v2411_v9 }
 0x157   : > { %v2372_v46 = vrot.slane %v2371_v1, 4 }
 0x158   : > { %v2363_v42 = vsel %vm6560_vm4, %v2358_v28, %v2362_v45 }
 0x159   : > { %v5267_v62 = vcombine.low %v2353_v20, %v2363_v42 }
 0x15c   : > { %6078 = vmatmul.mubr.msk.bf16.gmra.mrb[20].mxu0 %vm658_vm3, %v5541_v8  ;;  %v2377_v8 = vsel %vm6560_vm4, %v2372_v46, %v2376_v52 }
 0x15d   : > { %5942 = vmatmul.mubr.msk.bf16.gmra.mrb[20].mxu1 %vm658_vm3, %v5265_v44  ;;  %6081 = vmatprep.mubr.msk.bf16.mxu0 %vm658_vm3, %v5542_v56  ;;  %v5268_v56 = vcombine.low %v2377_v8, %v2387_v48 }
 0x15e   : > { %5945 = vmatprep.mubr.msk.bf16.mxu1 %vm658_vm3, %v5266_v3 }
 0x164   : > { %6082 = vmatmul.mubr.msk.bf16.gmra.mrb[24].mxu0 %vm658_vm3, %v5543_v43 }
 0x165   : > { %5946 = vmatmul.mubr.msk.bf16.gmra.mrb[24].mxu1 %vm658_vm3, %v5267_v62  ;;  %6085 = vmatprep.mubr.msk.bf16.mxu0 %vm658_vm3, %v5544_v50 }
 0x166   : > { %5949 = vmatprep.mubr.msk.bf16.mxu1 %vm658_vm3, %v5268_v56 }
 0x16c   : > { %6086 = vmatmul.mubr.msk.bf16.gmra.mrb[28].mxu0 %vm658_vm3, %v5545_v29 }
 0x16d   : > { %5950 = vmatmul.mubr.msk.bf16.gmra.mrb[28].mxu1 %vm658_vm3, %v5269_v14 }
 0x1e8   : > { %v5889_v63 = vpop.f32.mrb[0].mxu1 }
 0x1e9   : > { %v1821_v4 = vpop.f32.mrb[1].mxu1 }
 0x1ea   : > { %v5890_v43 = vpop.f32.mrb[2].mxu1 }
 0x1eb   : > { %v1824_v16 = vpop.f32.mrb[3].mxu1 }
 0x1f0   : > { %v5893_v58 = vpop.f32.mrb[4].mxu1 }
 0x1f1   : > { %v1837_v50 = vpop.f32.mrb[5].mxu1 }
 0x1f2   : > { %v5894_v54 = vpop.f32.mrb[6].mxu1 }
 0x1f3   : > { %v1840_v18 = vpop.f32.mrb[7].mxu1 }
 0x1f8   : > { %v5897_v11 = vpop.f32.mrb[8].mxu1 }
 0x1f9   : > { %v1853_v32 = vpop.f32.mrb[9].mxu1 }
 0x1fa   : > { %v8210_v24 = vpop.f32.mrb[10].mxu1 }
 0x1fb   : > { %v8212_v19 = vpop.f32.mrb[11].mxu1 }
 0x200   : > { %v8214_v5 = vpop.f32.mrb[12].mxu1 }
 0x201   : > { %v8216_v55 = vpop.f32.mrb[13].mxu1 }
 0x202   : > { %v8218_v29 = vpop.f32.mrb[14].mxu1 }
 0x203   : > { %v8220_v41 = vpop.f32.mrb[15].mxu1 }
 0x207   : > { %v6059_v52 = vpop.f32.mrb[0].mxu0 }
 0x208   : > { %v6091_v39 = vadd.f32 %v6059_v52, %v5889_v63  ;;  %v4572_v0 = vpop.f32.mrb[1].mxu0 }
 0x209   : > { %v6092_v36 = vadd.f32 %v4572_v0, %v1821_v4  ;;  %v6060_v10 = vpop.f32.mrb[2].mxu0 }
 0x20a   : > { %v4740_v59 = vadd.f32 %v6091_v39, %v8225_v2  ;;  %v6093_v38 = vadd.f32 %v6060_v10, %v5890_v43  ;;  %v4575_v37 = vpop.f32.mrb[3].mxu0 }
 0x20b   : > { %v4738_v26 = vadd.f32 %v6092_v36, %v8225_v2  ;;  %v6094_v35 = vadd.f32 %v4575_v37, %v1824_v16 }
 0x20c   : > { %v4772_v34 = vmax.f32 %v4740_v59, 0.0  ;;  %v4741_v6 = vadd.f32 %v6093_v38, %v8225_v2 }
 0x20d   : > { %v4770_v49 = vmax.f32 %v4738_v26, 0.0  ;;  %v4739_v23 = vadd.f32 %v6094_v35, %v8225_v2 }
 0x20e   : > { %v5600_v25 = vpack.c.bf16 %v4772_v34, %v4772_v34  ;;  %v4773_v1 = vmax.f32 %v4741_v6, 0.0 }
 0x20f   : > { %v5598_v7 = vpack.c.bf16 %v4770_v49, %v4770_v49  ;;  %v4771_v61 = vmax.f32 %v4739_v23, 0.0  ;;  %v6063_v22 = vpop.f32.mrb[4].mxu0 }
 0x210   : > { %4933 = vst.msk [vmem:[%s8234_s20 + $0x8] sm:$0xf] %vm4930_vm8, %v5600_v25  ;;  %v5601_v44 = vpack.c.bf16 %v4773_v1, %v4773_v1  ;;  %v6095_v3 = vadd.f32 %v6063_v22, %v5893_v58  ;;  %v4588_v51 = vpop.f32.mrb[5].mxu0 }
 0x211   : > { %4931 = vst.msk [vmem:[%s8234_s20] sm:$0xf] %vm4930_vm8, %v5598_v7  ;;  %v5599_v28 = vpack.c.bf16 %v4771_v61, %v4771_v61  ;;  %v6096_v45 = vadd.f32 %v4588_v51, %v1837_v50  ;;  %v6064_v27 = vpop.f32.mrb[6].mxu0 }
 0x212   : > { %4934 = vst.msk [vmem:[%s8234_s20 + $0xc] sm:$0xf] %vm4930_vm8, %v5601_v44  ;;  %v4744_v53 = vadd.f32 %v6095_v3, %v8225_v2  ;;  %v6097_v21 = vadd.f32 %v6064_v27, %v5894_v54  ;;  %v4591_v47 = vpop.f32.mrb[7].mxu0 }
 0x213   : > { %4932 = vst.msk [vmem:[%s8234_s20 + $0x4] sm:$0xf] %vm4930_vm8, %v5599_v28  ;;  %v4742_v46 = vadd.f32 %v6096_v45, %v8225_v2  ;;  %v6098_v15 = vadd.f32 %v4591_v47, %v1840_v18 }
 0x214   : > { %v4776_v60 = vmax.f32 %v4744_v53, 0.0  ;;  %v4745_v20 = vadd.f32 %v6097_v21, %v8225_v2 }
 0x215   : > { %v4774_v42 = vmax.f32 %v4742_v46, 0.0  ;;  %v4743_v33 = vadd.f32 %v6098_v15, %v8225_v2 }
 0x216   : > { %v5604_v12 = vpack.c.bf16 %v4776_v60, %v4776_v60  ;;  %v4777_v31 = vmax.f32 %v4745_v20, 0.0 }
 0x217   : > { %v5602_v57 = vpack.c.bf16 %v4774_v42, %v4774_v42  ;;  %v4775_v8 = vmax.f32 %v4743_v33, 0.0  ;;  %v6067_v48 = vpop.f32.mrb[8].mxu0 }
 0x218   : > { %4937 = vst.msk [vmem:[%s8234_s20 + $0x18] sm:$0xf] %vm4930_vm8, %v5604_v12  ;;  %v5605_v62 = vpack.c.bf16 %v4777_v31, %v4777_v31  ;;  %v6099_v56 = vadd.f32 %v6067_v48, %v5897_v11  ;;  %v4604_v40 = vpop.f32.mrb[9].mxu0 }
 0x219   : > { %4935 = vst.msk [vmem:[%s8234_s20 + $0x10] sm:$0xf] %vm4930_vm8, %v5602_v57  ;;  %v5603_v13 = vpack.c.bf16 %v4775_v8, %v4775_v8  ;;  %v6100_v17 = vadd.f32 %v4604_v40, %v1853_v32  ;;  %v6068_v30 = vpop.f32.mrb[10].mxu0 }
 0x21a   : > { %4938 = vst.msk [vmem:[%s8234_s20 + $0x1c] sm:$0xf] %vm4930_vm8, %v5605_v62  ;;  %v4748_v9 = vadd.f32 %v6099_v56, %v8225_v2  ;;  %v6101_v14 = vadd.f32 %v6068_v30, %v8210_v24  ;;  %v4607_v63 = vpop.f32.mrb[11].mxu0 }
 0x21b   : > { %4936 = vst.msk [vmem:[%s8234_s20 + $0x14] sm:$0xf] %vm4930_vm8, %v5603_v13  ;;  %v4746_v4 = vadd.f32 %v6100_v17, %v8225_v2  ;;  %v6102_v43 = vadd.f32 %v4607_v63, %v8212_v19 }
 0x21c   : > { %v4780_v16 = vmax.f32 %v4748_v9, 0.0  ;;  %v4749_v58 = vadd.f32 %v6101_v14, %v8225_v2 }
 0x21d   : > { %v4778_v50 = vmax.f32 %v4746_v4, 0.0  ;;  %v4747_v54 = vadd.f32 %v6102_v43, %v8225_v2 }
 0x21e   : > { %v5608_v18 = vpack.c.bf16 %v4780_v16, %v4780_v16  ;;  %v4781_v11 = vmax.f32 %v4749_v58, 0.0 }
 0x21f   : > { %v5606_v32 = vpack.c.bf16 %v4778_v50, %v4778_v50  ;;  %v4779_v24 = vmax.f32 %v4747_v54, 0.0  ;;  %v6071_v52 = vpop.f32.mrb[12].mxu0 }
 0x220   : > { %4941 = vst.msk [vmem:[%s8234_s20 + $0x28] sm:$0xf] %vm4930_vm8, %v5608_v18  ;;  %v5609_v39 = vpack.c.bf16 %v4781_v11, %v4781_v11  ;;  %v6103_v0 = vadd.f32 %v6071_v52, %v8214_v5  ;;  %v4620_v36 = vpop.f32.mrb[13].mxu0 }
 0x221   : > { %4939 = vst.msk [vmem:[%s8234_s20 + $0x20] sm:$0xf] %vm4930_vm8, %v5606_v32  ;;  %v5607_v19 = vpack.c.bf16 %v4779_v24, %v4779_v24  ;;  %v6104_v10 = vadd.f32 %v4620_v36, %v8216_v55  ;;  %v6072_v59 = vpop.f32.mrb[14].mxu0 }
 0x222   : > { %4942 = vst.msk [vmem:[%s8234_s20 + $0x2c] sm:$0xf] %vm4930_vm8, %v5609_v39  ;;  %v4752_v38 = vadd.f32 %v6103_v0, %v8225_v2  ;;  %v6105_v37 = vadd.f32 %v6072_v59, %v8218_v29  ;;  %v4623_v26 = vpop.f32.mrb[15].mxu0 }
 0x223   : > { %4940 = vst.msk [vmem:[%s8234_s20 + $0x24] sm:$0xf] %vm4930_vm8, %v5607_v19  ;;  %v4750_v5 = vadd.f32 %v6104_v10, %v8225_v2  ;;  %v6106_v35 = vadd.f32 %v4623_v26, %v8220_v41 }
 0x224   : > { %v4784_v34 = vmax.f32 %v4752_v38, 0.0  ;;  %v4753_v6 = vadd.f32 %v6105_v37, %v8225_v2 }
 0x225   : > { %v4782_v55 = vmax.f32 %v4750_v5, 0.0  ;;  %v4751_v49 = vadd.f32 %v6106_v35, %v8225_v2 }
 0x226   : > { %v5612_v23 = vpack.c.bf16 %v4784_v34, %v4784_v34  ;;  %v4785_v25 = vmax.f32 %v4753_v6, 0.0 }
 0x227   : > { %v5610_v1 = vpack.c.bf16 %v4782_v55, %v4782_v55  ;;  %v4783_v29 = vmax.f32 %v4751_v49, 0.0  ;;  %v6075_v7 = vpop.f32.mrb[16].mxu0 }
 0x228   : > { %4945 = vst.msk [vmem:[%s8234_s20 + $0x38] sm:$0xf] %vm4930_vm8, %v5612_v23  ;;  %v5613_v61 = vpack.c.bf16 %v4785_v25, %v4785_v25  ;;  %v5939_v22 = vpop.f32.mrb[16].mxu1  ;;  %v4636_v44 = vpop.f32.mrb[17].mxu0 }
 0x229   : > { %4943 = vst.msk [vmem:[%s8234_s20 + $0x30] sm:$0xf] %vm4930_vm8, %v5610_v1  ;;  %v5611_v41 = vpack.c.bf16 %v4783_v29, %v4783_v29  ;;  %v6107_v3 = vadd.f32 %v6075_v7, %v5939_v22  ;;  %v2611_v51 = vpop.f32.mrb[17].mxu1  ;;  %v6076_v28 = vpop.f32.mrb[18].mxu0 }
 0x22a   : > { %4946 = vst.msk [vmem:[%s8234_s20 + $0x3c] sm:$0xf] %vm4930_vm8, %v5613_v61  ;;  %v6108_v45 = vadd.f32 %v4636_v44, %v2611_v51  ;;  %v5940_v27 = vpop.f32.mrb[18].mxu1  ;;  %v4639_v53 = vpop.f32.mrb[19].mxu0 }
 0x22b   : > { %4944 = vst.msk [vmem:[%s8234_s20 + $0x34] sm:$0xf] %vm4930_vm8, %v5611_v41  ;;  %v4756_v21 = vadd.f32 %v6107_v3, %v8225_v2  ;;  %v6109_v47 = vadd.f32 %v6076_v28, %v5940_v27  ;;  %v2614_v46 = vpop.f32.mrb[19].mxu1 }
 0x22c   : > { %v4754_v15 = vadd.f32 %v6108_v45, %v8225_v2  ;;  %v6110_v60 = vadd.f32 %v4639_v53, %v2614_v46 }
 0x22d   : > { %v4788_v20 = vmax.f32 %v4756_v21, 0.0  ;;  %v4757_v42 = vadd.f32 %v6109_v47, %v8225_v2 }
 0x22e   : > { %v4786_v33 = vmax.f32 %v4754_v15, 0.0  ;;  %v4755_v12 = vadd.f32 %v6110_v60, %v8225_v2 }
 0x22f   : > { %v5616_v31 = vpack.c.bf16 %v4788_v20, %v4788_v20  ;;  %v4789_v57 = vmax.f32 %v4757_v42, 0.0  ;;  %v6079_v8 = vpop.f32.mrb[20].mxu0 }
 0x230   : > { %v5614_v48 = vpack.c.bf16 %v4786_v33, %v4786_v33  ;;  %v4787_v62 = vmax.f32 %v4755_v12, 0.0  ;;  %v5943_v56 = vpop.f32.mrb[20].mxu1  ;;  %v4652_v40 = vpop.f32.mrb[21].mxu0 }
 0x231   : > { %4949 = vst.msk [vmem:[%s8234_s20 + $0x48] sm:$0xf] %vm4930_vm8, %v5616_v31  ;;  %v5617_v13 = vpack.c.bf16 %v4789_v57, %v4789_v57  ;;  %v6111_v17 = vadd.f32 %v6079_v8, %v5943_v56  ;;  %v2627_v30 = vpop.f32.mrb[21].mxu1  ;;  %v6080_v9 = vpop.f32.mrb[22].mxu0 }
 0x232   : > { %4947 = vst.msk [vmem:[%s8234_s20 + $0x40] sm:$0xf] %vm4930_vm8, %v5614_v48  ;;  %v5615_v14 = vpack.c.bf16 %v4787_v62, %v4787_v62  ;;  %v6112_v63 = vadd.f32 %v4652_v40, %v2627_v30  ;;  %v5944_v4 = vpop.f32.mrb[22].mxu1  ;;  %v4655_v43 = vpop.f32.mrb[23].mxu0 }
 0x233   : > { %4950 = vst.msk [vmem:[%s8234_s20 + $0x4c] sm:$0xf] %vm4930_vm8, %v5617_v13  ;;  %v4760_v16 = vadd.f32 %v6111_v17, %v8225_v2  ;;  %v6113_v58 = vadd.f32 %v6080_v9, %v5944_v4  ;;  %v2630_v50 = vpop.f32.mrb[23].mxu1 }
 0x234   : > { %4948 = vst.msk [vmem:[%s8234_s20 + $0x44] sm:$0xf] %vm4930_vm8, %v5615_v14  ;;  %v4758_v54 = vadd.f32 %v6112_v63, %v8225_v2  ;;  %v6114_v18 = vadd.f32 %v4655_v43, %v2630_v50 }
 0x235   : > { %v4792_v11 = vmax.f32 %v4760_v16, 0.0  ;;  %v4761_v32 = vadd.f32 %v6113_v58, %v8225_v2 }
 0x236   : > { %v4790_v24 = vmax.f32 %v4758_v54, 0.0  ;;  %v4759_v52 = vadd.f32 %v6114_v18, %v8225_v2 }
 0x237   : > { %v5620_v39 = vpack.c.bf16 %v4792_v11, %v4792_v11  ;;  %v4793_v0 = vmax.f32 %v4761_v32, 0.0  ;;  %v6083_v36 = vpop.f32.mrb[24].mxu0 }
 0x238   : > { %v5618_v19 = vpack.c.bf16 %v4790_v24, %v4790_v24  ;;  %v4791_v10 = vmax.f32 %v4759_v52, 0.0  ;;  %v5947_v59 = vpop.f32.mrb[24].mxu1  ;;  %v4668_v38 = vpop.f32.mrb[25].mxu0 }
 0x239   : > { %4953 = vst.msk [vmem:[%s8234_s20 + $0x58] sm:$0xf] %vm4930_vm8, %v5620_v39  ;;  %v5621_v37 = vpack.c.bf16 %v4793_v0, %v4793_v0  ;;  %v6115_v26 = vadd.f32 %v6083_v36, %v5947_v59  ;;  %v2643_v5 = vpop.f32.mrb[25].mxu1  ;;  %v6084_v35 = vpop.f32.mrb[26].mxu0 }
 0x23a   : > { %4951 = vst.msk [vmem:[%s8234_s20 + $0x50] sm:$0xf] %vm4930_vm8, %v5618_v19  ;;  %v5619_v34 = vpack.c.bf16 %v4791_v10, %v4791_v10  ;;  %v6116_v6 = vadd.f32 %v4668_v38, %v2643_v5  ;;  %v5948_v55 = vpop.f32.mrb[26].mxu1  ;;  %v4671_v49 = vpop.f32.mrb[27].mxu0 }
 0x23b   : > { %4954 = vst.msk [vmem:[%s8234_s20 + $0x5c] sm:$0xf] %vm4930_vm8, %v5621_v37  ;;  %v4764_v23 = vadd.f32 %v6115_v26, %v8225_v2  ;;  %v6117_v25 = vadd.f32 %v6084_v35, %v5948_v55  ;;  %v2646_v1 = vpop.f32.mrb[27].mxu1 }
 0x23c   : > { %4952 = vst.msk [vmem:[%s8234_s20 + $0x54] sm:$0xf] %vm4930_vm8, %v5619_v34  ;;  %v4762_v29 = vadd.f32 %v6116_v6, %v8225_v2  ;;  %v6118_v7 = vadd.f32 %v4671_v49, %v2646_v1 }
 0x23d   : > { %v4796_v61 = vmax.f32 %v4764_v23, 0.0  ;;  %v4765_v22 = vadd.f32 %v6117_v25, %v8225_v2 }
 0x23e   : > { %v4794_v44 = vmax.f32 %v4762_v29, 0.0  ;;  %v4763_v41 = vadd.f32 %v6118_v7, %v8225_v2 }
 0x23f   : > { %v5624_v3 = vpack.c.bf16 %v4796_v61, %v4796_v61  ;;  %v4797_v51 = vmax.f32 %v4765_v22, 0.0  ;;  %v6087_v28 = vpop.f32.mrb[28].mxu0 }
 0x240   : > { %v5622_v45 = vpack.c.bf16 %v4794_v44, %v4794_v44  ;;  %v4795_v27 = vmax.f32 %v4763_v41, 0.0  ;;  %v5951_v53 = vpop.f32.mrb[28].mxu1  ;;  %v4684_v21 = vpop.f32.mrb[29].mxu0 }
 0x241   : > { %4957 = vst.msk [vmem:[%s8234_s20 + $0x68] sm:$0xf] %vm4930_vm8, %v5624_v3  ;;  %v5625_v47 = vpack.c.bf16 %v4797_v51, %v4797_v51  ;;  %v6119_v46 = vadd.f32 %v6087_v28, %v5951_v53  ;;  %v2659_v15 = vpop.f32.mrb[29].mxu1  ;;  %v6088_v60 = vpop.f32.mrb[30].mxu0 }
 0x242   : > { %4955 = vst.msk [vmem:[%s8234_s20 + $0x60] sm:$0xf] %vm4930_vm8, %v5622_v45  ;;  %v5623_v20 = vpack.c.bf16 %v4795_v27, %v4795_v27  ;;  %v6120_v42 = vadd.f32 %v4684_v21, %v2659_v15  ;;  %v5952_v33 = vpop.f32.mrb[30].mxu1  ;;  %v4687_v12 = vpop.f32.mrb[31].mxu0 }
 0x243   : > { %4958 = vst.msk [vmem:[%s8234_s20 + $0x6c] sm:$0xf] %vm4930_vm8, %v5625_v47  ;;  %v4768_v31 = vadd.f32 %v6119_v46, %v8225_v2  ;;  %v6121_v57 = vadd.f32 %v6088_v60, %v5952_v33  ;;  %v2662_v8 = vpop.f32.mrb[31].mxu1 }
 0x244   : > { %4956 = vst.msk [vmem:[%s8234_s20 + $0x64] sm:$0xf] %vm4930_vm8, %v5623_v20  ;;  %v4766_v48 = vadd.f32 %v6120_v42, %v8225_v2  ;;  %v6122_v62 = vadd.f32 %v4687_v12, %v2662_v8 }
 0x245   : > { %v4800_v56 = vmax.f32 %v4768_v31, 0.0  ;;  %v4769_v40 = vadd.f32 %v6121_v57, %v8225_v2 }
 0x246   : > { %v4798_v13 = vmax.f32 %v4766_v48, 0.0  ;;  %v4767_v17 = vadd.f32 %v6122_v62, %v8225_v2 }
 0x247   : > { %v5628_v30 = vpack.c.bf16 %v4800_v56, %v4800_v56  ;;  %v4801_v9 = vmax.f32 %v4769_v40, 0.0 }
 0x248   : > { %v5626_v14 = vpack.c.bf16 %v4798_v13, %v4798_v13  ;;  %v4799_v63 = vmax.f32 %v4767_v17, 0.0 }
 0x249   : > { %4961 = vst.msk [vmem:[%s8234_s20 + $0x78] sm:$0xf] %vm4930_vm8, %v5628_v30  ;;  %v5629_v4 = vpack.c.bf16 %v4801_v9, %v4801_v9 }
 0x24a   : > { %4959 = vst.msk [vmem:[%s8234_s20 + $0x70] sm:$0xf] %vm4930_vm8, %v5626_v14  ;;  %v5627_v43 = vpack.c.bf16 %v4799_v63, %v4799_v63 }
 0x24b   : > { %4962 = vst.msk [vmem:[%s8234_s20 + $0x7c] sm:$0xf] %vm4930_vm8, %v5629_v4 }
 0x24c   : > { %4960 = vst.msk [vmem:[%s8234_s20 + $0x74] sm:$0xf] %vm4930_vm8, %v5627_v43 }
 0x24d PF: > { %s13_s12 = sadd.s32 1, %s6477_s12  }
 0x24e   : > { %p10_p4 = scmp.ge.s32.totalorder %s13_s12, 4  }
 0x250   :  { %12 = sbr.rel (!%p10_p4) target bundleno = 1 (0x1), region = 72 }

// kernel: aspp_forward.11
= control target key start
LH: loop header
LB: loop body
LE: loop exit
PB: predicated region body
PF: predicated region fallthrough
CT: control target
= control target key end

     0   :  { %s2731_s30 = smov 0   ;;  %s2733_s10 = smov 0   ;;  %s3043_s0 = inlined_call_operand.vmem [shape: bf16[2,256,8], index: 0, kind: input, shape index: {}]   ;;  %s3044_s1 = inlined_call_operand.vmem [shape: bf16[2,256,8], index: 1, kind: input, shape index: {}]   ;;  %s3045_s2 = inlined_call_operand.vmem [shape: bf16[2,256,8], index: 2, kind: input, shape index: {}]   ;;  %s3046_s3 = inlined_call_operand.vmem [shape: bf16[2,256,8], index: 3, kind: input, shape index: {}]   ;;  %s3047_s4 = inlined_call_operand.vmem [shape: bf16[8,8], index: 4, kind: input, shape index: {}]   ;;  %s3048_s5 = inlined_call_operand.vmem [shape: bf16[8,8], index: 5, kind: input, shape index: {}]   ;;  %s3049_s6 = inlined_call_operand.vmem [shape: bf16[8,8], index: 6, kind: input, shape index: {}]   ;;  %s3050_s7 = inlined_call_operand.vmem [shape: bf16[8,8], index: 7, kind: input, shape index: {}]   ;;  %s3051_s8 = inlined_call_operand.vmem [shape: f32[2,1,8], index: 8, kind: input, shape index: {}]   ;;  %s3052_s9 = inlined_call_operand.vmem [shape: f32[2,256,8], index: 9, kind: output, shape index: {}]  }
   0x1   :  { %s2735_s11 = smov 0  }
   0x2 LB: > { %s31_s12 = sadd.s32 1, %s2675_s10  ;;  %p2118_p0 = scmp.ge.s32.totalorder %s2679_s11, 1  ;;  %s2679_s11 = sphi %s2735_s11, %s19_s11   ;;  %s2675_s10 = sphi %s2733_s10, %s3054_s10   ;;  %s2671_s30 = sphi %s2731_s30, %s3053_s30  }
   0x3   : > { %p33_p1 = scmp.ge.s32.totalorder %s31_s12, 2  ;;  %p367_p2 = scmp.lt.s32.totalorder %s2679_s11, 3 }
   0x5   : > { %s3056_s12 = smov (%p33_p1, %s31_s12), 0  ;;  %p368_p3 = pnand %p2118_p0, %p367_p2 }
   0x6   : > { %v560_v0 = vld [vmem:[%s3048_s5] sm:$0xf] (!%p368_p3)  ;;  %vm690_vm0 = vcmask (!%p368_p3), 1043456   ;;  %p442_p4 = scmp.lt.s32.totalorder (!%p368_p3), %s2671_s30, 1  ;;  %vm641_vm1 = vcmask (!%p368_p3), 64512  }
   0x7   : > { %371 = sbr.rel (%p368_p3) target bundleno = 362 (0x16a), region = 56  ;;  %v1179_v1 = vld [vmem:[%s3049_s6] sm:$0xf] (!%p368_p3)  ;;  %2565 = vmatprep.subr.msk.bf16.mxu1 (!%p368_p3), %vm690_vm0, %v560_v0  ;;  %v692_v2 = vsel (!%p368_p3), %vm690_vm0, %v560_v0, 0 }
   0x8   : > { %2567 = vmatprep.subr.msk.bf16.mxu0 (!%p368_p3), %vm690_vm0, %v1179_v1  ;;  %v1309_v3 = vsel (!%p368_p3), %vm690_vm0, %v1179_v1, 0  ;;  %v527_v4 = vld [vmem:[%s3047_s4] sm:$0xf] (!%p368_p3)  ;;  %2334 = vmatpush3.bf16.msra.mxu1 (!%p368_p3), %v692_v2 }
   0x9   : > { %2402 = vmatpush3.bf16.msra.mxu0 (!%p368_p3), %v1309_v3  ;;  %v1536_v5 = vld [vmem:[%s3050_s7] sm:$0xf] (!%p368_p3)  ;;  %2566 = vmatprep.subr.msk.bf16.mxu1 (!%p368_p3), %vm690_vm0, %v527_v4  ;;  %v984_v9 = vsel (!%p368_p3), %vm690_vm0, %v527_v4, 0 }
   0xa   : > { %2568 = vmatprep.subr.msk.bf16.mxu0 (!%p368_p3), %vm690_vm0, %v1536_v5  ;;  %v1666_v11 = vsel (!%p368_p3), %vm690_vm0, %v1536_v5, 0 }
   0xe   : > { %s3058_s30 = smov (!%p442_p4, %s2671_s30), 1 }
   0xf   : > { %s2770_s21 = sshll.u32 %s3058_s30, 7  ;;  %s483_s19 = scalar_lea.vmem %s3051_s8, %s3058_s30 }
  0x10   : > { %s2776_s24 = scalar_lea.vmem %s3044_s1, %s2770_s21  ;;  %s2782_s27 = scalar_lea.vmem %s3045_s2, %s2770_s21 }
  0x11   : > { %v2593_v6 = vld [vmem:[%s2776_s24] sm:$0xff]   ;;  %v2595_v8 = vld [vmem:[%s2776_s24 + $0x8] sm:$0xff]   ;;  %v2597_v12 = vld [vmem:[%s2776_s24 + $0x10] sm:$0xff]   ;;  %s2827_s13 = scalar_lea.vmem %s3043_s0, %s2770_s21  ;;  %s2834_s16 = scalar_lea.vmem %s3046_s3, %s2770_s21 }
  0x12   : > { %v2594_v7 = vld [vmem:[%s2782_s27] sm:$0xff]   ;;  %2335 = vmatprep.mubr.msk.bf16.mxu1 %vm641_vm1, %v2593_v6  ;;  %v2596_v10 = vld [vmem:[%s2782_s27 + $0x8] sm:$0xff]   ;;  %v2598_v13 = vld [vmem:[%s2782_s27 + $0x10] sm:$0xff]   ;;  %s2264_s20 = sshll.u32 %s3058_s30, 8 }
  0x13   : > { %2403 = vmatprep.mubr.msk.bf16.mxu0 %vm641_vm1, %v2594_v7  ;;  %2336 = vmatmul.mubr.msk.bf16.vlgmr.msra.gmra.mrb[0].mxu1 %vm641_vm1, %v2595_v8  ;;  %v2599_v14 = vld [vmem:[%s2776_s24 + $0x18] sm:$0xff]   ;;  %v2601_v16 = vld [vmem:[%s2776_s24 + $0x20] sm:$0xff]   ;;  %v2603_v18 = vld [vmem:[%s2776_s24 + $0x28] sm:$0xff]   ;;  %s2937_s23 = scalar_lea.vmem %s3052_s9, %s2264_s20 }
  0x14   : > { %2368 = vmatpush3.bf16.msra.mxu1 %v984_v9  ;;  %2404 = vmatmul.mubr.msk.bf16.vlgmr.msra.gmra.mrb[0].mxu0 %vm641_vm1, %v2596_v10  ;;  %v2600_v15 = vld [vmem:[%s2782_s27 + $0x18] sm:$0xff]   ;;  %v2602_v17 = vld [vmem:[%s2782_s27 + $0x20] sm:$0xff]   ;;  %v2604_v19 = vld [vmem:[%s2782_s27 + $0x28] sm:$0xff]  }
  0x15   : > { %2436 = vmatpush3.bf16.msra.mxu0 %v1666_v11  ;;  %2339 = vmatprep.mubr.msk.bf16.mxu1 %vm641_vm1, %v2597_v12  ;;  %v2605_v20 = vld [vmem:[%s2776_s24 + $0x30] sm:$0xff]   ;;  %v2607_v22 = vld [vmem:[%s2776_s24 + $0x38] sm:$0xff]   ;;  %v2609_v24 = vld [vmem:[%s2776_s24 + $0x40] sm:$0xff]  }
  0x16   : > { %2407 = vmatprep.mubr.msk.bf16.mxu0 %vm641_vm1, %v2598_v13  ;;  %v2606_v21 = vld [vmem:[%s2782_s27 + $0x30] sm:$0xff]   ;;  %v2608_v23 = vld [vmem:[%s2782_s27 + $0x38] sm:$0xff]   ;;  %v2610_v25 = vld [vmem:[%s2782_s27 + $0x40] sm:$0xff]  }
  0x17   : > { %v2611_v26 = vld [vmem:[%s2776_s24 + $0x48] sm:$0xff]   ;;  %v2613_v28 = vld [vmem:[%s2776_s24 + $0x50] sm:$0xff]   ;;  %v2615_v30 = vld [vmem:[%s2776_s24 + $0x58] sm:$0xff]  }
  0x18   : > { %v2612_v27 = vld [vmem:[%s2782_s27 + $0x48] sm:$0xff]   ;;  %v2614_v29 = vld [vmem:[%s2782_s27 + $0x50] sm:$0xff]   ;;  %v2616_v31 = vld [vmem:[%s2782_s27 + $0x58] sm:$0xff]  }
  0x19   : > { %v2617_v32 = vld [vmem:[%s2776_s24 + $0x60] sm:$0xff]   ;;  %v2619_v34 = vld [vmem:[%s2776_s24 + $0x68] sm:$0xff]   ;;  %v2621_v36 = vld [vmem:[%s2776_s24 + $0x70] sm:$0xff]  }
  0x1a   : > { %v2618_v33 = vld [vmem:[%s2782_s27 + $0x60] sm:$0xff]   ;;  %v2620_v35 = vld [vmem:[%s2782_s27 + $0x68] sm:$0xff]   ;;  %v2622_v37 = vld [vmem:[%s2782_s27 + $0x70] sm:$0xff]  }
  0x1b   : > { %2340 = vmatmul.mubr.msk.bf16.gmra.mrb[4].mxu1 %vm641_vm1, %v2599_v14  ;;  %v2623_v38 = vld [vmem:[%s2776_s24 + $0x78] sm:$0xff]   ;;  %v2625_v40 = vld [vmem:[%s2827_s13] sm:$0xff]   ;;  %v2627_v42 = vld [vmem:[%s2827_s13 + $0x8] sm:$0xff]  }
  0x1c   : > { %2408 = vmatmul.mubr.msk.bf16.gmra.mrb[4].mxu0 %vm641_vm1, %v2600_v15  ;;  %2343 = vmatprep.mubr.msk.bf16.mxu1 %vm641_vm1, %v2601_v16  ;;  %v2624_v39 = vld [vmem:[%s2782_s27 + $0x78] sm:$0xff]   ;;  %v2626_v41 = vld [vmem:[%s2834_s16] sm:$0xff]   ;;  %v2628_v43 = vld [vmem:[%s2834_s16 + $0x8] sm:$0xff]  }
  0x1d   : > { %2411 = vmatprep.mubr.msk.bf16.mxu0 %vm641_vm1, %v2602_v17  ;;  %v2629_v44 = vld [vmem:[%s2827_s13 + $0x10] sm:$0xff]   ;;  %v2631_v46 = vld [vmem:[%s2827_s13 + $0x18] sm:$0xff]   ;;  %v2633_v48 = vld [vmem:[%s2827_s13 + $0x20] sm:$0xff]  }
  0x1e   : > { %v2630_v45 = vld [vmem:[%s2834_s16 + $0x10] sm:$0xff]   ;;  %v2632_v47 = vld [vmem:[%s2834_s16 + $0x18] sm:$0xff]   ;;  %v2634_v49 = vld [vmem:[%s2834_s16 + $0x20] sm:$0xff]  }
  0x1f   : > { %v2635_v50 = vld [vmem:[%s2827_s13 + $0x28] sm:$0xff]   ;;  %v2637_v52 = vld [vmem:[%s2827_s13 + $0x30] sm:$0xff]   ;;  %v2639_v54 = vld [vmem:[%s2827_s13 + $0x38] sm:$0xff]  }
  0x20   : > { %v2636_v51 = vld [vmem:[%s2834_s16 + $0x28] sm:$0xff]   ;;  %v2638_v53 = vld [vmem:[%s2834_s16 + $0x30] sm:$0xff]   ;;  %v2640_v55 = vld [vmem:[%s2834_s16 + $0x38] sm:$0xff]  }
  0x21   : > { %v2641_v56 = vld [vmem:[%s2827_s13 + $0x40] sm:$0xff]   ;;  %v2643_v58 = vld [vmem:[%s2827_s13 + $0x48] sm:$0xff]   ;;  %v2645_v60 = vld [vmem:[%s2827_s13 + $0x50] sm:$0xff]  }
  0x22   : > { %v2642_v57 = vld [vmem:[%s2834_s16 + $0x40] sm:$0xff]   ;;  %v2644_v59 = vld [vmem:[%s2834_s16 + $0x48] sm:$0xff]   ;;  %v2646_v61 = vld [vmem:[%s2834_s16 + $0x50] sm:$0xff]  }
  0x23   : > { %2344 = vmatmul.mubr.msk.bf16.gmra.mrb[8].mxu1 %vm641_vm1, %v2603_v18  ;;  %v2647_v62 = vld [vmem:[%s2827_s13 + $0x58] sm:$0xff]   ;;  %v2649_v0 = vld [vmem:[%s2827_s13 + $0x60] sm:$0xff]   ;;  %v2651_v2 = vld [vmem:[%s2827_s13 + $0x68] sm:$0xff]  }
  0x24   : > { %2412 = vmatmul.mubr.msk.bf16.gmra.mrb[8].mxu0 %vm641_vm1, %v2604_v19  ;;  %2347 = vmatprep.mubr.msk.bf16.mxu1 %vm641_vm1, %v2605_v20  ;;  %v2648_v63 = vld [vmem:[%s2834_s16 + $0x58] sm:$0xff]   ;;  %v2650_v1 = vld [vmem:[%s2834_s16 + $0x60] sm:$0xff]   ;;  %v2652_v3 = vld [vmem:[%s2834_s16 + $0x68] sm:$0xff]  }
  0x25   : > { %2415 = vmatprep.mubr.msk.bf16.mxu0 %vm641_vm1, %v2606_v21  ;;  %v2653_v4 = vld [vmem:[%s2827_s13 + $0x70] sm:$0xff]   ;;  %v2655_v6 = vld [vmem:[%s2827_s13 + $0x78] sm:$0xff]   ;;  %v2930_v10 = vld [vmem:[%s483_s19] ss:$0 sm:$0xff] }
  0x26   : > { %v2654_v5 = vld [vmem:[%s2834_s16 + $0x70] sm:$0xff]   ;;  %v2656_v7 = vld [vmem:[%s2834_s16 + $0x78] sm:$0xff]  }
  0x2b   : > { %2348 = vmatmul.mubr.msk.bf16.gmra.mrb[12].mxu1 %vm641_vm1, %v2607_v22 }
  0x2c   : > { %2416 = vmatmul.mubr.msk.bf16.gmra.mrb[12].mxu0 %vm641_vm1, %v2608_v23  ;;  %2351 = vmatprep.mubr.msk.bf16.mxu1 %vm641_vm1, %v2609_v24 }
  0x2d   : > { %2419 = vmatprep.mubr.msk.bf16.mxu0 %vm641_vm1, %v2610_v25 }
  0x33   : > { %2352 = vmatmul.mubr.msk.bf16.gmra.mrb[16].mxu1 %vm641_vm1, %v2611_v26 }
  0x34   : > { %2420 = vmatmul.mubr.msk.bf16.gmra.mrb[16].mxu0 %vm641_vm1, %v2612_v27  ;;  %2355 = vmatprep.mubr.msk.bf16.mxu1 %vm641_vm1, %v2613_v28 }
  0x35   : > { %2423 = vmatprep.mubr.msk.bf16.mxu0 %vm641_vm1, %v2614_v29 }
  0x3b   : > { %2356 = vmatmul.mubr.msk.bf16.gmra.mrb[20].mxu1 %vm641_vm1, %v2615_v30 }
  0x3c   : > { %2424 = vmatmul.mubr.msk.bf16.gmra.mrb[20].mxu0 %vm641_vm1, %v2616_v31  ;;  %2359 = vmatprep.mubr.msk.bf16.mxu1 %vm641_vm1, %v2617_v32 }
  0x3d   : > { %2427 = vmatprep.mubr.msk.bf16.mxu0 %vm641_vm1, %v2618_v33 }
  0x43   : > { %2360 = vmatmul.mubr.msk.bf16.gmra.mrb[24].mxu1 %vm641_vm1, %v2619_v34 }
  0x44   : > { %2428 = vmatmul.mubr.msk.bf16.gmra.mrb[24].mxu0 %vm641_vm1, %v2620_v35  ;;  %2363 = vmatprep.mubr.msk.bf16.mxu1 %vm641_vm1, %v2621_v36 }
  0x45   : > { %2431 = vmatprep.mubr.msk.bf16.mxu0 %vm641_vm1, %v2622_v37 }
  0x4b   : > { %2364 = vmatmul.mubr.msk.bf16.gmra.mrb[28].mxu1 %vm641_vm1, %v2623_v38 }
  0x4c   : > { %2432 = vmatmul.mubr.msk.bf16.gmra.mrb[28].mxu0 %vm641_vm1, %v2624_v39  ;;  %2369 = vmatprep.mubr.msk.bf16.mxu1 %vm641_vm1, %v2625_v40 }
  0x4d   : > { %2437 = vmatprep.mubr.msk.bf16.mxu0 %vm641_vm1, %v2626_v41 }
  0x53   : > { %2370 = vmatmul.mubr.msk.bf16.vlgmr.msra.gmra.mrb[0].mxu1 %vm641_vm1, %v2627_v42 }
  0x54   : > { %2438 = vmatmul.mubr.msk.bf16.vlgmr.msra.gmra.mrb[0].mxu0 %vm641_vm1, %v2628_v43  ;;  %2373 = vmatprep.mubr.msk.bf16.mxu1 %vm641_vm1, %v2629_v44 }
  0x55   : > { %2441 = vmatprep.mubr.msk.bf16.mxu0 %vm641_vm1, %v2630_v45 }
  0x5b   : > { %2374 = vmatmul.mubr.msk.bf16.gmra.mrb[4].mxu1 %vm641_vm1, %v2631_v46 }
  0x5c   : > { %2442 = vmatmul.mubr.msk.bf16.gmra.mrb[4].mxu0 %vm641_vm1, %v2632_v47  ;;  %2377 = vmatprep.mubr.msk.bf16.mxu1 %vm641_vm1, %v2633_v48 }
  0x5d   : > { %2445 = vmatprep.mubr.msk.bf16.mxu0 %vm641_vm1, %v2634_v49 }
  0x63   : > { %2378 = vmatmul.mubr.msk.bf16.gmra.mrb[8].mxu1 %vm641_vm1, %v2635_v50 }
  0x64   : > { %2446 = vmatmul.mubr.msk.bf16.gmra.mrb[8].mxu0 %vm641_vm1, %v2636_v51  ;;  %2381 = vmatprep.mubr.msk.bf16.mxu1 %vm641_vm1, %v2637_v52 }
  0x65   : > { %2449 = vmatprep.mubr.msk.bf16.mxu0 %vm641_vm1, %v2638_v53 }
  0x6b   : > { %2382 = vmatmul.mubr.msk.bf16.gmra.mrb[12].mxu1 %vm641_vm1, %v2639_v54 }
  0x6c   : > { %2450 = vmatmul.mubr.msk.bf16.gmra.mrb[12].mxu0 %vm641_vm1, %v2640_v55  ;;  %2385 = vmatprep.mubr.msk.bf16.mxu1 %vm641_vm1, %v2641_v56 }
  0x6d   : > { %2453 = vmatprep.mubr.msk.bf16.mxu0 %vm641_vm1, %v2642_v57 }
  0x73   : > { %2386 = vmatmul.mubr.msk.bf16.gmra.mrb[16].mxu1 %vm641_vm1, %v2643_v58 }
  0x74   : > { %2454 = vmatmul.mubr.msk.bf16.gmra.mrb[16].mxu0 %vm641_vm1, %v2644_v59  ;;  %2389 = vmatprep.mubr.msk.bf16.mxu1 %vm641_vm1, %v2645_v60 }
  0x75   : > { %2457 = vmatprep.mubr.msk.bf16.mxu0 %vm641_vm1, %v2646_v61 }
  0x7b   : > { %2390 = vmatmul.mubr.msk.bf16.gmra.mrb[20].mxu1 %vm641_vm1, %v2647_v62 }
  0x7c   : > { %2458 = vmatmul.mubr.msk.bf16.gmra.mrb[20].mxu0 %vm641_vm1, %v2648_v63  ;;  %2393 = vmatprep.mubr.msk.bf16.mxu1 %vm641_vm1, %v2649_v0 }
  0x7d   : > { %2461 = vmatprep.mubr.msk.bf16.mxu0 %vm641_vm1, %v2650_v1 }
  0x83   : > { %2394 = vmatmul.mubr.msk.bf16.gmra.mrb[24].mxu1 %vm641_vm1, %v2651_v2 }
  0x84   : > { %2462 = vmatmul.mubr.msk.bf16.gmra.mrb[24].mxu0 %vm641_vm1, %v2652_v3  ;;  %2397 = vmatprep.mubr.msk.bf16.mxu1 %vm641_vm1, %v2653_v4 }
  0x85   : > { %2465 = vmatprep.mubr.msk.bf16.mxu0 %vm641_vm1, %v2654_v5 }
  0x8b   : > { %2398 = vmatmul.mubr.msk.bf16.gmra.mrb[28].mxu1 %vm641_vm1, %v2655_v6 }
  0x8c   : > { %2466 = vmatmul.mubr.msk.bf16.gmra.mrb[28].mxu0 %vm641_vm1, %v2656_v7 }
 0x126   : > { %v2371_v8 = vpop.f32.mrb[0].mxu1 }
 0x127   : > { %v2439_v9 = vpop.f32.mrb[0].mxu0  ;;  %v1020_v11 = vpop.f32.mrb[1].mxu1 }
 0x128   : > { %v2469_v12 = vadd.f32 %v2439_v9, %v2371_v8  ;;  %v1702_v13 = vpop.f32.mrb[1].mxu0  ;;  %v2372_v14 = vpop.f32.mrb[2].mxu1 }
 0x129   : > { %v2470_v15 = vadd.f32 %v1702_v13, %v1020_v11  ;;  %v2440_v16 = vpop.f32.mrb[2].mxu0  ;;  %v1023_v17 = vpop.f32.mrb[3].mxu1 }
 0x12a   : > { %v1870_v18 = vadd.f32 %v2469_v12, %v2930_v10  ;;  %v2471_v19 = vadd.f32 %v2440_v16, %v2372_v14  ;;  %v1705_v20 = vpop.f32.mrb[3].mxu0 }
 0x12b   : > { %v1868_v21 = vadd.f32 %v2470_v15, %v2930_v10  ;;  %v2472_v22 = vadd.f32 %v1705_v20, %v1023_v17 }
 0x12c   : > { %v1902_v23 = vmax.f32 %v1870_v18, 0.0  ;;  %v1871_v24 = vadd.f32 %v2471_v19, %v2930_v10 }
 0x12d   : > { %v1900_v25 = vmax.f32 %v1868_v21, 0.0  ;;  %v1869_v26 = vadd.f32 %v2472_v22, %v2930_v10 }
 0x12e   : > { %1934 = vst.msk [vmem:[%s2937_s23 + $0x10] sm:$0xff] %vm641_vm1, %v1902_v23  ;;  %v1903_v27 = vmax.f32 %v1871_v24, 0.0  ;;  %v2375_v28 = vpop.f32.mrb[4].mxu1 }
 0x12f   : > { %1932 = vst.msk [vmem:[%s2937_s23] sm:$0xff] %vm641_vm1, %v1900_v25  ;;  %v1901_v29 = vmax.f32 %v1869_v26, 0.0  ;;  %v2443_v30 = vpop.f32.mrb[4].mxu0  ;;  %v1036_v31 = vpop.f32.mrb[5].mxu1 }
 0x130   : > { %1935 = vst.msk [vmem:[%s2937_s23 + $0x18] sm:$0xff] %vm641_vm1, %v1903_v27  ;;  %v2473_v32 = vadd.f32 %v2443_v30, %v2375_v28  ;;  %v1718_v33 = vpop.f32.mrb[5].mxu0  ;;  %v2376_v34 = vpop.f32.mrb[6].mxu1 }
 0x131   : > { %1933 = vst.msk [vmem:[%s2937_s23 + $0x8] sm:$0xff] %vm641_vm1, %v1901_v29  ;;  %v2474_v35 = vadd.f32 %v1718_v33, %v1036_v31  ;;  %v2444_v36 = vpop.f32.mrb[6].mxu0  ;;  %v1039_v37 = vpop.f32.mrb[7].mxu1 }
 0x132   : > { %v1874_v38 = vadd.f32 %v2473_v32, %v2930_v10  ;;  %v2475_v39 = vadd.f32 %v2444_v36, %v2376_v34  ;;  %v1721_v40 = vpop.f32.mrb[7].mxu0 }
 0x133   : > { %v1872_v41 = vadd.f32 %v2474_v35, %v2930_v10  ;;  %v2476_v42 = vadd.f32 %v1721_v40, %v1039_v37 }
 0x134   : > { %v1906_v43 = vmax.f32 %v1874_v38, 0.0  ;;  %v1875_v44 = vadd.f32 %v2475_v39, %v2930_v10 }
 0x135   : > { %v1904_v45 = vmax.f32 %v1872_v41, 0.0  ;;  %v1873_v46 = vadd.f32 %v2476_v42, %v2930_v10 }
 0x136   : > { %1938 = vst.msk [vmem:[%s2937_s23 + $0x30] sm:$0xff] %vm641_vm1, %v1906_v43  ;;  %v1907_v47 = vmax.f32 %v1875_v44, 0.0  ;;  %v2379_v48 = vpop.f32.mrb[8].mxu1 }
 0x137   : > { %1936 = vst.msk [vmem:[%s2937_s23 + $0x20] sm:$0xff] %vm641_vm1, %v1904_v45  ;;  %v1905_v49 = vmax.f32 %v1873_v46, 0.0  ;;  %v2447_v50 = vpop.f32.mrb[8].mxu0  ;;  %v1052_v51 = vpop.f32.mrb[9].mxu1 }
 0x138   : > { %1939 = vst.msk [vmem:[%s2937_s23 + $0x38] sm:$0xff] %vm641_vm1, %v1907_v47  ;;  %v2477_v52 = vadd.f32 %v2447_v50, %v2379_v48  ;;  %v1734_v53 = vpop.f32.mrb[9].mxu0  ;;  %v2380_v54 = vpop.f32.mrb[10].mxu1 }
 0x139   : > { %1937 = vst.msk [vmem:[%s2937_s23 + $0x28] sm:$0xff] %vm641_vm1, %v1905_v49  ;;  %v2478_v55 = vadd.f32 %v1734_v53, %v1052_v51  ;;  %v2448_v56 = vpop.f32.mrb[10].mxu0  ;;  %v1055_v57 = vpop.f32.mrb[11].mxu1 }
 0x13a   : > { %v1878_v58 = vadd.f32 %v2477_v52, %v2930_v10  ;;  %v2479_v59 = vadd.f32 %v2448_v56, %v2380_v54  ;;  %v1737_v60 = vpop.f32.mrb[11].mxu0 }
 0x13b   : > { %v1876_v61 = vadd.f32 %v2478_v55, %v2930_v10  ;;  %v2480_v62 = vadd.f32 %v1737_v60, %v1055_v57 }
 0x13c   : > { %v1910_v63 = vmax.f32 %v1878_v58, 0.0  ;;  %v1879_v0 = vadd.f32 %v2479_v59, %v2930_v10 }
 0x13d   : > { %v1908_v1 = vmax.f32 %v1876_v61, 0.0  ;;  %v1877_v2 = vadd.f32 %v2480_v62, %v2930_v10 }
 0x13e   : > { %1942 = vst.msk [vmem:[%s2937_s23 + $0x50] sm:$0xff] %vm641_vm1, %v1910_v63  ;;  %v1911_v3 = vmax.f32 %v1879_v0, 0.0  ;;  %v2383_v4 = vpop.f32.mrb[12].mxu1 }
 0x13f   : > { %1940 = vst.msk [vmem:[%s2937_s23 + $0x40] sm:$0xff] %vm641_vm1, %v1908_v1  ;;  %v1909_v5 = vmax.f32 %v1877_v2, 0.0  ;;  %v2451_v6 = vpop.f32.mrb[12].mxu0  ;;  %v1068_v7 = vpop.f32.mrb[13].mxu1 }
 0x140   : > { %1943 = vst.msk [vmem:[%s2937_s23 + $0x58] sm:$0xff] %vm641_vm1, %v1911_v3  ;;  %v2481_v8 = vadd.f32 %v2451_v6, %v2383_v4  ;;  %v1750_v9 = vpop.f32.mrb[13].mxu0  ;;  %v2384_v11 = vpop.f32.mrb[14].mxu1 }
 0x141   : > { %1941 = vst.msk [vmem:[%s2937_s23 + $0x48] sm:$0xff] %vm641_vm1, %v1909_v5  ;;  %v2482_v12 = vadd.f32 %v1750_v9, %v1068_v7  ;;  %v2452_v13 = vpop.f32.mrb[14].mxu0  ;;  %v1071_v14 = vpop.f32.mrb[15].mxu1 }
 0x142   : > { %v1882_v15 = vadd.f32 %v2481_v8, %v2930_v10  ;;  %v2483_v16 = vadd.f32 %v2452_v13, %v2384_v11  ;;  %v1753_v17 = vpop.f32.mrb[15].mxu0 }
 0x143   : > { %v1880_v18 = vadd.f32 %v2482_v12, %v2930_v10  ;;  %v2484_v19 = vadd.f32 %v1753_v17, %v1071_v14 }
 0x144   : > { %v1914_v20 = vmax.f32 %v1882_v15, 0.0  ;;  %v1883_v21 = vadd.f32 %v2483_v16, %v2930_v10 }
 0x145   : > { %v1912_v22 = vmax.f32 %v1880_v18, 0.0  ;;  %v1881_v23 = vadd.f32 %v2484_v19, %v2930_v10 }
 0x146   : > { %1946 = vst.msk [vmem:[%s2937_s23 + $0x70] sm:$0xff] %vm641_vm1, %v1914_v20  ;;  %v1915_v24 = vmax.f32 %v1883_v21, 0.0  ;;  %v2387_v25 = vpop.f32.mrb[16].mxu1 }
 0x147   : > { %1944 = vst.msk [vmem:[%s2937_s23 + $0x60] sm:$0xff] %vm641_vm1, %v1912_v22  ;;  %v1913_v26 = vmax.f32 %v1881_v23, 0.0  ;;  %v2455_v27 = vpop.f32.mrb[16].mxu0  ;;  %v1084_v28 = vpop.f32.mrb[17].mxu1 }
 0x148   : > { %1947 = vst.msk [vmem:[%s2937_s23 + $0x78] sm:$0xff] %vm641_vm1, %v1915_v24  ;;  %v2485_v29 = vadd.f32 %v2455_v27, %v2387_v25  ;;  %v1766_v30 = vpop.f32.mrb[17].mxu0  ;;  %v2388_v31 = vpop.f32.mrb[18].mxu1 }
 0x149   : > { %1945 = vst.msk [vmem:[%s2937_s23 + $0x68] sm:$0xff] %vm641_vm1, %v1913_v26  ;;  %v2486_v32 = vadd.f32 %v1766_v30, %v1084_v28  ;;  %v2456_v33 = vpop.f32.mrb[18].mxu0  ;;  %v1087_v34 = vpop.f32.mrb[19].mxu1 }
 0x14a   : > { %v1886_v35 = vadd.f32 %v2485_v29, %v2930_v10  ;;  %v2487_v36 = vadd.f32 %v2456_v33, %v2388_v31  ;;  %v1769_v37 = vpop.f32.mrb[19].mxu0 }
 0x14b   : > { %v1884_v38 = vadd.f32 %v2486_v32, %v2930_v10  ;;  %v2488_v39 = vadd.f32 %v1769_v37, %v1087_v34 }
 0x14c   : > { %v1918_v40 = vmax.f32 %v1886_v35, 0.0  ;;  %v1887_v41 = vadd.f32 %v2487_v36, %v2930_v10 }
 0x14d   : > { %v1916_v42 = vmax.f32 %v1884_v38, 0.0  ;;  %v1885_v43 = vadd.f32 %v2488_v39, %v2930_v10 }
 0x14e   : > { %1950 = vst.msk [vmem:[%s2937_s23 + $0x90] sm:$0xff] %vm641_vm1, %v1918_v40  ;;  %v1919_v44 = vmax.f32 %v1887_v41, 0.0  ;;  %v2391_v45 = vpop.f32.mrb[20].mxu1 }
 0x14f   : > { %1948 = vst.msk [vmem:[%s2937_s23 + $0x80] sm:$0xff] %vm641_vm1, %v1916_v42  ;;  %v1917_v46 = vmax.f32 %v1885_v43, 0.0  ;;  %v2459_v47 = vpop.f32.mrb[20].mxu0  ;;  %v1100_v48 = vpop.f32.mrb[21].mxu1 }
 0x150   : > { %1951 = vst.msk [vmem:[%s2937_s23 + $0x98] sm:$0xff] %vm641_vm1, %v1919_v44  ;;  %v2489_v49 = vadd.f32 %v2459_v47, %v2391_v45  ;;  %v1782_v50 = vpop.f32.mrb[21].mxu0  ;;  %v2392_v51 = vpop.f32.mrb[22].mxu1 }
 0x151   : > { %1949 = vst.msk [vmem:[%s2937_s23 + $0x88] sm:$0xff] %vm641_vm1, %v1917_v46  ;;  %v2490_v52 = vadd.f32 %v1782_v50, %v1100_v48  ;;  %v2460_v53 = vpop.f32.mrb[22].mxu0  ;;  %v1103_v54 = vpop.f32.mrb[23].mxu1 }
 0x152   : > { %v1890_v55 = vadd.f32 %v2489_v49, %v2930_v10  ;;  %v2491_v56 = vadd.f32 %v2460_v53, %v2392_v51  ;;  %v1785_v57 = vpop.f32.mrb[23].mxu0 }
 0x153   : > { %v1888_v58 = vadd.f32 %v2490_v52, %v2930_v10  ;;  %v2492_v59 = vadd.f32 %v1785_v57, %v1103_v54 }
 0x154   : > { %v1922_v60 = vmax.f32 %v1890_v55, 0.0  ;;  %v1891_v61 = vadd.f32 %v2491_v56, %v2930_v10 }
 0x155   : > { %v1920_v62 = vmax.f32 %v1888_v58, 0.0  ;;  %v1889_v63 = vadd.f32 %v2492_v59, %v2930_v10 }
 0x156   : > { %1954 = vst.msk [vmem:[%s2937_s23 + $0xb0] sm:$0xff] %vm641_vm1, %v1922_v60  ;;  %v1923_v0 = vmax.f32 %v1891_v61, 0.0  ;;  %v2395_v1 = vpop.f32.mrb[24].mxu1 }
 0x157   : > { %1952 = vst.msk [vmem:[%s2937_s23 + $0xa0] sm:$0xff] %vm641_vm1, %v1920_v62  ;;  %v1921_v2 = vmax.f32 %v1889_v63, 0.0  ;;  %v2463_v3 = vpop.f32.mrb[24].mxu0  ;;  %v1116_v4 = vpop.f32.mrb[25].mxu1 }
 0x158   : > { %1955 = vst.msk [vmem:[%s2937_s23 + $0xb8] sm:$0xff] %vm641_vm1, %v1923_v0  ;;  %v2493_v5 = vadd.f32 %v2463_v3, %v2395_v1  ;;  %v1798_v6 = vpop.f32.mrb[25].mxu0  ;;  %v2396_v7 = vpop.f32.mrb[26].mxu1 }
 0x159   : > { %1953 = vst.msk [vmem:[%s2937_s23 + $0xa8] sm:$0xff] %vm641_vm1, %v1921_v2  ;;  %v2494_v8 = vadd.f32 %v1798_v6, %v1116_v4  ;;  %v2464_v9 = vpop.f32.mrb[26].mxu0  ;;  %v1119_v11 = vpop.f32.mrb[27].mxu1 }
 0x15a   : > { %v1894_v12 = vadd.f32 %v2493_v5, %v2930_v10  ;;  %v2495_v13 = vadd.f32 %v2464_v9, %v2396_v7  ;;  %v1801_v14 = vpop.f32.mrb[27].mxu0 }
 0x15b   : > { %v1892_v15 = vadd.f32 %v2494_v8, %v2930_v10  ;;  %v2496_v16 = vadd.f32 %v1801_v14, %v1119_v11 }
 0x15c   : > { %v1926_v17 = vmax.f32 %v1894_v12, 0.0  ;;  %v1895_v18 = vadd.f32 %v2495_v13, %v2930_v10 }
 0x15d   : > { %v1924_v19 = vmax.f32 %v1892_v15, 0.0  ;;  %v1893_v20 = vadd.f32 %v2496_v16, %v2930_v10 }
 0x15e   : > { %1958 = vst.msk [vmem:[%s2937_s23 + $0xd0] sm:$0xff] %vm641_vm1, %v1926_v17  ;;  %v1927_v21 = vmax.f32 %v1895_v18, 0.0  ;;  %v2399_v22 = vpop.f32.mrb[28].mxu1 }
 0x15f   : > { %1956 = vst.msk [vmem:[%s2937_s23 + $0xc0] sm:$0xff] %vm641_vm1, %v1924_v19  ;;  %v1925_v23 = vmax.f32 %v1893_v20, 0.0  ;;  %v2467_v24 = vpop.f32.mrb[28].mxu0  ;;  %v1132_v25 = vpop.f32.mrb[29].mxu1 }
 0x160   : > { %1959 = vst.msk [vmem:[%s2937_s23 + $0xd8] sm:$0xff] %vm641_vm1, %v1927_v21  ;;  %v2497_v26 = vadd.f32 %v2467_v24, %v2399_v22  ;;  %v1814_v27 = vpop.f32.mrb[29].mxu0  ;;  %v2400_v28 = vpop.f32.mrb[30].mxu1 }
 0x161   : > { %1957 = vst.msk [vmem:[%s2937_s23 + $0xc8] sm:$0xff] %vm641_vm1, %v1925_v23  ;;  %v2498_v29 = vadd.f32 %v1814_v27, %v1132_v25  ;;  %v2468_v30 = vpop.f32.mrb[30].mxu0  ;;  %v1135_v31 = vpop.f32.mrb[31].mxu1 }
 0x162   : > { %v1898_v32 = vadd.f32 %v2497_v26, %v2930_v10  ;;  %v2499_v33 = vadd.f32 %v2468_v30, %v2400_v28  ;;  %v1817_v34 = vpop.f32.mrb[31].mxu0 }
 0x163   : > { %v1896_v35 = vadd.f32 %v2498_v29, %v2930_v10  ;;  %v2500_v36 = vadd.f32 %v1817_v34, %v1135_v31 }
 0x164   : > { %v1930_v37 = vmax.f32 %v1898_v32, 0.0  ;;  %v1899_v38 = vadd.f32 %v2499_v33, %v2930_v10 }
 0x165   : > { %v1928_v39 = vmax.f32 %v1896_v35, 0.0  ;;  %v1897_v40 = vadd.f32 %v2500_v36, %v2930_v10 }
 0x166   : > { %1962 = vst.msk [vmem:[%s2937_s23 + $0xf0] sm:$0xff] %vm641_vm1, %v1930_v37  ;;  %v1931_v41 = vmax.f32 %v1899_v38, 0.0 }
 0x167   : > { %1960 = vst.msk [vmem:[%s2937_s23 + $0xe0] sm:$0xff] %vm641_vm1, %v1928_v39  ;;  %v1929_v42 = vmax.f32 %v1897_v40, 0.0 }
 0x168   : > { %1963 = vst.msk [vmem:[%s2937_s23 + $0xf8] sm:$0xff] %vm641_vm1, %v1931_v41 }
 0x169   : > { %1961 = vst.msk [vmem:[%s2937_s23 + $0xe8] sm:$0xff] %vm641_vm1, %v1929_v42 }
 0x16a PF: > { %s19_s11 = sadd.s32 1, %s2679_s11   ;;  %s3053_s30 = smov %s2675_s10 }
 0x16b   : > { %p16_p5 = scmp.ge.s32.totalorder %s19_s11, 4   ;;  %s3054_s10 = smov %s3056_s12 }
 0x16d   :  { %18 = sbr.rel (!%p16_p5) target bundleno = 2 (0x2), region = 98 }

</bundles_post_ra>
